<compile_context>
chip_gen: v6e
topology: v6e:2x2x1
jax: 0.10.0
libtpu: 0.0.40
codegen_flags: <defaults>
</compile_context>

<pallas_src>
import functools

import jax
import jax.numpy as jnp
from jax.experimental import pallas as pl
from jax.experimental.pallas import tpu as pltpu

_IN_FEAT = 110          # 100 (z) + 10 (label embedding)
_IN_PAD = 128           # lane-aligned K for the first matmul
_OUT_FEAT = 784         # 28*28 (full last dim of the output -> legal block dim)


def _generator_mlp_kernel(x_ref,
                          w1_ref, b1_ref,
                          w2_ref, b2_ref,
                          w3_ref, b3_ref,
                          w4_ref, b4_ref,
                          out_ref,
                          *, bf16_epilogue):
    """Fused MLP tile: (TN,128) -> 256 -> 512 -> 1024 -> 784.

    Weights bf16 (MXU-native), dot accumulation f32. The bias/LeakyReLU epilogue
    runs in bf16 on chips with bf16 VALUs, f32 otherwise. Final tanh + store f32.
    """
    epi = jnp.bfloat16 if bf16_epilogue else jnp.float32

    def layer(h, w_ref, b_ref):
        acc = jnp.dot(h, w_ref[...], preferred_element_type=jnp.float32)
        v = acc.astype(epi) + b_ref[...].astype(epi)
        v = jnp.maximum(v, v * 0.2)          # LeakyReLU(0.2), exact max form
        return v.astype(jnp.bfloat16)        # bf16 feed for the next MXU pass

    h = x_ref[...]                                        # (TN, 128) bf16
    h = layer(h, w1_ref, b1_ref)                          # (TN, 256)
    h = layer(h, w2_ref, b2_ref)                          # (TN, 512)
    h = layer(h, w3_ref, b3_ref)                          # (TN, 1024)
    acc = jnp.dot(h, w4_ref[...],
                  preferred_element_type=jnp.float32) + b4_ref[...]
    out_ref[...] = jnp.tanh(acc)                          # (TN, 784) f32


def _bf16_epilogue_default():
    """bf16 VALUs exist on v6e/v7x; keep the f32 epilogue on older chips."""
    try:
        kind = jax.devices()[0].device_kind.lower()
    except Exception:
        return True
    return not any(v in kind for v in ("v2", "v3", "v4", "v5"))


def _choose_tiling(n, max_tile):
    """Pick (tile_n, num_tiles, padded_n).

    num_tiles >= 2 whenever the batch allows it (v7x megacore), tile_n matched
    to n (rounded to 16 rows for bf16 sublane packing) to avoid dead MXU work.
    """
    n_g = ((n + 15) // 16) * 16
    num_tiles = pl.cdiv(n_g, max_tile)
    if n_g >= 32:
        num_tiles = max(num_tiles, 2)
    tn = ((pl.cdiv(n_g, num_tiles) + 15) // 16) * 16
    num_tiles = pl.cdiv(n_g, tn)
    return tn, num_tiles, num_tiles * tn


def generator_forward(z, labels, params, *, max_tile_n=512, bf16_epilogue=None):
    """z: (N, 100) f32, labels: (N,) int32. Returns (N, 28, 28) f32."""
    if bf16_epilogue is None:
        bf16_epilogue = _bf16_epilogue_default()

    # --- glue: embedding gather + concat, emitted directly in bf16 ---
    c = jnp.take(params["emb"], labels, axis=0)              # (N, 10)
    x = jnp.concatenate([z, c], axis=1).astype(jnp.bfloat16)  # (N, 110) bf16
    n = x.shape[0]

    tn, num_tiles, n_pad = _choose_tiling(n, max_tile_n)
    # Lane-align K (110 -> 128) and pad the batch up to num_tiles * tn.
    x = jnp.pad(x, ((0, n_pad - n), (0, _IN_PAD - _IN_FEAT)))

    operands = (
        x,
        params["w1"], params["b1"],
        params["w2"], params["b2"],
        params["w3"], params["b3"],
        params["w4"], params["b4"],
    )
    kernel = functools.partial(_generator_mlp_kernel, bf16_epilogue=bf16_epilogue)

    def call(single_buffer_weights):
        def resident_spec(shape):
            # Constant index_map -> DMA'd once, stays VMEM-resident across tiles.
            idx = lambda i: (0,) * len(shape)
            if single_buffer_weights:
                return pl.BlockSpec(shape, idx, pipeline_mode=pl.Buffered(1))
            return pl.BlockSpec(shape, idx)

        in_specs = [pl.BlockSpec((tn, _IN_PAD), lambda i: (i, 0))] + [
            resident_spec(op.shape) for op in operands[1:]
        ]
        return pl.pallas_call(
            kernel,
            out_shape=jax.ShapeDtypeStruct((n_pad, _OUT_FEAT), jnp.float32),
            grid=(num_tiles,),
            in_specs=in_specs,
            out_specs=pl.BlockSpec((tn, _OUT_FEAT), lambda i: (i, 0)),
            compiler_params=pltpu.CompilerParams(
                dimension_semantics=("parallel",),
                vmem_limit_bytes=32 * 1024 * 1024,
            ),
        )(*operands)

    try:
        out = call(single_buffer_weights=True)
    except Exception:
        # pipeline_mode=Buffered(1) not supported on this jax version; the only
        # cost of the fallback is ~3 MiB of extra (unused) weight double-buffer.
        out = call(single_buffer_weights=False)

    # Reshape is a free bitcast; row slice only copies when n was padded.
    return out[:n].reshape(n, 28, 28)


def init_params(key):
    """Parameters matching the PyTorch module (nn.Linear default init:
    U(-1/sqrt(fan_in), 1/sqrt(fan_in)); Embedding: N(0,1)). Weights are stored
    bf16; w1 is K-padded 110 -> 128 with zero rows."""
    ks = jax.random.split(key, 9)

    def linear(kw, kb, fan_in, fan_out):
        bound = float(fan_in) ** -0.5
        w = jax.random.uniform(kw, (fan_in, fan_out), jnp.float32, -bound, bound)
        b = jax.random.uniform(kb, (1, fan_out), jnp.float32, -bound, bound)
        return w, b

    emb = jax.random.normal(ks[0], (10, 10), jnp.float32)
    w1, b1 = linear(ks[1], ks[2], _IN_FEAT, 256)
    w2, b2 = linear(ks[3], ks[4], 256, 512)
    w3, b3 = linear(ks[5], ks[6], 512, 1024)
    w4, b4 = linear(ks[7], ks[8], 1024, _OUT_FEAT)

    w1 = jnp.pad(w1, ((0, _IN_PAD - _IN_FEAT), (0, 0)))      # (128, 256)

    return dict(
        emb=emb,
        w1=w1.astype(jnp.bfloat16), b1=b1,
        w2=w2.astype(jnp.bfloat16), b2=b2,
        w3=w3.astype(jnp.bfloat16), b3=b3,
        w4=w4.astype(jnp.bfloat16), b4=b4,
    )


def _reference_forward(z, labels, p):
    """Pure-JAX reference (f32 math on the same bf16-quantized weights)."""
    c = jnp.take(p["emb"], labels, axis=0)
    x = jnp.concatenate([z, c], axis=1)

    def leaky(v):
        return jnp.where(v >= 0.0, v, 0.2 * v)

    w1 = p["w1"].astype(jnp.float32)[:_IN_FEAT]       # drop K padding rows
    w2 = p["w2"].astype(jnp.float32)
    w3 = p["w3"].astype(jnp.float32)
    w4 = p["w4"].astype(jnp.float32)

    h = leaky(x @ w1 + p["b1"])
    h = leaky(h @ w2 + p["b2"])
    h = leaky(h @ w3 + p["b3"])
    h = jnp.tanh(h @ w4 + p["b4"])
    return h.reshape(x.shape[0], 28, 28)


if __name__ == "__main__":
    key = jax.random.PRNGKey(0)
    k_param, k_z, k_lab, k_z2 = jax.random.split(key, 4)

    params = init_params(k_param)

    # Small case (single tile).
    batch = 8
    z = jax.random.normal(k_z, (batch, 100), jnp.float32)
    labels = jax.random.randint(k_lab, (batch,), 0, 10, jnp.int32)
    out = jax.block_until_ready(generator_forward(z, labels, params))
    ref = _reference_forward(z, labels, params)
    assert out.shape == (batch, 28, 28), out.shape
    assert jnp.allclose(out, ref, atol=5e-2, rtol=5e-2), float(
        jnp.max(jnp.abs(out - ref)))

    # Spec-sized case (batch 100, like the original script): exercises the
    # multi-tile / megacore path and the padded-batch tail.
    batch2 = 100
    z2 = jax.random.normal(k_z2, (batch2, 100), jnp.float32)
    labels2 = jnp.asarray([i for i in range(10) for _ in range(10)], jnp.int32)
    out2 = jax.block_until_ready(generator_forward(z2, labels2, params))
    ref2 = _reference_forward(z2, labels2, params)
    assert out2.shape == (batch2, 28, 28), out2.shape
    assert jnp.allclose(out2, ref2, atol=5e-2, rtol=5e-2), float(
        jnp.max(jnp.abs(out2 - ref2)))

    print("KERNEL_OK")
</pallas_src>

<mosaic_0001>
module attributes {stable_mosaic.version = 11 : i64} {
  func.func @_generator_mlp_kernel(%arg0: i32, %arg1: memref<16x128xbf16, #tpu.memory_space<vmem>>, %arg2: memref<128x256xbf16, #tpu.memory_space<vmem>>, %arg3: memref<1x256xf32, #tpu.memory_space<vmem>>, %arg4: memref<256x512xbf16, #tpu.memory_space<vmem>>, %arg5: memref<1x512xf32, #tpu.memory_space<vmem>>, %arg6: memref<512x1024xbf16, #tpu.memory_space<vmem>>, %arg7: memref<1x1024xf32, #tpu.memory_space<vmem>>, %arg8: memref<1024x784xbf16, #tpu.memory_space<vmem>>, %arg9: memref<1x784xf32, #tpu.memory_space<vmem>>, %arg10: memref<16x784xf32, #tpu.memory_space<vmem>>) attributes {dimension_semantics = [#tpu.dimension_semantics<parallel>], iteration_bounds = array<i64: 1>, scalar_prefetch = 0 : i64, scratch_operands = 0 : i64, tpu.core_type = #tpu.core_type<tc>, window_params = [{transform_indices = @transform_0, window_bounds = array<i64: 16, 128>}, {pipeline_mode = #tpu.pipeline_mode<synchronous>, transform_indices = @transform_1, window_bounds = array<i64: 128, 256>}, {pipeline_mode = #tpu.pipeline_mode<synchronous>, transform_indices = @transform_2, window_bounds = array<i64: 1, 256>}, {pipeline_mode = #tpu.pipeline_mode<synchronous>, transform_indices = @transform_3, window_bounds = array<i64: 256, 512>}, {pipeline_mode = #tpu.pipeline_mode<synchronous>, transform_indices = @transform_4, window_bounds = array<i64: 1, 512>}, {pipeline_mode = #tpu.pipeline_mode<synchronous>, transform_indices = @transform_5, window_bounds = array<i64: 512, 1024>}, {pipeline_mode = #tpu.pipeline_mode<synchronous>, transform_indices = @transform_6, window_bounds = array<i64: 1, 1024>}, {pipeline_mode = #tpu.pipeline_mode<synchronous>, transform_indices = @transform_7, window_bounds = array<i64: 1024, 784>}, {pipeline_mode = #tpu.pipeline_mode<synchronous>, transform_indices = @transform_8, window_bounds = array<i64: 1, 784>}, {transform_indices = @transform_9, window_bounds = array<i64: 16, 784>}]} {
    %c0 = arith.constant 0 : index
    %c0_0 = arith.constant 0 : index
    %0 = vector.load %arg1[%c0, %c0_0] : memref<16x128xbf16, #tpu.memory_space<vmem>>, vector<16x128xbf16>
    %c0_1 = arith.constant 0 : index
    %c0_2 = arith.constant 0 : index
    %1 = vector.load %arg2[%c0_1, %c0_2] : memref<128x256xbf16, #tpu.memory_space<vmem>>, vector<128x256xbf16>
    %cst = arith.constant dense<0.000000e+00> : vector<16x256xf32>
    %2 = tpu.matmul %0, %1, %cst {dimension_numbers = #tpu.dot_dimension_numbers<[1], [0], [0], [1], [0, 0, 1, 1], [], []>} : vector<16x128xbf16>, vector<128x256xbf16>, vector<16x256xf32> -> vector<16x256xf32>
    %3 = arith.truncf %2 : vector<16x256xf32> to vector<16x256xbf16>
    %c0_3 = arith.constant 0 : index
    %c0_4 = arith.constant 0 : index
    %4 = vector.load %arg3[%c0_3, %c0_4] : memref<1x256xf32, #tpu.memory_space<vmem>>, vector<1x256xf32>
    %5 = arith.truncf %4 : vector<1x256xf32> to vector<1x256xbf16>
    %6 = vector.broadcast %5 : vector<1x256xbf16> to vector<16x256xbf16>
    %7 = arith.addf %3, %6 : vector<16x256xbf16>
    %cst_5 = arith.constant 2.001950e-01 : bf16
    %8 = vector.broadcast %cst_5 : bf16 to vector<16x256xbf16>
    %9 = arith.mulf %7, %8 : vector<16x256xbf16>
    %10 = arith.maximumf %7, %9 : vector<16x256xbf16>
    %c0_6 = arith.constant 0 : index
    %c0_7 = arith.constant 0 : index
    %11 = vector.load %arg4[%c0_6, %c0_7] : memref<256x512xbf16, #tpu.memory_space<vmem>>, vector<256x512xbf16>
    %cst_8 = arith.constant dense<0.000000e+00> : vector<16x512xf32>
    %12 = tpu.matmul %10, %11, %cst_8 {dimension_numbers = #tpu.dot_dimension_numbers<[1], [0], [0], [1], [0, 0, 1, 1], [], []>} : vector<16x256xbf16>, vector<256x512xbf16>, vector<16x512xf32> -> vector<16x512xf32>
    %13 = arith.truncf %12 : vector<16x512xf32> to vector<16x512xbf16>
    %c0_9 = arith.constant 0 : index
    %c0_10 = arith.constant 0 : index
    %14 = vector.load %arg5[%c0_9, %c0_10] : memref<1x512xf32, #tpu.memory_space<vmem>>, vector<1x512xf32>
    %15 = arith.truncf %14 : vector<1x512xf32> to vector<1x512xbf16>
    %16 = vector.broadcast %15 : vector<1x512xbf16> to vector<16x512xbf16>
    %17 = arith.addf %13, %16 : vector<16x512xbf16>
    %cst_11 = arith.constant 2.001950e-01 : bf16
    %18 = vector.broadcast %cst_11 : bf16 to vector<16x512xbf16>
    %19 = arith.mulf %17, %18 : vector<16x512xbf16>
    %20 = arith.maximumf %17, %19 : vector<16x512xbf16>
    %c0_12 = arith.constant 0 : index
    %c0_13 = arith.constant 0 : index
    %21 = vector.load %arg6[%c0_12, %c0_13] : memref<512x1024xbf16, #tpu.memory_space<vmem>>, vector<512x1024xbf16>
    %cst_14 = arith.constant dense<0.000000e+00> : vector<16x1024xf32>
    %22 = tpu.matmul %20, %21, %cst_14 {dimension_numbers = #tpu.dot_dimension_numbers<[1], [0], [0], [1], [0, 0, 1, 1], [], []>} : vector<16x512xbf16>, vector<512x1024xbf16>, vector<16x1024xf32> -> vector<16x1024xf32>
    %23 = arith.truncf %22 : vector<16x1024xf32> to vector<16x1024xbf16>
    %c0_15 = arith.constant 0 : index
    %c0_16 = arith.constant 0 : index
    %24 = vector.load %arg7[%c0_15, %c0_16] : memref<1x1024xf32, #tpu.memory_space<vmem>>, vector<1x1024xf32>
    %25 = arith.truncf %24 : vector<1x1024xf32> to vector<1x1024xbf16>
    %26 = vector.broadcast %25 : vector<1x1024xbf16> to vector<16x1024xbf16>
    %27 = arith.addf %23, %26 : vector<16x1024xbf16>
    %cst_17 = arith.constant 2.001950e-01 : bf16
    %28 = vector.broadcast %cst_17 : bf16 to vector<16x1024xbf16>
    %29 = arith.mulf %27, %28 : vector<16x1024xbf16>
    %30 = arith.maximumf %27, %29 : vector<16x1024xbf16>
    %c0_18 = arith.constant 0 : index
    %c0_19 = arith.constant 0 : index
    %31 = vector.load %arg8[%c0_18, %c0_19] : memref<1024x784xbf16, #tpu.memory_space<vmem>>, vector<1024x784xbf16>
    %cst_20 = arith.constant dense<0.000000e+00> : vector<16x784xf32>
    %32 = tpu.matmul %30, %31, %cst_20 {dimension_numbers = #tpu.dot_dimension_numbers<[1], [0], [0], [1], [0, 0, 1, 1], [], []>} : vector<16x1024xbf16>, vector<1024x784xbf16>, vector<16x784xf32> -> vector<16x784xf32>
    %c0_21 = arith.constant 0 : index
    %c0_22 = arith.constant 0 : index
    %33 = vector.load %arg9[%c0_21, %c0_22] : memref<1x784xf32, #tpu.memory_space<vmem>>, vector<1x784xf32>
    %34 = vector.broadcast %33 : vector<1x784xf32> to vector<16x784xf32>
    %35 = arith.addf %32, %34 : vector<16x784xf32>
    %36 = math.tanh %35 : vector<16x784xf32>
    %c0_23 = arith.constant 0 : index
    %c0_24 = arith.constant 0 : index
    %37 = vector.load %arg10[%c0_23, %c0_24] : memref<16x784xf32, #tpu.memory_space<vmem>>, vector<16x784xf32>
    tpu.vector_store %arg10[%c0_23, %c0_24], %36 {strides = array<i32>} : memref<16x784xf32, #tpu.memory_space<vmem>>, vector<16x784xf32>,
    return
  }
  func.func @transform_0(%arg0: i32) -> (i32, i32) {
    %c0_i32 = arith.constant 0 : i32
    %c0_i32_0 = arith.constant 0 : i32
    return %arg0, %c0_i32 : i32, i32
  }
  func.func @transform_1(%arg0: i32) -> (i32, i32) {
    %c0_i32 = arith.constant 0 : i32
    %c0_i32_0 = arith.constant 0 : i32
    %c0_i32_1 = arith.constant 0 : i32
    return %c0_i32, %c0_i32_0 : i32, i32
  }
  func.func @transform_2(%arg0: i32) -> (i32, i32) {
    %c0_i32 = arith.constant 0 : i32
    %c0_i32_0 = arith.constant 0 : i32
    %c0_i32_1 = arith.constant 0 : i32
    return %c0_i32, %c0_i32_0 : i32, i32
  }
  func.func @transform_3(%arg0: i32) -> (i32, i32) {
    %c0_i32 = arith.constant 0 : i32
    %c0_i32_0 = arith.constant 0 : i32
    %c0_i32_1 = arith.constant 0 : i32
    return %c0_i32, %c0_i32_0 : i32, i32
  }
  func.func @transform_4(%arg0: i32) -> (i32, i32) {
    %c0_i32 = arith.constant 0 : i32
    %c0_i32_0 = arith.constant 0 : i32
    %c0_i32_1 = arith.constant 0 : i32
    return %c0_i32, %c0_i32_0 : i32, i32
  }
  func.func @transform_5(%arg0: i32) -> (i32, i32) {
    %c0_i32 = arith.constant 0 : i32
    %c0_i32_0 = arith.constant 0 : i32
    %c0_i32_1 = arith.constant 0 : i32
    return %c0_i32, %c0_i32_0 : i32, i32
  }
  func.func @transform_6(%arg0: i32) -> (i32, i32) {
    %c0_i32 = arith.constant 0 : i32
    %c0_i32_0 = arith.constant 0 : i32
    %c0_i32_1 = arith.constant 0 : i32
    return %c0_i32, %c0_i32_0 : i32, i32
  }
  func.func @transform_7(%arg0: i32) -> (i32, i32) {
    %c0_i32 = arith.constant 0 : i32
    %c0_i32_0 = arith.constant 0 : i32
    %c0_i32_1 = arith.constant 0 : i32
    return %c0_i32, %c0_i32_0 : i32, i32
  }
  func.func @transform_8(%arg0: i32) -> (i32, i32) {
    %c0_i32 = arith.constant 0 : i32
    %c0_i32_0 = arith.constant 0 : i32
    %c0_i32_1 = arith.constant 0 : i32
    return %c0_i32, %c0_i32_0 : i32, i32
  }
  func.func @transform_9(%arg0: i32) -> (i32, i32) {
    %c0_i32 = arith.constant 0 : i32
    %c0_i32_0 = arith.constant 0 : i32
    return %arg0, %c0_i32 : i32, i32
  }
}

module attributes {stable_mosaic.version = 11 : i64} {
  func.func @_generator_mlp_kernel(%arg0: i32, %arg1: memref<16x128xbf16, #tpu.memory_space<vmem>>, %arg2: memref<128x256xbf16, #tpu.memory_space<vmem>>, %arg3: memref<1x256xf32, #tpu.memory_space<vmem>>, %arg4: memref<256x512xbf16, #tpu.memory_space<vmem>>, %arg5: memref<1x512xf32, #tpu.memory_space<vmem>>, %arg6: memref<512x1024xbf16, #tpu.memory_space<vmem>>, %arg7: memref<1x1024xf32, #tpu.memory_space<vmem>>, %arg8: memref<1024x784xbf16, #tpu.memory_space<vmem>>, %arg9: memref<1x784xf32, #tpu.memory_space<vmem>>, %arg10: memref<16x784xf32, #tpu.memory_space<vmem>>) attributes {dimension_semantics = [#tpu.dimension_semantics<parallel>], iteration_bounds = array<i64: 1>, scalar_prefetch = 0 : i64, scratch_operands = 0 : i64, tpu.core_type = #tpu.core_type<tc>, window_params = [{transform_indices = @transform_0, window_bounds = array<i64: 16, 128>}, {pipeline_mode = #tpu.pipeline_mode<synchronous>, transform_indices = @transform_1, window_bounds = array<i64: 128, 256>}, {pipeline_mode = #tpu.pipeline_mode<synchronous>, transform_indices = @transform_2, window_bounds = array<i64: 1, 256>}, {pipeline_mode = #tpu.pipeline_mode<synchronous>, transform_indices = @transform_3, window_bounds = array<i64: 256, 512>}, {pipeline_mode = #tpu.pipeline_mode<synchronous>, transform_indices = @transform_4, window_bounds = array<i64: 1, 512>}, {pipeline_mode = #tpu.pipeline_mode<synchronous>, transform_indices = @transform_5, window_bounds = array<i64: 512, 1024>}, {pipeline_mode = #tpu.pipeline_mode<synchronous>, transform_indices = @transform_6, window_bounds = array<i64: 1, 1024>}, {pipeline_mode = #tpu.pipeline_mode<synchronous>, transform_indices = @transform_7, window_bounds = array<i64: 1024, 784>}, {pipeline_mode = #tpu.pipeline_mode<synchronous>, transform_indices = @transform_8, window_bounds = array<i64: 1, 784>}, {transform_indices = @transform_9, window_bounds = array<i64: 16, 784>}]} {
    %c0 = arith.constant 0 : index
    %c0_0 = arith.constant 0 : index
    %0 = vector.load %arg1[%c0, %c0_0] : memref<16x128xbf16, #tpu.memory_space<vmem>>, vector<16x128xbf16>
    %c0_1 = arith.constant 0 : index
    %c0_2 = arith.constant 0 : index
    %1 = vector.load %arg2[%c0_1, %c0_2] : memref<128x256xbf16, #tpu.memory_space<vmem>>, vector<128x256xbf16>
    %cst = arith.constant dense<0.000000e+00> : vector<16x256xf32>
    %2 = tpu.matmul %0, %1, %cst {dimension_numbers = #tpu.dot_dimension_numbers<[1], [0], [0], [1], [0, 0, 1, 1], [], []>} : vector<16x128xbf16>, vector<128x256xbf16>, vector<16x256xf32> -> vector<16x256xf32>
    %3 = arith.truncf %2 : vector<16x256xf32> to vector<16x256xbf16>
    %c0_3 = arith.constant 0 : index
    %c0_4 = arith.constant 0 : index
    %4 = vector.load %arg3[%c0_3, %c0_4] : memref<1x256xf32, #tpu.memory_space<vmem>>, vector<1x256xf32>
    %5 = arith.truncf %4 : vector<1x256xf32> to vector<1x256xbf16>
    %6 = vector.broadcast %5 : vector<1x256xbf16> to vector<16x256xbf16>
    %7 = arith.addf %3, %6 : vector<16x256xbf16>
    %cst_5 = arith.constant 2.001950e-01 : bf16
    %8 = vector.broadcast %cst_5 : bf16 to vector<16x256xbf16>
    %9 = arith.mulf %7, %8 : vector<16x256xbf16>
    %10 = arith.maximumf %7, %9 : vector<16x256xbf16>
    %c0_6 = arith.constant 0 : index
    %c0_7 = arith.constant 0 : index
    %11 = vector.load %arg4[%c0_6, %c0_7] : memref<256x512xbf16, #tpu.memory_space<vmem>>, vector<256x512xbf16>
    %cst_8 = arith.constant dense<0.000000e+00> : vector<16x512xf32>
    %12 = tpu.matmul %10, %11, %cst_8 {dimension_numbers = #tpu.dot_dimension_numbers<[1], [0], [0], [1], [0, 0, 1, 1], [], []>} : vector<16x256xbf16>, vector<256x512xbf16>, vector<16x512xf32> -> vector<16x512xf32>
    %13 = arith.truncf %12 : vector<16x512xf32> to vector<16x512xbf16>
    %c0_9 = arith.constant 0 : index
    %c0_10 = arith.constant 0 : index
    %14 = vector.load %arg5[%c0_9, %c0_10] : memref<1x512xf32, #tpu.memory_space<vmem>>, vector<1x512xf32>
    %15 = arith.truncf %14 : vector<1x512xf32> to vector<1x512xbf16>
    %16 = vector.broadcast %15 : vector<1x512xbf16> to vector<16x512xbf16>
    %17 = arith.addf %13, %16 : vector<16x512xbf16>
    %cst_11 = arith.constant 2.001950e-01 : bf16
    %18 = vector.broadcast %cst_11 : bf16 to vector<16x512xbf16>
    %19 = arith.mulf %17, %18 : vector<16x512xbf16>
    %20 = arith.maximumf %17, %19 : vector<16x512xbf16>
    %c0_12 = arith.constant 0 : index
    %c0_13 = arith.constant 0 : index
    %21 = vector.load %arg6[%c0_12, %c0_13] : memref<512x1024xbf16, #tpu.memory_space<vmem>>, vector<512x1024xbf16>
    %cst_14 = arith.constant dense<0.000000e+00> : vector<16x1024xf32>
    %22 = tpu.matmul %20, %21, %cst_14 {dimension_numbers = #tpu.dot_dimension_numbers<[1], [0], [0], [1], [0, 0, 1, 1], [], []>} : vector<16x512xbf16>, vector<512x1024xbf16>, vector<16x1024xf32> -> vector<16x1024xf32>
    %23 = arith.truncf %22 : vector<16x1024xf32> to vector<16x1024xbf16>
    %c0_15 = arith.constant 0 : index
    %c0_16 = arith.constant 0 : index
    %24 = vector.load %arg7[%c0_15, %c0_16] : memref<1x1024xf32, #tpu.memory_space<vmem>>, vector<1x1024xf32>
    %25 = arith.truncf %24 : vector<1x1024xf32> to vector<1x1024xbf16>
    %26 = vector.broadcast %25 : vector<1x1024xbf16> to vector<16x1024xbf16>
    %27 = arith.addf %23, %26 : vector<16x1024xbf16>
    %cst_17 = arith.constant 2.001950e-01 : bf16
    %28 = vector.broadcast %cst_17 : bf16 to vector<16x1024xbf16>
    %29 = arith.mulf %27, %28 : vector<16x1024xbf16>
    %30 = arith.maximumf %27, %29 : vector<16x1024xbf16>
    %c0_18 = arith.constant 0 : index
    %c0_19 = arith.constant 0 : index
    %31 = vector.load %arg8[%c0_18, %c0_19] : memref<1024x784xbf16, #tpu.memory_space<vmem>>, vector<1024x784xbf16>
    %cst_20 = arith.constant dense<0.000000e+00> : vector<16x784xf32>
    %32 = tpu.matmul %30, %31, %cst_20 {dimension_numbers = #tpu.dot_dimension_numbers<[1], [0], [0], [1], [0, 0, 1, 1], [], []>} : vector<16x1024xbf16>, vector<1024x784xbf16>, vector<16x784xf32> -> vector<16x784xf32>
    %c0_21 = arith.constant 0 : index
    %c0_22 = arith.constant 0 : index
    %33 = vector.load %arg9[%c0_21, %c0_22] : memref<1x784xf32, #tpu.memory_space<vmem>>, vector<1x784xf32>
    %34 = vector.broadcast %33 : vector<1x784xf32> to vector<16x784xf32>
    %35 = arith.addf %32, %34 : vector<16x784xf32>
    %36 = math.tanh %35 : vector<16x784xf32>
    %c0_23 = arith.constant 0 : index
    %c0_24 = arith.constant 0 : index
    %37 = vector.load %arg10[%c0_23, %c0_24] : memref<16x784xf32, #tpu.memory_space<vmem>>, vector<16x784xf32>
    tpu.vector_store %arg10[%c0_23, %c0_24], %36 {strides = array<i32>} : memref<16x784xf32, #tpu.memory_space<vmem>>, vector<16x784xf32>,
    return
  }
  func.func @transform_0(%arg0: i32) -> (i32, i32) {
    %c0_i32 = arith.constant 0 : i32
    %c0_i32_0 = arith.constant 0 : i32
    return %arg0, %c0_i32 : i32, i32
  }
  func.func @transform_1(%arg0: i32) -> (i32, i32) {
    %c0_i32 = arith.constant 0 : i32
    %c0_i32_0 = arith.constant 0 : i32
    %c0_i32_1 = arith.constant 0 : i32
    return %c0_i32, %c0_i32_0 : i32, i32
  }
  func.func @transform_2(%arg0: i32) -> (i32, i32) {
    %c0_i32 = arith.constant 0 : i32
    %c0_i32_0 = arith.constant 0 : i32
    %c0_i32_1 = arith.constant 0 : i32
    return %c0_i32, %c0_i32_0 : i32, i32
  }
  func.func @transform_3(%arg0: i32) -> (i32, i32) {
    %c0_i32 = arith.constant 0 : i32
    %c0_i32_0 = arith.constant 0 : i32
    %c0_i32_1 = arith.constant 0 : i32
    return %c0_i32, %c0_i32_0 : i32, i32
  }
  func.func @transform_4(%arg0: i32) -> (i32, i32) {
    %c0_i32 = arith.constant 0 : i32
    %c0_i32_0 = arith.constant 0 : i32
    %c0_i32_1 = arith.constant 0 : i32
    return %c0_i32, %c0_i32_0 : i32, i32
  }
  func.func @transform_5(%arg0: i32) -> (i32, i32) {
    %c0_i32 = arith.constant 0 : i32
    %c0_i32_0 = arith.constant 0 : i32
    %c0_i32_1 = arith.constant 0 : i32
    return %c0_i32, %c0_i32_0 : i32, i32
  }
  func.func @transform_6(%arg0: i32) -> (i32, i32) {
    %c0_i32 = arith.constant 0 : i32
    %c0_i32_0 = arith.constant 0 : i32
    %c0_i32_1 = arith.constant 0 : i32
    return %c0_i32, %c0_i32_0 : i32, i32
  }
  func.func @transform_7(%arg0: i32) -> (i32, i32) {
    %c0_i32 = arith.constant 0 : i32
    %c0_i32_0 = arith.constant 0 : i32
    %c0_i32_1 = arith.constant 0 : i32
    return %c0_i32, %c0_i32_0 : i32, i32
  }
  func.func @transform_8(%arg0: i32) -> (i32, i32) {
    %c0_i32 = arith.constant 0 : i32
    %c0_i32_0 = arith.constant 0 : i32
    %c0_i32_1 = arith.constant 0 : i32
    return %c0_i32, %c0_i32_0 : i32, i32
  }
  func.func @transform_9(%arg0: i32) -> (i32, i32) {
    %c0_i32 = arith.constant 0 : i32
    %c0_i32_0 = arith.constant 0 : i32
    return %arg0, %c0_i32 : i32, i32
  }
}

</mosaic_0001>

<bundles_post_ra>
// kernel: tpu_custom_call.1
= control target key start
LH: loop header
LB: loop body
LE: loop exit
PB: predicated region body
PF: predicated region fallthrough
CT: control target
= control target key end

     0   :  { %v8042_v2 = vmov 0   ;;  %s10643_s0 = inlined_call_operand.vmem [shape: bf16[16,128], index: 0, kind: input, shape index: {}]   ;;  %s10644_s1 = inlined_call_operand.vmem [shape: bf16[128,256], index: 1, kind: input, shape index: {}]   ;;  %s10645_s2 = inlined_call_operand.vmem [shape: f32[1,256], index: 2, kind: input, shape index: {}]   ;;  %s10646_s3 = inlined_call_operand.vmem [shape: bf16[256,512], index: 3, kind: input, shape index: {}]   ;;  %s10647_s4 = inlined_call_operand.vmem [shape: f32[1,512], index: 4, kind: input, shape index: {}]   ;;  %s10648_s5 = inlined_call_operand.vmem [shape: bf16[512,1024], index: 5, kind: input, shape index: {}]   ;;  %s10649_s6 = inlined_call_operand.vmem [shape: f32[1,1024], index: 6, kind: input, shape index: {}]   ;;  %s10650_s7 = inlined_call_operand.vmem [shape: bf16[1024,784], index: 7, kind: input, shape index: {}]   ;;  %s10651_s8 = inlined_call_operand.vmem [shape: f32[1,784], index: 8, kind: input, shape index: {}]   ;;  %s10652_s9 = inlined_call_operand.hbm [shape: f32[16,784], index: 9, kind: output, shape index: {}]  }
   0x1   :  { %v7231_v0 = vld [vmem:[%s10644_s1 + $0x74] ss:$8 sps:$4 sm:$0xff]   ;;  %v7233_v1 = vld [vmem:[%s10644_s1 + $0x70] ss:$8 sps:$4 sm:$0xff]   ;;  %171 = vmatprep.mubr.bf16.mxu0 %v8042_v2  ;;  %v7234_v3 = vld [vmem:[%s10644_s1 + $0x64] ss:$8 sps:$4 sm:$0xff]  }
   0x2   :  { %139 = vmatprep.subr.bf16.mxu0 %v7231_v0  ;;  %v7236_v4 = vld [vmem:[%s10644_s1 + $0x60] ss:$8 sps:$4 sm:$0xff]   ;;  %v7237_v5 = vld [vmem:[%s10644_s1 + $0x54] ss:$8 sps:$4 sm:$0xff]   ;;  %v7239_v6 = vld [vmem:[%s10644_s1 + $0x50] ss:$8 sps:$4 sm:$0xff]  }
   0x3   :  { %140 = vmatpush1.bf16.msra.mxu0 %v7233_v1  ;;  %v7240_v7 = vld [vmem:[%s10644_s1 + $0x44] ss:$8 sps:$4 sm:$0xff]   ;;  %v7242_v8 = vld [vmem:[%s10644_s1 + $0x40] ss:$8 sps:$4 sm:$0xff]   ;;  %v7243_v9 = vld [vmem:[%s10644_s1 + $0x34] ss:$8 sps:$4 sm:$0xff]  }
   0x4   :  { %141 = vmatprep.subr.bf16.mxu0 %v7234_v3  ;;  %v7256_v10 = vld [vmem:[%s10646_s3 + $0xe4] ss:$16 sps:$4 sm:$0xff]   ;;  %v7245_v11 = vld [vmem:[%s10644_s1 + $0x30] ss:$8 sps:$4 sm:$0xff]   ;;  %v7248_v17 = vld [vmem:[%s10644_s1 + $0x20] ss:$8 sps:$4 sm:$0xff]  }
   0x5   :  { %602 = vmatprep.subr.bf16.mxu1 %v7256_v10  ;;  %v7261_v12 = vld [vmem:[%s10646_s3 + $0xe0] ss:$16 sps:$4 sm:$0xff]   ;;  %v7262_v13 = vld [vmem:[%s10646_s3 + $0xc4] ss:$16 sps:$4 sm:$0xff]   ;;  %v7260_v26 = vld [vmem:[%s10646_s3 + $0xec] ss:$16 sps:$4 sm:$0xff]  }
   0x6   :  { %v7246_v14 = vld [vmem:[%s10644_s1 + $0x24] ss:$8 sps:$4 sm:$0xff]   ;;  %603 = vmatpush1.bf16.msra.mxu1 %v7261_v12  ;;  %v7267_v15 = vld [vmem:[%s10646_s3 + $0xc0] ss:$16 sps:$4 sm:$0xff]   ;;  %v7249_v18 = vld [vmem:[%s10644_s1 + $0x14] ss:$8 sps:$4 sm:$0xff]  }
   0x7   :  { %142 = vmatpush1.bf16.msra.mxu0 %v7236_v4  ;;  %604 = vmatprep.subr.bf16.mxu1 %v7262_v13  ;;  %v7268_v16 = vld [vmem:[%s10646_s3 + $0xa4] ss:$16 sps:$4 sm:$0xff]   ;;  %v7273_v19 = vld [vmem:[%s10646_s3 + $0xa0] ss:$16 sps:$4 sm:$0xff]   ;;  %v7258_v30 = vld [vmem:[%s10646_s3 + $0xe8] ss:$16 sps:$4 sm:$0xff]  }
   0x8   :  { %143 = vmatprep.subr.bf16.mxu0 %v7237_v5  ;;  %v7274_v20 = vld [vmem:[%s10646_s3 + $0x84] ss:$16 sps:$4 sm:$0xff]   ;;  %v7251_v21 = vld [vmem:[%s10644_s1 + $0x10] ss:$8 sps:$4 sm:$0xff]   ;;  %v7254_v25 = vld [vmem:[%s10644_s1] ss:$8 sps:$4 sm:$0xff]  }
   0x9   :  { %v7252_v22 = vld [vmem:[%s10644_s1 + $0x4] ss:$8 sps:$4 sm:$0xff]   ;;  %v7279_v23 = vld [vmem:[%s10646_s3 + $0x80] ss:$16 sps:$4 sm:$0xff]   ;;  %v7264_v34 = vld [vmem:[%s10646_s3 + $0xc8] ss:$16 sps:$4 sm:$0xff]  }
   0xa   :  { %605 = vmatpush1.bf16.msra.mxu1 %v7267_v15  ;;  %v7280_v24 = vld [vmem:[%s10646_s3 + $0x64] ss:$16 sps:$4 sm:$0xff]   ;;  %v7285_v27 = vld [vmem:[%s10646_s3 + $0x60] ss:$16 sps:$4 sm:$0xff]   ;;  %v7266_v31 = vld [vmem:[%s10646_s3 + $0xcc] ss:$16 sps:$4 sm:$0xff]  }
   0xb   :  { %144 = vmatpush1.bf16.msra.mxu0 %v7239_v6  ;;  %606 = vmatprep.subr.bf16.mxu1 %v7268_v16  ;;  %v7286_v28 = vld [vmem:[%s10646_s3 + $0x44] ss:$16 sps:$4 sm:$0xff]   ;;  %v7291_v32 = vld [vmem:[%s10646_s3 + $0x40] ss:$16 sps:$4 sm:$0xff]   ;;  %v7272_v35 = vld [vmem:[%s10646_s3 + $0xac] ss:$16 sps:$4 sm:$0xff]  }
   0xc   :  { %145 = vmatprep.subr.bf16.mxu0 %v7240_v7  ;;  %v7255_v29 = vld [vmem:[%s10643_s0] sm:$0xff]   ;;  %v7270_v38 = vld [vmem:[%s10646_s3 + $0xa8] ss:$16 sps:$4 sm:$0xff]   ;;  %v7278_v39 = vld [vmem:[%s10646_s3 + $0x8c] ss:$16 sps:$4 sm:$0xff]  }
   0xd   :  { %v7292_v33 = vld [vmem:[%s10646_s3 + $0x24] ss:$16 sps:$4 sm:$0xff]   ;;  %v7297_v36 = vld [vmem:[%s10646_s3 + $0x20] ss:$16 sps:$4 sm:$0xff]   ;;  %v7276_v41 = vld [vmem:[%s10646_s3 + $0x88] ss:$16 sps:$4 sm:$0xff]  }
   0xe   :  { %607 = vmatpush1.bf16.msra.mxu1 %v7273_v19  ;;  %v7298_v37 = vld [vmem:[%s10646_s3 + $0x4] ss:$16 sps:$4 sm:$0xff]   ;;  %v7303_v40 = vld [vmem:[%s10646_s3] ss:$16 sps:$4 sm:$0xff]   ;;  %v7284_v43 = vld [vmem:[%s10646_s3 + $0x6c] ss:$16 sps:$4 sm:$0xff]  }
   0xf   :  { %146 = vmatpush1.bf16.msra.mxu0 %v7242_v8  ;;  %608 = vmatprep.subr.bf16.mxu1 %v7274_v20  ;;  %v7304_v42 = vld [vmem:[%s10646_s3 + $0x1e4] ss:$16 sps:$4 sm:$0xff]   ;;  %v7309_v44 = vld [vmem:[%s10646_s3 + $0x1e0] ss:$16 sps:$4 sm:$0xff]   ;;  %v7282_v46 = vld [vmem:[%s10646_s3 + $0x68] ss:$16 sps:$4 sm:$0xff]  }
  0x10   :  { %147 = vmatprep.subr.bf16.mxu0 %v7243_v9  ;;  %v7310_v45 = vld [vmem:[%s10646_s3 + $0x1c4] ss:$16 sps:$4 sm:$0xff]   ;;  %v7290_v47 = vld [vmem:[%s10646_s3 + $0x4c] ss:$16 sps:$4 sm:$0xff]   ;;  %v7315_v48 = vld [vmem:[%s10646_s3 + $0x1c0] ss:$16 sps:$4 sm:$0xff]  }
  0x11   :  { %v7316_v49 = vld [vmem:[%s10646_s3 + $0x1a4] ss:$16 sps:$4 sm:$0xff]   ;;  %v7288_v50 = vld [vmem:[%s10646_s3 + $0x48] ss:$16 sps:$4 sm:$0xff]   ;;  %v7296_v51 = vld [vmem:[%s10646_s3 + $0x2c] ss:$16 sps:$4 sm:$0xff]  }
  0x12   :  { %609 = vmatpush1.bf16.msra.mxu1 %v7279_v23  ;;  %v7321_v52 = vld [vmem:[%s10646_s3 + $0x1a0] ss:$16 sps:$4 sm:$0xff]   ;;  %v7322_v53 = vld [vmem:[%s10646_s3 + $0x184] ss:$16 sps:$4 sm:$0xff]   ;;  %v7294_v54 = vld [vmem:[%s10646_s3 + $0x28] ss:$16 sps:$4 sm:$0xff]  }
  0x13   :  { %148 = vmatpush1.bf16.msra.mxu0 %v7245_v11  ;;  %610 = vmatprep.subr.bf16.mxu1 %v7280_v24  ;;  %v7302_v55 = vld [vmem:[%s10646_s3 + $0xc] ss:$16 sps:$4 sm:$0xff]   ;;  %v7327_v56 = vld [vmem:[%s10646_s3 + $0x180] ss:$16 sps:$4 sm:$0xff]   ;;  %v7300_v57 = vld [vmem:[%s10646_s3 + $0x8] ss:$16 sps:$4 sm:$0xff]  }
  0x14   :  { %149 = vmatprep.subr.bf16.mxu0 %v7246_v14  ;;  %v7308_v58 = vld [vmem:[%s10646_s3 + $0x1ec] ss:$16 sps:$4 sm:$0xff]   ;;  %v7306_v59 = vld [vmem:[%s10646_s3 + $0x1e8] ss:$16 sps:$4 sm:$0xff]   ;;  %v7328_v2 = vld [vmem:[%s10646_s3 + $0x164] ss:$16 sps:$4 sm:$0xff]  }
  0x15   :  { %v7314_v60 = vld [vmem:[%s10646_s3 + $0x1cc] ss:$16 sps:$4 sm:$0xff]   ;;  %v7312_v61 = vld [vmem:[%s10646_s3 + $0x1c8] ss:$16 sps:$4 sm:$0xff]   ;;  %v7333_v5 = vld [vmem:[%s10646_s3 + $0x160] ss:$16 sps:$4 sm:$0xff]  }
  0x16   :  { %611 = vmatpush1.bf16.msra.mxu1 %v7285_v27  ;;  %v7320_v62 = vld [vmem:[%s10646_s3 + $0x1ac] ss:$16 sps:$4 sm:$0xff]   ;;  %v7318_v63 = vld [vmem:[%s10646_s3 + $0x1a8] ss:$16 sps:$4 sm:$0xff]   ;;  %v7334_v6 = vld [vmem:[%s10646_s3 + $0x144] ss:$16 sps:$4 sm:$0xff]  }
  0x17   :  { %150 = vmatpush1.bf16.msra.mxu0 %v7248_v17  ;;  %612 = vmatprep.subr.bf16.mxu1 %v7286_v28  ;;  %v7326_v0 = vld [vmem:[%s10646_s3 + $0x18c] ss:$16 sps:$4 sm:$0xff]   ;;  %v7324_v1 = vld [vmem:[%s10646_s3 + $0x188] ss:$16 sps:$4 sm:$0xff]   ;;  %v7339_v9 = vld [vmem:[%s10646_s3 + $0x140] ss:$16 sps:$4 sm:$0xff]  }
  0x18   :  { %151 = vmatprep.subr.bf16.mxu0 %v7249_v18  ;;  %v7332_v3 = vld [vmem:[%s10646_s3 + $0x16c] ss:$16 sps:$4 sm:$0xff]   ;;  %v7330_v4 = vld [vmem:[%s10646_s3 + $0x168] ss:$16 sps:$4 sm:$0xff]   ;;  %v7340_v10 = vld [vmem:[%s10646_s3 + $0x124] ss:$16 sps:$4 sm:$0xff]  }
  0x19   :  { %v7338_v7 = vld [vmem:[%s10646_s3 + $0x14c] ss:$16 sps:$4 sm:$0xff]   ;;  %v7336_v8 = vld [vmem:[%s10646_s3 + $0x148] ss:$16 sps:$4 sm:$0xff]   ;;  %v7345_v13 = vld [vmem:[%s10646_s3 + $0x120] ss:$16 sps:$4 sm:$0xff]  }
  0x1a   :  { %613 = vmatpush1.bf16.msra.mxu1 %v7291_v32  ;;  %v7344_v11 = vld [vmem:[%s10646_s3 + $0x12c] ss:$16 sps:$4 sm:$0xff]   ;;  %v7342_v12 = vld [vmem:[%s10646_s3 + $0x128] ss:$16 sps:$4 sm:$0xff]   ;;  %v7346_v14 = vld [vmem:[%s10646_s3 + $0x104] ss:$16 sps:$4 sm:$0xff]  }
  0x1b   :  { %152 = vmatpush1.bf16.msra.mxu0 %v7251_v21  ;;  %614 = vmatprep.subr.bf16.mxu1 %v7292_v33  ;;  %v7348_v15 = vld [vmem:[%s10646_s3 + $0x108] ss:$16 sps:$4 sm:$0xff]   ;;  %v7350_v16 = vld [vmem:[%s10646_s3 + $0x10c] ss:$16 sps:$4 sm:$0xff]   ;;  %v7351_v17 = vld [vmem:[%s10646_s3 + $0x100] ss:$16 sps:$4 sm:$0xff]  }
  0x1c   :  { %153 = vmatprep.subr.bf16.mxu0 %v7252_v22  ;;  %v814_v18 = vld [vmem:[%s10648_s5 + $0x1c0] sm:$0xff] }
  0x1d   :  { %v818_v19 = vld [vmem:[%s10648_s5 + $0x1e0] sm:$0xff] }
  0x1e   :  { %615 = vmatpush1.bf16.msra.mxu1 %v7297_v36  ;;  %v942_v20 = vld [vmem:[%s10648_s5 + $0x5c0] sm:$0xff]  ;;  %v6491_v21 = vcombine.low %v814_v18, %v818_v19  ;;  %v6492_v22 = vcombine.high %v814_v18, %v818_v19 }
  0x1f   :  { %154 = vmatpush1.bf16.msra.mxu0 %v7254_v25  ;;  %616 = vmatprep.subr.bf16.mxu1 %v7298_v37  ;;  %v946_v23 = vld [vmem:[%s10648_s5 + $0x5e0] sm:$0xff] }
  0x20   :  { %645 = vmatprep.subr.bf16.mxu0 %v7260_v26  ;;  %v6619_v24 = vcombine.low %v942_v20, %v946_v23  ;;  %v6620_v25 = vcombine.high %v942_v20, %v946_v23  ;;  %v186_v26 = vlaneseq  ;;  %v184_v28 = vld [vmem:[%s10645_s2] sm:$0x3] }
  0x22   :  { %172 = vmatmul.mubr.bf16.vlgmr.msra.gmra.mxu0 %v7255_v29  ;;  %617 = vmatpush1.bf16.msra.mxu1 %v7303_v40  ;;  %v8351_v27 = vshrl.u32 %v186_v26, 7 }
  0x23   :  { %646 = vmatpush1.bf16.msra.mxu0 %v7258_v30  ;;  %618 = vmatprep.subr.bf16.mxu1 %v7304_v42 }
  0x24   :  { %647 = vmatprep.subr.bf16.mxu0 %v7266_v31  ;;  %v8357_v29 = vsub.s32 0, %v8351_v27  ;;  %v8360_v30 = vsub.s32 1, %v8351_v27 }
  0x26   :  { %619 = vmatpush2.bf16.msra.mxu1 %v7309_v44  ;;  %v189_v31 = vrot.slane %v184_v28, %v8357_v29  ;;  %v193_v32 = vrot.slane %v184_v28, %v8360_v30 }
  0x27   :  { %648 = vmatpush1.bf16.msra.mxu0 %v7264_v34  ;;  %620 = vmatprep.subr.bf16.mxu1 %v7310_v45 }
  0x28   :  { %649 = vmatprep.subr.bf16.mxu0 %v7272_v35  ;;  %v196_v33 = vpack.c.bf16 %v189_v31, %v189_v31  ;;  %v197_v34 = vpack.c.bf16 %v193_v32, %v193_v32 }
  0x2a   :  { %621 = vmatpush2.bf16.msra.mxu1 %v7315_v48  ;;  %v199_v35 = vpack.i.b16 %v196_v33, %v196_v33  ;;  %v206_v37 = vpack.i.b16 %v197_v34, %v197_v34  ;;  %v806_v48 = vld [vmem:[%s10648_s5 + $0x180] sm:$0xff] }
  0x2b   :  { %650 = vmatpush1.bf16.msra.mxu0 %v7270_v38  ;;  %622 = vmatprep.subr.bf16.mxu1 %v7316_v49  ;;  %v810_v49 = vld [vmem:[%s10648_s5 + $0x1a0] sm:$0xff] }
  0x2c   :  { %651 = vmatprep.subr.bf16.mxu0 %v7278_v39  ;;  %v204_v39 = vrot.slane %v199_v35, %v8357_v29  ;;  %v211_v42 = vrot.slane %v206_v37, %v8357_v29 }
  0x2e   :  { %623 = vmatpush2.bf16.msra.mxu1 %v7321_v52 }
  0x2f   :  { %652 = vmatpush1.bf16.msra.mxu0 %v7276_v41  ;;  %624 = vmatprep.subr.bf16.mxu1 %v7322_v53 }
  0x30   :  { %653 = vmatprep.subr.bf16.mxu0 %v7284_v43 }
  0x32   :  { %625 = vmatpush2.bf16.msra.mxu1 %v7327_v56  ;;  %v926_v56 = vld [vmem:[%s10648_s5 + $0x540] sm:$0xff] }
  0x33   :  { %654 = vmatpush1.bf16.msra.mxu0 %v7282_v46  ;;  %626 = vmatprep.subr.bf16.mxu1 %v7328_v2 }
  0x34   :  { %655 = vmatprep.subr.bf16.mxu0 %v7290_v47 }
  0x36   :  { %627 = vmatpush2.bf16.msra.mxu1 %v7333_v5 }
  0x37   :  { %656 = vmatpush1.bf16.msra.mxu0 %v7288_v50  ;;  %628 = vmatprep.subr.bf16.mxu1 %v7334_v6  ;;  %v934_v50 = vld [vmem:[%s10648_s5 + $0x580] sm:$0xff] }
  0x38   :  { %657 = vmatprep.subr.bf16.mxu0 %v7296_v51  ;;  %v938_v51 = vld [vmem:[%s10648_s5 + $0x5a0] sm:$0xff] }
  0x3a   :  { %629 = vmatpush2.bf16.msra.mxu1 %v7339_v9 }
  0x3b   :  { %658 = vmatpush1.bf16.msra.mxu0 %v7294_v54  ;;  %630 = vmatprep.subr.bf16.mxu1 %v7340_v10  ;;  %v798_v54 = vld [vmem:[%s10648_s5 + $0x140] sm:$0xff] }
  0x3c   :  { %659 = vmatprep.subr.bf16.mxu0 %v7302_v55  ;;  %v802_v55 = vld [vmem:[%s10648_s5 + $0x160] sm:$0xff] }
  0x3e   :  { %631 = vmatpush2.bf16.msra.mxu1 %v7345_v13 }
  0x3f   :  { %660 = vmatpush1.bf16.msra.mxu0 %v7300_v57  ;;  %632 = vmatprep.subr.bf16.mxu1 %v7346_v14  ;;  %v930_v57 = vld [vmem:[%s10648_s5 + $0x560] sm:$0xff] }
  0x40   :  { %661 = vmatprep.subr.bf16.mxu0 %v7308_v58 }
  0x42   :  { %633 = vmatpush2.bf16.msra.mxu1 %v7351_v17 }
  0x43   :  { %662 = vmatpush2.bf16.msra.mxu0 %v7306_v59  ;;  %2294 = vmatprep.subr.bf16.mxu1 %v6492_v22  ;;  %v6484_v59 = vcombine.high %v806_v48, %v810_v49 }
  0x44   :  { %663 = vmatprep.subr.bf16.mxu0 %v7314_v60  ;;  %v6612_v60 = vcombine.high %v934_v50, %v938_v51 }
  0x47   :  { %664 = vmatpush2.bf16.msra.mxu0 %v7312_v61  ;;  %v6483_v61 = vcombine.low %v806_v48, %v810_v49 }
  0x48   :  { %665 = vmatprep.subr.bf16.mxu0 %v7320_v62  ;;  %v6611_v62 = vcombine.low %v934_v50, %v938_v51 }
  0x4b   :  { %666 = vmatpush2.bf16.msra.mxu0 %v7318_v63 }
  0x4c   :  { %667 = vmatprep.subr.bf16.mxu0 %v7326_v0 }
  0x4f   :  { %668 = vmatpush2.bf16.msra.mxu0 %v7324_v1 }
  0x50   :  { %669 = vmatprep.subr.bf16.mxu0 %v7332_v3 }
  0x53   :  { %670 = vmatpush2.bf16.msra.mxu0 %v7330_v4 }
  0x54   :  { %671 = vmatprep.subr.bf16.mxu0 %v7338_v7 }
  0x57   :  { %672 = vmatpush2.bf16.msra.mxu0 %v7336_v8 }
  0x58   :  { %673 = vmatprep.subr.bf16.mxu0 %v7344_v11 }
  0x5b   :  { %674 = vmatpush2.bf16.msra.mxu0 %v7342_v12 }
  0x5c   :  { %675 = vmatprep.subr.bf16.mxu0 %v7350_v16 }
  0x5f   :  { %676 = vmatpush2.bf16.msra.mxu0 %v7348_v15 }
  0x60   :  { %2337 = vmatprep.subr.bf16.mxu0 %v6620_v25 }
  0xe2   :  { %v173_v36 = vpop.f32.mrf.mxu0 }
  0xe4   :  { %v175_v38 = vpop.f32.mrf.mxu0 }
  0xe6   :  { %v177_v40 = vpop.f32.mrf.mxu0 }
  0xe7   :  { %v182_v41 = vpack.c.bf16 %v177_v40, %v173_v36 }
  0xe8   :  { %v179_v43 = vpop.f32.mrf.mxu0 }
  0xe9   :  { %v212_v44 = vadd.bf16 %v204_v39, %v182_v41  ;;  %v183_v45 = vpack.c.bf16 %v179_v43, %v175_v38 }
  0xeb   :  { %v214_v46 = vmul.bf16 1045249613, %v212_v44  ;;  %v213_v47 = vadd.bf16 %v211_v42, %v183_v45 }
  0xed   :  { %v215_v52 = vmul.bf16 1045249613, %v213_v47  ;;  %v216_v58 = vmax.bf16 %v214_v46, %v212_v44 }
  0xef   :  { %v217_v53 = vmax.bf16 %v215_v52, %v213_v47 }
  0xf1   :  { %634 = vmatprep.mubr.bf16.mxu1 %v217_v53  ;;  %677 = vmatprep.mubr.bf16.mxu0 %v217_v53 }
  0xf2   :  { %635 = vmatmul.mubr.bf16.vlgmr.msra.gmra.mxu1 %v216_v58  ;;  %678 = vmatmul.mubr.bf16.vlgmr.msra.gmra.mxu0 %v216_v58 }
  0xf3   :  { %2295 = vmatpush1.bf16.msra.mxu1 %v6491_v21  ;;  %2338 = vmatpush1.bf16.msra.mxu0 %v6619_v24 }
  0xf4   :  { %14 = vsyncpa [#allocation3], 0  ;;  %2296 = vmatprep.subr.bf16.mxu1 %v6484_v59  ;;  %2339 = vmatprep.subr.bf16.mxu0 %v6612_v60  ;;  %v6476_v63 = vcombine.high %v798_v54, %v802_v55  ;;  %v6604_v0 = vcombine.high %v926_v56, %v930_v57  ;;  %v790_v1 = vld [vmem:[%s10648_s5 + $0x100] sm:$0xff]  ;;  %v6475_v5 = vcombine.low %v798_v54, %v802_v55  ;;  %vm6329_vm0 = vcmask 130048  }
  0xf5   :  { %v794_v2 = vld [vmem:[%s10648_s5 + $0x120] sm:$0xff]  ;;  %v6603_v6 = vcombine.low %v926_v56, %v930_v57 }
  0xf6   :  { %v918_v3 = vld [vmem:[%s10648_s5 + $0x500] sm:$0xff]  ;;  %v6468_v7 = vcombine.high %v790_v1, %v794_v2  ;;  %v6467_v13 = vcombine.low %v790_v1, %v794_v2 }
  0xf7   :  { %v922_v4 = vld [vmem:[%s10648_s5 + $0x520] sm:$0xff]  ;;  %2297 = vmatpush1.bf16.msra.mxu1 %v6483_v61  ;;  %2340 = vmatpush1.bf16.msra.mxu0 %v6611_v62 }
  0xf8   :  { %2298 = vmatprep.subr.bf16.mxu1 %v6476_v63  ;;  %2341 = vmatprep.subr.bf16.mxu0 %v6604_v0  ;;  %v6596_v8 = vcombine.high %v918_v3, %v922_v4  ;;  %v782_v9 = vld [vmem:[%s10648_s5 + $0xc0] sm:$0xff]  ;;  %v6595_v14 = vcombine.low %v918_v3, %v922_v4 }
  0xf9   :  { %v786_v10 = vld [vmem:[%s10648_s5 + $0xe0] sm:$0xff] }
  0xfa   :  { %v910_v11 = vld [vmem:[%s10648_s5 + $0x4c0] sm:$0xff]  ;;  %v6460_v15 = vcombine.high %v782_v9, %v786_v10  ;;  %v6459_v21 = vcombine.low %v782_v9, %v786_v10 }
  0xfb   :  { %v914_v12 = vld [vmem:[%s10648_s5 + $0x4e0] sm:$0xff]  ;;  %2299 = vmatpush1.bf16.msra.mxu1 %v6475_v5  ;;  %2342 = vmatpush1.bf16.msra.mxu0 %v6603_v6 }
  0xfc   :  { %2300 = vmatprep.subr.bf16.mxu1 %v6468_v7  ;;  %2343 = vmatprep.subr.bf16.mxu0 %v6596_v8  ;;  %v6588_v16 = vcombine.high %v910_v11, %v914_v12  ;;  %v774_v17 = vld [vmem:[%s10648_s5 + $0x80] sm:$0xff]  ;;  %v6587_v22 = vcombine.low %v910_v11, %v914_v12 }
  0xfd   :  { %v778_v18 = vld [vmem:[%s10648_s5 + $0xa0] sm:$0xff] }
  0xfe   :  { %v902_v19 = vld [vmem:[%s10648_s5 + $0x480] sm:$0xff]  ;;  %v6452_v23 = vcombine.high %v774_v17, %v778_v18  ;;  %v6451_v32 = vcombine.low %v774_v17, %v778_v18 }
  0xff   :  { %v906_v20 = vld [vmem:[%s10648_s5 + $0x4a0] sm:$0xff]  ;;  %2301 = vmatpush1.bf16.msra.mxu1 %v6467_v13  ;;  %2344 = vmatpush1.bf16.msra.mxu0 %v6595_v14 }
 0x100   :  { %2302 = vmatprep.subr.bf16.mxu1 %v6460_v15  ;;  %2345 = vmatprep.subr.bf16.mxu0 %v6588_v16  ;;  %v6580_v24 = vcombine.high %v902_v19, %v906_v20  ;;  %v766_v25 = vld [vmem:[%s10648_s5 + $0x40] sm:$0xff]  ;;  %v6579_v33 = vcombine.low %v902_v19, %v906_v20 }
 0x101   :  { %v770_v26 = vld [vmem:[%s10648_s5 + $0x60] sm:$0xff] }
 0x102   :  { %v894_v28 = vld [vmem:[%s10648_s5 + $0x440] sm:$0xff]  ;;  %v6444_v34 = vcombine.high %v766_v25, %v770_v26  ;;  %v6443_v40 = vcombine.low %v766_v25, %v770_v26 }
 0x103   :  { %v898_v31 = vld [vmem:[%s10648_s5 + $0x460] sm:$0xff]  ;;  %2303 = vmatpush1.bf16.msra.mxu1 %v6459_v21  ;;  %2346 = vmatpush1.bf16.msra.mxu0 %v6587_v22 }
 0x104   :  { %2304 = vmatprep.subr.bf16.mxu1 %v6452_v23  ;;  %2347 = vmatprep.subr.bf16.mxu0 %v6580_v24  ;;  %v6572_v35 = vcombine.high %v894_v28, %v898_v31  ;;  %v758_v36 = vld [vmem:[%s10648_s5] sm:$0xff]  ;;  %v6571_v41 = vcombine.low %v894_v28, %v898_v31 }
 0x105   :  { %v762_v37 = vld [vmem:[%s10648_s5 + $0x20] sm:$0xff] }
 0x106   :  { %v886_v38 = vld [vmem:[%s10648_s5 + $0x400] sm:$0xff]  ;;  %v6436_v42 = vcombine.high %v758_v36, %v762_v37  ;;  %v6435_v48 = vcombine.low %v758_v36, %v762_v37 }
 0x107   :  { %v890_v39 = vld [vmem:[%s10648_s5 + $0x420] sm:$0xff]  ;;  %2305 = vmatpush1.bf16.msra.mxu1 %v6451_v32  ;;  %2348 = vmatpush1.bf16.msra.mxu0 %v6579_v33 }
 0x108   :  { %2306 = vmatprep.subr.bf16.mxu1 %v6444_v34  ;;  %2349 = vmatprep.subr.bf16.mxu0 %v6572_v35  ;;  %v6564_v43 = vcombine.high %v886_v38, %v890_v39  ;;  %v878_v44 = vld [vmem:[%s10648_s5 + $0x3c0] sm:$0xff]  ;;  %v6563_v49 = vcombine.low %v886_v38, %v890_v39 }
 0x109   :  { %v882_v45 = vld [vmem:[%s10648_s5 + $0x3e0] sm:$0xff] }
 0x10a   :  { %v1006_v46 = vld [vmem:[%s10648_s5 + $0x7c0] sm:$0xff]  ;;  %v6556_v50 = vcombine.high %v878_v44, %v882_v45  ;;  %v6555_v56 = vcombine.low %v878_v44, %v882_v45 }
 0x10b   :  { %v1010_v47 = vld [vmem:[%s10648_s5 + $0x7e0] sm:$0xff]  ;;  %2307 = vmatpush1.bf16.msra.mxu1 %v6443_v40  ;;  %2350 = vmatpush1.bf16.msra.mxu0 %v6571_v41 }
 0x10c   :  { %2308 = vmatprep.subr.bf16.mxu1 %v6436_v42  ;;  %2351 = vmatprep.subr.bf16.mxu0 %v6564_v43  ;;  %v6684_v51 = vcombine.high %v1006_v46, %v1010_v47  ;;  %v870_v52 = vld [vmem:[%s10648_s5 + $0x380] sm:$0xff]  ;;  %v6683_v57 = vcombine.low %v1006_v46, %v1010_v47 }
 0x10d   :  { %v874_v53 = vld [vmem:[%s10648_s5 + $0x3a0] sm:$0xff] }
 0x10e   :  { %v998_v54 = vld [vmem:[%s10648_s5 + $0x780] sm:$0xff]  ;;  %v6548_v58 = vcombine.high %v870_v52, %v874_v53  ;;  %v6547_v0 = vcombine.low %v870_v52, %v874_v53  ;;  %v8566_v53 = vld [vmem:[%s10648_s5 + $0x5e8] sm:$0xff] }
 0x10f   :  { %v1002_v55 = vld [vmem:[%s10648_s5 + $0x7a0] sm:$0xff]  ;;  %2309 = vmatpush1.bf16.msra.mxu1 %v6435_v48  ;;  %2352 = vmatpush1.bf16.msra.mxu0 %v6563_v49  ;;  %v8549_v49 = vld [vmem:[%s10648_s5 + $0x1c8] sm:$0xff] }
 0x110   :  { %2310 = vmatprep.subr.bf16.mxu1 %v6556_v50  ;;  %2353 = vmatprep.subr.bf16.mxu0 %v6684_v51  ;;  %v6676_v59 = vcombine.high %v998_v54, %v1002_v55  ;;  %v862_v60 = vld [vmem:[%s10648_s5 + $0x340] sm:$0xff]  ;;  %v6675_v1 = vcombine.low %v998_v54, %v1002_v55  ;;  %v8554_v50 = vld [vmem:[%s10648_s5 + $0x1e8] sm:$0xff] }
 0x111   :  { %v866_v61 = vld [vmem:[%s10648_s5 + $0x360] sm:$0xff]  ;;  %v8559_v51 = vld [vmem:[%s10648_s5 + $0x5c8] sm:$0xff]  ;;  %v6494_v52 = vcombine.high %v8549_v49, %v8554_v50  ;;  %v6493_v54 = vcombine.low %v8549_v49, %v8554_v50 }
 0x112   :  { %v990_v62 = vld [vmem:[%s10648_s5 + $0x740] sm:$0xff]  ;;  %v6540_v2 = vcombine.high %v862_v60, %v866_v61  ;;  %v6539_v8 = vcombine.low %v862_v60, %v866_v61  ;;  %v6621_v55 = vcombine.low %v8559_v51, %v8566_v53 }
 0x113   :  { %v994_v63 = vld [vmem:[%s10648_s5 + $0x760] sm:$0xff]  ;;  %2311 = vmatpush2.bf16.msra.mxu1 %v6555_v56  ;;  %2354 = vmatpush2.bf16.msra.mxu0 %v6683_v57  ;;  %v6622_v56 = vcombine.high %v8559_v51, %v8566_v53  ;;  %v8575_v57 = vsub.s32 2, %v8351_v27  ;;  %v791_v53 = vld [vmem:[%s10648_s5 + $0x108] sm:$0xff] }
 0x114   :  { %2312 = vmatprep.subr.bf16.mxu1 %v6548_v58  ;;  %2355 = vmatprep.subr.bf16.mxu0 %v6676_v59  ;;  %v6668_v3 = vcombine.high %v990_v62, %v994_v63  ;;  %v854_v4 = vld [vmem:[%s10648_s5 + $0x300] sm:$0xff]  ;;  %v6667_v9 = vcombine.low %v990_v62, %v994_v63  ;;  %v8581_v59 = vsub.s32 3, %v8351_v27 }
 0x115   :  { %v858_v5 = vld [vmem:[%s10648_s5 + $0x320] sm:$0xff] }
 0x116   :  { %v982_v6 = vld [vmem:[%s10648_s5 + $0x700] sm:$0xff]  ;;  %v6532_v10 = vcombine.high %v854_v4, %v858_v5  ;;  %v6531_v16 = vcombine.low %v854_v4, %v858_v5 }
 0x117   :  { %v986_v7 = vld [vmem:[%s10648_s5 + $0x720] sm:$0xff]  ;;  %2313 = vmatpush2.bf16.msra.mxu1 %v6547_v0  ;;  %2356 = vmatpush2.bf16.msra.mxu0 %v6675_v1 }
 0x118   :  { %2314 = vmatprep.subr.bf16.mxu1 %v6540_v2  ;;  %2357 = vmatprep.subr.bf16.mxu0 %v6668_v3  ;;  %v6660_v11 = vcombine.high %v982_v6, %v986_v7  ;;  %v846_v12 = vld [vmem:[%s10648_s5 + $0x2c0] sm:$0xff]  ;;  %v6659_v17 = vcombine.low %v982_v6, %v986_v7 }
 0x119   :  { %v850_v13 = vld [vmem:[%s10648_s5 + $0x2e0] sm:$0xff] }
 0x11a   :  { %v974_v14 = vld [vmem:[%s10648_s5 + $0x6c0] sm:$0xff]  ;;  %v6524_v18 = vcombine.high %v846_v12, %v850_v13  ;;  %v6523_v20 = vcombine.low %v846_v12, %v850_v13 }
 0x11b   :  { %v978_v15 = vld [vmem:[%s10648_s5 + $0x6e0] sm:$0xff]  ;;  %2315 = vmatpush2.bf16.msra.mxu1 %v6539_v8  ;;  %2358 = vmatpush2.bf16.msra.mxu0 %v6667_v9 }
 0x11c   :  { %2316 = vmatprep.subr.bf16.mxu1 %v6532_v10  ;;  %2359 = vmatprep.subr.bf16.mxu0 %v6660_v11  ;;  %v6652_v19 = vcombine.high %v974_v14, %v978_v15  ;;  %v6651_v21 = vcombine.low %v974_v14, %v978_v15  ;;  %v838_v22 = vld [vmem:[%s10648_s5 + $0x280] sm:$0xff] }
 0x11d   :  { %v842_v23 = vld [vmem:[%s10648_s5 + $0x2a0] sm:$0xff] }
 0x11e   :  { %v966_v24 = vld [vmem:[%s10648_s5 + $0x680] sm:$0xff]  ;;  %v6516_v25 = vcombine.high %v838_v22, %v842_v23  ;;  %v6515_v28 = vcombine.low %v838_v22, %v842_v23 }
 0x11f   :  { %2317 = vmatpush2.bf16.msra.mxu1 %v6531_v16  ;;  %2360 = vmatpush2.bf16.msra.mxu0 %v6659_v17  ;;  %v970_v26 = vld [vmem:[%s10648_s5 + $0x6a0] sm:$0xff] }
 0x120   :  { %2318 = vmatprep.subr.bf16.mxu1 %v6524_v18  ;;  %2361 = vmatprep.subr.bf16.mxu0 %v6652_v19  ;;  %v6643_v31 = vcombine.low %v966_v24, %v970_v26  ;;  %v6644_v32 = vcombine.high %v966_v24, %v970_v26  ;;  %v830_v33 = vld [vmem:[%s10648_s5 + $0x240] sm:$0xff] }
 0x121   :  { %v834_v34 = vld [vmem:[%s10648_s5 + $0x260] sm:$0xff] }
 0x122   :  { %v958_v35 = vld [vmem:[%s10648_s5 + $0x640] sm:$0xff]  ;;  %v6508_v36 = vcombine.high %v830_v33, %v834_v34  ;;  %v6507_v38 = vcombine.low %v830_v33, %v834_v34 }
 0x123   :  { %2319 = vmatpush2.bf16.msra.mxu1 %v6523_v20  ;;  %2362 = vmatpush2.bf16.msra.mxu0 %v6651_v21  ;;  %v962_v37 = vld [vmem:[%s10648_s5 + $0x660] sm:$0xff] }
 0x124   :  { %2320 = vmatprep.subr.bf16.mxu1 %v6516_v25  ;;  %2363 = vmatprep.subr.bf16.mxu0 %v6644_v32  ;;  %v6635_v39 = vcombine.low %v958_v35, %v962_v37  ;;  %v6636_v40 = vcombine.high %v958_v35, %v962_v37  ;;  %v822_v41 = vld [vmem:[%s10648_s5 + $0x200] sm:$0xff]  ;;  %v807_v35 = vld [vmem:[%s10648_s5 + $0x188] sm:$0xff] }
 0x125   :  { %v826_v42 = vld [vmem:[%s10648_s5 + $0x220] sm:$0xff]  ;;  %v935_v37 = vld [vmem:[%s10648_s5 + $0x588] sm:$0xff] }
 0x126   :  { %v950_v43 = vld [vmem:[%s10648_s5 + $0x600] sm:$0xff]  ;;  %v6500_v44 = vcombine.high %v822_v41, %v826_v42  ;;  %v6499_v46 = vcombine.low %v822_v41, %v826_v42 }
 0x127   :  { %2321 = vmatpush2.bf16.msra.mxu1 %v6515_v28  ;;  %2364 = vmatpush2.bf16.msra.mxu0 %v6643_v31  ;;  %v954_v45 = vld [vmem:[%s10648_s5 + $0x620] sm:$0xff] }
 0x128   :  { %2322 = vmatprep.subr.bf16.mxu1 %v6508_v36  ;;  %2365 = vmatprep.subr.bf16.mxu0 %v6636_v40  ;;  %v6627_v47 = vcombine.low %v950_v43, %v954_v45  ;;  %v6628_v48 = vcombine.high %v950_v43, %v954_v45  ;;  %v692_v58 = vld [vmem:[%s10647_s4] sm:$0xf]  ;;  %v811_v36 = vld [vmem:[%s10648_s5 + $0x1a8] sm:$0xff] }
 0x129   :  { %v697_v60 = vrot.slane %v692_v58, %v8357_v29  ;;  %v705_v61 = vrot.slane %v692_v58, %v8575_v57  ;;  %v701_v62 = vrot.slane %v692_v58, %v8360_v30  ;;  %v709_v63 = vrot.slane %v692_v58, %v8581_v59  ;;  %v799_v43 = vld [vmem:[%s10648_s5 + $0x148] sm:$0xff] }
 0x12a   :  { %v6485_v49 = vcombine.low %v807_v35, %v811_v36 }
 0x12b   :  { %2323 = vmatpush2.bf16.msra.mxu1 %v6507_v38  ;;  %2366 = vmatpush2.bf16.msra.mxu0 %v6635_v39  ;;  %v714_v0 = vpack.c.bf16 %v697_v60, %v697_v60  ;;  %v716_v1 = vpack.c.bf16 %v705_v61, %v705_v61  ;;  %v715_v2 = vpack.c.bf16 %v701_v62, %v701_v62  ;;  %v939_v38 = vld [vmem:[%s10648_s5 + $0x5a8] sm:$0xff] }
 0x12c   :  { %2324 = vmatprep.subr.bf16.mxu1 %v6500_v44  ;;  %2367 = vmatprep.subr.bf16.mxu0 %v6628_v48  ;;  %v717_v3 = vpack.c.bf16 %v709_v63, %v709_v63  ;;  %v6486_v44 = vcombine.high %v807_v35, %v811_v36  ;;  %v6614_v45 = vcombine.high %v935_v37, %v939_v38  ;;  %v931_v48 = vld [vmem:[%s10648_s5 + $0x568] sm:$0xff] }
 0x12d   :  { %v719_v4 = vpack.i.b16 %v714_v0, %v714_v0  ;;  %v733_v5 = vpack.i.b16 %v716_v1, %v716_v1  ;;  %v726_v8 = vpack.i.b16 %v715_v2, %v715_v2  ;;  %v6613_v50 = vcombine.low %v935_v37, %v939_v38  ;;  %v783_v63 = vld [vmem:[%s10648_s5 + $0xc8] sm:$0xff] }
 0x12e   :  { %v740_v9 = vpack.i.b16 %v717_v3, %v717_v3  ;;  %v787_v0 = vld [vmem:[%s10648_s5 + $0xe8] sm:$0xff] }
 0x12f   :  { %2325 = vmatpush2.bf16.msra.mxu1 %v6499_v46  ;;  %2368 = vmatpush2.bf16.msra.mxu0 %v6627_v47  ;;  %v724_v12 = vrot.slane %v719_v4, %v8357_v29  ;;  %v738_v13 = vrot.slane %v733_v5, %v8357_v29  ;;  %v731_v18 = vrot.slane %v726_v8, %v8357_v29  ;;  %v803_v46 = vld [vmem:[%s10648_s5 + $0x168] sm:$0xff] }
 0x130   :  { %2380 = vmatprep.subr.bf16.mxu1 %v6494_v52  ;;  %2423 = vmatprep.subr.bf16.mxu0 %v6622_v56  ;;  %v745_v19 = vrot.slane %v740_v9, %v8357_v29  ;;  %v927_v47 = vld [vmem:[%s10648_s5 + $0x548] sm:$0xff]  ;;  %v6478_v51 = vcombine.high %v799_v43, %v803_v46  ;;  %v6477_v58 = vcombine.low %v799_v43, %v803_v46 }
 0x131   :  { %v6606_v52 = vcombine.high %v927_v47, %v931_v48  ;;  %v795_v56 = vld [vmem:[%s10648_s5 + $0x128] sm:$0xff]  ;;  %v6605_v60 = vcombine.low %v927_v47, %v931_v48  ;;  %v6462_v5 = vcombine.high %v783_v63, %v787_v0 }
 0x132   :  { %v6470_v61 = vcombine.high %v791_v53, %v795_v56  ;;  %v911_v1 = vld [vmem:[%s10648_s5 + $0x4c8] sm:$0xff]  ;;  %v6469_v3 = vcombine.low %v791_v53, %v795_v56 }
 0x133   :  { %v915_v2 = vld [vmem:[%s10648_s5 + $0x4e8] sm:$0xff] }
 0x134   :  { %v779_v8 = vld [vmem:[%s10648_s5 + $0xa8] sm:$0xff] }
 0x135   :  { %v903_v9 = vld [vmem:[%s10648_s5 + $0x488] sm:$0xff] }
 0x136   :  { %v883_v35 = vld [vmem:[%s10648_s5 + $0x3e8] sm:$0xff] }
 0x137   :  { %v1007_v36 = vld [vmem:[%s10648_s5 + $0x7c8] sm:$0xff] }
 0x138   :  { %v1011_v37 = vld [vmem:[%s10648_s5 + $0x7e8] sm:$0xff] }
 0x139   :  { %v871_v46 = vld [vmem:[%s10648_s5 + $0x388] sm:$0xff] }
 0x13a   :  { %v875_v47 = vld [vmem:[%s10648_s5 + $0x3a8] sm:$0xff] }
 0x13b   :  { %v999_v48 = vld [vmem:[%s10648_s5 + $0x788] sm:$0xff] }
 0x13c   :  { %v863_v56 = vld [vmem:[%s10648_s5 + $0x348] sm:$0xff] }
 0x1b2   :  { %v636_v6 = vpop.f32.mrf.mxu1  ;;  %v679_v7 = vpop.f32.mrf.mxu0 }
 0x1b4   :  { %v638_v10 = vpop.f32.mrf.mxu1  ;;  %v681_v11 = vpop.f32.mrf.mxu0 }
 0x1b6   :  { %v640_v14 = vpop.f32.mrf.mxu1  ;;  %v683_v15 = vpop.f32.mrf.mxu0 }
 0x1b7   :  { %v688_v16 = vpack.c.bf16 %v640_v14, %v636_v6  ;;  %v690_v17 = vpack.c.bf16 %v683_v15, %v679_v7  ;;  %v6590_v6 = vcombine.high %v911_v1, %v915_v2  ;;  %v775_v7 = vld [vmem:[%s10648_s5 + $0x88] sm:$0xff] }
 0x1b8   :  { %v642_v20 = vpop.f32.mrf.mxu1  ;;  %v685_v21 = vpop.f32.mrf.mxu0  ;;  %v767_v15 = vld [vmem:[%s10648_s5 + $0x48] sm:$0xff] }
 0x1b9   :  { %v746_v22 = vadd.bf16 %v724_v12, %v688_v16  ;;  %v748_v23 = vadd.bf16 %v738_v13, %v690_v17  ;;  %v689_v24 = vpack.c.bf16 %v642_v20, %v638_v10  ;;  %v691_v25 = vpack.c.bf16 %v685_v21, %v681_v11  ;;  %v907_v10 = vld [vmem:[%s10648_s5 + $0x4a8] sm:$0xff] }
 0x1ba   :  { %v6461_v11 = vcombine.low %v783_v63, %v787_v0  ;;  %v6589_v12 = vcombine.low %v911_v1, %v915_v2  ;;  %v6454_v13 = vcombine.high %v775_v7, %v779_v8  ;;  %v6582_v14 = vcombine.high %v903_v9, %v907_v10  ;;  %v771_v16 = vld [vmem:[%s10648_s5 + $0x68] sm:$0xff] }
 0x1bb   :  { %v747_v26 = vadd.bf16 %v731_v18, %v689_v24  ;;  %v749_v28 = vadd.bf16 %v745_v19, %v691_v25  ;;  %v750_v31 = vmul.bf16 1045249613, %v746_v22  ;;  %v752_v32 = vmul.bf16 1045249613, %v748_v23  ;;  %v895_v17 = vld [vmem:[%s10648_s5 + $0x448] sm:$0xff] }
 0x1bc   :  { %v899_v18 = vld [vmem:[%s10648_s5 + $0x468] sm:$0xff]  ;;  %v6453_v19 = vcombine.low %v775_v7, %v779_v8  ;;  %v6581_v20 = vcombine.low %v903_v9, %v907_v10  ;;  %v6446_v21 = vcombine.high %v767_v15, %v771_v16 }
 0x1bd   :  { %v751_v33 = vmul.bf16 1045249613, %v747_v26  ;;  %v753_v34 = vmul.bf16 1045249613, %v749_v28  ;;  %v8607_v41 = vmax.bf16 %v750_v31, %v746_v22  ;;  %v8609_v42 = vmax.bf16 %v752_v32, %v748_v23  ;;  %v759_v23 = vld [vmem:[%s10648_s5 + $0x8] sm:$0xff] }
 0x1be   :  { %v6574_v22 = vcombine.high %v895_v17, %v899_v18  ;;  %v763_v24 = vld [vmem:[%s10648_s5 + $0x28] sm:$0xff]  ;;  %v6573_v31 = vcombine.low %v895_v17, %v899_v18 }
 0x1bf   :  { %v8603_v39 = vmax.bf16 %v751_v33, %v747_v26  ;;  %v8605_v40 = vmax.bf16 %v753_v34, %v749_v28  ;;  %v887_v25 = vld [vmem:[%s10648_s5 + $0x408] sm:$0xff]  ;;  %v6445_v28 = vcombine.low %v767_v15, %v771_v16  ;;  %v6438_v32 = vcombine.high %v759_v23, %v763_v24 }
 0x1c0   :  { %v891_v26 = vld [vmem:[%s10648_s5 + $0x428] sm:$0xff]  ;;  %v6437_v38 = vcombine.low %v759_v23, %v763_v24 }
 0x1c1   :  { %2326 = vmatprep.mubr.bf16.mxu1 %v8603_v39  ;;  %2369 = vmatprep.mubr.bf16.mxu0 %v8605_v40  ;;  %v6566_v33 = vcombine.high %v887_v25, %v891_v26  ;;  %v879_v34 = vld [vmem:[%s10648_s5 + $0x3c8] sm:$0xff]  ;;  %v6565_v43 = vcombine.low %v887_v25, %v891_v26 }
 0x1c2   :  { %2327 = vmatmul.mubr.bf16.vlgmr.msra.gmra.mxu1 %v8607_v41  ;;  %2370 = vmatmul.mubr.bf16.vlgmr.msra.gmra.mxu0 %v8609_v42  ;;  %v855_v0 = vld [vmem:[%s10648_s5 + $0x308] sm:$0xff] }
 0x1c3   :  { %2381 = vmatpush1.bf16.msra.mxu1 %v6493_v54  ;;  %2424 = vmatpush1.bf16.msra.mxu0 %v6621_v55  ;;  %v919_v54 = vld [vmem:[%s10648_s5 + $0x508] sm:$0xff] }
 0x1c4   :  { %2412 = vmatprep.mubr.bf16.mxu1 %v8603_v39  ;;  %2455 = vmatprep.mubr.bf16.mxu0 %v8605_v40  ;;  %v923_v55 = vld [vmem:[%s10648_s5 + $0x528] sm:$0xff] }
 0x1c5   :  { %2382 = vmatprep.subr.bf16.mxu1 %v6486_v44  ;;  %2425 = vmatprep.subr.bf16.mxu0 %v6614_v45  ;;  %v6598_v62 = vcombine.high %v919_v54, %v923_v55  ;;  %v6597_v4 = vcombine.low %v919_v54, %v923_v55  ;;  %v6558_v44 = vcombine.high %v879_v34, %v883_v35  ;;  %v867_v54 = vld [vmem:[%s10648_s5 + $0x368] sm:$0xff] }
 0x1c6   :  { %v6686_v45 = vcombine.high %v1007_v36, %v1011_v37  ;;  %v991_v55 = vld [vmem:[%s10648_s5 + $0x748] sm:$0xff] }
 0x1c7   :  { %2383 = vmatpush1.bf16.msra.mxu1 %v6485_v49  ;;  %2426 = vmatpush1.bf16.msra.mxu0 %v6613_v50  ;;  %v1003_v49 = vld [vmem:[%s10648_s5 + $0x7a8] sm:$0xff]  ;;  %v6557_v50 = vcombine.low %v879_v34, %v883_v35 }
 0x1c8   :  { %2384 = vmatprep.subr.bf16.mxu1 %v6478_v51  ;;  %2427 = vmatprep.subr.bf16.mxu0 %v6606_v52  ;;  %v6685_v51 = vcombine.low %v1007_v36, %v1011_v37  ;;  %v6550_v52 = vcombine.high %v871_v46, %v875_v47  ;;  %v6678_v53 = vcombine.high %v999_v48, %v1003_v49  ;;  %v859_v1 = vld [vmem:[%s10648_s5 + $0x328] sm:$0xff] }
 0x1c9   :  { %v983_v2 = vld [vmem:[%s10648_s5 + $0x708] sm:$0xff] }
 0x1ca   :  { %v847_v8 = vld [vmem:[%s10648_s5 + $0x2c8] sm:$0xff] }
 0x1cb   :  { %2385 = vmatpush1.bf16.msra.mxu1 %v6477_v58  ;;  %2428 = vmatpush1.bf16.msra.mxu0 %v6605_v60  ;;  %v995_v58 = vld [vmem:[%s10648_s5 + $0x768] sm:$0xff]  ;;  %v6549_v60 = vcombine.low %v871_v46, %v875_v47  ;;  %v816_v47 = vld [vmem:[%s10648_s5 + $0x1d0] sm:$0xff] }
 0x1cc   :  { %2386 = vmatprep.subr.bf16.mxu1 %v6470_v61  ;;  %2429 = vmatprep.subr.bf16.mxu0 %v6598_v62  ;;  %v6677_v61 = vcombine.low %v999_v48, %v1003_v49  ;;  %v6542_v62 = vcombine.high %v863_v56, %v867_v54  ;;  %v6670_v63 = vcombine.high %v991_v55, %v995_v58  ;;  %v851_v9 = vld [vmem:[%s10648_s5 + $0x2e8] sm:$0xff]  ;;  %v820_v48 = vld [vmem:[%s10648_s5 + $0x1f0] sm:$0xff] }
 0x1cd   :  { %v975_v10 = vld [vmem:[%s10648_s5 + $0x6c8] sm:$0xff]  ;;  %v944_v49 = vld [vmem:[%s10648_s5 + $0x5d0] sm:$0xff] }
 0x1ce   :  { %v839_v16 = vld [vmem:[%s10648_s5 + $0x288] sm:$0xff] }
 0x1cf   :  { %2387 = vmatpush1.bf16.msra.mxu1 %v6469_v3  ;;  %2430 = vmatpush1.bf16.msra.mxu0 %v6597_v4  ;;  %v987_v3 = vld [vmem:[%s10648_s5 + $0x728] sm:$0xff]  ;;  %v6541_v4 = vcombine.low %v863_v56, %v867_v54  ;;  %v808_v54 = vld [vmem:[%s10648_s5 + $0x190] sm:$0xff] }
 0x1d0   :  { %2388 = vmatprep.subr.bf16.mxu1 %v6462_v5  ;;  %2431 = vmatprep.subr.bf16.mxu0 %v6590_v6  ;;  %v6669_v5 = vcombine.low %v991_v55, %v995_v58  ;;  %v6534_v6 = vcombine.high %v855_v0, %v859_v1  ;;  %v6662_v7 = vcombine.high %v983_v2, %v987_v3  ;;  %v843_v17 = vld [vmem:[%s10648_s5 + $0x2a8] sm:$0xff]  ;;  %v812_v55 = vld [vmem:[%s10648_s5 + $0x1b0] sm:$0xff] }
 0x1d1   :  { %v967_v18 = vld [vmem:[%s10648_s5 + $0x688] sm:$0xff]  ;;  %v936_v58 = vld [vmem:[%s10648_s5 + $0x590] sm:$0xff] }
 0x1d2   :  { %v831_v24 = vld [vmem:[%s10648_s5 + $0x248] sm:$0xff] }
 0x1d3   :  { %2389 = vmatpush1.bf16.msra.mxu1 %v6461_v11  ;;  %2432 = vmatpush1.bf16.msra.mxu0 %v6589_v12  ;;  %v979_v11 = vld [vmem:[%s10648_s5 + $0x6e8] sm:$0xff]  ;;  %v6533_v12 = vcombine.low %v855_v0, %v859_v1  ;;  %v800_v1 = vld [vmem:[%s10648_s5 + $0x150] sm:$0xff] }
 0x1d4   :  { %2390 = vmatprep.subr.bf16.mxu1 %v6454_v13  ;;  %2433 = vmatprep.subr.bf16.mxu0 %v6582_v14  ;;  %v6661_v13 = vcombine.low %v983_v2, %v987_v3  ;;  %v6526_v14 = vcombine.high %v847_v8, %v851_v9  ;;  %v6654_v15 = vcombine.high %v975_v10, %v979_v11  ;;  %v835_v25 = vld [vmem:[%s10648_s5 + $0x268] sm:$0xff]  ;;  %v804_v2 = vld [vmem:[%s10648_s5 + $0x170] sm:$0xff] }
 0x1d5   :  { %v959_v26 = vld [vmem:[%s10648_s5 + $0x648] sm:$0xff]  ;;  %v928_v3 = vld [vmem:[%s10648_s5 + $0x550] sm:$0xff] }
 0x1d6   :  { %v823_v35 = vld [vmem:[%s10648_s5 + $0x208] sm:$0xff] }
 0x1d7   :  { %2391 = vmatpush1.bf16.msra.mxu1 %v6453_v19  ;;  %2434 = vmatpush1.bf16.msra.mxu0 %v6581_v20  ;;  %v971_v19 = vld [vmem:[%s10648_s5 + $0x6a8] sm:$0xff]  ;;  %v6525_v20 = vcombine.low %v847_v8, %v851_v9  ;;  %v792_v9 = vld [vmem:[%s10648_s5 + $0x110] sm:$0xff] }
 0x1d8   :  { %2392 = vmatprep.subr.bf16.mxu1 %v6446_v21  ;;  %2435 = vmatprep.subr.bf16.mxu0 %v6574_v22  ;;  %v6653_v21 = vcombine.low %v975_v10, %v979_v11  ;;  %v6518_v22 = vcombine.high %v839_v16, %v843_v17  ;;  %v6646_v23 = vcombine.high %v967_v18, %v971_v19  ;;  %v827_v36 = vld [vmem:[%s10648_s5 + $0x228] sm:$0xff]  ;;  %v796_v10 = vld [vmem:[%s10648_s5 + $0x130] sm:$0xff] }
 0x1d9   :  { %v951_v37 = vld [vmem:[%s10648_s5 + $0x608] sm:$0xff]  ;;  %v920_v11 = vld [vmem:[%s10648_s5 + $0x510] sm:$0xff] }
 0x1db   :  { %2393 = vmatpush1.bf16.msra.mxu1 %v6445_v28  ;;  %2436 = vmatpush1.bf16.msra.mxu0 %v6573_v31  ;;  %v963_v28 = vld [vmem:[%s10648_s5 + $0x668] sm:$0xff]  ;;  %v6517_v31 = vcombine.low %v839_v16, %v843_v17  ;;  %v784_v17 = vld [vmem:[%s10648_s5 + $0xd0] sm:$0xff] }
 0x1dc   :  { %2394 = vmatprep.subr.bf16.mxu1 %v6438_v32  ;;  %2437 = vmatprep.subr.bf16.mxu0 %v6566_v33  ;;  %v6645_v32 = vcombine.low %v967_v18, %v971_v19  ;;  %v6510_v33 = vcombine.high %v831_v24, %v835_v25  ;;  %v6638_v34 = vcombine.high %v959_v26, %v963_v28  ;;  %v788_v18 = vld [vmem:[%s10648_s5 + $0xf0] sm:$0xff] }
 0x1dd   :  { %v912_v19 = vld [vmem:[%s10648_s5 + $0x4d0] sm:$0xff] }
 0x1df   :  { %2395 = vmatpush1.bf16.msra.mxu1 %v6437_v38  ;;  %2438 = vmatpush1.bf16.msra.mxu0 %v6565_v43  ;;  %v955_v38 = vld [vmem:[%s10648_s5 + $0x628] sm:$0xff]  ;;  %v6509_v43 = vcombine.low %v831_v24, %v835_v25  ;;  %v776_v25 = vld [vmem:[%s10648_s5 + $0x90] sm:$0xff] }
 0x1e0   :  { %2396 = vmatprep.subr.bf16.mxu1 %v6558_v44  ;;  %2439 = vmatprep.subr.bf16.mxu0 %v6686_v45  ;;  %v6637_v44 = vcombine.low %v959_v26, %v963_v28  ;;  %v6502_v45 = vcombine.high %v823_v35, %v827_v36  ;;  %v6630_v46 = vcombine.high %v951_v37, %v955_v38  ;;  %v780_v26 = vld [vmem:[%s10648_s5 + $0xb0] sm:$0xff] }
 0x1e1   :  { %v904_v28 = vld [vmem:[%s10648_s5 + $0x490] sm:$0xff] }
 0x1e3   :  { %2397 = vmatpush2.bf16.msra.mxu1 %v6557_v50  ;;  %2440 = vmatpush2.bf16.msra.mxu0 %v6685_v51  ;;  %v948_v50 = vld [vmem:[%s10648_s5 + $0x5f0] sm:$0xff]  ;;  %v6501_v51 = vcombine.low %v823_v35, %v827_v36 }
 0x1e4   :  { %2398 = vmatprep.subr.bf16.mxu1 %v6550_v52  ;;  %2441 = vmatprep.subr.bf16.mxu0 %v6678_v53  ;;  %v6629_v52 = vcombine.low %v951_v37, %v955_v38  ;;  %v6496_v53 = vcombine.high %v816_v47, %v820_v48  ;;  %v6624_v56 = vcombine.high %v944_v49, %v948_v50  ;;  %v768_v36 = vld [vmem:[%s10648_s5 + $0x50] sm:$0xff] }
 0x1e5   :  { %v772_v37 = vld [vmem:[%s10648_s5 + $0x70] sm:$0xff] }
 0x1e6   :  { %v896_v38 = vld [vmem:[%s10648_s5 + $0x450] sm:$0xff] }
 0x1e7   :  { %2399 = vmatpush2.bf16.msra.mxu1 %v6549_v60  ;;  %2442 = vmatpush2.bf16.msra.mxu0 %v6677_v61  ;;  %v940_v60 = vld [vmem:[%s10648_s5 + $0x5b0] sm:$0xff]  ;;  %v6495_v61 = vcombine.low %v816_v47, %v820_v48 }
 0x1e8   :  { %2400 = vmatprep.subr.bf16.mxu1 %v6542_v62  ;;  %2443 = vmatprep.subr.bf16.mxu0 %v6670_v63  ;;  %v6623_v62 = vcombine.low %v944_v49, %v948_v50  ;;  %v6488_v63 = vcombine.high %v808_v54, %v812_v55  ;;  %v6616_v0 = vcombine.high %v936_v58, %v940_v60  ;;  %v760_v48 = vld [vmem:[%s10648_s5 + $0x10] sm:$0xff] }
 0x1e9   :  { %v764_v49 = vld [vmem:[%s10648_s5 + $0x30] sm:$0xff] }
 0x1ea   :  { %v888_v50 = vld [vmem:[%s10648_s5 + $0x410] sm:$0xff] }
 0x1eb   :  { %2401 = vmatpush2.bf16.msra.mxu1 %v6541_v4  ;;  %2444 = vmatpush2.bf16.msra.mxu0 %v6669_v5  ;;  %v932_v4 = vld [vmem:[%s10648_s5 + $0x570] sm:$0xff]  ;;  %v6487_v5 = vcombine.low %v808_v54, %v812_v55 }
 0x1ec   :  { %2402 = vmatprep.subr.bf16.mxu1 %v6534_v6  ;;  %2445 = vmatprep.subr.bf16.mxu0 %v6662_v7  ;;  %v6615_v6 = vcombine.low %v936_v58, %v940_v60  ;;  %v6480_v7 = vcombine.high %v800_v1, %v804_v2  ;;  %v6608_v8 = vcombine.high %v928_v3, %v932_v4  ;;  %v880_v55 = vld [vmem:[%s10648_s5 + $0x3d0] sm:$0xff] }
 0x1ed   :  { %v884_v58 = vld [vmem:[%s10648_s5 + $0x3f0] sm:$0xff] }
 0x1ee   :  { %v1008_v60 = vld [vmem:[%s10648_s5 + $0x7d0] sm:$0xff] }
 0x1ef   :  { %2403 = vmatpush2.bf16.msra.mxu1 %v6533_v12  ;;  %2446 = vmatpush2.bf16.msra.mxu0 %v6661_v13  ;;  %v924_v12 = vld [vmem:[%s10648_s5 + $0x530] sm:$0xff]  ;;  %v6479_v13 = vcombine.low %v800_v1, %v804_v2 }
 0x1f0   :  { %2404 = vmatprep.subr.bf16.mxu1 %v6526_v14  ;;  %2447 = vmatprep.subr.bf16.mxu0 %v6654_v15  ;;  %v6607_v14 = vcombine.low %v928_v3, %v932_v4  ;;  %v6472_v15 = vcombine.high %v792_v9, %v796_v10  ;;  %v6600_v16 = vcombine.high %v920_v11, %v924_v12  ;;  %v872_v2 = vld [vmem:[%s10648_s5 + $0x390] sm:$0xff] }
 0x1f1   :  { %v876_v3 = vld [vmem:[%s10648_s5 + $0x3b0] sm:$0xff] }
 0x1f2   :  { %v1000_v4 = vld [vmem:[%s10648_s5 + $0x790] sm:$0xff] }
 0x1f3   :  { %2405 = vmatpush2.bf16.msra.mxu1 %v6525_v20  ;;  %2448 = vmatpush2.bf16.msra.mxu0 %v6653_v21  ;;  %v916_v20 = vld [vmem:[%s10648_s5 + $0x4f0] sm:$0xff]  ;;  %v6471_v21 = vcombine.low %v792_v9, %v796_v10 }
 0x1f4   :  { %2406 = vmatprep.subr.bf16.mxu1 %v6518_v22  ;;  %2449 = vmatprep.subr.bf16.mxu0 %v6646_v23  ;;  %v6599_v22 = vcombine.low %v920_v11, %v924_v12  ;;  %v6464_v23 = vcombine.high %v784_v17, %v788_v18  ;;  %v6592_v24 = vcombine.high %v912_v19, %v916_v20  ;;  %v864_v10 = vld [vmem:[%s10648_s5 + $0x350] sm:$0xff] }
 0x1f5   :  { %v868_v11 = vld [vmem:[%s10648_s5 + $0x370] sm:$0xff] }
 0x1f6   :  { %v992_v12 = vld [vmem:[%s10648_s5 + $0x750] sm:$0xff] }
 0x1f7   :  { %2407 = vmatpush2.bf16.msra.mxu1 %v6517_v31  ;;  %2450 = vmatpush2.bf16.msra.mxu0 %v6645_v32  ;;  %v908_v31 = vld [vmem:[%s10648_s5 + $0x4b0] sm:$0xff]  ;;  %v6463_v32 = vcombine.low %v784_v17, %v788_v18 }
 0x1f8   :  { %2408 = vmatprep.subr.bf16.mxu1 %v6510_v33  ;;  %2451 = vmatprep.subr.bf16.mxu0 %v6638_v34  ;;  %v6591_v33 = vcombine.low %v912_v19, %v916_v20  ;;  %v6456_v34 = vcombine.high %v776_v25, %v780_v26  ;;  %v6584_v35 = vcombine.high %v904_v28, %v908_v31  ;;  %v856_v18 = vld [vmem:[%s10648_s5 + $0x310] sm:$0xff] }
 0x1f9   :  { %v860_v19 = vld [vmem:[%s10648_s5 + $0x330] sm:$0xff] }
 0x1fa   :  { %v984_v20 = vld [vmem:[%s10648_s5 + $0x710] sm:$0xff] }
 0x1fb   :  { %2409 = vmatpush2.bf16.msra.mxu1 %v6509_v43  ;;  %2452 = vmatpush2.bf16.msra.mxu0 %v6637_v44  ;;  %v900_v43 = vld [vmem:[%s10648_s5 + $0x470] sm:$0xff]  ;;  %v6455_v44 = vcombine.low %v776_v25, %v780_v26 }
 0x1fc   :  { %2410 = vmatprep.subr.bf16.mxu1 %v6502_v45  ;;  %2453 = vmatprep.subr.bf16.mxu0 %v6630_v46  ;;  %v6583_v45 = vcombine.low %v904_v28, %v908_v31  ;;  %v6448_v46 = vcombine.high %v768_v36, %v772_v37  ;;  %v6576_v47 = vcombine.high %v896_v38, %v900_v43  ;;  %v848_v26 = vld [vmem:[%s10648_s5 + $0x2d0] sm:$0xff] }
 0x1fd   :  { %v852_v28 = vld [vmem:[%s10648_s5 + $0x2f0] sm:$0xff] }
 0x1fe   :  { %v976_v31 = vld [vmem:[%s10648_s5 + $0x6d0] sm:$0xff] }
 0x1ff   :  { %2411 = vmatpush2.bf16.msra.mxu1 %v6501_v51  ;;  %2454 = vmatpush2.bf16.msra.mxu0 %v6629_v52  ;;  %v892_v51 = vld [vmem:[%s10648_s5 + $0x430] sm:$0xff]  ;;  %v6447_v52 = vcombine.low %v768_v36, %v772_v37 }
 0x200   :  { %2466 = vmatprep.subr.bf16.mxu1 %v6496_v53  ;;  %2509 = vmatprep.subr.bf16.mxu0 %v6624_v56  ;;  %v6575_v53 = vcombine.low %v896_v38, %v900_v43  ;;  %v6440_v56 = vcombine.high %v760_v48, %v764_v49  ;;  %v6568_v54 = vcombine.high %v888_v50, %v892_v51  ;;  %v840_v37 = vld [vmem:[%s10648_s5 + $0x290] sm:$0xff] }
 0x201   :  { %v844_v38 = vld [vmem:[%s10648_s5 + $0x2b0] sm:$0xff] }
 0x202   :  { %2413 = vmatmul.mubr.bf16.vlgmr.msra.gmra.mxu1 %v8607_v41  ;;  %2456 = vmatmul.mubr.bf16.vlgmr.msra.gmra.mxu0 %v8609_v42  ;;  %v968_v43 = vld [vmem:[%s10648_s5 + $0x690] sm:$0xff] }
 0x203   :  { %2467 = vmatpush1.bf16.msra.mxu1 %v6495_v61  ;;  %2498 = vmatprep.mubr.bf16.mxu1 %v8603_v39  ;;  %v1012_v61 = vld [vmem:[%s10648_s5 + $0x7f0] sm:$0xff] }
 0x204   :  { %2510 = vmatpush1.bf16.msra.mxu0 %v6623_v62  ;;  %2541 = vmatprep.mubr.bf16.mxu0 %v8605_v40  ;;  %v6439_v62 = vcombine.low %v760_v48, %v764_v49  ;;  %v6688_v1 = vcombine.high %v1008_v60, %v1012_v61  ;;  %v832_v49 = vld [vmem:[%s10648_s5 + $0x250] sm:$0xff] }
 0x205   :  { %2468 = vmatprep.subr.bf16.mxu1 %v6488_v63  ;;  %2511 = vmatprep.subr.bf16.mxu0 %v6616_v0  ;;  %v6567_v63 = vcombine.low %v888_v50, %v892_v51  ;;  %v6560_v0 = vcombine.high %v880_v55, %v884_v58  ;;  %v836_v50 = vld [vmem:[%s10648_s5 + $0x270] sm:$0xff] }
 0x206   :  { %v960_v51 = vld [vmem:[%s10648_s5 + $0x650] sm:$0xff] }
 0x207   :  { %2469 = vmatpush1.bf16.msra.mxu1 %v6487_v5  ;;  %v1004_v5 = vld [vmem:[%s10648_s5 + $0x7b0] sm:$0xff] }
 0x208   :  { %2512 = vmatpush1.bf16.msra.mxu0 %v6615_v6  ;;  %2470 = vmatprep.subr.bf16.mxu1 %v6480_v7  ;;  %v6559_v6 = vcombine.low %v880_v55, %v884_v58  ;;  %v6687_v7 = vcombine.low %v1008_v60, %v1012_v61  ;;  %v6680_v9 = vcombine.high %v1000_v4, %v1004_v5  ;;  %v824_v58 = vld [vmem:[%s10648_s5 + $0x210] sm:$0xff] }
 0x209   :  { %2513 = vmatprep.subr.bf16.mxu0 %v6608_v8  ;;  %v6552_v8 = vcombine.high %v872_v2, %v876_v3  ;;  %v828_v60 = vld [vmem:[%s10648_s5 + $0x230] sm:$0xff] }
 0x20a   :  { %v952_v61 = vld [vmem:[%s10648_s5 + $0x610] sm:$0xff] }
 0x20b   :  { %2471 = vmatpush1.bf16.msra.mxu1 %v6479_v13  ;;  %v996_v13 = vld [vmem:[%s10648_s5 + $0x770] sm:$0xff] }
 0x20c   :  { %2514 = vmatpush1.bf16.msra.mxu0 %v6607_v14  ;;  %2472 = vmatprep.subr.bf16.mxu1 %v6472_v15  ;;  %v6551_v14 = vcombine.low %v872_v2, %v876_v3  ;;  %v6679_v15 = vcombine.low %v1000_v4, %v1004_v5  ;;  %v6672_v17 = vcombine.high %v992_v12, %v996_v13  ;;  %v817_v3 = vld [vmem:[%s10648_s5 + $0x1d8] sm:$0xff] }
 0x20d   :  { %2515 = vmatprep.subr.bf16.mxu0 %v6600_v16  ;;  %v6544_v16 = vcombine.high %v864_v10, %v868_v11  ;;  %v821_v4 = vld [vmem:[%s10648_s5 + $0x1f8] sm:$0xff] }
 0x20e   :  { %v945_v5 = vld [vmem:[%s10648_s5 + $0x5d8] sm:$0xff] }
 0x20f   :  { %2473 = vmatpush1.bf16.msra.mxu1 %v6471_v21  ;;  %v988_v21 = vld [vmem:[%s10648_s5 + $0x730] sm:$0xff] }
 0x210   :  { %2516 = vmatpush1.bf16.msra.mxu0 %v6599_v22  ;;  %2474 = vmatprep.subr.bf16.mxu1 %v6464_v23  ;;  %v6543_v22 = vcombine.low %v864_v10, %v868_v11  ;;  %v6671_v23 = vcombine.low %v992_v12, %v996_v13  ;;  %v6664_v25 = vcombine.high %v984_v20, %v988_v21  ;;  %v809_v11 = vld [vmem:[%s10648_s5 + $0x198] sm:$0xff] }
 0x211   :  { %2517 = vmatprep.subr.bf16.mxu0 %v6592_v24  ;;  %v6536_v24 = vcombine.high %v856_v18, %v860_v19  ;;  %v813_v12 = vld [vmem:[%s10648_s5 + $0x1b8] sm:$0xff]  ;;  %v6497_v13 = vcombine.low %v817_v3, %v821_v4 }
 0x213   :  { %2475 = vmatpush1.bf16.msra.mxu1 %v6463_v32  ;;  %v980_v32 = vld [vmem:[%s10648_s5 + $0x6f0] sm:$0xff] }
 0x214   :  { %2518 = vmatpush1.bf16.msra.mxu0 %v6591_v33  ;;  %2476 = vmatprep.subr.bf16.mxu1 %v6456_v34  ;;  %v6535_v33 = vcombine.low %v856_v18, %v860_v19  ;;  %v6663_v34 = vcombine.low %v984_v20, %v988_v21  ;;  %v6656_v36 = vcombine.high %v976_v31, %v980_v32  ;;  %v801_v18 = vld [vmem:[%s10648_s5 + $0x158] sm:$0xff] }
 0x215   :  { %2519 = vmatprep.subr.bf16.mxu0 %v6584_v35  ;;  %v6528_v35 = vcombine.high %v848_v26, %v852_v28  ;;  %v805_v19 = vld [vmem:[%s10648_s5 + $0x178] sm:$0xff] }
 0x216   :  { %v929_v21 = vld [vmem:[%s10648_s5 + $0x558] sm:$0xff] }
 0x217   :  { %2477 = vmatpush1.bf16.msra.mxu1 %v6455_v44  ;;  %v972_v44 = vld [vmem:[%s10648_s5 + $0x6b0] sm:$0xff] }
 0x218   :  { %2520 = vmatpush1.bf16.msra.mxu0 %v6583_v45  ;;  %2478 = vmatprep.subr.bf16.mxu1 %v6448_v46  ;;  %v6527_v45 = vcombine.low %v848_v26, %v852_v28  ;;  %v6655_v46 = vcombine.low %v976_v31, %v980_v32  ;;  %v6648_v48 = vcombine.high %v968_v43, %v972_v44  ;;  %v793_v28 = vld [vmem:[%s10648_s5 + $0x118] sm:$0xff] }
 0x219   :  { %2521 = vmatprep.subr.bf16.mxu0 %v6576_v47  ;;  %v6520_v47 = vcombine.high %v840_v37, %v844_v38  ;;  %v797_v31 = vld [vmem:[%s10648_s5 + $0x138] sm:$0xff] }
 0x21a   :  { %v925_v32 = vld [vmem:[%s10648_s5 + $0x538] sm:$0xff] }
 0x21b   :  { %2479 = vmatpush1.bf16.msra.mxu1 %v6447_v52  ;;  %v964_v52 = vld [vmem:[%s10648_s5 + $0x670] sm:$0xff] }
 0x21c   :  { %2522 = vmatpush1.bf16.msra.mxu0 %v6575_v53  ;;  %2480 = vmatprep.subr.bf16.mxu1 %v6440_v56  ;;  %v6519_v53 = vcombine.low %v840_v37, %v844_v38  ;;  %v6647_v56 = vcombine.low %v968_v43, %v972_v44  ;;  %v6640_v55 = vcombine.high %v960_v51, %v964_v52  ;;  %v789_v37 = vld [vmem:[%s10648_s5 + $0xf8] sm:$0xff] }
 0x21d   :  { %2523 = vmatprep.subr.bf16.mxu0 %v6568_v54  ;;  %v6512_v54 = vcombine.high %v832_v49, %v836_v50  ;;  %v913_v38 = vld [vmem:[%s10648_s5 + $0x4d8] sm:$0xff]  ;;  %v6473_v44 = vcombine.low %v793_v28, %v797_v31 }
 0x21e   :  { %v917_v43 = vld [vmem:[%s10648_s5 + $0x4f8] sm:$0xff] }
 0x21f   :  { %2481 = vmatpush1.bf16.msra.mxu1 %v6439_v62  ;;  %v956_v62 = vld [vmem:[%s10648_s5 + $0x630] sm:$0xff] }
 0x220   :  { %2524 = vmatpush1.bf16.msra.mxu0 %v6567_v63  ;;  %2482 = vmatprep.subr.bf16.mxu1 %v6560_v0  ;;  %v6511_v63 = vcombine.low %v832_v49, %v836_v50  ;;  %v6639_v0 = vcombine.low %v960_v51, %v964_v52  ;;  %v6632_v2 = vcombine.high %v952_v61, %v956_v62  ;;  %v781_v49 = vld [vmem:[%s10648_s5 + $0xb8] sm:$0xff] }
 0x221   :  { %2525 = vmatprep.subr.bf16.mxu0 %v6688_v1  ;;  %v6504_v1 = vcombine.high %v824_v58, %v828_v60  ;;  %v905_v50 = vld [vmem:[%s10648_s5 + $0x498] sm:$0xff] }
 0x222   :  { %v909_v51 = vld [vmem:[%s10648_s5 + $0x4b8] sm:$0xff] }
 0x223   :  { %2483 = vmatpush2.bf16.msra.mxu1 %v6559_v6  ;;  %v949_v6 = vld [vmem:[%s10648_s5 + $0x5f8] sm:$0xff] }
 0x224   :  { %2526 = vmatpush2.bf16.msra.mxu0 %v6687_v7  ;;  %2484 = vmatprep.subr.bf16.mxu1 %v6552_v8  ;;  %v6503_v7 = vcombine.low %v824_v58, %v828_v60  ;;  %v6631_v8 = vcombine.low %v952_v61, %v956_v62  ;;  %v6626_v10 = vcombine.high %v945_v5, %v949_v6  ;;  %v773_v58 = vld [vmem:[%s10648_s5 + $0x78] sm:$0xff] }
 0x225   :  { %2527 = vmatprep.subr.bf16.mxu0 %v6680_v9  ;;  %v6498_v9 = vcombine.high %v817_v3, %v821_v4  ;;  %v897_v60 = vld [vmem:[%s10648_s5 + $0x458] sm:$0xff] }
 0x226   :  { %v901_v61 = vld [vmem:[%s10648_s5 + $0x478] sm:$0xff] }
 0x227   :  { %2485 = vmatpush2.bf16.msra.mxu1 %v6551_v14  ;;  %v937_v14 = vld [vmem:[%s10648_s5 + $0x598] sm:$0xff] }
 0x228   :  { %2528 = vmatpush2.bf16.msra.mxu0 %v6679_v15  ;;  %2486 = vmatprep.subr.bf16.mxu1 %v6544_v16  ;;  %v941_v15 = vld [vmem:[%s10648_s5 + $0x5b8] sm:$0xff]  ;;  %v6625_v16 = vcombine.low %v945_v5, %v949_v6 }
 0x229   :  { %2529 = vmatprep.subr.bf16.mxu0 %v6672_v17  ;;  %v6490_v17 = vcombine.high %v809_v11, %v813_v12  ;;  %v6618_v20 = vcombine.high %v937_v14, %v941_v15  ;;  %v765_v3 = vld [vmem:[%s10648_s5 + $0x38] sm:$0xff] }
 0x22a   :  { %v889_v4 = vld [vmem:[%s10648_s5 + $0x418] sm:$0xff] }
 0x22b   :  { %2487 = vmatpush2.bf16.msra.mxu1 %v6543_v22  ;;  %v933_v22 = vld [vmem:[%s10648_s5 + $0x578] sm:$0xff] }
 0x22c   :  { %2530 = vmatpush2.bf16.msra.mxu0 %v6671_v23  ;;  %2488 = vmatprep.subr.bf16.mxu1 %v6536_v24  ;;  %v6489_v23 = vcombine.low %v809_v11, %v813_v12  ;;  %v6617_v24 = vcombine.low %v937_v14, %v941_v15  ;;  %v6610_v26 = vcombine.high %v929_v21, %v933_v22  ;;  %v893_v5 = vld [vmem:[%s10648_s5 + $0x438] sm:$0xff] }
 0x22d   :  { %2531 = vmatprep.subr.bf16.mxu0 %v6664_v25  ;;  %v6482_v25 = vcombine.high %v801_v18, %v805_v19  ;;  %v885_v11 = vld [vmem:[%s10648_s5 + $0x3f8] sm:$0xff]  ;;  %v6569_v15 = vcombine.low %v889_v4, %v893_v5 }
 0x22e   :  { %v1009_v12 = vld [vmem:[%s10648_s5 + $0x7d8] sm:$0xff] }
 0x22f   :  { %2489 = vmatpush2.bf16.msra.mxu1 %v6535_v33  ;;  %v6609_v33 = vcombine.low %v929_v21, %v933_v22  ;;  %v1005_v21 = vld [vmem:[%s10648_s5 + $0x7b8] sm:$0xff] }
 0x230   :  { %2532 = vmatpush2.bf16.msra.mxu0 %v6663_v34  ;;  %2490 = vmatprep.subr.bf16.mxu1 %v6528_v35  ;;  %v6474_v34 = vcombine.high %v793_v28, %v797_v31  ;;  %v869_v28 = vld [vmem:[%s10648_s5 + $0x378] sm:$0xff] }
 0x231   :  { %2533 = vmatprep.subr.bf16.mxu0 %v6656_v36  ;;  %v785_v36 = vld [vmem:[%s10648_s5 + $0xd8] sm:$0xff] }
 0x232   :  { %v6465_v52 = vcombine.low %v785_v36, %v789_v37  ;;  %v993_v31 = vld [vmem:[%s10648_s5 + $0x758] sm:$0xff] }
 0x233   :  { %2491 = vmatpush2.bf16.msra.mxu1 %v6527_v45 }
 0x234   :  { %2534 = vmatpush2.bf16.msra.mxu0 %v6655_v46  ;;  %2492 = vmatprep.subr.bf16.mxu1 %v6520_v47  ;;  %v6466_v46 = vcombine.high %v785_v36, %v789_v37  ;;  %v6594_v47 = vcombine.high %v913_v38, %v917_v43  ;;  %v861_v36 = vld [vmem:[%s10648_s5 + $0x338] sm:$0xff] }
 0x235   :  { %2535 = vmatprep.subr.bf16.mxu0 %v6648_v48  ;;  %v777_v48 = vld [vmem:[%s10648_s5 + $0x98] sm:$0xff] }
 0x236   :  { %v6457_v62 = vcombine.low %v777_v48, %v781_v49  ;;  %v985_v37 = vld [vmem:[%s10648_s5 + $0x718] sm:$0xff] }
 0x237   :  { %2493 = vmatpush2.bf16.msra.mxu1 %v6519_v53  ;;  %v6593_v53 = vcombine.low %v913_v38, %v917_v43  ;;  %v989_v38 = vld [vmem:[%s10648_s5 + $0x738] sm:$0xff] }
 0x238   :  { %2536 = vmatpush2.bf16.msra.mxu0 %v6647_v56  ;;  %2494 = vmatprep.subr.bf16.mxu1 %v6512_v54  ;;  %v6458_v56 = vcombine.high %v777_v48, %v781_v49  ;;  %v6586_v54 = vcombine.high %v905_v50, %v909_v51  ;;  %v853_v48 = vld [vmem:[%s10648_s5 + $0x2f8] sm:$0xff] }
 0x239   :  { %2537 = vmatprep.subr.bf16.mxu0 %v6640_v55  ;;  %v769_v55 = vld [vmem:[%s10648_s5 + $0x58] sm:$0xff] }
 0x23a   :  { %v6449_v6 = vcombine.low %v769_v55, %v773_v58  ;;  %v977_v49 = vld [vmem:[%s10648_s5 + $0x6d8] sm:$0xff] }
 0x23b   :  { %2495 = vmatpush2.bf16.msra.mxu1 %v6511_v63  ;;  %v6585_v63 = vcombine.low %v905_v50, %v909_v51  ;;  %v981_v50 = vld [vmem:[%s10648_s5 + $0x6f8] sm:$0xff] }
 0x23c   :  { %2538 = vmatpush2.bf16.msra.mxu0 %v6639_v0  ;;  %2496 = vmatprep.subr.bf16.mxu1 %v6504_v1  ;;  %v6450_v0 = vcombine.high %v769_v55, %v773_v58  ;;  %v6578_v1 = vcombine.high %v897_v60, %v901_v61  ;;  %v845_v55 = vld [vmem:[%s10648_s5 + $0x2b8] sm:$0xff] }
 0x23d   :  { %2539 = vmatprep.subr.bf16.mxu0 %v6632_v2  ;;  %v761_v2 = vld [vmem:[%s10648_s5 + $0x18] sm:$0xff] }
 0x23e   :  { %v6441_v14 = vcombine.low %v761_v2, %v765_v3  ;;  %v969_v58 = vld [vmem:[%s10648_s5 + $0x698] sm:$0xff] }
 0x23f   :  { %2497 = vmatpush2.bf16.msra.mxu1 %v6503_v7  ;;  %v6577_v7 = vcombine.low %v897_v60, %v901_v61  ;;  %v973_v60 = vld [vmem:[%s10648_s5 + $0x6b8] sm:$0xff] }
 0x240   :  { %2540 = vmatpush2.bf16.msra.mxu0 %v6631_v8  ;;  %2552 = vmatprep.subr.bf16.mxu1 %v6498_v9  ;;  %v6442_v8 = vcombine.high %v761_v2, %v765_v3  ;;  %v6570_v9 = vcombine.high %v889_v4, %v893_v5  ;;  %v837_v2 = vld [vmem:[%s10648_s5 + $0x278] sm:$0xff] }
 0x241   :  { %2595 = vmatprep.subr.bf16.mxu0 %v6626_v10  ;;  %v881_v10 = vld [vmem:[%s10648_s5 + $0x3d8] sm:$0xff] }
 0x242   :  { %2499 = vmatmul.mubr.bf16.vlgmr.msra.gmra.mxu1 %v8607_v41  ;;  %v6561_v22 = vcombine.low %v881_v10, %v885_v11  ;;  %v961_v3 = vld [vmem:[%s10648_s5 + $0x658] sm:$0xff] }
 0x243   :  { %2542 = vmatmul.mubr.bf16.vlgmr.msra.gmra.mxu0 %v8609_v42  ;;  %2553 = vmatpush1.bf16.msra.mxu1 %v6497_v13  ;;  %v1013_v13 = vld [vmem:[%s10648_s5 + $0x7f8] sm:$0xff] }
 0x244   :  { %2584 = vmatprep.mubr.bf16.mxu1 %v8603_v39  ;;  %2596 = vmatpush1.bf16.msra.mxu0 %v6625_v16  ;;  %v921_v39 = vld [vmem:[%s10648_s5 + $0x518] sm:$0xff]  ;;  %v6562_v16 = vcombine.high %v881_v10, %v885_v11 }
 0x245   :  { %2627 = vmatprep.mubr.bf16.mxu0 %v8605_v40  ;;  %2554 = vmatprep.subr.bf16.mxu1 %v6490_v17  ;;  %v6481_v40 = vcombine.low %v801_v18, %v805_v19  ;;  %v6602_v35 = vcombine.high %v921_v39, %v925_v32  ;;  %v6601_v45 = vcombine.low %v921_v39, %v925_v32  ;;  %v873_v18 = vld [vmem:[%s10648_s5 + $0x398] sm:$0xff] }
 0x246   :  { %2597 = vmatprep.subr.bf16.mxu0 %v6618_v20  ;;  %v6690_v17 = vcombine.high %v1009_v12, %v1013_v13  ;;  %v877_v19 = vld [vmem:[%s10648_s5 + $0x3b8] sm:$0xff] }
 0x247   :  { %2555 = vmatpush1.bf16.msra.mxu1 %v6489_v23  ;;  %v1001_v20 = vld [vmem:[%s10648_s5 + $0x798] sm:$0xff]  ;;  %v6689_v23 = vcombine.low %v1009_v12, %v1013_v13  ;;  %v6553_v32 = vcombine.low %v873_v18, %v877_v19 }
 0x248   :  { %2598 = vmatpush1.bf16.msra.mxu0 %v6617_v24  ;;  %2556 = vmatprep.subr.bf16.mxu1 %v6482_v25  ;;  %v6554_v24 = vcombine.high %v873_v18, %v877_v19  ;;  %v6682_v25 = vcombine.high %v1001_v20, %v1005_v21  ;;  %v997_v39 = vld [vmem:[%s10648_s5 + $0x778] sm:$0xff]  ;;  %v7354_v19 = vld [vmem:[%s10650_s7 + $0x18c] ss:$28 sps:$4 sm:$0xff]  }
 0x249   :  { %2599 = vmatprep.subr.bf16.mxu0 %v6610_v26  ;;  %v865_v26 = vld [vmem:[%s10648_s5 + $0x358] sm:$0xff] }
 0x24a   :  { %v6545_v43 = vcombine.low %v865_v26, %v869_v28  ;;  %v965_v4 = vld [vmem:[%s10648_s5 + $0x678] sm:$0xff] }
 0x24b   :  { %2557 = vmatpush1.bf16.msra.mxu1 %v6481_v40  ;;  %v6681_v40 = vcombine.low %v1001_v20, %v1005_v21  ;;  %v829_v10 = vld [vmem:[%s10648_s5 + $0x238] sm:$0xff]  ;;  %v9183_v20 = vld [vmem:[%s10649_s6] sm:$0xff] }
 0x24c   :  { %2600 = vmatpush1.bf16.msra.mxu0 %v6609_v33  ;;  %2558 = vmatprep.subr.bf16.mxu1 %v6474_v34  ;;  %v6546_v33 = vcombine.high %v865_v26, %v869_v28  ;;  %v6674_v34 = vcombine.high %v993_v31, %v997_v39  ;;  %v953_v11 = vld [vmem:[%s10648_s5 + $0x618] sm:$0xff]  ;;  %v2655_v21 = vrot.slane %v9183_v20, %v8360_v30  ;;  %v7375_v28 = vld [vmem:[%s10650_s7 + $0x4d4] ss:$28 sps:$4 sm:$0xff]  }
 0x24d   :  { %2601 = vmatprep.subr.bf16.mxu0 %v6602_v35  ;;  %v857_v35 = vld [vmem:[%s10648_s5 + $0x318] sm:$0xff] }
 0x24e   :  { %v6537_v51 = vcombine.low %v857_v35, %v861_v36  ;;  %v957_v12 = vld [vmem:[%s10648_s5 + $0x638] sm:$0xff]  ;;  %v2689_v26 = vpack.c.bf16 %v2655_v21, %v2655_v21 }
 0x24f   :  { %2559 = vmatpush1.bf16.msra.mxu1 %v6473_v44  ;;  %v6673_v44 = vcombine.low %v993_v31, %v997_v39  ;;  %v6633_v18 = vcombine.low %v953_v11, %v957_v12  ;;  %v7429_v21 = vld [vmem:[%s10650_s7 + $0x65c] ss:$28 sps:$4 sm:$0xff]  }
 0x250   :  { %2602 = vmatpush1.bf16.msra.mxu0 %v6601_v45  ;;  %2560 = vmatprep.subr.bf16.mxu1 %v6466_v46  ;;  %v6538_v45 = vcombine.high %v857_v35, %v861_v36  ;;  %v6666_v46 = vcombine.high %v985_v37, %v989_v38  ;;  %v2704_v35 = vpack.i.b16 %v2689_v26, %v2689_v26  ;;  %v7435_v26 = vld [vmem:[%s10650_s7 + $0x624] ss:$28 sps:$4 sm:$0xff]  }
 0x251   :  { %2603 = vmatprep.subr.bf16.mxu0 %v6594_v47  ;;  %v849_v47 = vld [vmem:[%s10648_s5 + $0x2d8] sm:$0xff] }
 0x252   :  { %v6529_v61 = vcombine.low %v849_v47, %v853_v48 }
 0x253   :  { %2561 = vmatpush1.bf16.msra.mxu1 %v6465_v52  ;;  %v6665_v52 = vcombine.low %v985_v37, %v989_v38  ;;  %v7358_v38 = vld [vmem:[%s10650_s7 + $0x118] ss:$28 sps:$4 sm:$0xff]  }
 0x254   :  { %2604 = vmatpush1.bf16.msra.mxu0 %v6593_v53  ;;  %2562 = vmatprep.subr.bf16.mxu1 %v6458_v56  ;;  %v6530_v53 = vcombine.high %v849_v47, %v853_v48  ;;  %v6658_v56 = vcombine.high %v977_v49, %v981_v50 }
 0x255   :  { %2605 = vmatprep.subr.bf16.mxu0 %v6586_v54  ;;  %v841_v54 = vld [vmem:[%s10648_s5 + $0x298] sm:$0xff] }
 0x256   :  { %v6521_v5 = vcombine.low %v841_v54, %v845_v55 }
 0x257   :  { %2563 = vmatpush1.bf16.msra.mxu1 %v6457_v62  ;;  %v6657_v62 = vcombine.low %v977_v49, %v981_v50  ;;  %v2709_v49 = vrot.slane %v2704_v35, %v8357_v29  ;;  %v7387_v50 = vld [vmem:[%s10650_s7 + $0x464] ss:$28 sps:$4 sm:$0xff]  }
 0x258   :  { %2606 = vmatpush1.bf16.msra.mxu0 %v6585_v63  ;;  %2564 = vmatprep.subr.bf16.mxu1 %v6450_v0  ;;  %v6522_v63 = vcombine.high %v841_v54, %v845_v55  ;;  %v6650_v0 = vcombine.high %v969_v58, %v973_v60  ;;  %v7393_v55 = vld [vmem:[%s10650_s7 + $0x42c] ss:$28 sps:$4 sm:$0xff]  }
 0x259   :  { %2607 = vmatprep.subr.bf16.mxu0 %v6578_v1  ;;  %v833_v1 = vld [vmem:[%s10648_s5 + $0x258] sm:$0xff] }
 0x25a   :  { %v6513_v13 = vcombine.low %v833_v1, %v837_v2 }
 0x25b   :  { %2565 = vmatpush1.bf16.msra.mxu1 %v6449_v6  ;;  %v6649_v6 = vcombine.low %v969_v58, %v973_v60  ;;  %v7364_v60 = vld [vmem:[%s10650_s7 + $0xa8] ss:$28 sps:$4 sm:$0xff]  }
 0x25c   :  { %2608 = vmatpush1.bf16.msra.mxu0 %v6577_v7  ;;  %2566 = vmatprep.subr.bf16.mxu1 %v6442_v8  ;;  %v6514_v7 = vcombine.high %v833_v1, %v837_v2  ;;  %v6642_v8 = vcombine.high %v961_v3, %v965_v4  ;;  %v7370_v1 = vld [vmem:[%s10650_s7 + $0x70] ss:$28 sps:$4 sm:$0xff]   ;;  %v7378_v2 = vld [vmem:[%s10650_s7 + $0x3c] ss:$28 sps:$4 sm:$0xff]  }
 0x25d   :  { %2609 = vmatprep.subr.bf16.mxu0 %v6570_v9  ;;  %v825_v9 = vld [vmem:[%s10648_s5 + $0x218] sm:$0xff] }
 0x25f   :  { %2567 = vmatpush1.bf16.msra.mxu1 %v6441_v14  ;;  %v6641_v14 = vcombine.low %v961_v3, %v965_v4  ;;  %v7397_v3 = vld [vmem:[%s10650_s7 + $0x3f0] ss:$28 sps:$4 sm:$0xff]   ;;  %v7405_v4 = vld [vmem:[%s10650_s7 + $0x3bc] ss:$28 sps:$4 sm:$0xff]  }
 0x260   :  { %2610 = vmatpush1.bf16.msra.mxu0 %v6569_v15  ;;  %2568 = vmatprep.subr.bf16.mxu1 %v6562_v16  ;;  %v6506_v15 = vcombine.high %v825_v9, %v829_v10  ;;  %v6634_v16 = vcombine.high %v953_v11, %v957_v12  ;;  %v7409_v11 = vld [vmem:[%s10650_s7 + $0x380] ss:$28 sps:$4 sm:$0xff]   ;;  %v7417_v12 = vld [vmem:[%s10650_s7 + $0x6cc] ss:$28 sps:$4 sm:$0xff]  }
 0x261   :  { %2611 = vmatprep.subr.bf16.mxu0 %v6690_v17  ;;  %v6505_v17 = vcombine.low %v825_v9, %v829_v10  ;;  %v7382_v9 = vld [vmem:[%s10650_s7] ss:$28 sps:$4 sm:$0xff]   ;;  %v7390_v10 = vld [vmem:[%s10650_s7 + $0x34c] ss:$28 sps:$4 sm:$0xff]  }
 0x263   :  { %2569 = vmatpush2.bf16.msra.mxu1 %v6561_v22  ;;  %v7369_v22 = vld [vmem:[%s10650_s7 + $0x50c] ss:$28 sps:$4 sm:$0xff]  }
 0x264   :  { %2612 = vmatpush2.bf16.msra.mxu0 %v6689_v23  ;;  %2570 = vmatprep.subr.bf16.mxu1 %v6554_v24  ;;  %v7352_v23 = vld [vmem:[%s10650_s7 + $0x188] ss:$28 sps:$4 sm:$0xff]   ;;  %v7357_v24 = vld [vmem:[%s10650_s7 + $0x154] ss:$28 sps:$4 sm:$0xff]  }
 0x265   :  { %2613 = vmatprep.subr.bf16.mxu0 %v6682_v25  ;;  %v7367_v25 = vld [vmem:[%s10650_s7 + $0x508] ss:$28 sps:$4 sm:$0xff]  }
 0x267   :  { %2571 = vmatpush2.bf16.msra.mxu1 %v6553_v32  ;;  %v7355_v32 = vld [vmem:[%s10650_s7 + $0x150] ss:$28 sps:$4 sm:$0xff]  }
 0x268   :  { %2614 = vmatpush2.bf16.msra.mxu0 %v6681_v40  ;;  %2572 = vmatprep.subr.bf16.mxu1 %v6546_v33 }
 0x269   :  { %2615 = vmatprep.subr.bf16.mxu0 %v6674_v34  ;;  %v7360_v34 = vld [vmem:[%s10650_s7 + $0x11c] ss:$28 sps:$4 sm:$0xff]  }
 0x26b   :  { %2573 = vmatpush2.bf16.msra.mxu1 %v6545_v43 }
 0x26c   :  { %2616 = vmatpush2.bf16.msra.mxu0 %v6673_v44  ;;  %2574 = vmatprep.subr.bf16.mxu1 %v6538_v45  ;;  %v7363_v45 = vld [vmem:[%s10650_s7 + $0xe4] ss:$28 sps:$4 sm:$0xff]  }
 0x26d   :  { %2617 = vmatprep.subr.bf16.mxu0 %v6666_v46  ;;  %v7379_v46 = vld [vmem:[%s10650_s7 + $0x498] ss:$28 sps:$4 sm:$0xff]  }
 0x26f   :  { %2575 = vmatpush2.bf16.msra.mxu1 %v6537_v51 }
 0x270   :  { %2618 = vmatpush2.bf16.msra.mxu0 %v6665_v52  ;;  %2576 = vmatprep.subr.bf16.mxu1 %v6530_v53  ;;  %v7361_v52 = vld [vmem:[%s10650_s7 + $0xe0] ss:$28 sps:$4 sm:$0xff]   ;;  %v7366_v53 = vld [vmem:[%s10650_s7 + $0xac] ss:$28 sps:$4 sm:$0xff]  }
 0x271   :  { %2619 = vmatprep.subr.bf16.mxu0 %v6658_v56  ;;  %v7385_v56 = vld [vmem:[%s10650_s7 + $0x460] ss:$28 sps:$4 sm:$0xff]  }
 0x273   :  { %2577 = vmatpush2.bf16.msra.mxu1 %v6529_v61  ;;  %v7372_v61 = vld [vmem:[%s10650_s7 + $0x74] ss:$28 sps:$4 sm:$0xff]  }
 0x274   :  { %2620 = vmatpush2.bf16.msra.mxu0 %v6657_v62  ;;  %2578 = vmatprep.subr.bf16.mxu1 %v6522_v63  ;;  %v7391_v62 = vld [vmem:[%s10650_s7 + $0x428] ss:$28 sps:$4 sm:$0xff]  }
 0x275   :  { %2621 = vmatprep.subr.bf16.mxu0 %v6650_v0  ;;  %v7399_v0 = vld [vmem:[%s10650_s7 + $0x3f4] ss:$28 sps:$4 sm:$0xff]  }
 0x277   :  { %2579 = vmatpush2.bf16.msra.mxu1 %v6521_v5  ;;  %v7376_v5 = vld [vmem:[%s10650_s7 + $0x38] ss:$28 sps:$4 sm:$0xff]  }
 0x278   :  { %2622 = vmatpush2.bf16.msra.mxu0 %v6649_v6  ;;  %2580 = vmatprep.subr.bf16.mxu1 %v6514_v7  ;;  %v7384_v6 = vld [vmem:[%s10650_s7 + $0x4] ss:$28 sps:$4 sm:$0xff]   ;;  %v7403_v7 = vld [vmem:[%s10650_s7 + $0x3b8] ss:$28 sps:$4 sm:$0xff]  }
 0x279   :  { %2623 = vmatprep.subr.bf16.mxu0 %v6642_v8  ;;  %v7411_v8 = vld [vmem:[%s10650_s7 + $0x384] ss:$28 sps:$4 sm:$0xff]  }
 0x27b   :  { %2581 = vmatpush2.bf16.msra.mxu1 %v6513_v13  ;;  %v7388_v13 = vld [vmem:[%s10650_s7 + $0x348] ss:$28 sps:$4 sm:$0xff]  }
 0x27c   :  { %2624 = vmatpush2.bf16.msra.mxu0 %v6641_v14  ;;  %2582 = vmatprep.subr.bf16.mxu1 %v6506_v15  ;;  %v7396_v14 = vld [vmem:[%s10650_s7 + $0x314] ss:$28 sps:$4 sm:$0xff]   ;;  %v7415_v15 = vld [vmem:[%s10650_s7 + $0x6c8] ss:$28 sps:$4 sm:$0xff]  }
 0x27d   :  { %2625 = vmatprep.subr.bf16.mxu0 %v6634_v16  ;;  %v7423_v16 = vld [vmem:[%s10650_s7 + $0x694] ss:$28 sps:$4 sm:$0xff]  }
 0x27f   :  { %2583 = vmatpush2.bf16.msra.mxu1 %v6505_v17  ;;  %v7394_v17 = vld [vmem:[%s10650_s7 + $0x310] ss:$28 sps:$4 sm:$0xff]  }
 0x280   :  { %2626 = vmatpush2.bf16.msra.mxu0 %v6633_v18  ;;  %5629 = vmatprep.subr.bf16.mxu1 %v7354_v19  ;;  %v7402_v18 = vld [vmem:[%s10650_s7 + $0x2dc] ss:$28 sps:$4 sm:$0xff]   ;;  %v7421_v19 = vld [vmem:[%s10650_s7 + $0x690] ss:$28 sps:$4 sm:$0xff]  }
 0x281   :  { %5672 = vmatprep.subr.bf16.mxu0 %v7369_v22  ;;  %v7400_v22 = vld [vmem:[%s10650_s7 + $0x2d8] ss:$28 sps:$4 sm:$0xff]  }
 0x282   :  { %2585 = vmatmul.mubr.bf16.vlgmr.msra.gmra.mxu1 %v8607_v41  ;;  %v9203_v31 = vpop.f32.mrf.mxu1  ;;  %v9205_v39 = vpop.f32.mrf.mxu0  ;;  %v7373_v41 = vld [vmem:[%s10650_s7 + $0x4d0] ss:$28 sps:$4 sm:$0xff]  }
 0x283   :  { %2628 = vmatmul.mubr.bf16.vlgmr.msra.gmra.mxu0 %v8609_v42  ;;  %5630 = vmatpush1.bf16.msra.mxu1 %v7352_v23  ;;  %v7381_v42 = vld [vmem:[%s10650_s7 + $0x49c] ss:$28 sps:$4 sm:$0xff]   ;;  %v2651_v23 = vrot.slane %v9183_v20, %v8357_v29 }
 0x284   :  { %v2330_v40 = vpop.f32.mrf.mxu1  ;;  %v2373_v33 = vpop.f32.mrf.mxu0  ;;  %5631 = vmatprep.subr.bf16.mxu1 %v7357_v24  ;;  %5673 = vmatpush1.bf16.msra.mxu0 %v7367_v25  ;;  %v7408_v24 = vld [vmem:[%s10650_s7 + $0x2a4] ss:$28 sps:$4 sm:$0xff]   ;;  %v7427_v25 = vld [vmem:[%s10650_s7 + $0x658] ss:$28 sps:$4 sm:$0xff]  }
 0x285   :  { %5674 = vmatprep.subr.bf16.mxu0 %v7375_v28  ;;  %v2374_v47 = vadd.f32 %v2373_v33, %v2330_v40  ;;  %v7406_v28 = vld [vmem:[%s10650_s7 + $0x2a0] ss:$28 sps:$4 sm:$0xff]   ;;  %v7414_v40 = vld [vmem:[%s10650_s7 + $0x26c] ss:$28 sps:$4 sm:$0xff]  }
 0x286   :  { %v9220_v36 = vpop.f32.mrf.mxu1  ;;  %v9222_v37 = vpop.f32.mrf.mxu0  ;;  %v7433_v33 = vld [vmem:[%s10650_s7 + $0x620] ss:$28 sps:$4 sm:$0xff]  }
 0x287   :  { %5632 = vmatpush1.bf16.msra.mxu1 %v7355_v32  ;;  %v2688_v32 = vpack.c.bf16 %v2651_v23, %v2651_v23  ;;  %v2376_v35 = vadd.f32 %v9222_v37, %v9220_v36  ;;  %v7418_v36 = vld [vmem:[%s10650_s7 + $0x230] ss:$28 sps:$4 sm:$0xff]  }
 0x288   :  { %v2334_v43 = vpop.f32.mrf.mxu1  ;;  %v2377_v44 = vpop.f32.mrf.mxu0  ;;  %5633 = vmatprep.subr.bf16.mxu1 %v7360_v34  ;;  %5675 = vmatpush1.bf16.msra.mxu0 %v7373_v41  ;;  %v7438_v34 = vld [vmem:[%s10650_s7 + $0x5ec] ss:$28 sps:$4 sm:$0xff]  }
 0x289   :  { %v2378_v48 = vadd.f32 %v2377_v44, %v2334_v43  ;;  %5676 = vmatprep.subr.bf16.mxu0 %v7381_v42  ;;  %v7412_v41 = vld [vmem:[%s10650_s7 + $0x268] ss:$28 sps:$4 sm:$0xff]   ;;  %v2697_v42 = vpack.i.b16 %v2688_v32, %v2688_v32  ;;  %v7441_v44 = vld [vmem:[%s10650_s7 + $0x5b4] ss:$28 sps:$4 sm:$0xff]   ;;  %v7457_v32 = vld [vmem:[%s10650_s7 + $0x7e0] ss:$28 sps:$4 sm:$0xff]  }
 0x28a   :  { %v7436_v43 = vld [vmem:[%s10650_s7 + $0x5e8] ss:$28 sps:$4 sm:$0xff]  }
 0x28b   :  { %v2639_v51 = vpack.c.bf16 %v2378_v48, %v2374_v47  ;;  %5634 = vmatpush1.bf16.msra.mxu1 %v7358_v38  ;;  %v7420_v38 = vld [vmem:[%s10650_s7 + $0x234] ss:$28 sps:$4 sm:$0xff]   ;;  %v7426_v47 = vld [vmem:[%s10650_s7 + $0x1fc] ss:$28 sps:$4 sm:$0xff]  }
 0x28c   :  { %5635 = vmatprep.subr.bf16.mxu1 %v7363_v45  ;;  %5677 = vmatpush1.bf16.msra.mxu0 %v7379_v46  ;;  %v2372_v45 = vadd.f32 %v9205_v39, %v9203_v31  ;;  %v2702_v46 = vrot.slane %v2697_v42, %v8357_v29  ;;  %v7439_v48 = vld [vmem:[%s10650_s7 + $0x5b0] ss:$28 sps:$4 sm:$0xff]   ;;  %v7444_v31 = vld [vmem:[%s10650_s7 + $0x57c] ss:$28 sps:$4 sm:$0xff]  }
 0x28d   :  { %v2753_v54 = vadd.bf16 %v2709_v49, %v2639_v51  ;;  %5678 = vmatprep.subr.bf16.mxu0 %v7387_v50  ;;  %v7424_v39 = vld [vmem:[%s10650_s7 + $0x1f8] ss:$28 sps:$4 sm:$0xff]   ;;  %v7432_v50 = vld [vmem:[%s10650_s7 + $0x1c4] ss:$28 sps:$4 sm:$0xff]  }
 0x28e   :  { %v2638_v37 = vpack.c.bf16 %v2376_v35, %v2372_v45  ;;  %v7442_v51 = vld [vmem:[%s10650_s7 + $0x578] ss:$28 sps:$4 sm:$0xff]   ;;  %v7460_v35 = vld [vmem:[%s10650_s7 + $0x7a8] ss:$28 sps:$4 sm:$0xff]  }
 0x28f   :  { %v2761_v58 = vmul.bf16 1045249613, %v2753_v54  ;;  %5636 = vmatpush1.bf16.msra.mxu1 %v7361_v52  ;;  %v7447_v52 = vld [vmem:[%s10650_s7 + $0x544] ss:$28 sps:$4 sm:$0xff]   ;;  %v7465_v42 = vld [vmem:[%s10650_s7 + $0x774] ss:$28 sps:$4 sm:$0xff]  }
 0x290   :  { %5637 = vmatprep.subr.bf16.mxu1 %v7366_v53  ;;  %5679 = vmatpush1.bf16.msra.mxu0 %v7385_v56  ;;  %v2752_v49 = vadd.bf16 %v2702_v46, %v2638_v37  ;;  %v7430_v53 = vld [vmem:[%s10650_s7 + $0x1c0] ss:$28 sps:$4 sm:$0xff]   ;;  %v2659_v56 = vrot.slane %v9183_v20, %v8575_v57  ;;  %v7504_v45 = vld [vmem:[%s10650_s7 + $0xbd4] ss:$28 sps:$4 sm:$0xff]  }
 0x291   :  { %v9258_v63 = vmax.bf16 %v2761_v58, %v2753_v54  ;;  %5680 = vmatprep.subr.bf16.mxu0 %v7393_v55  ;;  %v7445_v55 = vld [vmem:[%s10650_s7 + $0x540] ss:$28 sps:$4 sm:$0xff]   ;;  %v7450_v58 = vld [vmem:[%s10650_s7 + $0x88c] ss:$28 sps:$4 sm:$0xff]  }
 0x292   :  { %v2760_v54 = vmul.bf16 1045249613, %v2752_v49  ;;  %v7468_v37 = vld [vmem:[%s10650_s7 + $0x73c] ss:$28 sps:$4 sm:$0xff]   ;;  %v7502_v46 = vld [vmem:[%s10650_s7 + $0xbd0] ss:$28 sps:$4 sm:$0xff]  }
 0x293   :  { %5638 = vmatpush1.bf16.msra.mxu1 %v7364_v60  ;;  %5661 = vmatprep.mubr.bf16.mxu1 %v9258_v63  ;;  %v2663_v60 = vrot.slane %v9183_v20, %v8581_v59 }
 0x294   :  { %5639 = vmatprep.subr.bf16.mxu1 %v7372_v61  ;;  %5681 = vmatpush1.bf16.msra.mxu0 %v7391_v62  ;;  %v7498_v61 = vld [vmem:[%s10650_s7 + $0xc0c] ss:$28 sps:$4 sm:$0xff]   ;;  %v2690_v62 = vpack.c.bf16 %v2659_v56, %v2659_v56 }
 0x295   :  { %5682 = vmatprep.subr.bf16.mxu0 %v7399_v0  ;;  %v7448_v0 = vld [vmem:[%s10650_s7 + $0x888] ss:$28 sps:$4 sm:$0xff]  }
 0x296   :  { %v7472_v56 = vld [vmem:[%s10650_s7 + $0xa48] ss:$28 sps:$4 sm:$0xff]  }
 0x297   :  { %5640 = vmatpush1.bf16.msra.mxu1 %v7370_v1  ;;  %v9410_v1 = vmax.bf16 %v2760_v54, %v2752_v49  ;;  %v7516_v49 = vld [vmem:[%s10650_s7 + $0xb64] ss:$28 sps:$4 sm:$0xff]   ;;  %v7477_v54 = vld [vmem:[%s10650_s7 + $0xa14] ss:$28 sps:$4 sm:$0xff]  }
 0x298   :  { %5641 = vmatprep.subr.bf16.mxu1 %v7378_v2  ;;  %5683 = vmatpush1.bf16.msra.mxu0 %v7397_v3  ;;  %v7453_v2 = vld [vmem:[%s10650_s7 + $0x854] ss:$28 sps:$4 sm:$0xff]   ;;  %v2691_v3 = vpack.c.bf16 %v2663_v60, %v2663_v60 }
 0x299   :  { %5684 = vmatprep.subr.bf16.mxu0 %v7405_v4  ;;  %v7475_v60 = vld [vmem:[%s10650_s7 + $0xa10] ss:$28 sps:$4 sm:$0xff]  }
 0x29b   :  { %5642 = vmatpush1.bf16.msra.mxu1 %v7376_v5 }
 0x29c   :  { %5643 = vmatprep.subr.bf16.mxu1 %v7384_v6  ;;  %5685 = vmatpush1.bf16.msra.mxu0 %v7403_v7  ;;  %v2711_v6 = vpack.i.b16 %v2690_v62, %v2690_v62  ;;  %v7451_v7 = vld [vmem:[%s10650_s7 + $0x850] ss:$28 sps:$4 sm:$0xff]  }
 0x29d   :  { %5686 = vmatprep.subr.bf16.mxu0 %v7411_v8  ;;  %v7526_v62 = vld [vmem:[%s10650_s7 + $0xaf0] ss:$28 sps:$4 sm:$0xff]  }
 0x29f   :  { %5644 = vmatpush1.bf16.msra.mxu1 %v7382_v9 }
 0x2a0   :  { %5645 = vmatprep.subr.bf16.mxu1 %v7390_v10  ;;  %5687 = vmatpush1.bf16.msra.mxu0 %v7409_v11  ;;  %v7456_v10 = vld [vmem:[%s10650_s7 + $0x81c] ss:$28 sps:$4 sm:$0xff]   ;;  %v2718_v11 = vpack.i.b16 %v2691_v3, %v2691_v3  ;;  %v7483_v3 = vld [vmem:[%s10650_s7 + $0x9a4] ss:$28 sps:$4 sm:$0xff]  }
 0x2a1   :  { %5688 = vmatprep.subr.bf16.mxu0 %v7417_v12 }
 0x2a3   :  { %5646 = vmatpush2.bf16.msra.mxu1 %v7388_v13 }
 0x2a4   :  { %5647 = vmatprep.subr.bf16.mxu1 %v7396_v14  ;;  %5689 = vmatpush2.bf16.msra.mxu0 %v7415_v15 }
 0x2a5   :  { %5690 = vmatprep.subr.bf16.mxu0 %v7423_v16  ;;  %v2716_v16 = vrot.slane %v2711_v6, %v8357_v29  ;;  %v7481_v6 = vld [vmem:[%s10650_s7 + $0x9a0] ss:$28 sps:$4 sm:$0xff]  }
 0x2a7   :  { %5648 = vmatpush2.bf16.msra.mxu1 %v7394_v17  ;;  %v7454_v17 = vld [vmem:[%s10650_s7 + $0x818] ss:$28 sps:$4 sm:$0xff]  }
 0x2a8   :  { %5649 = vmatprep.subr.bf16.mxu1 %v7402_v18  ;;  %5691 = vmatpush2.bf16.msra.mxu0 %v7421_v19 }
 0x2a9   :  { %5692 = vmatprep.subr.bf16.mxu0 %v7429_v21  ;;  %v7459_v21 = vld [vmem:[%s10650_s7 + $0x7e4] ss:$28 sps:$4 sm:$0xff]  }
 0x2ab   :  { %5650 = vmatpush2.bf16.msra.mxu1 %v7400_v22 }
 0x2ac   :  { %5651 = vmatprep.subr.bf16.mxu1 %v7408_v24  ;;  %5693 = vmatpush2.bf16.msra.mxu0 %v7427_v25  ;;  %v2723_v25 = vrot.slane %v2718_v11, %v8357_v29  ;;  %v7489_v11 = vld [vmem:[%s10650_s7 + $0x934] ss:$28 sps:$4 sm:$0xff]  }
 0x2ad   :  { %5694 = vmatprep.subr.bf16.mxu0 %v7435_v26 }
 0x2af   :  { %5652 = vmatpush2.bf16.msra.mxu1 %v7406_v28 }
 0x2b0   :  { %5653 = vmatprep.subr.bf16.mxu1 %v7414_v40  ;;  %5695 = vmatpush2.bf16.msra.mxu0 %v7433_v33  ;;  %v7462_v40 = vld [vmem:[%s10650_s7 + $0x7ac] ss:$28 sps:$4 sm:$0xff]  }
 0x2b1   :  { %5696 = vmatprep.subr.bf16.mxu0 %v7438_v34 }
 0x2b3   :  { %5654 = vmatpush2.bf16.msra.mxu1 %v7412_v41 }
 0x2b4   :  { %5655 = vmatprep.subr.bf16.mxu1 %v7420_v38  ;;  %5697 = vmatpush2.bf16.msra.mxu0 %v7436_v43  ;;  %v7496_v43 = vld [vmem:[%s10650_s7 + $0xc08] ss:$28 sps:$4 sm:$0xff]  }
 0x2b5   :  { %5698 = vmatprep.subr.bf16.mxu0 %v7441_v44 }
 0x2b7   :  { %5656 = vmatpush2.bf16.msra.mxu1 %v7418_v36  ;;  %v7463_v36 = vld [vmem:[%s10650_s7 + $0x770] ss:$28 sps:$4 sm:$0xff]  }
 0x2b8   :  { %5657 = vmatprep.subr.bf16.mxu1 %v7426_v47  ;;  %5699 = vmatpush2.bf16.msra.mxu0 %v7439_v48  ;;  %v7510_v47 = vld [vmem:[%s10650_s7 + $0xb9c] ss:$28 sps:$4 sm:$0xff]  }
 0x2b9   :  { %5700 = vmatprep.subr.bf16.mxu0 %v7444_v31  ;;  %v7466_v48 = vld [vmem:[%s10650_s7 + $0x738] ss:$28 sps:$4 sm:$0xff]   ;;  %v7471_v31 = vld [vmem:[%s10650_s7 + $0x704] ss:$28 sps:$4 sm:$0xff]  }
 0x2bb   :  { %5658 = vmatpush2.bf16.msra.mxu1 %v7424_v39  ;;  %v7508_v39 = vld [vmem:[%s10650_s7 + $0xb98] ss:$28 sps:$4 sm:$0xff]  }
 0x2bc   :  { %5659 = vmatprep.subr.bf16.mxu1 %v7432_v50  ;;  %5701 = vmatpush2.bf16.msra.mxu0 %v7442_v51  ;;  %v7469_v50 = vld [vmem:[%s10650_s7 + $0x700] ss:$28 sps:$4 sm:$0xff]   ;;  %v7474_v51 = vld [vmem:[%s10650_s7 + $0xa4c] ss:$28 sps:$4 sm:$0xff]  }
 0x2bd   :  { %5702 = vmatprep.subr.bf16.mxu0 %v7447_v52  ;;  %v7514_v52 = vld [vmem:[%s10650_s7 + $0xb60] ss:$28 sps:$4 sm:$0xff]  }
 0x2bf   :  { %5660 = vmatpush2.bf16.msra.mxu1 %v7430_v53  ;;  %v7522_v53 = vld [vmem:[%s10650_s7 + $0xb2c] ss:$28 sps:$4 sm:$0xff]  }
 0x2c0   :  { %5703 = vmatpush2.bf16.msra.mxu0 %v7445_v55  ;;  %5715 = vmatprep.subr.bf16.mxu1 %v7450_v58  ;;  %v7520_v55 = vld [vmem:[%s10650_s7 + $0xb28] ss:$28 sps:$4 sm:$0xff]   ;;  %v7528_v58 = vld [vmem:[%s10650_s7 + $0xaf4] ss:$28 sps:$4 sm:$0xff]  }
 0x2c1   :  { %5758 = vmatprep.subr.bf16.mxu0 %v7498_v61  ;;  %v7480_v61 = vld [vmem:[%s10650_s7 + $0x9dc] ss:$28 sps:$4 sm:$0xff]  }
 0x2c2   :  { %v2414_v4 = vpop.f32.mrf.mxu1  ;;  %v2457_v5 = vpop.f32.mrf.mxu0  ;;  %5662 = vmatmul.mubr.bf16.vlgmr.msra.gmra.mxu1 %v9410_v1 }
 0x2c3   :  { %5716 = vmatpush1.bf16.msra.mxu1 %v7448_v0  ;;  %v2458_v14 = vadd.f32 %v2457_v5, %v2414_v4  ;;  %v7534_v0 = vld [vmem:[%s10650_s7 + $0xabc] ss:$28 sps:$4 sm:$0xff]   ;;  %v7540_v5 = vld [vmem:[%s10650_s7 + $0xa84] ss:$28 sps:$4 sm:$0xff]  }
 0x2c4   :  { %v2416_v8 = vpop.f32.mrf.mxu1  ;;  %v2459_v9 = vpop.f32.mrf.mxu0  ;;  %5717 = vmatprep.subr.bf16.mxu1 %v7453_v2  ;;  %v7478_v2 = vld [vmem:[%s10650_s7 + $0x9d8] ss:$28 sps:$4 sm:$0xff]  }
 0x2c5   :  { %v2460_v22 = vadd.f32 %v2459_v9, %v2416_v8  ;;  %v7532_v4 = vld [vmem:[%s10650_s7 + $0xab8] ss:$28 sps:$4 sm:$0xff]   ;;  %v7538_v8 = vld [vmem:[%s10650_s7 + $0xa80] ss:$28 sps:$4 sm:$0xff]   ;;  %v7546_v9 = vld [vmem:[%s10650_s7 + $0xdcc] ss:$28 sps:$4 sm:$0xff]  }
 0x2c6   :  { %v2418_v12 = vpop.f32.mrf.mxu1  ;;  %v2461_v13 = vpop.f32.mrf.mxu0 }
 0x2c7   :  { %v2462_v15 = vadd.f32 %v2461_v13, %v2418_v12  ;;  %5718 = vmatpush1.bf16.msra.mxu1 %v7451_v7  ;;  %v7486_v7 = vld [vmem:[%s10650_s7 + $0x96c] ss:$28 sps:$4 sm:$0xff]   ;;  %v7552_v13 = vld [vmem:[%s10650_s7 + $0xd94] ss:$28 sps:$4 sm:$0xff]  }
 0x2c8   :  { %v2420_v18 = vpop.f32.mrf.mxu1  ;;  %v2463_v19 = vpop.f32.mrf.mxu0  ;;  %5719 = vmatprep.subr.bf16.mxu1 %v7456_v10  ;;  %v7484_v10 = vld [vmem:[%s10650_s7 + $0x968] ss:$28 sps:$4 sm:$0xff]  }
 0x2c9   :  { %v2640_v23 = vpack.c.bf16 %v2462_v15, %v2458_v14  ;;  %v2464_v24 = vadd.f32 %v2463_v19, %v2420_v18  ;;  %v7544_v12 = vld [vmem:[%s10650_s7 + $0xdc8] ss:$28 sps:$4 sm:$0xff]   ;;  %v7487_v14 = vld [vmem:[%s10650_s7 + $0x930] ss:$28 sps:$4 sm:$0xff]   ;;  %v7492_v15 = vld [vmem:[%s10650_s7 + $0x8fc] ss:$28 sps:$4 sm:$0xff]  }
 0x2ca   :  { %v7490_v18 = vld [vmem:[%s10650_s7 + $0x8f8] ss:$28 sps:$4 sm:$0xff]   ;;  %v2666_v19 = vsub.s32 4, %v8351_v27 }
 0x2cb   :  { %v2754_v26 = vadd.bf16 %v2716_v16, %v2640_v23  ;;  %v2641_v28 = vpack.c.bf16 %v2464_v24, %v2460_v22  ;;  %5720 = vmatpush1.bf16.msra.mxu1 %v7454_v17  ;;  %v7550_v16 = vld [vmem:[%s10650_s7 + $0xd90] ss:$28 sps:$4 sm:$0xff]   ;;  %v7558_v17 = vld [vmem:[%s10650_s7 + $0xd5c] ss:$28 sps:$4 sm:$0xff]   ;;  %v2670_v23 = vsub.s32 5, %v8351_v27 }
 0x2cc   :  { %5721 = vmatprep.subr.bf16.mxu1 %v7459_v21  ;;  %v7495_v21 = vld [vmem:[%s10650_s7 + $0x8c4] ss:$28 sps:$4 sm:$0xff]   ;;  %v7556_v22 = vld [vmem:[%s10650_s7 + $0xd58] ss:$28 sps:$4 sm:$0xff]  }
 0x2cd   :  { %v2755_v33 = vadd.bf16 %v2723_v25, %v2641_v28  ;;  %v2762_v34 = vmul.bf16 1045249613, %v2754_v26  ;;  %v7564_v24 = vld [vmem:[%s10650_s7 + $0xd24] ss:$28 sps:$4 sm:$0xff]   ;;  %v7501_v28 = vld [vmem:[%s10650_s7 + $0x194] ss:$28 sps:$4 sm:$0xff]  }
 0x2ce   :  { %v7493_v25 = vld [vmem:[%s10650_s7 + $0x8c0] ss:$28 sps:$4 sm:$0xff]  }
 0x2cf   :  { %v2763_v41 = vmul.bf16 1045249613, %v2755_v33  ;;  %5722 = vmatpush1.bf16.msra.mxu1 %v7457_v32  ;;  %v9447_v44 = vmax.bf16 %v2762_v34, %v2754_v26  ;;  %v2667_v26 = vrot.slane %v9183_v20, %v2666_v19  ;;  %v7562_v32 = vld [vmem:[%s10650_s7 + $0xd20] ss:$28 sps:$4 sm:$0xff]  }
 0x2d0   :  { %5723 = vmatprep.subr.bf16.mxu1 %v7462_v40  ;;  %v2671_v40 = vrot.slane %v9183_v20, %v2670_v23 }
 0x2d1   :  { %v9442_v38 = vmax.bf16 %v2763_v41, %v2755_v33  ;;  %v7570_v33 = vld [vmem:[%s10650_s7 + $0xcec] ss:$28 sps:$4 sm:$0xff]   ;;  %v2692_v34 = vpack.c.bf16 %v2667_v26, %v2667_v26 }
 0x2d2   :  { %v7568_v41 = vld [vmem:[%s10650_s7 + $0xce8] ss:$28 sps:$4 sm:$0xff]  }
 0x2d3   :  { %5704 = vmatprep.mubr.bf16.mxu0 %v9442_v38  ;;  %5724 = vmatpush1.bf16.msra.mxu1 %v7460_v35  ;;  %v7543_v26 = vld [vmem:[%s10650_s7 + $0xc] ss:$28 sps:$4 sm:$0xff]  }
 0x2d4   :  { %5705 = vmatmul.mubr.bf16.vlgmr.msra.gmra.mxu0 %v9447_v44  ;;  %5725 = vmatprep.subr.bf16.mxu1 %v7465_v42  ;;  %v2693_v42 = vpack.c.bf16 %v2671_v40, %v2671_v40  ;;  %v7547_v40 = vld [vmem:[%s10650_s7 + $0x350] ss:$28 sps:$4 sm:$0xff]  }
 0x2d5   :  { %5759 = vmatpush1.bf16.msra.mxu0 %v7496_v43  ;;  %v7576_v43 = vld [vmem:[%s10650_s7 + $0xcb4] ss:$28 sps:$4 sm:$0xff]  }
 0x2d6   :  { %5760 = vmatprep.subr.bf16.mxu0 %v7504_v45 }
 0x2d7   :  { %5726 = vmatpush1.bf16.msra.mxu1 %v7463_v36 }
 0x2d8   :  { %5727 = vmatprep.subr.bf16.mxu1 %v7468_v37  ;;  %v2725_v37 = vpack.i.b16 %v2692_v34, %v2692_v34  ;;  %v7553_v34 = vld [vmem:[%s10650_s7 + $0x318] ss:$28 sps:$4 sm:$0xff]  }
 0x2d9   :  { %5761 = vmatpush1.bf16.msra.mxu0 %v7502_v46 }
 0x2da   :  { %5762 = vmatprep.subr.bf16.mxu0 %v7510_v47  ;;  %v7574_v47 = vld [vmem:[%s10650_s7 + $0xcb0] ss:$28 sps:$4 sm:$0xff]  }
 0x2db   :  { %5728 = vmatpush1.bf16.msra.mxu1 %v7466_v48 }
 0x2dc   :  { %5729 = vmatprep.subr.bf16.mxu1 %v7471_v31  ;;  %v2732_v31 = vpack.i.b16 %v2693_v42, %v2693_v42  ;;  %v7559_v42 = vld [vmem:[%s10650_s7 + $0x2e0] ss:$28 sps:$4 sm:$0xff]  }
 0x2dd   :  { %5763 = vmatpush1.bf16.msra.mxu0 %v7508_v39  ;;  %v7582_v39 = vld [vmem:[%s10650_s7 + $0xc7c] ss:$28 sps:$4 sm:$0xff]  }
 0x2de   :  { %5764 = vmatprep.subr.bf16.mxu0 %v7516_v49 }
 0x2df   :  { %5730 = vmatpush1.bf16.msra.mxu1 %v7469_v50 }
 0x2e0   :  { %5731 = vmatprep.subr.bf16.mxu1 %v7474_v51 }
 0x2e1   :  { %5765 = vmatpush1.bf16.msra.mxu0 %v7514_v52  ;;  %v2730_v52 = vrot.slane %v2725_v37, %v8357_v29  ;;  %v7565_v37 = vld [vmem:[%s10650_s7 + $0x2a8] ss:$28 sps:$4 sm:$0xff]  }
 0x2e2   :  { %5766 = vmatprep.subr.bf16.mxu0 %v7522_v53 }
 0x2e3   :  { %5732 = vmatpush2.bf16.msra.mxu1 %v7472_v56 }
 0x2e4   :  { %5733 = vmatprep.subr.bf16.mxu1 %v7477_v54  ;;  %v7580_v54 = vld [vmem:[%s10650_s7 + $0xc78] ss:$28 sps:$4 sm:$0xff]  }
 0x2e5   :  { %5767 = vmatpush1.bf16.msra.mxu0 %v7520_v55 }
 0x2e6   :  { %5768 = vmatprep.subr.bf16.mxu0 %v7528_v58 }
 0x2e7   :  { %5734 = vmatpush2.bf16.msra.mxu1 %v7475_v60 }
 0x2e8   :  { %5735 = vmatprep.subr.bf16.mxu1 %v7480_v61  ;;  %v2737_v61 = vrot.slane %v2732_v31, %v8357_v29 }
 0x2e9   :  { %5769 = vmatpush1.bf16.msra.mxu0 %v7526_v62  ;;  %v7588_v62 = vld [vmem:[%s10650_s7 + $0xc44] ss:$28 sps:$4 sm:$0xff]  }
 0x2ea   :  { %5770 = vmatprep.subr.bf16.mxu0 %v7534_v0 }
 0x2eb   :  { %5736 = vmatpush2.bf16.msra.mxu1 %v7478_v2 }
 0x2ec   :  { %5737 = vmatprep.subr.bf16.mxu1 %v7483_v3  ;;  %v7586_v3 = vld [vmem:[%s10650_s7 + $0xc40] ss:$28 sps:$4 sm:$0xff]  }
 0x2ed   :  { %5771 = vmatpush1.bf16.msra.mxu0 %v7532_v4 }
 0x2ee   :  { %5772 = vmatprep.subr.bf16.mxu0 %v7540_v5  ;;  %v7594_v5 = vld [vmem:[%s10650_s7 + $0x514] ss:$28 sps:$4 sm:$0xff]  }
 0x2ef   :  { %5738 = vmatpush2.bf16.msra.mxu1 %v7481_v6 }
 0x2f0   :  { %5739 = vmatprep.subr.bf16.mxu1 %v7486_v7 }
 0x2f1   :  { %5773 = vmatpush1.bf16.msra.mxu0 %v7538_v8 }
 0x2f2   :  { %5774 = vmatprep.subr.bf16.mxu0 %v7546_v9  ;;  %v7499_v9 = vld [vmem:[%s10650_s7 + $0x190] ss:$28 sps:$4 sm:$0xff]  }
 0x2f3   :  { %5740 = vmatpush2.bf16.msra.mxu1 %v7484_v10 }
 0x2f4   :  { %5741 = vmatprep.subr.bf16.mxu1 %v7489_v11  ;;  %v7507_v11 = vld [vmem:[%s10650_s7 + $0x15c] ss:$28 sps:$4 sm:$0xff]  }
 0x2f5   :  { %5775 = vmatpush2.bf16.msra.mxu0 %v7544_v12  ;;  %v7505_v12 = vld [vmem:[%s10650_s7 + $0x158] ss:$28 sps:$4 sm:$0xff]  }
 0x2f6   :  { %5776 = vmatprep.subr.bf16.mxu0 %v7552_v13  ;;  %v7513_v13 = vld [vmem:[%s10650_s7 + $0x124] ss:$28 sps:$4 sm:$0xff]  }
 0x2f7   :  { %5742 = vmatpush2.bf16.msra.mxu1 %v7487_v14  ;;  %v7511_v14 = vld [vmem:[%s10650_s7 + $0x120] ss:$28 sps:$4 sm:$0xff]  }
 0x2f8   :  { %5743 = vmatprep.subr.bf16.mxu1 %v7492_v15  ;;  %v7519_v15 = vld [vmem:[%s10650_s7 + $0xec] ss:$28 sps:$4 sm:$0xff]  }
 0x2f9   :  { %5777 = vmatpush2.bf16.msra.mxu0 %v7550_v16  ;;  %v7517_v16 = vld [vmem:[%s10650_s7 + $0xe8] ss:$28 sps:$4 sm:$0xff]  }
 0x2fa   :  { %5778 = vmatprep.subr.bf16.mxu0 %v7558_v17  ;;  %v7525_v17 = vld [vmem:[%s10650_s7 + $0xb4] ss:$28 sps:$4 sm:$0xff]  }
 0x2fb   :  { %5744 = vmatpush2.bf16.msra.mxu1 %v7490_v18  ;;  %v7523_v18 = vld [vmem:[%s10650_s7 + $0xb0] ss:$28 sps:$4 sm:$0xff]  }
 0x2fc   :  { %5745 = vmatprep.subr.bf16.mxu1 %v7495_v21  ;;  %v7531_v21 = vld [vmem:[%s10650_s7 + $0x7c] ss:$28 sps:$4 sm:$0xff]  }
 0x2fd   :  { %5779 = vmatpush2.bf16.msra.mxu0 %v7556_v22  ;;  %v7529_v22 = vld [vmem:[%s10650_s7 + $0x78] ss:$28 sps:$4 sm:$0xff]  }
 0x2fe   :  { %5780 = vmatprep.subr.bf16.mxu0 %v7564_v24  ;;  %v7537_v24 = vld [vmem:[%s10650_s7 + $0x44] ss:$28 sps:$4 sm:$0xff]  }
 0x2ff   :  { %5746 = vmatpush2.bf16.msra.mxu1 %v7493_v25  ;;  %v7535_v25 = vld [vmem:[%s10650_s7 + $0x40] ss:$28 sps:$4 sm:$0xff]  }
 0x300   :  { %5801 = vmatprep.subr.bf16.mxu1 %v7501_v28  ;;  %v7541_v28 = vld [vmem:[%s10650_s7 + $0x8] ss:$28 sps:$4 sm:$0xff]  }
 0x301   :  { %5781 = vmatpush2.bf16.msra.mxu0 %v7562_v32  ;;  %v7549_v32 = vld [vmem:[%s10650_s7 + $0x354] ss:$28 sps:$4 sm:$0xff]  }
 0x302   :  { %v2500_v35 = vpop.f32.mrf.mxu1  ;;  %5782 = vmatprep.subr.bf16.mxu0 %v7570_v33  ;;  %v7555_v33 = vld [vmem:[%s10650_s7 + $0x31c] ss:$28 sps:$4 sm:$0xff]  }
 0x303   :  { %v2543_v45 = vpop.f32.mrf.mxu0 }
 0x304   :  { %v2502_v36 = vpop.f32.mrf.mxu1  ;;  %v2544_v50 = vadd.f32 %v2543_v45, %v2500_v35  ;;  %v2674_v35 = vsub.s32 6, %v8351_v27  ;;  %v7567_v45 = vld [vmem:[%s10650_s7 + $0x2ac] ss:$28 sps:$4 sm:$0xff]  }
 0x305   :  { %v2545_v46 = vpop.f32.mrf.mxu0  ;;  %5783 = vmatpush2.bf16.msra.mxu0 %v7568_v41  ;;  %v7561_v41 = vld [vmem:[%s10650_s7 + $0x2e4] ss:$28 sps:$4 sm:$0xff]  }
 0x306   :  { %v2504_v48 = vpop.f32.mrf.mxu1  ;;  %5784 = vmatprep.subr.bf16.mxu0 %v7576_v43  ;;  %v2546_v55 = vadd.f32 %v2545_v46, %v2502_v36  ;;  %v2678_v43 = vsub.s32 7, %v8351_v27  ;;  %v2675_v36 = vrot.slane %v9183_v20, %v2674_v35 }
 0x307   :  { %v2547_v49 = vpop.f32.mrf.mxu0 }
 0x308   :  { %v2548_v51 = vadd.f32 %v2547_v49, %v2504_v48  ;;  %v2506_v53 = vpop.f32.mrf.mxu1  ;;  %v2679_v46 = vrot.slane %v9183_v20, %v2678_v43  ;;  %v2694_v48 = vpack.c.bf16 %v2675_v36, %v2675_v36  ;;  %v7612_v43 = vld [vmem:[%s10650_s7 + $0x46c] ss:$28 sps:$4 sm:$0xff]  }
 0x309   :  { %v2549_v56 = vpop.f32.mrf.mxu0  ;;  %5785 = vmatpush2.bf16.msra.mxu0 %v7574_v47  ;;  %v7573_v47 = vld [vmem:[%s10650_s7 + $0x274] ss:$28 sps:$4 sm:$0xff]   ;;  %v7610_v36 = vld [vmem:[%s10650_s7 + $0x468] ss:$28 sps:$4 sm:$0xff]  }
 0x30a   :  { %v2642_v58 = vpack.c.bf16 %v2548_v51, %v2544_v50  ;;  %v2550_v60 = vadd.f32 %v2549_v56, %v2506_v53  ;;  %5786 = vmatprep.subr.bf16.mxu0 %v7582_v39  ;;  %v7571_v39 = vld [vmem:[%s10650_s7 + $0x270] ss:$28 sps:$4 sm:$0xff]   ;;  %v2695_v49 = vpack.c.bf16 %v2679_v46, %v2679_v46  ;;  %v7579_v51 = vld [vmem:[%s10650_s7 + $0x23c] ss:$28 sps:$4 sm:$0xff]  }
 0x30b   :  { %v7618_v46 = vld [vmem:[%s10650_s7 + $0x434] ss:$28 sps:$4 sm:$0xff]  }
 0x30c   :  { %v2756_v0 = vadd.bf16 %v2730_v52, %v2642_v58  ;;  %v2643_v2 = vpack.c.bf16 %v2550_v60, %v2546_v55  ;;  %v2739_v52 = vpack.i.b16 %v2694_v48, %v2694_v48  ;;  %v2746_v55 = vpack.i.b16 %v2695_v49, %v2695_v49  ;;  %v7585_v60 = vld [vmem:[%s10650_s7 + $0x204] ss:$28 sps:$4 sm:$0xff]   ;;  %v7616_v48 = vld [vmem:[%s10650_s7 + $0x430] ss:$28 sps:$4 sm:$0xff]   ;;  %v7627_v49 = vld [vmem:[%s10650_s7 + $0x77c] ss:$28 sps:$4 sm:$0xff]  }
 0x30d   :  { %5787 = vmatpush2.bf16.msra.mxu0 %v7580_v54  ;;  %v7577_v54 = vld [vmem:[%s10650_s7 + $0x238] ss:$28 sps:$4 sm:$0xff]  }
 0x30e   :  { %v2757_v4 = vadd.bf16 %v2737_v61, %v2643_v2  ;;  %5788 = vmatprep.subr.bf16.mxu0 %v7588_v62  ;;  %v2764_v6 = vmul.bf16 1045249613, %v2756_v0 }
 0x310   :  { %v2765_v7 = vmul.bf16 1045249613, %v2757_v4  ;;  %v9625_v10 = vmax.bf16 %v2764_v6, %v2756_v0  ;;  %v2744_v0 = vrot.slane %v2739_v52, %v8357_v29  ;;  %v7633_v52 = vld [vmem:[%s10650_s7 + $0x744] ss:$28 sps:$4 sm:$0xff]  }
 0x311   :  { %5789 = vmatpush2.bf16.msra.mxu0 %v7586_v3 }
 0x312   :  { %v9620_v8 = vmax.bf16 %v2765_v7, %v2757_v4  ;;  %5844 = vmatprep.subr.bf16.mxu0 %v7594_v5  ;;  %v2751_v7 = vrot.slane %v2746_v55, %v8357_v29  ;;  %v7639_v55 = vld [vmem:[%s10650_s7 + $0x70c] ss:$28 sps:$4 sm:$0xff]  }
 0x314   :  { %5747 = vmatprep.mubr.bf16.mxu1 %v9620_v8 }
 0x315   :  { %5748 = vmatmul.mubr.bf16.vlgmr.msra.gmra.mxu1 %v9625_v10 }
 0x316   :  { %5802 = vmatpush1.bf16.msra.mxu1 %v7499_v9  ;;  %5833 = vmatprep.mubr.bf16.mxu1 %v9258_v63  ;;  %v7583_v9 = vld [vmem:[%s10650_s7 + $0x200] ss:$28 sps:$4 sm:$0xff]  }
 0x317   :  { %5803 = vmatprep.subr.bf16.mxu1 %v7507_v11  ;;  %v7591_v11 = vld [vmem:[%s10650_s7 + $0x1cc] ss:$28 sps:$4 sm:$0xff]  }
 0x31a   :  { %5804 = vmatpush1.bf16.msra.mxu1 %v7505_v12 }
 0x31b   :  { %5805 = vmatprep.subr.bf16.mxu1 %v7513_v13 }
 0x31e   :  { %5806 = vmatpush1.bf16.msra.mxu1 %v7511_v14 }
 0x31f   :  { %5807 = vmatprep.subr.bf16.mxu1 %v7519_v15  ;;  %v7589_v15 = vld [vmem:[%s10650_s7 + $0x1c8] ss:$28 sps:$4 sm:$0xff]  }
 0x322   :  { %5808 = vmatpush1.bf16.msra.mxu1 %v7517_v16 }
 0x323   :  { %5809 = vmatprep.subr.bf16.mxu1 %v7525_v17  ;;  %v7597_v17 = vld [vmem:[%s10650_s7 + $0x894] ss:$28 sps:$4 sm:$0xff]  }
 0x326   :  { %5810 = vmatpush1.bf16.msra.mxu1 %v7523_v18 }
 0x327   :  { %5811 = vmatprep.subr.bf16.mxu1 %v7531_v21 }
 0x32a   :  { %5812 = vmatpush1.bf16.msra.mxu1 %v7529_v22  ;;  %v7592_v22 = vld [vmem:[%s10650_s7 + $0x510] ss:$28 sps:$4 sm:$0xff]  }
 0x32b   :  { %5813 = vmatprep.subr.bf16.mxu1 %v7537_v24  ;;  %v7595_v24 = vld [vmem:[%s10650_s7 + $0x890] ss:$28 sps:$4 sm:$0xff]  }
 0x32e   :  { %5814 = vmatpush1.bf16.msra.mxu1 %v7535_v25 }
 0x32f   :  { %5815 = vmatprep.subr.bf16.mxu1 %v7543_v26  ;;  %v7600_v26 = vld [vmem:[%s10650_s7 + $0x4dc] ss:$28 sps:$4 sm:$0xff]  }
 0x332   :  { %5816 = vmatpush1.bf16.msra.mxu1 %v7541_v28  ;;  %v7603_v28 = vld [vmem:[%s10650_s7 + $0x85c] ss:$28 sps:$4 sm:$0xff]  }
 0x333   :  { %5817 = vmatprep.subr.bf16.mxu1 %v7549_v32  ;;  %v7598_v32 = vld [vmem:[%s10650_s7 + $0x4d8] ss:$28 sps:$4 sm:$0xff]  }
 0x336   :  { %5818 = vmatpush2.bf16.msra.mxu1 %v7547_v40  ;;  %v7601_v40 = vld [vmem:[%s10650_s7 + $0x858] ss:$28 sps:$4 sm:$0xff]  }
 0x337   :  { %5819 = vmatprep.subr.bf16.mxu1 %v7555_v33  ;;  %v7606_v33 = vld [vmem:[%s10650_s7 + $0x4a4] ss:$28 sps:$4 sm:$0xff]  }
 0x33a   :  { %5820 = vmatpush2.bf16.msra.mxu1 %v7553_v34  ;;  %v7609_v34 = vld [vmem:[%s10650_s7 + $0x824] ss:$28 sps:$4 sm:$0xff]  }
 0x33b   :  { %5821 = vmatprep.subr.bf16.mxu1 %v7561_v41  ;;  %v7604_v41 = vld [vmem:[%s10650_s7 + $0x4a0] ss:$28 sps:$4 sm:$0xff]  }
 0x33e   :  { %5822 = vmatpush2.bf16.msra.mxu1 %v7559_v42  ;;  %v7607_v42 = vld [vmem:[%s10650_s7 + $0x820] ss:$28 sps:$4 sm:$0xff]  }
 0x33f   :  { %5823 = vmatprep.subr.bf16.mxu1 %v7567_v45  ;;  %v7615_v45 = vld [vmem:[%s10650_s7 + $0x7ec] ss:$28 sps:$4 sm:$0xff]  }
 0x342   :  { %5824 = vmatpush2.bf16.msra.mxu1 %v7565_v37  ;;  %v2586_v31 = vpop.f32.mrf.mxu1  ;;  %v7613_v37 = vld [vmem:[%s10650_s7 + $0x7e8] ss:$28 sps:$4 sm:$0xff]  }
 0x343   :  { %v2629_v50 = vpop.f32.mrf.mxu0  ;;  %5825 = vmatprep.subr.bf16.mxu1 %v7573_v47  ;;  %v7621_v47 = vld [vmem:[%s10650_s7 + $0x7b4] ss:$28 sps:$4 sm:$0xff]  }
 0x344   :  { %v2588_v20 = vpop.f32.mrf.mxu1  ;;  %v2630_v61 = vadd.f32 %v2629_v50, %v2586_v31  ;;  %v7619_v31 = vld [vmem:[%s10650_s7 + $0x7b0] ss:$28 sps:$4 sm:$0xff]   ;;  %v7622_v50 = vld [vmem:[%s10650_s7 + $0x3f8] ss:$28 sps:$4 sm:$0xff]  }
 0x345   :  { %v2631_v53 = vpop.f32.mrf.mxu0 }
 0x346   :  { %5826 = vmatpush2.bf16.msra.mxu1 %v7571_v39  ;;  %v2590_v56 = vpop.f32.mrf.mxu1  ;;  %v2632_v4 = vadd.f32 %v2631_v53, %v2588_v20  ;;  %v7624_v39 = vld [vmem:[%s10650_s7 + $0x3fc] ss:$28 sps:$4 sm:$0xff]   ;;  %v7630_v20 = vld [vmem:[%s10650_s7 + $0x3c4] ss:$28 sps:$4 sm:$0xff]  }
 0x347   :  { %v2633_v58 = vpop.f32.mrf.mxu0  ;;  %5827 = vmatprep.subr.bf16.mxu1 %v7579_v51  ;;  %v7625_v51 = vld [vmem:[%s10650_s7 + $0x778] ss:$28 sps:$4 sm:$0xff]   ;;  %v7628_v53 = vld [vmem:[%s10650_s7 + $0x3c0] ss:$28 sps:$4 sm:$0xff]  }
 0x348   :  { %v2634_v62 = vadd.f32 %v2633_v58, %v2590_v56  ;;  %v2592_v2 = vpop.f32.mrf.mxu1  ;;  %v7631_v56 = vld [vmem:[%s10650_s7 + $0x740] ss:$28 sps:$4 sm:$0xff]   ;;  %v7634_v58 = vld [vmem:[%s10650_s7 + $0x388] ss:$28 sps:$4 sm:$0xff]  }
 0x349   :  { %v2635_v3 = vpop.f32.mrf.mxu0 }
 0x34a   :  { %v2644_v5 = vpack.c.bf16 %v2634_v62, %v2630_v61  ;;  %v2636_v6 = vadd.f32 %v2635_v3, %v2592_v2  ;;  %5828 = vmatpush2.bf16.msra.mxu1 %v7577_v54  ;;  %v7636_v54 = vld [vmem:[%s10650_s7 + $0x38c] ss:$28 sps:$4 sm:$0xff]   ;;  %v7642_v61 = vld [vmem:[%s10650_s7 + $0x6d4] ss:$28 sps:$4 sm:$0xff]   ;;  %v7648_v3 = vld [vmem:[%s10650_s7 + $0x69c] ss:$28 sps:$4 sm:$0xff]  }
 0x34b   :  { %5829 = vmatprep.subr.bf16.mxu1 %v7585_v60  ;;  %v7637_v60 = vld [vmem:[%s10650_s7 + $0x708] ss:$28 sps:$4 sm:$0xff]   ;;  %v7645_v62 = vld [vmem:[%s10650_s7 + $0xa54] ss:$28 sps:$4 sm:$0xff]  }
 0x34c   :  { %v2758_v12 = vadd.bf16 %v2744_v0, %v2644_v5  ;;  %v2645_v13 = vpack.c.bf16 %v2636_v6, %v2632_v4  ;;  %v7640_v0 = vld [vmem:[%s10650_s7 + $0x6d0] ss:$28 sps:$4 sm:$0xff]   ;;  %v7651_v4 = vld [vmem:[%s10650_s7 + $0xa1c] ss:$28 sps:$4 sm:$0xff]  }
 0x34d   :  { %v7643_v2 = vld [vmem:[%s10650_s7 + $0xa50] ss:$28 sps:$4 sm:$0xff]   ;;  %v7646_v5 = vld [vmem:[%s10650_s7 + $0x698] ss:$28 sps:$4 sm:$0xff]  }
 0x34e   :  { %v2759_v14 = vadd.bf16 %v2751_v7, %v2645_v13  ;;  %5830 = vmatpush2.bf16.msra.mxu1 %v7583_v9  ;;  %v2766_v16 = vmul.bf16 1045249613, %v2758_v12  ;;  %v7649_v6 = vld [vmem:[%s10650_s7 + $0xa18] ss:$28 sps:$4 sm:$0xff]   ;;  %v7654_v7 = vld [vmem:[%s10650_s7 + $0x664] ss:$28 sps:$4 sm:$0xff]  }
 0x34f   :  { %5831 = vmatprep.subr.bf16.mxu1 %v7591_v11  ;;  %v7657_v9 = vld [vmem:[%s10650_s7 + $0x9e4] ss:$28 sps:$4 sm:$0xff]   ;;  %v7660_v13 = vld [vmem:[%s10650_s7 + $0x62c] ss:$28 sps:$4 sm:$0xff]  }
 0x350   :  { %v2767_v18 = vmul.bf16 1045249613, %v2759_v14  ;;  %v9739_v25 = vmax.bf16 %v2766_v16, %v2758_v12  ;;  %v7652_v11 = vld [vmem:[%s10650_s7 + $0x660] ss:$28 sps:$4 sm:$0xff]   ;;  %v7661_v16 = vld [vmem:[%s10650_s7 + $0x9a8] ss:$28 sps:$4 sm:$0xff]  }
 0x351   :  { %v7655_v12 = vld [vmem:[%s10650_s7 + $0x9e0] ss:$28 sps:$4 sm:$0xff]  }
 0x352   :  { %v9731_v21 = vmax.bf16 %v2767_v18, %v2759_v14  ;;  %5832 = vmatpush2.bf16.msra.mxu1 %v7589_v15  ;;  %v7663_v14 = vld [vmem:[%s10650_s7 + $0x9ac] ss:$28 sps:$4 sm:$0xff]   ;;  %v7669_v18 = vld [vmem:[%s10650_s7 + $0x974] ss:$28 sps:$4 sm:$0xff]  }
 0x353   :  { %5887 = vmatprep.subr.bf16.mxu1 %v7597_v17  ;;  %v7658_v15 = vld [vmem:[%s10650_s7 + $0x628] ss:$28 sps:$4 sm:$0xff]   ;;  %v7666_v17 = vld [vmem:[%s10650_s7 + $0x5f4] ss:$28 sps:$4 sm:$0xff]  }
 0x354   :  { %5790 = vmatprep.mubr.bf16.mxu0 %v9731_v21 }
 0x355   :  { %5834 = vmatmul.mubr.bf16.vlgmr.msra.gmra.mxu1 %v9410_v1  ;;  %5791 = vmatmul.mubr.bf16.vlgmr.msra.gmra.mxu0 %v9739_v25 }
 0x356   :  { %5845 = vmatpush1.bf16.msra.mxu0 %v7592_v22  ;;  %5888 = vmatpush1.bf16.msra.mxu1 %v7595_v24  ;;  %v7664_v22 = vld [vmem:[%s10650_s7 + $0x5f0] ss:$28 sps:$4 sm:$0xff]  }
 0x357   :  { %5919 = vmatprep.mubr.bf16.mxu1 %v9620_v8  ;;  %5876 = vmatprep.mubr.bf16.mxu0 %v9442_v38  ;;  %v7667_v24 = vld [vmem:[%s10650_s7 + $0x970] ss:$28 sps:$4 sm:$0xff]  }
 0x358   :  { %5846 = vmatprep.subr.bf16.mxu0 %v7600_v26  ;;  %5889 = vmatprep.subr.bf16.mxu1 %v7603_v28  ;;  %v7672_v26 = vld [vmem:[%s10650_s7 + $0x5bc] ss:$28 sps:$4 sm:$0xff]  }
 0x359   :  { %v7675_v28 = vld [vmem:[%s10650_s7 + $0x93c] ss:$28 sps:$4 sm:$0xff]  }
 0x35a   :  { %5847 = vmatpush1.bf16.msra.mxu0 %v7598_v32  ;;  %5890 = vmatpush1.bf16.msra.mxu1 %v7601_v40  ;;  %v7670_v32 = vld [vmem:[%s10650_s7 + $0x5b8] ss:$28 sps:$4 sm:$0xff]  }
 0x35b   :  { %5848 = vmatprep.subr.bf16.mxu0 %v7606_v33  ;;  %5891 = vmatprep.subr.bf16.mxu1 %v7609_v34  ;;  %v7673_v40 = vld [vmem:[%s10650_s7 + $0x938] ss:$28 sps:$4 sm:$0xff]   ;;  %v7678_v33 = vld [vmem:[%s10650_s7 + $0x584] ss:$28 sps:$4 sm:$0xff]  }
 0x35c   :  { %v7681_v34 = vld [vmem:[%s10650_s7 + $0x904] ss:$28 sps:$4 sm:$0xff]  }
 0x35e   :  { %5849 = vmatpush1.bf16.msra.mxu0 %v7604_v41  ;;  %5892 = vmatpush1.bf16.msra.mxu1 %v7607_v42  ;;  %v7676_v41 = vld [vmem:[%s10650_s7 + $0x580] ss:$28 sps:$4 sm:$0xff]  }
 0x35f   :  { %5850 = vmatprep.subr.bf16.mxu0 %v7612_v43  ;;  %5893 = vmatprep.subr.bf16.mxu1 %v7615_v45  ;;  %v7679_v42 = vld [vmem:[%s10650_s7 + $0x900] ss:$28 sps:$4 sm:$0xff]   ;;  %v7684_v43 = vld [vmem:[%s10650_s7 + $0x54c] ss:$28 sps:$4 sm:$0xff]  }
 0x360   :  { %v7687_v45 = vld [vmem:[%s10650_s7 + $0x8cc] ss:$28 sps:$4 sm:$0xff]  }
 0x362   :  { %5851 = vmatpush1.bf16.msra.mxu0 %v7610_v36  ;;  %5894 = vmatpush1.bf16.msra.mxu1 %v7613_v37  ;;  %v7682_v36 = vld [vmem:[%s10650_s7 + $0x548] ss:$28 sps:$4 sm:$0xff]  }
 0x363   :  { %5852 = vmatprep.subr.bf16.mxu0 %v7618_v46  ;;  %5895 = vmatprep.subr.bf16.mxu1 %v7621_v47  ;;  %v7685_v37 = vld [vmem:[%s10650_s7 + $0x8c8] ss:$28 sps:$4 sm:$0xff]   ;;  %v7690_v46 = vld [vmem:[%s10650_s7 + $0xc14] ss:$28 sps:$4 sm:$0xff]   ;;  %v7693_v47 = vld [vmem:[%s10650_s7 + $0x19c] ss:$28 sps:$4 sm:$0xff]  }
 0x366   :  { %5853 = vmatpush1.bf16.msra.mxu0 %v7616_v48  ;;  %5896 = vmatpush1.bf16.msra.mxu1 %v7619_v31  ;;  %v7688_v48 = vld [vmem:[%s10650_s7 + $0xc10] ss:$28 sps:$4 sm:$0xff]   ;;  %v7691_v31 = vld [vmem:[%s10650_s7 + $0x198] ss:$28 sps:$4 sm:$0xff]  }
 0x367   :  { %5854 = vmatprep.subr.bf16.mxu0 %v7624_v39  ;;  %5897 = vmatprep.subr.bf16.mxu1 %v7627_v49  ;;  %v7696_v39 = vld [vmem:[%s10650_s7 + $0xbdc] ss:$28 sps:$4 sm:$0xff]   ;;  %v7699_v49 = vld [vmem:[%s10650_s7 + $0x164] ss:$28 sps:$4 sm:$0xff]  }
 0x36a   :  { %5855 = vmatpush1.bf16.msra.mxu0 %v7622_v50  ;;  %5898 = vmatpush1.bf16.msra.mxu1 %v7625_v51  ;;  %v7694_v50 = vld [vmem:[%s10650_s7 + $0xbd8] ss:$28 sps:$4 sm:$0xff]   ;;  %v7697_v51 = vld [vmem:[%s10650_s7 + $0x160] ss:$28 sps:$4 sm:$0xff]  }
 0x36b   :  { %5856 = vmatprep.subr.bf16.mxu0 %v7630_v20  ;;  %5899 = vmatprep.subr.bf16.mxu1 %v7633_v52  ;;  %v7702_v20 = vld [vmem:[%s10650_s7 + $0xba4] ss:$28 sps:$4 sm:$0xff]   ;;  %v7705_v52 = vld [vmem:[%s10650_s7 + $0x12c] ss:$28 sps:$4 sm:$0xff]  }
 0x36e   :  { %5857 = vmatpush1.bf16.msra.mxu0 %v7628_v53  ;;  %5900 = vmatpush1.bf16.msra.mxu1 %v7631_v56  ;;  %v7700_v53 = vld [vmem:[%s10650_s7 + $0xba0] ss:$28 sps:$4 sm:$0xff]   ;;  %v7703_v56 = vld [vmem:[%s10650_s7 + $0x128] ss:$28 sps:$4 sm:$0xff]  }
 0x36f   :  { %5858 = vmatprep.subr.bf16.mxu0 %v7636_v54  ;;  %5901 = vmatprep.subr.bf16.mxu1 %v7639_v55  ;;  %v7708_v54 = vld [vmem:[%s10650_s7 + $0xb6c] ss:$28 sps:$4 sm:$0xff]   ;;  %v7711_v55 = vld [vmem:[%s10650_s7 + $0xf4] ss:$28 sps:$4 sm:$0xff]  }
 0x372   :  { %5859 = vmatpush1.bf16.msra.mxu0 %v7634_v58  ;;  %5902 = vmatpush1.bf16.msra.mxu1 %v7637_v60  ;;  %v7706_v58 = vld [vmem:[%s10650_s7 + $0xb68] ss:$28 sps:$4 sm:$0xff]   ;;  %v7709_v60 = vld [vmem:[%s10650_s7 + $0xf0] ss:$28 sps:$4 sm:$0xff]  }
 0x373   :  { %5860 = vmatprep.subr.bf16.mxu0 %v7642_v61  ;;  %5903 = vmatprep.subr.bf16.mxu1 %v7645_v62  ;;  %v7714_v61 = vld [vmem:[%s10650_s7 + $0xb34] ss:$28 sps:$4 sm:$0xff]   ;;  %v7717_v62 = vld [vmem:[%s10650_s7 + $0xbc] ss:$28 sps:$4 sm:$0xff]  }
 0x376   :  { %5861 = vmatpush2.bf16.msra.mxu0 %v7640_v0  ;;  %5904 = vmatpush2.bf16.msra.mxu1 %v7643_v2  ;;  %v7712_v0 = vld [vmem:[%s10650_s7 + $0xb30] ss:$28 sps:$4 sm:$0xff]   ;;  %v7715_v2 = vld [vmem:[%s10650_s7 + $0xb8] ss:$28 sps:$4 sm:$0xff]  }
 0x377   :  { %5862 = vmatprep.subr.bf16.mxu0 %v7648_v3  ;;  %5905 = vmatprep.subr.bf16.mxu1 %v7651_v4  ;;  %v7720_v3 = vld [vmem:[%s10650_s7 + $0xafc] ss:$28 sps:$4 sm:$0xff]   ;;  %v7723_v4 = vld [vmem:[%s10650_s7 + $0x84] ss:$28 sps:$4 sm:$0xff]  }
 0x37a   :  { %5863 = vmatpush2.bf16.msra.mxu0 %v7646_v5  ;;  %5906 = vmatpush2.bf16.msra.mxu1 %v7649_v6  ;;  %v7718_v5 = vld [vmem:[%s10650_s7 + $0xaf8] ss:$28 sps:$4 sm:$0xff]   ;;  %v7721_v6 = vld [vmem:[%s10650_s7 + $0x80] ss:$28 sps:$4 sm:$0xff]  }
 0x37b   :  { %5864 = vmatprep.subr.bf16.mxu0 %v7654_v7  ;;  %5907 = vmatprep.subr.bf16.mxu1 %v7657_v9  ;;  %v7726_v7 = vld [vmem:[%s10650_s7 + $0xac4] ss:$28 sps:$4 sm:$0xff]   ;;  %v7729_v9 = vld [vmem:[%s10650_s7 + $0x4c] ss:$28 sps:$4 sm:$0xff]  }
 0x37e   :  { %5865 = vmatpush2.bf16.msra.mxu0 %v7652_v11  ;;  %5908 = vmatpush2.bf16.msra.mxu1 %v7655_v12  ;;  %v7724_v11 = vld [vmem:[%s10650_s7 + $0xac0] ss:$28 sps:$4 sm:$0xff]   ;;  %v7727_v12 = vld [vmem:[%s10650_s7 + $0x48] ss:$28 sps:$4 sm:$0xff]  }
 0x37f   :  { %5866 = vmatprep.subr.bf16.mxu0 %v7660_v13  ;;  %5909 = vmatprep.subr.bf16.mxu1 %v7663_v14  ;;  %v7732_v13 = vld [vmem:[%s10650_s7 + $0xa8c] ss:$28 sps:$4 sm:$0xff]   ;;  %v7735_v14 = vld [vmem:[%s10650_s7 + $0x14] ss:$28 sps:$4 sm:$0xff]  }
 0x382   :  { %5867 = vmatpush2.bf16.msra.mxu0 %v7658_v15  ;;  %5910 = vmatpush2.bf16.msra.mxu1 %v7661_v16  ;;  %v7730_v15 = vld [vmem:[%s10650_s7 + $0xa88] ss:$28 sps:$4 sm:$0xff]   ;;  %v7733_v16 = vld [vmem:[%s10650_s7 + $0x10] ss:$28 sps:$4 sm:$0xff]  }
 0x383   :  { %5868 = vmatprep.subr.bf16.mxu0 %v7666_v17  ;;  %5911 = vmatprep.subr.bf16.mxu1 %v7669_v18  ;;  %v7738_v17 = vld [vmem:[%s10650_s7 + $0xdd4] ss:$28 sps:$4 sm:$0xff]   ;;  %v7741_v18 = vld [vmem:[%s10650_s7 + $0x35c] ss:$28 sps:$4 sm:$0xff]  }
 0x386   :  { %5869 = vmatpush2.bf16.msra.mxu0 %v7664_v22  ;;  %5912 = vmatpush2.bf16.msra.mxu1 %v7667_v24  ;;  %v7736_v22 = vld [vmem:[%s10650_s7 + $0xdd0] ss:$28 sps:$4 sm:$0xff]   ;;  %v7739_v24 = vld [vmem:[%s10650_s7 + $0x358] ss:$28 sps:$4 sm:$0xff]  }
 0x387   :  { %5870 = vmatprep.subr.bf16.mxu0 %v7672_v26  ;;  %5913 = vmatprep.subr.bf16.mxu1 %v7675_v28  ;;  %v7744_v26 = vld [vmem:[%s10650_s7 + $0xd9c] ss:$28 sps:$4 sm:$0xff]   ;;  %v7747_v28 = vld [vmem:[%s10650_s7 + $0x324] ss:$28 sps:$4 sm:$0xff]  }
 0x38a   :  { %5871 = vmatpush2.bf16.msra.mxu0 %v7670_v32  ;;  %5914 = vmatpush2.bf16.msra.mxu1 %v7673_v40  ;;  %v7742_v32 = vld [vmem:[%s10650_s7 + $0xd98] ss:$28 sps:$4 sm:$0xff]   ;;  %v7745_v40 = vld [vmem:[%s10650_s7 + $0x320] ss:$28 sps:$4 sm:$0xff]  }
 0x38b   :  { %5872 = vmatprep.subr.bf16.mxu0 %v7678_v33  ;;  %5915 = vmatprep.subr.bf16.mxu1 %v7681_v34  ;;  %v7750_v33 = vld [vmem:[%s10650_s7 + $0xd64] ss:$28 sps:$4 sm:$0xff]   ;;  %v7753_v34 = vld [vmem:[%s10650_s7 + $0x2ec] ss:$28 sps:$4 sm:$0xff]  }
 0x38e   :  { %5873 = vmatpush2.bf16.msra.mxu0 %v7676_v41  ;;  %5916 = vmatpush2.bf16.msra.mxu1 %v7679_v42  ;;  %v7748_v41 = vld [vmem:[%s10650_s7 + $0xd60] ss:$28 sps:$4 sm:$0xff]   ;;  %v7751_v42 = vld [vmem:[%s10650_s7 + $0x2e8] ss:$28 sps:$4 sm:$0xff]  }
 0x38f   :  { %5874 = vmatprep.subr.bf16.mxu0 %v7684_v43  ;;  %5917 = vmatprep.subr.bf16.mxu1 %v7687_v45  ;;  %v7756_v43 = vld [vmem:[%s10650_s7 + $0xd2c] ss:$28 sps:$4 sm:$0xff]   ;;  %v7759_v45 = vld [vmem:[%s10650_s7 + $0x2b4] ss:$28 sps:$4 sm:$0xff]  }
 0x392   :  { %5875 = vmatpush2.bf16.msra.mxu0 %v7682_v36  ;;  %5918 = vmatpush2.bf16.msra.mxu1 %v7685_v37  ;;  %v7754_v36 = vld [vmem:[%s10650_s7 + $0xd28] ss:$28 sps:$4 sm:$0xff]   ;;  %v7757_v37 = vld [vmem:[%s10650_s7 + $0x2b0] ss:$28 sps:$4 sm:$0xff]  }
 0x393   :  { %5930 = vmatprep.subr.bf16.mxu0 %v7690_v46  ;;  %5973 = vmatprep.subr.bf16.mxu1 %v7693_v47  ;;  %v7762_v46 = vld [vmem:[%s10650_s7 + $0xcf4] ss:$28 sps:$4 sm:$0xff]   ;;  %v7765_v47 = vld [vmem:[%s10650_s7 + $0x27c] ss:$28 sps:$4 sm:$0xff]  }
 0x395   :  { %5877 = vmatmul.mubr.bf16.vlgmr.msra.gmra.mxu0 %v9447_v44  ;;  %5920 = vmatmul.mubr.bf16.vlgmr.msra.gmra.mxu1 %v9625_v10 }
 0x396   :  { %5931 = vmatpush1.bf16.msra.mxu0 %v7688_v48  ;;  %5962 = vmatprep.mubr.bf16.mxu0 %v9731_v21  ;;  %v7760_v48 = vld [vmem:[%s10650_s7 + $0xcf0] ss:$28 sps:$4 sm:$0xff]  }
 0x397   :  { %5974 = vmatpush1.bf16.msra.mxu1 %v7691_v31  ;;  %6005 = vmatprep.mubr.bf16.mxu1 %v9258_v63  ;;  %v7763_v31 = vld [vmem:[%s10650_s7 + $0x278] ss:$28 sps:$4 sm:$0xff]  }
 0x398   :  { %5932 = vmatprep.subr.bf16.mxu0 %v7696_v39  ;;  %5975 = vmatprep.subr.bf16.mxu1 %v7699_v49  ;;  %v7768_v39 = vld [vmem:[%s10650_s7 + $0xcbc] ss:$28 sps:$4 sm:$0xff]   ;;  %v7771_v49 = vld [vmem:[%s10650_s7 + $0x244] ss:$28 sps:$4 sm:$0xff]  }
 0x39a   :  { %5933 = vmatpush1.bf16.msra.mxu0 %v7694_v50  ;;  %v7766_v50 = vld [vmem:[%s10650_s7 + $0xcb8] ss:$28 sps:$4 sm:$0xff]  }
 0x39b   :  { %5976 = vmatpush1.bf16.msra.mxu1 %v7697_v51  ;;  %5934 = vmatprep.subr.bf16.mxu0 %v7702_v20  ;;  %v7769_v51 = vld [vmem:[%s10650_s7 + $0x240] ss:$28 sps:$4 sm:$0xff]  }
 0x39c   :  { %5977 = vmatprep.subr.bf16.mxu1 %v7705_v52  ;;  %v7774_v20 = vld [vmem:[%s10650_s7 + $0xc84] ss:$28 sps:$4 sm:$0xff]   ;;  %v7777_v52 = vld [vmem:[%s10650_s7 + $0x20c] ss:$28 sps:$4 sm:$0xff]  }
 0x39e   :  { %5935 = vmatpush1.bf16.msra.mxu0 %v7700_v53  ;;  %v7772_v53 = vld [vmem:[%s10650_s7 + $0xc80] ss:$28 sps:$4 sm:$0xff]  }
 0x39f   :  { %5978 = vmatpush1.bf16.msra.mxu1 %v7703_v56  ;;  %5936 = vmatprep.subr.bf16.mxu0 %v7708_v54  ;;  %v7775_v56 = vld [vmem:[%s10650_s7 + $0x208] ss:$28 sps:$4 sm:$0xff]  }
 0x3a0   :  { %5979 = vmatprep.subr.bf16.mxu1 %v7711_v55  ;;  %v7780_v54 = vld [vmem:[%s10650_s7 + $0xc4c] ss:$28 sps:$4 sm:$0xff]   ;;  %v7783_v55 = vld [vmem:[%s10650_s7 + $0x1d4] ss:$28 sps:$4 sm:$0xff]  }
 0x3a2   :  { %5937 = vmatpush1.bf16.msra.mxu0 %v7706_v58  ;;  %v7778_v58 = vld [vmem:[%s10650_s7 + $0xc48] ss:$28 sps:$4 sm:$0xff]  }
 0x3a3   :  { %5980 = vmatpush1.bf16.msra.mxu1 %v7709_v60  ;;  %5938 = vmatprep.subr.bf16.mxu0 %v7714_v61  ;;  %v7781_v60 = vld [vmem:[%s10650_s7 + $0x1d0] ss:$28 sps:$4 sm:$0xff]   ;;  %v7786_v61 = vld [vmem:[%s10650_s7 + $0x51c] ss:$28 sps:$4 sm:$0xff]  }
 0x3a4   :  { %5981 = vmatprep.subr.bf16.mxu1 %v7717_v62  ;;  %v7789_v62 = vld [vmem:[%s10650_s7 + $0x89c] ss:$28 sps:$4 sm:$0xff]  }
 0x3a6   :  { %5939 = vmatpush1.bf16.msra.mxu0 %v7712_v0  ;;  %v7784_v0 = vld [vmem:[%s10650_s7 + $0x518] ss:$28 sps:$4 sm:$0xff]  }
 0x3a7   :  { %5982 = vmatpush1.bf16.msra.mxu1 %v7715_v2  ;;  %5940 = vmatprep.subr.bf16.mxu0 %v7720_v3  ;;  %v7787_v2 = vld [vmem:[%s10650_s7 + $0x898] ss:$28 sps:$4 sm:$0xff]   ;;  %v7792_v3 = vld [vmem:[%s10650_s7 + $0x4e4] ss:$28 sps:$4 sm:$0xff]  }
 0x3a8   :  { %5983 = vmatprep.subr.bf16.mxu1 %v7723_v4  ;;  %v7795_v4 = vld [vmem:[%s10650_s7 + $0x864] ss:$28 sps:$4 sm:$0xff]  }
 0x3aa   :  { %5941 = vmatpush1.bf16.msra.mxu0 %v7718_v5  ;;  %v7790_v5 = vld [vmem:[%s10650_s7 + $0x4e0] ss:$28 sps:$4 sm:$0xff]  }
 0x3ab   :  { %5984 = vmatpush1.bf16.msra.mxu1 %v7721_v6  ;;  %5942 = vmatprep.subr.bf16.mxu0 %v7726_v7  ;;  %v7793_v6 = vld [vmem:[%s10650_s7 + $0x860] ss:$28 sps:$4 sm:$0xff]   ;;  %v7798_v7 = vld [vmem:[%s10650_s7 + $0x4ac] ss:$28 sps:$4 sm:$0xff]  }
 0x3ac   :  { %5985 = vmatprep.subr.bf16.mxu1 %v7729_v9  ;;  %v7801_v9 = vld [vmem:[%s10650_s7 + $0x82c] ss:$28 sps:$4 sm:$0xff]  }
 0x3ae   :  { %5943 = vmatpush1.bf16.msra.mxu0 %v7724_v11  ;;  %v7796_v11 = vld [vmem:[%s10650_s7 + $0x4a8] ss:$28 sps:$4 sm:$0xff]  }
 0x3af   :  { %5986 = vmatpush1.bf16.msra.mxu1 %v7727_v12  ;;  %5944 = vmatprep.subr.bf16.mxu0 %v7732_v13  ;;  %v7799_v12 = vld [vmem:[%s10650_s7 + $0x828] ss:$28 sps:$4 sm:$0xff]   ;;  %v7804_v13 = vld [vmem:[%s10650_s7 + $0x474] ss:$28 sps:$4 sm:$0xff]  }
 0x3b0   :  { %5987 = vmatprep.subr.bf16.mxu1 %v7735_v14  ;;  %v7807_v14 = vld [vmem:[%s10650_s7 + $0x7f4] ss:$28 sps:$4 sm:$0xff]  }
 0x3b2   :  { %5945 = vmatpush1.bf16.msra.mxu0 %v7730_v15  ;;  %v7802_v15 = vld [vmem:[%s10650_s7 + $0x470] ss:$28 sps:$4 sm:$0xff]  }
 0x3b3   :  { %5988 = vmatpush1.bf16.msra.mxu1 %v7733_v16  ;;  %5946 = vmatprep.subr.bf16.mxu0 %v7738_v17  ;;  %v7805_v16 = vld [vmem:[%s10650_s7 + $0x7f0] ss:$28 sps:$4 sm:$0xff]   ;;  %v7810_v17 = vld [vmem:[%s10650_s7 + $0x43c] ss:$28 sps:$4 sm:$0xff]  }
 0x3b4   :  { %5989 = vmatprep.subr.bf16.mxu1 %v7741_v18  ;;  %v7813_v18 = vld [vmem:[%s10650_s7 + $0x7bc] ss:$28 sps:$4 sm:$0xff]  }
 0x3b6   :  { %5947 = vmatpush2.bf16.msra.mxu0 %v7736_v22  ;;  %v7808_v22 = vld [vmem:[%s10650_s7 + $0x438] ss:$28 sps:$4 sm:$0xff]  }
 0x3b7   :  { %5990 = vmatpush2.bf16.msra.mxu1 %v7739_v24  ;;  %5948 = vmatprep.subr.bf16.mxu0 %v7744_v26  ;;  %v7811_v24 = vld [vmem:[%s10650_s7 + $0x7b8] ss:$28 sps:$4 sm:$0xff]   ;;  %v7816_v26 = vld [vmem:[%s10650_s7 + $0x404] ss:$28 sps:$4 sm:$0xff]  }
 0x3b8   :  { %5991 = vmatprep.subr.bf16.mxu1 %v7747_v28  ;;  %v7819_v28 = vld [vmem:[%s10650_s7 + $0x784] ss:$28 sps:$4 sm:$0xff]  }
 0x3ba   :  { %5949 = vmatpush2.bf16.msra.mxu0 %v7742_v32  ;;  %v7814_v32 = vld [vmem:[%s10650_s7 + $0x400] ss:$28 sps:$4 sm:$0xff]  }
 0x3bb   :  { %5992 = vmatpush2.bf16.msra.mxu1 %v7745_v40  ;;  %5950 = vmatprep.subr.bf16.mxu0 %v7750_v33  ;;  %v7817_v40 = vld [vmem:[%s10650_s7 + $0x780] ss:$28 sps:$4 sm:$0xff]   ;;  %v7822_v33 = vld [vmem:[%s10650_s7 + $0x3cc] ss:$28 sps:$4 sm:$0xff]  }
 0x3bc   :  { %5993 = vmatprep.subr.bf16.mxu1 %v7753_v34  ;;  %v7825_v34 = vld [vmem:[%s10650_s7 + $0x74c] ss:$28 sps:$4 sm:$0xff]  }
 0x3be   :  { %5951 = vmatpush2.bf16.msra.mxu0 %v7748_v41  ;;  %v7820_v41 = vld [vmem:[%s10650_s7 + $0x3c8] ss:$28 sps:$4 sm:$0xff]  }
 0x3bf   :  { %5994 = vmatpush2.bf16.msra.mxu1 %v7751_v42  ;;  %5952 = vmatprep.subr.bf16.mxu0 %v7756_v43  ;;  %v7823_v42 = vld [vmem:[%s10650_s7 + $0x748] ss:$28 sps:$4 sm:$0xff]   ;;  %v7828_v43 = vld [vmem:[%s10650_s7 + $0x394] ss:$28 sps:$4 sm:$0xff]  }
 0x3c0   :  { %5995 = vmatprep.subr.bf16.mxu1 %v7759_v45  ;;  %v7831_v45 = vld [vmem:[%s10650_s7 + $0x714] ss:$28 sps:$4 sm:$0xff]  }
 0x3c2   :  { %5953 = vmatpush2.bf16.msra.mxu0 %v7754_v36  ;;  %v7826_v36 = vld [vmem:[%s10650_s7 + $0x390] ss:$28 sps:$4 sm:$0xff]  }
 0x3c3   :  { %5996 = vmatpush2.bf16.msra.mxu1 %v7757_v37  ;;  %5954 = vmatprep.subr.bf16.mxu0 %v7762_v46  ;;  %v7829_v37 = vld [vmem:[%s10650_s7 + $0x710] ss:$28 sps:$4 sm:$0xff]   ;;  %v7834_v46 = vld [vmem:[%s10650_s7 + $0x6dc] ss:$28 sps:$4 sm:$0xff]  }
 0x3c4   :  { %5997 = vmatprep.subr.bf16.mxu1 %v7765_v47  ;;  %v7837_v47 = vld [vmem:[%s10650_s7 + $0xa5c] ss:$28 sps:$4 sm:$0xff]  }
 0x3c6   :  { %5955 = vmatpush2.bf16.msra.mxu0 %v7760_v48  ;;  %v7832_v48 = vld [vmem:[%s10650_s7 + $0x6d8] ss:$28 sps:$4 sm:$0xff]  }
 0x3c7   :  { %5998 = vmatpush2.bf16.msra.mxu1 %v7763_v31  ;;  %5956 = vmatprep.subr.bf16.mxu0 %v7768_v39  ;;  %v7835_v31 = vld [vmem:[%s10650_s7 + $0xa58] ss:$28 sps:$4 sm:$0xff]   ;;  %v7840_v39 = vld [vmem:[%s10650_s7 + $0x6a4] ss:$28 sps:$4 sm:$0xff]  }
 0x3c8   :  { %5999 = vmatprep.subr.bf16.mxu1 %v7771_v49  ;;  %v7843_v49 = vld [vmem:[%s10650_s7 + $0xa24] ss:$28 sps:$4 sm:$0xff]  }
 0x3ca   :  { %5957 = vmatpush2.bf16.msra.mxu0 %v7766_v50  ;;  %v7838_v50 = vld [vmem:[%s10650_s7 + $0x6a0] ss:$28 sps:$4 sm:$0xff]  }
 0x3cb   :  { %6000 = vmatpush2.bf16.msra.mxu1 %v7769_v51  ;;  %5958 = vmatprep.subr.bf16.mxu0 %v7774_v20  ;;  %v7841_v51 = vld [vmem:[%s10650_s7 + $0xa20] ss:$28 sps:$4 sm:$0xff]   ;;  %v7846_v20 = vld [vmem:[%s10650_s7 + $0x66c] ss:$28 sps:$4 sm:$0xff]  }
 0x3cc   :  { %6001 = vmatprep.subr.bf16.mxu1 %v7777_v52  ;;  %v7849_v52 = vld [vmem:[%s10650_s7 + $0x9ec] ss:$28 sps:$4 sm:$0xff]  }
 0x3ce   :  { %5959 = vmatpush2.bf16.msra.mxu0 %v7772_v53  ;;  %v7844_v53 = vld [vmem:[%s10650_s7 + $0x668] ss:$28 sps:$4 sm:$0xff]  }
 0x3cf   :  { %6002 = vmatpush2.bf16.msra.mxu1 %v7775_v56  ;;  %5960 = vmatprep.subr.bf16.mxu0 %v7780_v54  ;;  %v7847_v56 = vld [vmem:[%s10650_s7 + $0x9e8] ss:$28 sps:$4 sm:$0xff]   ;;  %v7852_v54 = vld [vmem:[%s10650_s7 + $0x634] ss:$28 sps:$4 sm:$0xff]  }
 0x3d0   :  { %6003 = vmatprep.subr.bf16.mxu1 %v7783_v55  ;;  %v7855_v55 = vld [vmem:[%s10650_s7 + $0x9b4] ss:$28 sps:$4 sm:$0xff]  }
 0x3d2   :  { %5961 = vmatpush2.bf16.msra.mxu0 %v7778_v58  ;;  %v5663_v58 = vpop.f32.mrf.mxu1 }
 0x3d3   :  { %6004 = vmatpush2.bf16.msra.mxu1 %v7781_v60  ;;  %6016 = vmatprep.subr.bf16.mxu0 %v7786_v61  ;;  %v7850_v60 = vld [vmem:[%s10650_s7 + $0x630] ss:$28 sps:$4 sm:$0xff]  }
 0x3d4   :  { %6059 = vmatprep.subr.bf16.mxu1 %v7789_v62  ;;  %v7853_v61 = vld [vmem:[%s10650_s7 + $0x9b0] ss:$28 sps:$4 sm:$0xff]   ;;  %v7858_v62 = vld [vmem:[%s10650_s7 + $0x5fc] ss:$28 sps:$4 sm:$0xff]  }
 0x3d5   :  { %5963 = vmatmul.mubr.bf16.vlgmr.msra.gmra.mxu0 %v9739_v25 }
 0x3d6   :  { %6006 = vmatmul.mubr.bf16.vlgmr.msra.gmra.mxu1 %v9410_v1  ;;  %6017 = vmatpush1.bf16.msra.mxu0 %v7784_v0  ;;  %v7861_v0 = vld [vmem:[%s10650_s7 + $0x97c] ss:$28 sps:$4 sm:$0xff]  }
 0x3d7   :  { %6048 = vmatprep.mubr.bf16.mxu0 %v9442_v38  ;;  %6060 = vmatpush1.bf16.msra.mxu1 %v7787_v2  ;;  %v5665_v2 = vpop.f32.mrf.mxu1 }
 0x3d8   :  { %6091 = vmatprep.mubr.bf16.mxu1 %v9620_v8  ;;  %6018 = vmatprep.subr.bf16.mxu0 %v7792_v3  ;;  %v7856_v3 = vld [vmem:[%s10650_s7 + $0x5f8] ss:$28 sps:$4 sm:$0xff]  }
 0x3d9   :  { %6061 = vmatprep.subr.bf16.mxu1 %v7795_v4  ;;  %v7859_v4 = vld [vmem:[%s10650_s7 + $0x978] ss:$28 sps:$4 sm:$0xff]  }
 0x3da   :  { %6019 = vmatpush1.bf16.msra.mxu0 %v7790_v5  ;;  %v7864_v5 = vld [vmem:[%s10650_s7 + $0x5c4] ss:$28 sps:$4 sm:$0xff]  }
 0x3db   :  { %6062 = vmatpush1.bf16.msra.mxu1 %v7793_v6  ;;  %6020 = vmatprep.subr.bf16.mxu0 %v7798_v7  ;;  %v7867_v6 = vld [vmem:[%s10650_s7 + $0x944] ss:$28 sps:$4 sm:$0xff]   ;;  %v5667_v7 = vpop.f32.mrf.mxu1 }
 0x3dc   :  { %6063 = vmatprep.subr.bf16.mxu1 %v7801_v9  ;;  %v7862_v9 = vld [vmem:[%s10650_s7 + $0x5c0] ss:$28 sps:$4 sm:$0xff]  }
 0x3de   :  { %6021 = vmatpush1.bf16.msra.mxu0 %v7796_v11  ;;  %v5706_v11 = vpop.f32.mrf.mxu0 }
 0x3df   :  { %6064 = vmatpush1.bf16.msra.mxu1 %v7799_v12  ;;  %6022 = vmatprep.subr.bf16.mxu0 %v7804_v13  ;;  %v7865_v12 = vld [vmem:[%s10650_s7 + $0x940] ss:$28 sps:$4 sm:$0xff]   ;;  %v7870_v13 = vld [vmem:[%s10650_s7 + $0x58c] ss:$28 sps:$4 sm:$0xff]  }
 0x3e0   :  { %6065 = vmatprep.subr.bf16.mxu1 %v7807_v14  ;;  %v7873_v14 = vld [vmem:[%s10650_s7 + $0x90c] ss:$28 sps:$4 sm:$0xff]  }
 0x3e2   :  { %6023 = vmatpush1.bf16.msra.mxu0 %v7802_v15  ;;  %v10303_v15 = vld [vmem:[%s10651_s8] sm:$0x7f] }
 0x3e3   :  { %6066 = vmatpush1.bf16.msra.mxu1 %v7805_v16  ;;  %6024 = vmatprep.subr.bf16.mxu0 %v7810_v17  ;;  %v5669_v16 = vpop.f32.mrf.mxu1  ;;  %v7868_v17 = vld [vmem:[%s10650_s7 + $0x588] ss:$28 sps:$4 sm:$0xff]  }
 0x3e4   :  { %6067 = vmatprep.subr.bf16.mxu1 %v7813_v18  ;;  %v5708_v18 = vpop.f32.mrf.mxu0 }
 0x3e6   :  { %6025 = vmatpush1.bf16.msra.mxu0 %v7808_v22  ;;  %v5749_v22 = vpop.f32.mrf.mxu1 }
 0x3e7   :  { %6068 = vmatpush1.bf16.msra.mxu1 %v7811_v24  ;;  %6026 = vmatprep.subr.bf16.mxu0 %v7816_v26  ;;  %v7871_v24 = vld [vmem:[%s10650_s7 + $0x908] ss:$28 sps:$4 sm:$0xff]   ;;  %v7876_v26 = vld [vmem:[%s10650_s7 + $0x554] ss:$28 sps:$4 sm:$0xff]  }
 0x3e8   :  { %6069 = vmatprep.subr.bf16.mxu1 %v7819_v28  ;;  %v3293_v28 = vrot.slane %v10303_v15, %v8357_v29  ;;  %v7877_v29 = vld [vmem:[%s10650_s7 + $0x8d0] ss:$28 sps:$4 sm:$0xff]  }
 0x3ea   :  { %6027 = vmatpush1.bf16.msra.mxu0 %v7814_v32  ;;  %v7879_v32 = vld [vmem:[%s10650_s7 + $0x8d4] ss:$28 sps:$4 sm:$0xff]  }
 0x3eb   :  { %6070 = vmatpush1.bf16.msra.mxu1 %v7817_v40  ;;  %6028 = vmatprep.subr.bf16.mxu0 %v7822_v33  ;;  %v3297_v40 = vrot.slane %v10303_v15, %v8360_v30  ;;  %v7874_v33 = vld [vmem:[%s10650_s7 + $0x550] ss:$28 sps:$4 sm:$0xff]   ;;  %v7883_v30 = vld [vmem:[%s10650_s7 + $0x360] ss:$28 sps:$4 sm:$0xff]  }
 0x3ec   :  { %6071 = vmatprep.subr.bf16.mxu1 %v7825_v34  ;;  %v5710_v34 = vpop.f32.mrf.mxu0 }
 0x3ee   :  { %6029 = vmatpush1.bf16.msra.mxu0 %v7820_v41  ;;  %v5751_v41 = vpop.f32.mrf.mxu1 }
 0x3ef   :  { %6072 = vmatpush1.bf16.msra.mxu1 %v7823_v42  ;;  %6030 = vmatprep.subr.bf16.mxu0 %v7828_v43  ;;  %v7882_v42 = vld [vmem:[%s10650_s7 + $0xc1c] ss:$28 sps:$4 sm:$0xff]   ;;  %v5664_v43 = vadd.f32 %v5663_v58, %v3293_v28 }
 0x3f0   :  { %6073 = vmatprep.subr.bf16.mxu1 %v7831_v45  ;;  %v5666_v45 = vadd.f32 %v5665_v2, %v3297_v40 }
 0x3f2   :  { %6031 = vmatpush1.bf16.msra.mxu0 %v7826_v36  ;;  %v5707_v36 = vadd.f32 %v5706_v11, %v5664_v43 }
 0x3f3   :  { %6074 = vmatpush1.bf16.msra.mxu1 %v7829_v37  ;;  %6032 = vmatprep.subr.bf16.mxu0 %v7834_v46  ;;  %v7880_v37 = vld [vmem:[%s10650_s7 + $0xc18] ss:$28 sps:$4 sm:$0xff]   ;;  %v5712_v46 = vpop.f32.mrf.mxu0 }
 0x3f4   :  { %6075 = vmatprep.subr.bf16.mxu1 %v7837_v47  ;;  %v5753_v47 = vpop.f32.mrf.mxu1 }
 0x3f6   :  { %6033 = vmatpush2.bf16.msra.mxu0 %v7832_v48  ;;  %v7884_v48 = vld [vmem:[%s10650_s7 + $0x1a0] ss:$28 sps:$4 sm:$0xff]   ;;  %v5755_v58 = vpop.f32.mrf.mxu1 }
 0x3f7   :  { %6076 = vmatpush2.bf16.msra.mxu1 %v7835_v31  ;;  %6034 = vmatprep.subr.bf16.mxu0 %v7840_v39  ;;  %v5668_v31 = vadd.f32 %v5667_v7, %v3293_v28  ;;  %v5709_v39 = vadd.f32 %v5708_v18, %v5666_v45  ;;  %v7902_v18 = vld [vmem:[%s10650_s7 + $0xb3c] ss:$28 sps:$4 sm:$0xff]   ;;  %v7907_v28 = vld [vmem:[%s10650_s7 + $0xb04] ss:$28 sps:$4 sm:$0xff]  }
 0x3f8   :  { %6077 = vmatprep.subr.bf16.mxu1 %v7843_v49  ;;  %v5750_v49 = vadd.f32 %v5749_v22, %v5707_v36  ;;  %v7903_v22 = vld [vmem:[%s10650_s7 + $0x280] ss:$28 sps:$4 sm:$0xff]   ;;  %v7914_v36 = vld [vmem:[%s10650_s7 + $0x50] ss:$28 sps:$4 sm:$0xff]  }
 0x3fa   :  { %6035 = vmatpush2.bf16.msra.mxu0 %v7838_v50  ;;  %v7887_v50 = vld [vmem:[%s10650_s7 + $0xbe4] ss:$28 sps:$4 sm:$0xff]  }
 0x3fb   :  { %6078 = vmatpush2.bf16.msra.mxu1 %v7841_v51  ;;  %6036 = vmatprep.subr.bf16.mxu0 %v7846_v20  ;;  %v5670_v51 = vadd.f32 %v5669_v16, %v3297_v40  ;;  %v7895_v16 = vld [vmem:[%s10650_s7 + $0xb70] ss:$28 sps:$4 sm:$0xff]  }
 0x3fc   :  { %6079 = vmatprep.subr.bf16.mxu1 %v7849_v52  ;;  %v7888_v52 = vld [vmem:[%s10650_s7 + $0x328] ss:$28 sps:$4 sm:$0xff]  }
 0x3fe   :  { %6037 = vmatpush2.bf16.msra.mxu0 %v7844_v53  ;;  %v5711_v53 = vadd.f32 %v5710_v34, %v5668_v31  ;;  %v7922_v31 = vld [vmem:[%s10650_s7 + $0xddc] ss:$28 sps:$4 sm:$0xff]  }
 0x3ff   :  { %6080 = vmatpush2.bf16.msra.mxu1 %v7847_v56  ;;  %6038 = vmatprep.subr.bf16.mxu0 %v7852_v54  ;;  %v5752_v56 = vadd.f32 %v5751_v41, %v5709_v39  ;;  %v7909_v41 = vld [vmem:[%s10650_s7 + $0x88] ss:$28 sps:$4 sm:$0xff]   ;;  %v7923_v39 = vld [vmem:[%s10650_s7 + $0xa60] ss:$28 sps:$4 sm:$0xff]  }
 0x400   :  { %6081 = vmatprep.subr.bf16.mxu1 %v7855_v55  ;;  %v7885_v55 = vld [vmem:[%s10650_s7 + $0xbe0] ss:$28 sps:$4 sm:$0xff]   ;;  %v5754_v2 = vadd.f32 %v5753_v47, %v5711_v53  ;;  %v7915_v47 = vld [vmem:[%s10650_s7 + $0xa90] ss:$28 sps:$4 sm:$0xff]   ;;  %v7929_v53 = vld [vmem:[%s10650_s7 + $0x868] ss:$28 sps:$4 sm:$0xff]  }
 0x402   :  { %6039 = vmatpush2.bf16.msra.mxu0 %v7850_v60 }
 0x403   :  { %6082 = vmatpush2.bf16.msra.mxu1 %v7853_v61  ;;  %6040 = vmatprep.subr.bf16.mxu0 %v7858_v62  ;;  %v7889_v61 = vld [vmem:[%s10650_s7 + $0x168] ss:$28 sps:$4 sm:$0xff]  }
 0x404   :  { %6083 = vmatprep.subr.bf16.mxu1 %v7861_v0  ;;  %v7892_v62 = vld [vmem:[%s10650_s7 + $0xbac] ss:$28 sps:$4 sm:$0xff]   ;;  %v5713_v0 = vadd.f32 %v5712_v46, %v5670_v51  ;;  %v7918_v46 = vld [vmem:[%s10650_s7 + $0x1d8] ss:$28 sps:$4 sm:$0xff]   ;;  %v7927_v51 = vld [vmem:[%s10650_s7 + $0xda4] ss:$28 sps:$4 sm:$0xff]  }
 0x406   :  { %6041 = vmatpush2.bf16.msra.mxu0 %v7856_v3 }
 0x407   :  { %6084 = vmatpush2.bf16.msra.mxu1 %v7859_v4  ;;  %6042 = vmatprep.subr.bf16.mxu0 %v7864_v5  ;;  %v7893_v4 = vld [vmem:[%s10650_s7 + $0x2f0] ss:$28 sps:$4 sm:$0xff]  }
 0x408   :  { %6085 = vmatprep.subr.bf16.mxu1 %v7867_v6  ;;  %v5756_v6 = vadd.f32 %v5755_v58, %v5713_v0  ;;  %v7938_v58 = vld [vmem:[%s10650_s7 + $0x9b8] ss:$28 sps:$4 sm:$0xff]   ;;  %v7943_v0 = vld [vmem:[%s10650_s7 + $0x980] ss:$28 sps:$4 sm:$0xff]  }
 0x40a   :  { %6043 = vmatpush2.bf16.msra.mxu0 %v7862_v9  ;;  %v7890_v9 = vld [vmem:[%s10650_s7 + $0xba8] ss:$28 sps:$4 sm:$0xff]  }
 0x40b   :  { %6086 = vmatpush2.bf16.msra.mxu1 %v7865_v12  ;;  %6044 = vmatprep.subr.bf16.mxu0 %v7870_v13  ;;  %v7897_v12 = vld [vmem:[%s10650_s7 + $0xb74] ss:$28 sps:$4 sm:$0xff]  }
 0x40c   :  { %6087 = vmatprep.subr.bf16.mxu1 %v7873_v14  ;;  %v7898_v14 = vld [vmem:[%s10650_s7 + $0x2b8] ss:$28 sps:$4 sm:$0xff]  }
 0x40e   :  { %6045 = vmatpush2.bf16.msra.mxu0 %v7868_v17  ;;  %v7899_v17 = vld [vmem:[%s10650_s7 + $0xf8] ss:$28 sps:$4 sm:$0xff]  }
 0x40f   :  { %6088 = vmatpush2.bf16.msra.mxu1 %v7871_v24  ;;  %6046 = vmatprep.subr.bf16.mxu0 %v7876_v26  ;;  %v7900_v24 = vld [vmem:[%s10650_s7 + $0xb38] ss:$28 sps:$4 sm:$0xff]   ;;  %v7904_v26 = vld [vmem:[%s10650_s7 + $0xc0] ss:$28 sps:$4 sm:$0xff]  }
 0x410   :  { %6089 = vmatprep.subr.bf16.mxu1 %v7879_v32  ;;  %v7908_v32 = vld [vmem:[%s10650_s7 + $0x248] ss:$28 sps:$4 sm:$0xff]  }
 0x412   :  { %6047 = vmatpush2.bf16.msra.mxu0 %v7874_v33  ;;  %v7905_v33 = vld [vmem:[%s10650_s7 + $0xb00] ss:$28 sps:$4 sm:$0xff]  }
 0x413   :  { %6090 = vmatpush2.bf16.msra.mxu1 %v7877_v29  ;;  %6102 = vmatprep.subr.bf16.mxu0 %v7882_v42  ;;  %v7912_v29 = vld [vmem:[%s10650_s7 + $0xacc] ss:$28 sps:$4 sm:$0xff]  }
 0x414   :  { %7139 = vmatprep.subr.bf16.mxu1 %v7883_v30  ;;  %v7913_v42 = vld [vmem:[%s10650_s7 + $0x210] ss:$28 sps:$4 sm:$0xff]   ;;  %v7910_v30 = vld [vmem:[%s10650_s7 + $0xac8] ss:$28 sps:$4 sm:$0xff]  }
 0x415   :  { %6049 = vmatmul.mubr.bf16.vlgmr.msra.gmra.mxu0 %v9447_v44  ;;  %v5792_v20 = vpop.f32.mrf.mxu0 }
 0x416   :  { %6092 = vmatmul.mubr.bf16.vlgmr.msra.gmra.mxu1 %v9625_v10  ;;  %v5793_v54 = vadd.f32 %v5792_v20, %v5750_v49  ;;  %6103 = vmatpush1.bf16.msra.mxu0 %v7880_v37  ;;  %v7917_v37 = vld [vmem:[%s10650_s7 + $0xa94] ss:$28 sps:$4 sm:$0xff]   ;;  %v7928_v20 = vld [vmem:[%s10650_s7 + $0xa28] ss:$28 sps:$4 sm:$0xff]  }
 0x417   :  { %6134 = vmatprep.mubr.bf16.mxu0 %v9731_v21  ;;  %7140 = vmatpush3.bf16.msra.mxu1 %v7884_v48  ;;  %v5794_v60 = vpop.f32.mrf.mxu0  ;;  %v7919_v48 = vld [vmem:[%s10650_s7 + $0x18] ss:$28 sps:$4 sm:$0xff]  }
 0x418   :  { %7992 = vtanh.f32 %v5793_v54  ;;  %6177 = vmatprep.mubr.bf16.mxu1 %v9258_v63  ;;  %v5795_v3 = vadd.f32 %v5794_v60, %v5752_v56  ;;  %6104 = vmatprep.subr.bf16.mxu0 %v7887_v50  ;;  %v7894_v63 = vld [vmem:[%s10650_s7 + $0x130] ss:$28 sps:$4 sm:$0xff]   ;;  %v7920_v49 = vld [vmem:[%s10650_s7 + $0xdd8] ss:$28 sps:$4 sm:$0xff]   ;;  %v7924_v50 = vld [vmem:[%s10650_s7 + $0x8a0] ss:$28 sps:$4 sm:$0xff]  }
 0x419   :  { %7141 = vmatprep.subr.bf16.mxu1 %v7888_v52  ;;  %v5796_v5 = vpop.f32.mrf.mxu0  ;;  %v7925_v52 = vld [vmem:[%s10650_s7 + $0xda0] ss:$28 sps:$4 sm:$0xff]   ;;  %v7932_v56 = vld [vmem:[%s10650_s7 + $0xd6c] ss:$28 sps:$4 sm:$0xff]  }
 0x41a   :  { %7994 = vtanh.f32 %v5795_v3  ;;  %v5797_v7 = vadd.f32 %v5796_v5, %v5754_v2  ;;  %6105 = vmatpush1.bf16.msra.mxu0 %v7885_v55  ;;  %v7930_v54 = vld [vmem:[%s10650_s7 + $0xd68] ss:$28 sps:$4 sm:$0xff]   ;;  %v7937_v55 = vld [vmem:[%s10650_s7 + $0xd34] ss:$28 sps:$4 sm:$0xff]   ;;  %v7944_v3 = vld [vmem:[%s10650_s7 + $0x7c0] ss:$28 sps:$4 sm:$0xff]  }
 0x41b   :  { %7142 = vmatpush3.bf16.msra.mxu1 %v7889_v61  ;;  %v5798_v11 = vpop.f32.mrf.mxu0  ;;  %6106 = vmatprep.subr.bf16.mxu0 %v7892_v62  ;;  %v7935_v60 = vld [vmem:[%s10650_s7 + $0xd30] ss:$28 sps:$4 sm:$0xff]   ;;  %v7939_v61 = vld [vmem:[%s10650_s7 + $0x7f8] ss:$28 sps:$4 sm:$0xff]   ;;  %v7948_v5 = vld [vmem:[%s10650_s7 + $0x948] ss:$28 sps:$4 sm:$0xff]  }
 0x41c   :  { %7996 = vtanh.f32 %v5797_v7  ;;  %v5799_v13 = vadd.f32 %v5798_v11, %v5756_v6  ;;  %7143 = vmatprep.subr.bf16.mxu1 %v7893_v4  ;;  %v7942_v62 = vld [vmem:[%s10650_s7 + $0xcfc] ss:$28 sps:$4 sm:$0xff]   ;;  %v7947_v4 = vld [vmem:[%s10650_s7 + $0xcc4] ss:$28 sps:$4 sm:$0xff]   ;;  %v7953_v11 = vld [vmem:[%s10650_s7 + $0x910] ss:$28 sps:$4 sm:$0xff]  }
 0x41d   :  { %v7940_v2 = vld [vmem:[%s10650_s7 + $0xcf8] ss:$28 sps:$4 sm:$0xff]   ;;  %v7945_v6 = vld [vmem:[%s10650_s7 + $0xcc0] ss:$28 sps:$4 sm:$0xff]   ;;  %v7949_v7 = vld [vmem:[%s10650_s7 + $0x788] ss:$28 sps:$4 sm:$0xff]  }
 0x41e   :  { %7998 = vtanh.f32 %v5799_v13  ;;  %6107 = vmatpush1.bf16.msra.mxu0 %v7890_v9  ;;  %v7952_v9 = vld [vmem:[%s10650_s7 + $0xc8c] ss:$28 sps:$4 sm:$0xff]   ;;  %v7957_v13 = vld [vmem:[%s10650_s7 + $0xc54] ss:$28 sps:$4 sm:$0xff]  }
 0x41f   :  { %7144 = vmatpush3.bf16.msra.mxu1 %v7894_v63  ;;  %6108 = vmatprep.subr.bf16.mxu0 %v7897_v12  ;;  %v7950_v63 = vld [vmem:[%s10650_s7 + $0xc88] ss:$28 sps:$4 sm:$0xff]   ;;  %v7954_v12 = vld [vmem:[%s10650_s7 + $0x750] ss:$28 sps:$4 sm:$0xff]  }
 0x420   :  { %7145 = vmatprep.subr.bf16.mxu1 %v7898_v14  ;;  %v7958_v14 = vld [vmem:[%s10650_s7 + $0x8d8] ss:$28 sps:$4 sm:$0xff]  }
 0x422   :  { %6109 = vmatpush1.bf16.msra.mxu0 %v7895_v16  ;;  %v7955_v16 = vld [vmem:[%s10650_s7 + $0xc50] ss:$28 sps:$4 sm:$0xff]  }
 0x423   :  { %7146 = vmatpush3.bf16.msra.mxu1 %v7899_v17  ;;  %6110 = vmatprep.subr.bf16.mxu0 %v7902_v18  ;;  %v7959_v17 = vld [vmem:[%s10650_s7 + $0x718] ss:$28 sps:$4 sm:$0xff]   ;;  %v7960_v18 = vld [vmem:[%s10650_s7 + $0x6e0] ss:$28 sps:$4 sm:$0xff]  }
 0x424   :  { %7147 = vmatprep.subr.bf16.mxu1 %v7903_v22  ;;  %v7961_v22 = vld [vmem:[%s10650_s7 + $0x520] ss:$28 sps:$4 sm:$0xff]  }
 0x425   :  { %v7993_v40 = vpop.eup %7992 }
 0x426   :  { %6323 = vst [vmem:[#allocation2] sm:$0xff] %v7993_v40  ;;  %6111 = vmatpush1.bf16.msra.mxu0 %v7900_v24  ;;  %v7962_v24 = vld [vmem:[%s10650_s7 + $0x6a8] ss:$28 sps:$4 sm:$0xff]   ;;  %v7968_v40 = vld [vmem:[%s10650_s7 + $0x600] ss:$28 sps:$4 sm:$0xff]  }
 0x427   :  { %v7995_v34 = vpop.eup %7994  ;;  %7148 = vmatpush3.bf16.msra.mxu1 %v7904_v26  ;;  %6112 = vmatprep.subr.bf16.mxu0 %v7907_v28  ;;  %v7963_v26 = vld [vmem:[%s10650_s7 + $0x4e8] ss:$28 sps:$4 sm:$0xff]   ;;  %v7964_v28 = vld [vmem:[%s10650_s7 + $0x670] ss:$28 sps:$4 sm:$0xff]  }
 0x428   :  { %6324 = vst [vmem:[#allocation2 + $0x8] sm:$0xff] %v7995_v34  ;;  %7149 = vmatprep.subr.bf16.mxu1 %v7908_v32  ;;  %v7965_v32 = vld [vmem:[%s10650_s7 + $0x4b0] ss:$28 sps:$4 sm:$0xff]   ;;  %v7970_v34 = vld [vmem:[%s10650_s7 + $0x5c8] ss:$28 sps:$4 sm:$0xff]  }
 0x429   :  { %v7997_v43 = vpop.eup %7996 }
 0x42a   :  { %6331 = vst [vmem:[#allocation2 + $0x38] sm:$0xff] %v7997_v43  ;;  %6113 = vmatpush1.bf16.msra.mxu0 %v7905_v33  ;;  %v7969_v33 = vld [vmem:[%s10650_s7 + $0x440] ss:$28 sps:$4 sm:$0xff]   ;;  %v7974_v43 = vld [vmem:[%s10650_s7 + $0x558] ss:$28 sps:$4 sm:$0xff]  }
 0x42b   :  { %v7999_v45 = vpop.eup %7998  ;;  %7150 = vmatpush3.bf16.msra.mxu1 %v7909_v41  ;;  %6114 = vmatprep.subr.bf16.mxu0 %v7912_v29  ;;  %v7971_v41 = vld [vmem:[%s10650_s7 + $0x408] ss:$28 sps:$4 sm:$0xff]   ;;  %v7972_v29 = vld [vmem:[%s10650_s7 + $0x590] ss:$28 sps:$4 sm:$0xff]  }
 0x42c   :  { %6332 = vst [vmem:[#allocation2 + $0x40] sm:$0xff] %v7999_v45  ;;  %7151 = vmatprep.subr.bf16.mxu1 %v7913_v42  ;;  %v7973_v42 = vld [vmem:[%s10650_s7 + $0x3d0] ss:$28 sps:$4 sm:$0xff]   ;;  %v7976_v45 = vld [vmem:[%s10650_s7 + $0xde0] ss:$28 sps:$4 sm:$0xff]  }
 0x42e   :  { %6115 = vmatpush1.bf16.msra.mxu0 %v7910_v30  ;;  %v7975_v30 = vld [vmem:[%s10650_s7 + $0x398] ss:$28 sps:$4 sm:$0xff]  }
 0x42f   :  { %7152 = vmatpush3.bf16.msra.mxu1 %v7914_v36  ;;  %6116 = vmatprep.subr.bf16.mxu0 %v7917_v37  ;;  %v7977_v36 = vld [vmem:[%s10650_s7 + $0xc20] ss:$28 sps:$4 sm:$0xff]   ;;  %v7978_v37 = vld [vmem:[%s10650_s7 + $0xda8] ss:$28 sps:$4 sm:$0xff]  }
 0x430   :  { %7153 = vmatprep.subr.bf16.mxu1 %v7918_v46  ;;  %v7979_v46 = vld [vmem:[%s10650_s7 + $0xbe8] ss:$28 sps:$4 sm:$0xff]  }
 0x432   :  { %6117 = vmatpush1.bf16.msra.mxu0 %v7915_v47  ;;  %v7980_v47 = vld [vmem:[%s10650_s7 + $0xd70] ss:$28 sps:$4 sm:$0xff]  }
 0x433   :  { %7154 = vmatpush3.bf16.msra.mxu1 %v7919_v48  ;;  %6118 = vmatprep.subr.bf16.mxu0 %v7922_v31  ;;  %v7981_v48 = vld [vmem:[%s10650_s7 + $0xbb0] ss:$28 sps:$4 sm:$0xff]   ;;  %v5835_v31 = vpop.f32.mrf.mxu1 }
 0x434   :  { %7183 = vmatprep.subr.bf16.mxu1 %v7923_v39  ;;  %v7984_v39 = vld [vmem:[%s10650_s7 + $0xd00] ss:$28 sps:$4 sm:$0xff]  }
 0x436   :  { %6178 = vmatmul.mubr.bf16.vlgmr.msra.gmra.mxu1 %v9410_v1  ;;  %6119 = vmatpush2.bf16.msra.mxu0 %v7920_v49  ;;  %v7933_v1 = vld [vmem:[%s10650_s7 + $0x9f0] ss:$28 sps:$4 sm:$0xff]   ;;  %v7985_v49 = vld [vmem:[%s10650_s7 + $0xb40] ss:$28 sps:$4 sm:$0xff]  }
 0x437   :  { %7184 = vmatpush3.bf16.msra.mxu1 %v7924_v50  ;;  %6259 = vmatprep.mubr.bf16.mxu1 %v9620_v8  ;;  %v7934_v8 = vld [vmem:[%s10650_s7 + $0x830] ss:$28 sps:$4 sm:$0xff]   ;;  %v5837_v50 = vpop.f32.mrf.mxu1 }
 0x438   :  { %6120 = vmatprep.subr.bf16.mxu0 %v7927_v51  ;;  %7185 = vmatprep.subr.bf16.mxu1 %v7928_v20  ;;  %v7986_v51 = vld [vmem:[%s10650_s7 + $0xcc8] ss:$28 sps:$4 sm:$0xff]  }
 0x439   :  { %v7987_v20 = vld [vmem:[%s10650_s7 + $0xb08] ss:$28 sps:$4 sm:$0xff]  }
 0x43a   :  { %6121 = vmatpush2.bf16.msra.mxu0 %v7925_v52  ;;  %v5839_v52 = vpop.f32.mrf.mxu1 }
 0x43b   :  { %7186 = vmatpush3.bf16.msra.mxu1 %v7929_v53  ;;  %6122 = vmatprep.subr.bf16.mxu0 %v7932_v56  ;;  %v7988_v56 = vld [vmem:[%s10650_s7 + $0xc90] ss:$28 sps:$4 sm:$0xff]  }
 0x43c   :  { %7187 = vmatprep.subr.bf16.mxu1 %v7933_v1  ;;  %v3301_v1 = vrot.slane %v10303_v15, %v8575_v57  ;;  %v7991_v57 = vld [vmem:[%s10650_s7 + $0xa98] ss:$28 sps:$4 sm:$0xff]  }
 0x43e   :  { %6123 = vmatpush2.bf16.msra.mxu0 %v7930_v54  ;;  %v7989_v54 = vld [vmem:[%s10650_s7 + $0xad0] ss:$28 sps:$4 sm:$0xff]  }
 0x43f   :  { %7188 = vmatpush3.bf16.msra.mxu1 %v7934_v8  ;;  %6124 = vmatprep.subr.bf16.mxu0 %v7937_v55  ;;  %v5841_v8 = vpop.f32.mrf.mxu1 }
 0x440   :  { %7189 = vmatprep.subr.bf16.mxu1 %v7938_v58  ;;  %v7990_v58 = vld [vmem:[%s10650_s7 + $0xc58] ss:$28 sps:$4 sm:$0xff]  }
 0x442   :  { %6125 = vmatpush2.bf16.msra.mxu0 %v7935_v60  ;;  %v3305_v60 = vrot.slane %v10303_v15, %v8581_v59 }
 0x443   :  { %7190 = vmatpush3.bf16.msra.mxu1 %v7939_v61  ;;  %6126 = vmatprep.subr.bf16.mxu0 %v7942_v62  ;;  %v5836_v62 = vadd.f32 %v5835_v31, %v3301_v1 }
 0x444   :  { %7191 = vmatprep.subr.bf16.mxu1 %v7943_v0 }
 0x446   :  { %6127 = vmatpush2.bf16.msra.mxu0 %v7940_v2  ;;  %v5838_v2 = vadd.f32 %v5837_v50, %v3305_v60 }
 0x447   :  { %7192 = vmatpush3.bf16.msra.mxu1 %v7944_v3  ;;  %6128 = vmatprep.subr.bf16.mxu0 %v7947_v4 }
 0x448   :  { %7193 = vmatprep.subr.bf16.mxu1 %v7948_v5  ;;  %v5840_v5 = vadd.f32 %v5839_v52, %v3301_v1 }
 0x44a   :  { %6129 = vmatpush2.bf16.msra.mxu0 %v7945_v6 }
 0x44b   :  { %7194 = vmatpush3.bf16.msra.mxu1 %v7949_v7  ;;  %6130 = vmatprep.subr.bf16.mxu0 %v7952_v9  ;;  %v5842_v9 = vadd.f32 %v5841_v8, %v3305_v60 }
 0x44c   :  { %7195 = vmatprep.subr.bf16.mxu1 %v7953_v11 }
 0x44e   :  { %6131 = vmatpush2.bf16.msra.mxu0 %v7950_v63 }
 0x44f   :  { %7196 = vmatpush3.bf16.msra.mxu1 %v7954_v12  ;;  %6132 = vmatprep.subr.bf16.mxu0 %v7957_v13 }
 0x450   :  { %7197 = vmatprep.subr.bf16.mxu1 %v7958_v14 }
 0x452   :  { %6133 = vmatpush2.bf16.msra.mxu0 %v7955_v16 }
 0x453   :  { %7198 = vmatpush3.bf16.msra.mxu1 %v7959_v17  ;;  %7161 = vmatprep.subr.bf16.mxu0 %v7960_v18 }
 0x455   :  { %6135 = vmatmul.mubr.bf16.vlgmr.msra.gmra.mxu0 %v9739_v25  ;;  %v5878_v53 = vpop.f32.mrf.mxu0  ;;  %v5921_v61 = vpop.f32.mrf.mxu1 }
 0x456   :  { %6260 = vmatmul.mubr.bf16.vlgmr.msra.gmra.mxu1 %v9625_v10  ;;  %7162 = vmatpush3.bf16.msra.mxu0 %v7961_v22  ;;  %v7966_v10 = vld [vmem:[%s10650_s7 + $0x638] ss:$28 sps:$4 sm:$0xff]   ;;  %v5879_v3 = vadd.f32 %v5878_v53, %v5836_v62 }
 0x457   :  { %6218 = vmatprep.mubr.bf16.mxu0 %v9442_v38  ;;  %7163 = vmatprep.subr.bf16.mxu0 %v7962_v24  ;;  %v7967_v38 = vld [vmem:[%s10650_s7 + $0x478] ss:$28 sps:$4 sm:$0xff]   ;;  %v5880_v55 = vpop.f32.mrf.mxu0  ;;  %v5923_v4 = vpop.f32.mrf.mxu1 }
 0x458   :  { %v5881_v6 = vadd.f32 %v5880_v55, %v5838_v2  ;;  %v5922_v11 = vadd.f32 %v5921_v61, %v5879_v3 }
 0x459   :  { %v5882_v0 = vpop.f32.mrf.mxu0  ;;  %v5925_v59 = vpop.f32.mrf.mxu1 }
 0x45a   :  { %7164 = vmatpush3.bf16.msra.mxu0 %v7963_v26  ;;  %v5883_v63 = vadd.f32 %v5882_v0, %v5840_v5  ;;  %v5924_v13 = vadd.f32 %v5923_v4, %v5881_v6 }
 0x45b   :  { %7165 = vmatprep.subr.bf16.mxu0 %v7964_v28  ;;  %v5884_v7 = vpop.f32.mrf.mxu0  ;;  %v5927_v24 = vpop.f32.mrf.mxu1 }
 0x45c   :  { %v5885_v14 = vadd.f32 %v5884_v7, %v5842_v9  ;;  %v5926_v18 = vadd.f32 %v5925_v59, %v5883_v63 }
 0x45e   :  { %7166 = vmatpush3.bf16.msra.mxu0 %v7965_v32  ;;  %v5928_v28 = vadd.f32 %v5927_v24, %v5885_v14  ;;  %v3317_v14 = vrot.slane %v10303_v15, %v2674_v35 }
 0x45f   :  { %7167 = vmatprep.subr.bf16.mxu0 %v7966_v10 }
 0x462   :  { %7168 = vmatpush3.bf16.msra.mxu0 %v7967_v38 }
 0x463   :  { %7169 = vmatprep.subr.bf16.mxu0 %v7968_v40 }
 0x466   :  { %7170 = vmatpush3.bf16.msra.mxu0 %v7969_v33 }
 0x467   :  { %7171 = vmatprep.subr.bf16.mxu0 %v7970_v34 }
 0x46a   :  { %7172 = vmatpush3.bf16.msra.mxu0 %v7971_v41 }
 0x46b   :  { %7173 = vmatprep.subr.bf16.mxu0 %v7972_v29 }
 0x46e   :  { %7174 = vmatpush3.bf16.msra.mxu0 %v7973_v42 }
 0x46f   :  { %7175 = vmatprep.subr.bf16.mxu0 %v7974_v43 }
 0x472   :  { %7176 = vmatpush3.bf16.msra.mxu0 %v7975_v30  ;;  %v3309_v30 = vrot.slane %v10303_v15, %v2666_v19 }
 0x473   :  { %7205 = vmatprep.subr.bf16.mxu0 %v7976_v45 }
 0x475   :  { %6219 = vmatmul.mubr.bf16.vlgmr.msra.gmra.mxu0 %v9447_v44  ;;  %v7982_v44 = vld [vmem:[%s10650_s7 + $0xd38] ss:$28 sps:$4 sm:$0xff]  }
 0x476   :  { %7206 = vmatpush3.bf16.msra.mxu0 %v7977_v36  ;;  %6300 = vmatprep.mubr.bf16.mxu0 %v9731_v21  ;;  %v7983_v21 = vld [vmem:[%s10650_s7 + $0xb78] ss:$28 sps:$4 sm:$0xff]   ;;  %s8043_s7 = smov [#allocation2]  }
 0x477   :  { %7207 = vmatprep.subr.bf16.mxu0 %v7978_v37  ;;  %v3313_v37 = vrot.slane %v10303_v15, %v2670_v23  ;;  %s6343_s12 = sshll.u32 %s8043_s7, 4  ;;  %s6344_s12 = int_to_ptr.vmem [resolvable:$true] %s6343_s12 }
 0x478   :  { %s8020_s13 = scalar_lea.vmem %s6344_s12, 1792  ;;  %p8025_p1 = scmp.lt.s32.totalorder %s6344_s12, %s6344_s12 }
 0x479   :  { %p8021_p0 = scmp.ne.s32.totalorder %s6344_s12, %s8020_s13  ;;  %p8026_p2 = scmp.lt.s32.totalorder %s8020_s13, %s8020_s13 }
 0x47a   :  { %7208 = vmatpush3.bf16.msra.mxu0 %v7979_v46 }
 0x47b   :  { %7209 = vmatprep.subr.bf16.mxu0 %v7980_v47  ;;  %p8027_p3 = por %p8026_p2, %p8025_p1 }
 0x47d   :  { %p8028_p4 = pnand %p8027_p3, %p8021_p0 }
 0x47e   :  { %7210 = vmatpush3.bf16.msra.mxu0 %v7981_v48 }
 0x47f   :  { %7211 = vmatprep.subr.bf16.mxu0 %v7982_v44 }
 0x482   :  { %7212 = vmatpush3.bf16.msra.mxu0 %v7983_v21 }
 0x483   :  { %7213 = vmatprep.subr.bf16.mxu0 %v7984_v39 }
 0x486   :  { %7214 = vmatpush3.bf16.msra.mxu0 %v7985_v49 }
 0x487   :  { %7215 = vmatprep.subr.bf16.mxu0 %v7986_v51 }
 0x48a   :  { %7216 = vmatpush3.bf16.msra.mxu0 %v7987_v20 }
 0x48b   :  { %7217 = vmatprep.subr.bf16.mxu0 %v7988_v56 }
 0x48e   :  { %7218 = vmatpush3.bf16.msra.mxu0 %v7989_v54 }
 0x48f   :  { %7219 = vmatprep.subr.bf16.mxu0 %v7990_v58 }
 0x492   :  { %7220 = vmatpush3.bf16.msra.mxu0 %v7991_v57 }
 0x495   :  { %v5964_v12 = vpop.f32.mrf.mxu0  ;;  %6301 = vmatmul.mubr.bf16.vlgmr.msra.gmra.mxu0 %v9739_v25 }
 0x496   :  { %v5965_v16 = vadd.f32 %v5964_v12, %v5922_v11  ;;  %v6007_v41 = vpop.f32.mrf.mxu1 }
 0x497   :  { %v5966_v17 = vpop.f32.mrf.mxu0  ;;  %v6008_v47 = vadd.f32 %v6007_v41, %v3309_v30 }
 0x498   :  { %8000 = vtanh.f32 %v5965_v16  ;;  %v5967_v22 = vadd.f32 %v5966_v17, %v5924_v13  ;;  %v6009_v29 = vpop.f32.mrf.mxu1 }
 0x499   :  { %v5968_v26 = vpop.f32.mrf.mxu0  ;;  %v6010_v44 = vadd.f32 %v6009_v29, %v3313_v37 }
 0x49a   :  { %8002 = vtanh.f32 %v5967_v22  ;;  %v5969_v32 = vadd.f32 %v5968_v26, %v5926_v18  ;;  %v6011_v42 = vpop.f32.mrf.mxu1 }
 0x49b   :  { %v5970_v10 = vpop.f32.mrf.mxu0  ;;  %v6012_v39 = vadd.f32 %v6011_v42, %v3309_v30 }
 0x49c   :  { %8004 = vtanh.f32 %v5969_v32  ;;  %v5971_v38 = vadd.f32 %v5970_v10, %v5928_v28  ;;  %v6013_v45 = vpop.f32.mrf.mxu1 }
 0x49d   :  { %v6014_v51 = vadd.f32 %v6013_v45, %v3313_v37 }
 0x49e   :  { %8006 = vtanh.f32 %v5971_v38 }
 0x4a5   :  { %v8001_v40 = vpop.eup %8000 }
 0x4a6   :  { %6325 = vst [vmem:[#allocation2 + $0x10] sm:$0xff] %v8001_v40 }
 0x4a7   :  { %v8003_v33 = vpop.eup %8002 }
 0x4a8   :  { %6326 = vst [vmem:[#allocation2 + $0x18] sm:$0xff] %v8003_v33 }
 0x4a9   :  { %v8005_v25 = vpop.eup %8004 }
 0x4aa   :  { %6333 = vst [vmem:[#allocation2 + $0x48] sm:$0xff] %v8005_v25 }
 0x4ab   :  { %v8007_v34 = vpop.eup %8006 }
 0x4ac   :  { %6334 = vst [vmem:[#allocation2 + $0x50] sm:$0xff] %v8007_v34 }
 0x4d5   :  { %v6050_v43 = vpop.f32.mrf.mxu0 }
 0x4d6   :  { %v6093_v46 = vpop.f32.mrf.mxu1  ;;  %v6051_v21 = vadd.f32 %v6050_v43, %v6008_v47 }
 0x4d7   :  { %v6052_v36 = vpop.f32.mrf.mxu0 }
 0x4d8   :  { %v6095_v31 = vpop.f32.mrf.mxu1  ;;  %v6053_v49 = vadd.f32 %v6052_v36, %v6010_v44  ;;  %v6094_v20 = vadd.f32 %v6093_v46, %v6051_v21 }
 0x4d9   :  { %v6054_v48 = vpop.f32.mrf.mxu0 }
 0x4da   :  { %v6055_v52 = vadd.f32 %v6054_v48, %v6012_v39  ;;  %v6097_v53 = vpop.f32.mrf.mxu1  ;;  %v6096_v56 = vadd.f32 %v6095_v31, %v6053_v49 }
 0x4db   :  { %v6056_v50 = vpop.f32.mrf.mxu0 }
 0x4dc   :  { %v6057_v1 = vadd.f32 %v6056_v50, %v6014_v51  ;;  %v6098_v55 = vadd.f32 %v6097_v53, %v6055_v52  ;;  %v6099_v58 = vpop.f32.mrf.mxu1 }
 0x4de   :  { %v6100_v61 = vadd.f32 %v6099_v58, %v6057_v1 }
 0x4f6   :  { %v7155_v6 = vpop.f32.mrf.mxu1 }
 0x4f8   :  { %v7156_v7 = vpop.f32.mrf.mxu1 }
 0x4f9   :  { %v7157_v16 = vadd.f32 %v7156_v7, %v7155_v6 }
 0x4fa   :  { %v7158_v9 = vpop.f32.mrf.mxu1 }
 0x4fb   :  { %v6180_v24 = vadd.f32 %v7157_v16, %v3317_v14 }
 0x4fc   :  { %v7159_v63 = vpop.f32.mrf.mxu1 }
 0x4fd   :  { %v7160_v26 = vadd.f32 %v7159_v63, %v7158_v9 }
 0x4ff   :  { %v6183_v40 = vadd.f32 %v7160_v26, %v3317_v14 }
 0x515   :  { %v6136_v19 = vpop.f32.mrf.mxu0 }
 0x516   :  { %v6137_v54 = vadd.f32 %v6136_v19, %v6094_v20  ;;  %v7199_v12 = vpop.f32.mrf.mxu1 }
 0x517   :  { %v6138_v8 = vpop.f32.mrf.mxu0 }
 0x518   :  { %8008 = vtanh.f32 %v6137_v54  ;;  %v6139_v23 = vadd.f32 %v6138_v8, %v6096_v56  ;;  %v7200_v17 = vpop.f32.mrf.mxu1 }
 0x519   :  { %v6140_v60 = vpop.f32.mrf.mxu0  ;;  %v7201_v33 = vadd.f32 %v7200_v17, %v7199_v12 }
 0x51a   :  { %8010 = vtanh.f32 %v6139_v23  ;;  %v6141_v62 = vadd.f32 %v6140_v60, %v6098_v55  ;;  %v7202_v28 = vpop.f32.mrf.mxu1 }
 0x51b   :  { %v6142_v57 = vpop.f32.mrf.mxu0 }
 0x51c   :  { %8012 = vtanh.f32 %v6141_v62  ;;  %v6143_v0 = vadd.f32 %v6142_v57, %v6100_v61  ;;  %v7203_v25 = vpop.f32.mrf.mxu1 }
 0x51d   :  { %v7204_v43 = vadd.f32 %v7203_v25, %v7202_v28 }
 0x51e   :  { %8014 = vtanh.f32 %v6143_v0 }
 0x525   :  { %v8009_v2 = vpop.eup %8008 }
 0x526   :  { %6327 = vst [vmem:[#allocation2 + $0x20] sm:$0xff] %v8009_v2 }
 0x527   :  { %v8011_v3 = vpop.eup %8010 }
 0x528   :  { %6328 = vst [vmem:[#allocation2 + $0x28] sm:$0xff] %v8011_v3 }
 0x529   :  { %v8013_v4 = vpop.eup %8012 }
 0x52a   :  { %6335 = vst [vmem:[#allocation2 + $0x58] sm:$0xff] %v8013_v4 }
 0x52b   :  { %v8015_v5 = vpop.eup %8014 }
 0x52c   :  { %6336 = vst [vmem:[#allocation2 + $0x60] sm:$0xff] %v8015_v5 }
 0x535   :  { %v7177_v11 = vpop.f32.mrf.mxu0 }
 0x537   :  { %v7178_v59 = vpop.f32.mrf.mxu0 }
 0x538   :  { %v7179_v18 = vadd.f32 %v7178_v59, %v7177_v11 }
 0x539   :  { %v7180_v13 = vpop.f32.mrf.mxu0 }
 0x53a   :  { %v6221_v32 = vadd.f32 %v7179_v18, %v6180_v24 }
 0x53b   :  { %v7181_v22 = vpop.f32.mrf.mxu0 }
 0x53c   :  { %v7182_v10 = vadd.f32 %v7181_v22, %v7180_v13  ;;  %v6262_v29 = vadd.f32 %v7201_v33, %v6221_v32 }
 0x53e   :  { %v6224_v41 = vadd.f32 %v7182_v10, %v6183_v40 }
 0x540   :  { %v6265_v30 = vadd.f32 %v7204_v43, %v6224_v41 }
 0x555   :  { %v7221_v38 = vpop.f32.mrf.mxu0 }
 0x557   :  { %v7222_v34 = vpop.f32.mrf.mxu0 }
 0x558   :  { %v7223_v42 = vadd.f32 %v7222_v34, %v7221_v38 }
 0x559   :  { %v7224_v27 = vpop.f32.mrf.mxu0 }
 0x55a   :  { %v6303_v35 = vadd.f32 %v7223_v42, %v6262_v29 }
 0x55b   :  { %v7225_v15 = vpop.f32.mrf.mxu0 }
 0x55c   :  { %8016 = vtanh.f32 %v6303_v35  ;;  %v7226_v45 = vadd.f32 %v7225_v15, %v7224_v27 }
 0x55e   :  { %v6306_v36 = vadd.f32 %v7226_v45, %v6265_v30 }
 0x560   :  { %8018 = vtanh.f32 %v6306_v36 }
 0x569   :  { %v8017_v37 = vpop.eup %8016 }
 0x56a   :  { %6330 = vst.msk [vmem:[#allocation2 + $0x30] sm:$0xff] %vm6329_vm0, %v8017_v37 }
 0x56d   :  { %v8019_v46 = vpop.eup %8018 }
 0x56e   :  { %6337 = vst.msk [vmem:[#allocation2 + $0x68] sm:$0xff] %vm6329_vm0, %v8019_v46 }
 0x56f   :  { %8031 = shalt.err (!%p8028_p4)
}
 0x570   :  { %s8044_s14 = smov 896   ;;  %s8045_s15 = smov 56  }
 0x571   :  { %6349 = dma.vmem_to_hbm [thread:$0]  %s6344_s12, 1792, %s10652_s9, [#allocation3], %s8044_s14, %s8044_s14, %s8045_s15  }
 0x572   :  { %8040 = dma.done.wait [#allocation3], 1792  }
 0x573   :  { %8041 = vsyncadd [#allocation3], 4294965504 }
 0x574   :  { %6353 = vsyncpa [#allocation3], 1 }

// kernel: tpu_custom_call.1
= control target key start
LH: loop header
LB: loop body
LE: loop exit
PB: predicated region body
PF: predicated region fallthrough
CT: control target
= control target key end

     0   :  { %v8042_v2 = vmov 0   ;;  %s10643_s0 = inlined_call_operand.vmem [shape: bf16[16,128], index: 0, kind: input, shape index: {}]   ;;  %s10644_s1 = inlined_call_operand.vmem [shape: bf16[128,256], index: 1, kind: input, shape index: {}]   ;;  %s10645_s2 = inlined_call_operand.vmem [shape: f32[1,256], index: 2, kind: input, shape index: {}]   ;;  %s10646_s3 = inlined_call_operand.vmem [shape: bf16[256,512], index: 3, kind: input, shape index: {}]   ;;  %s10647_s4 = inlined_call_operand.vmem [shape: f32[1,512], index: 4, kind: input, shape index: {}]   ;;  %s10648_s5 = inlined_call_operand.vmem [shape: bf16[512,1024], index: 5, kind: input, shape index: {}]   ;;  %s10649_s6 = inlined_call_operand.vmem [shape: f32[1,1024], index: 6, kind: input, shape index: {}]   ;;  %s10650_s7 = inlined_call_operand.vmem [shape: bf16[1024,784], index: 7, kind: input, shape index: {}]   ;;  %s10651_s8 = inlined_call_operand.vmem [shape: f32[1,784], index: 8, kind: input, shape index: {}]   ;;  %s10652_s9 = inlined_call_operand.hbm [shape: f32[16,784], index: 9, kind: output, shape index: {}]  }
   0x1   :  { %v7231_v0 = vld [vmem:[%s10644_s1 + $0x74] ss:$8 sps:$4 sm:$0xff]   ;;  %v7233_v1 = vld [vmem:[%s10644_s1 + $0x70] ss:$8 sps:$4 sm:$0xff]   ;;  %171 = vmatprep.mubr.bf16.mxu0 %v8042_v2  ;;  %v7234_v3 = vld [vmem:[%s10644_s1 + $0x64] ss:$8 sps:$4 sm:$0xff]  }
   0x2   :  { %139 = vmatprep.subr.bf16.mxu0 %v7231_v0  ;;  %v7236_v4 = vld [vmem:[%s10644_s1 + $0x60] ss:$8 sps:$4 sm:$0xff]   ;;  %v7237_v5 = vld [vmem:[%s10644_s1 + $0x54] ss:$8 sps:$4 sm:$0xff]   ;;  %v7239_v6 = vld [vmem:[%s10644_s1 + $0x50] ss:$8 sps:$4 sm:$0xff]  }
   0x3   :  { %140 = vmatpush1.bf16.msra.mxu0 %v7233_v1  ;;  %v7240_v7 = vld [vmem:[%s10644_s1 + $0x44] ss:$8 sps:$4 sm:$0xff]   ;;  %v7242_v8 = vld [vmem:[%s10644_s1 + $0x40] ss:$8 sps:$4 sm:$0xff]   ;;  %v7243_v9 = vld [vmem:[%s10644_s1 + $0x34] ss:$8 sps:$4 sm:$0xff]  }
   0x4   :  { %141 = vmatprep.subr.bf16.mxu0 %v7234_v3  ;;  %v7256_v10 = vld [vmem:[%s10646_s3 + $0xe4] ss:$16 sps:$4 sm:$0xff]   ;;  %v7245_v11 = vld [vmem:[%s10644_s1 + $0x30] ss:$8 sps:$4 sm:$0xff]   ;;  %v7248_v17 = vld [vmem:[%s10644_s1 + $0x20] ss:$8 sps:$4 sm:$0xff]  }
   0x5   :  { %602 = vmatprep.subr.bf16.mxu1 %v7256_v10  ;;  %v7261_v12 = vld [vmem:[%s10646_s3 + $0xe0] ss:$16 sps:$4 sm:$0xff]   ;;  %v7262_v13 = vld [vmem:[%s10646_s3 + $0xc4] ss:$16 sps:$4 sm:$0xff]   ;;  %v7260_v26 = vld [vmem:[%s10646_s3 + $0xec] ss:$16 sps:$4 sm:$0xff]  }
   0x6   :  { %v7246_v14 = vld [vmem:[%s10644_s1 + $0x24] ss:$8 sps:$4 sm:$0xff]   ;;  %603 = vmatpush1.bf16.msra.mxu1 %v7261_v12  ;;  %v7267_v15 = vld [vmem:[%s10646_s3 + $0xc0] ss:$16 sps:$4 sm:$0xff]   ;;  %v7249_v18 = vld [vmem:[%s10644_s1 + $0x14] ss:$8 sps:$4 sm:$0xff]  }
   0x7   :  { %142 = vmatpush1.bf16.msra.mxu0 %v7236_v4  ;;  %604 = vmatprep.subr.bf16.mxu1 %v7262_v13  ;;  %v7268_v16 = vld [vmem:[%s10646_s3 + $0xa4] ss:$16 sps:$4 sm:$0xff]   ;;  %v7273_v19 = vld [vmem:[%s10646_s3 + $0xa0] ss:$16 sps:$4 sm:$0xff]   ;;  %v7258_v30 = vld [vmem:[%s10646_s3 + $0xe8] ss:$16 sps:$4 sm:$0xff]  }
   0x8   :  { %143 = vmatprep.subr.bf16.mxu0 %v7237_v5  ;;  %v7274_v20 = vld [vmem:[%s10646_s3 + $0x84] ss:$16 sps:$4 sm:$0xff]   ;;  %v7251_v21 = vld [vmem:[%s10644_s1 + $0x10] ss:$8 sps:$4 sm:$0xff]   ;;  %v7254_v25 = vld [vmem:[%s10644_s1] ss:$8 sps:$4 sm:$0xff]  }
   0x9   :  { %v7252_v22 = vld [vmem:[%s10644_s1 + $0x4] ss:$8 sps:$4 sm:$0xff]   ;;  %v7279_v23 = vld [vmem:[%s10646_s3 + $0x80] ss:$16 sps:$4 sm:$0xff]   ;;  %v7264_v34 = vld [vmem:[%s10646_s3 + $0xc8] ss:$16 sps:$4 sm:$0xff]  }
   0xa   :  { %605 = vmatpush1.bf16.msra.mxu1 %v7267_v15  ;;  %v7280_v24 = vld [vmem:[%s10646_s3 + $0x64] ss:$16 sps:$4 sm:$0xff]   ;;  %v7285_v27 = vld [vmem:[%s10646_s3 + $0x60] ss:$16 sps:$4 sm:$0xff]   ;;  %v7266_v31 = vld [vmem:[%s10646_s3 + $0xcc] ss:$16 sps:$4 sm:$0xff]  }
   0xb   :  { %144 = vmatpush1.bf16.msra.mxu0 %v7239_v6  ;;  %606 = vmatprep.subr.bf16.mxu1 %v7268_v16  ;;  %v7286_v28 = vld [vmem:[%s10646_s3 + $0x44] ss:$16 sps:$4 sm:$0xff]   ;;  %v7291_v32 = vld [vmem:[%s10646_s3 + $0x40] ss:$16 sps:$4 sm:$0xff]   ;;  %v7272_v35 = vld [vmem:[%s10646_s3 + $0xac] ss:$16 sps:$4 sm:$0xff]  }
   0xc   :  { %145 = vmatprep.subr.bf16.mxu0 %v7240_v7  ;;  %v7255_v29 = vld [vmem:[%s10643_s0] sm:$0xff]   ;;  %v7270_v38 = vld [vmem:[%s10646_s3 + $0xa8] ss:$16 sps:$4 sm:$0xff]   ;;  %v7278_v39 = vld [vmem:[%s10646_s3 + $0x8c] ss:$16 sps:$4 sm:$0xff]  }
   0xd   :  { %v7292_v33 = vld [vmem:[%s10646_s3 + $0x24] ss:$16 sps:$4 sm:$0xff]   ;;  %v7297_v36 = vld [vmem:[%s10646_s3 + $0x20] ss:$16 sps:$4 sm:$0xff]   ;;  %v7276_v41 = vld [vmem:[%s10646_s3 + $0x88] ss:$16 sps:$4 sm:$0xff]  }
   0xe   :  { %607 = vmatpush1.bf16.msra.mxu1 %v7273_v19  ;;  %v7298_v37 = vld [vmem:[%s10646_s3 + $0x4] ss:$16 sps:$4 sm:$0xff]   ;;  %v7303_v40 = vld [vmem:[%s10646_s3] ss:$16 sps:$4 sm:$0xff]   ;;  %v7284_v43 = vld [vmem:[%s10646_s3 + $0x6c] ss:$16 sps:$4 sm:$0xff]  }
   0xf   :  { %146 = vmatpush1.bf16.msra.mxu0 %v7242_v8  ;;  %608 = vmatprep.subr.bf16.mxu1 %v7274_v20  ;;  %v7304_v42 = vld [vmem:[%s10646_s3 + $0x1e4] ss:$16 sps:$4 sm:$0xff]   ;;  %v7309_v44 = vld [vmem:[%s10646_s3 + $0x1e0] ss:$16 sps:$4 sm:$0xff]   ;;  %v7282_v46 = vld [vmem:[%s10646_s3 + $0x68] ss:$16 sps:$4 sm:$0xff]  }
  0x10   :  { %147 = vmatprep.subr.bf16.mxu0 %v7243_v9  ;;  %v7310_v45 = vld [vmem:[%s10646_s3 + $0x1c4] ss:$16 sps:$4 sm:$0xff]   ;;  %v7290_v47 = vld [vmem:[%s10646_s3 + $0x4c] ss:$16 sps:$4 sm:$0xff]   ;;  %v7315_v48 = vld [vmem:[%s10646_s3 + $0x1c0] ss:$16 sps:$4 sm:$0xff]  }
  0x11   :  { %v7316_v49 = vld [vmem:[%s10646_s3 + $0x1a4] ss:$16 sps:$4 sm:$0xff]   ;;  %v7288_v50 = vld [vmem:[%s10646_s3 + $0x48] ss:$16 sps:$4 sm:$0xff]   ;;  %v7296_v51 = vld [vmem:[%s10646_s3 + $0x2c] ss:$16 sps:$4 sm:$0xff]  }
  0x12   :  { %609 = vmatpush1.bf16.msra.mxu1 %v7279_v23  ;;  %v7321_v52 = vld [vmem:[%s10646_s3 + $0x1a0] ss:$16 sps:$4 sm:$0xff]   ;;  %v7322_v53 = vld [vmem:[%s10646_s3 + $0x184] ss:$16 sps:$4 sm:$0xff]   ;;  %v7294_v54 = vld [vmem:[%s10646_s3 + $0x28] ss:$16 sps:$4 sm:$0xff]  }
  0x13   :  { %148 = vmatpush1.bf16.msra.mxu0 %v7245_v11  ;;  %610 = vmatprep.subr.bf16.mxu1 %v7280_v24  ;;  %v7302_v55 = vld [vmem:[%s10646_s3 + $0xc] ss:$16 sps:$4 sm:$0xff]   ;;  %v7327_v56 = vld [vmem:[%s10646_s3 + $0x180] ss:$16 sps:$4 sm:$0xff]   ;;  %v7300_v57 = vld [vmem:[%s10646_s3 + $0x8] ss:$16 sps:$4 sm:$0xff]  }
  0x14   :  { %149 = vmatprep.subr.bf16.mxu0 %v7246_v14  ;;  %v7308_v58 = vld [vmem:[%s10646_s3 + $0x1ec] ss:$16 sps:$4 sm:$0xff]   ;;  %v7306_v59 = vld [vmem:[%s10646_s3 + $0x1e8] ss:$16 sps:$4 sm:$0xff]   ;;  %v7328_v2 = vld [vmem:[%s10646_s3 + $0x164] ss:$16 sps:$4 sm:$0xff]  }
  0x15   :  { %v7314_v60 = vld [vmem:[%s10646_s3 + $0x1cc] ss:$16 sps:$4 sm:$0xff]   ;;  %v7312_v61 = vld [vmem:[%s10646_s3 + $0x1c8] ss:$16 sps:$4 sm:$0xff]   ;;  %v7333_v5 = vld [vmem:[%s10646_s3 + $0x160] ss:$16 sps:$4 sm:$0xff]  }
  0x16   :  { %611 = vmatpush1.bf16.msra.mxu1 %v7285_v27  ;;  %v7320_v62 = vld [vmem:[%s10646_s3 + $0x1ac] ss:$16 sps:$4 sm:$0xff]   ;;  %v7318_v63 = vld [vmem:[%s10646_s3 + $0x1a8] ss:$16 sps:$4 sm:$0xff]   ;;  %v7334_v6 = vld [vmem:[%s10646_s3 + $0x144] ss:$16 sps:$4 sm:$0xff]  }
  0x17   :  { %150 = vmatpush1.bf16.msra.mxu0 %v7248_v17  ;;  %612 = vmatprep.subr.bf16.mxu1 %v7286_v28  ;;  %v7326_v0 = vld [vmem:[%s10646_s3 + $0x18c] ss:$16 sps:$4 sm:$0xff]   ;;  %v7324_v1 = vld [vmem:[%s10646_s3 + $0x188] ss:$16 sps:$4 sm:$0xff]   ;;  %v7339_v9 = vld [vmem:[%s10646_s3 + $0x140] ss:$16 sps:$4 sm:$0xff]  }
  0x18   :  { %151 = vmatprep.subr.bf16.mxu0 %v7249_v18  ;;  %v7332_v3 = vld [vmem:[%s10646_s3 + $0x16c] ss:$16 sps:$4 sm:$0xff]   ;;  %v7330_v4 = vld [vmem:[%s10646_s3 + $0x168] ss:$16 sps:$4 sm:$0xff]   ;;  %v7340_v10 = vld [vmem:[%s10646_s3 + $0x124] ss:$16 sps:$4 sm:$0xff]  }
  0x19   :  { %v7338_v7 = vld [vmem:[%s10646_s3 + $0x14c] ss:$16 sps:$4 sm:$0xff]   ;;  %v7336_v8 = vld [vmem:[%s10646_s3 + $0x148] ss:$16 sps:$4 sm:$0xff]   ;;  %v7345_v13 = vld [vmem:[%s10646_s3 + $0x120] ss:$16 sps:$4 sm:$0xff]  }
  0x1a   :  { %613 = vmatpush1.bf16.msra.mxu1 %v7291_v32  ;;  %v7344_v11 = vld [vmem:[%s10646_s3 + $0x12c] ss:$16 sps:$4 sm:$0xff]   ;;  %v7342_v12 = vld [vmem:[%s10646_s3 + $0x128] ss:$16 sps:$4 sm:$0xff]   ;;  %v7346_v14 = vld [vmem:[%s10646_s3 + $0x104] ss:$16 sps:$4 sm:$0xff]  }
  0x1b   :  { %152 = vmatpush1.bf16.msra.mxu0 %v7251_v21  ;;  %614 = vmatprep.subr.bf16.mxu1 %v7292_v33  ;;  %v7348_v15 = vld [vmem:[%s10646_s3 + $0x108] ss:$16 sps:$4 sm:$0xff]   ;;  %v7350_v16 = vld [vmem:[%s10646_s3 + $0x10c] ss:$16 sps:$4 sm:$0xff]   ;;  %v7351_v17 = vld [vmem:[%s10646_s3 + $0x100] ss:$16 sps:$4 sm:$0xff]  }
  0x1c   :  { %153 = vmatprep.subr.bf16.mxu0 %v7252_v22  ;;  %v814_v18 = vld [vmem:[%s10648_s5 + $0x1c0] sm:$0xff] }
  0x1d   :  { %v818_v19 = vld [vmem:[%s10648_s5 + $0x1e0] sm:$0xff] }
  0x1e   :  { %615 = vmatpush1.bf16.msra.mxu1 %v7297_v36  ;;  %v942_v20 = vld [vmem:[%s10648_s5 + $0x5c0] sm:$0xff]  ;;  %v6491_v21 = vcombine.low %v814_v18, %v818_v19  ;;  %v6492_v22 = vcombine.high %v814_v18, %v818_v19 }
  0x1f   :  { %154 = vmatpush1.bf16.msra.mxu0 %v7254_v25  ;;  %616 = vmatprep.subr.bf16.mxu1 %v7298_v37  ;;  %v946_v23 = vld [vmem:[%s10648_s5 + $0x5e0] sm:$0xff] }
  0x20   :  { %645 = vmatprep.subr.bf16.mxu0 %v7260_v26  ;;  %v6619_v24 = vcombine.low %v942_v20, %v946_v23  ;;  %v6620_v25 = vcombine.high %v942_v20, %v946_v23  ;;  %v186_v26 = vlaneseq  ;;  %v184_v28 = vld [vmem:[%s10645_s2] sm:$0x3] }
  0x22   :  { %172 = vmatmul.mubr.bf16.vlgmr.msra.gmra.mxu0 %v7255_v29  ;;  %617 = vmatpush1.bf16.msra.mxu1 %v7303_v40  ;;  %v8351_v27 = vshrl.u32 %v186_v26, 7 }
  0x23   :  { %646 = vmatpush1.bf16.msra.mxu0 %v7258_v30  ;;  %618 = vmatprep.subr.bf16.mxu1 %v7304_v42 }
  0x24   :  { %647 = vmatprep.subr.bf16.mxu0 %v7266_v31  ;;  %v8357_v29 = vsub.s32 0, %v8351_v27  ;;  %v8360_v30 = vsub.s32 1, %v8351_v27 }
  0x26   :  { %619 = vmatpush2.bf16.msra.mxu1 %v7309_v44  ;;  %v189_v31 = vrot.slane %v184_v28, %v8357_v29  ;;  %v193_v32 = vrot.slane %v184_v28, %v8360_v30 }
  0x27   :  { %648 = vmatpush1.bf16.msra.mxu0 %v7264_v34  ;;  %620 = vmatprep.subr.bf16.mxu1 %v7310_v45 }
  0x28   :  { %649 = vmatprep.subr.bf16.mxu0 %v7272_v35  ;;  %v196_v33 = vpack.c.bf16 %v189_v31, %v189_v31  ;;  %v197_v34 = vpack.c.bf16 %v193_v32, %v193_v32 }
  0x2a   :  { %621 = vmatpush2.bf16.msra.mxu1 %v7315_v48  ;;  %v199_v35 = vpack.i.b16 %v196_v33, %v196_v33  ;;  %v206_v37 = vpack.i.b16 %v197_v34, %v197_v34  ;;  %v806_v48 = vld [vmem:[%s10648_s5 + $0x180] sm:$0xff] }
  0x2b   :  { %650 = vmatpush1.bf16.msra.mxu0 %v7270_v38  ;;  %622 = vmatprep.subr.bf16.mxu1 %v7316_v49  ;;  %v810_v49 = vld [vmem:[%s10648_s5 + $0x1a0] sm:$0xff] }
  0x2c   :  { %651 = vmatprep.subr.bf16.mxu0 %v7278_v39  ;;  %v204_v39 = vrot.slane %v199_v35, %v8357_v29  ;;  %v211_v42 = vrot.slane %v206_v37, %v8357_v29 }
  0x2e   :  { %623 = vmatpush2.bf16.msra.mxu1 %v7321_v52 }
  0x2f   :  { %652 = vmatpush1.bf16.msra.mxu0 %v7276_v41  ;;  %624 = vmatprep.subr.bf16.mxu1 %v7322_v53 }
  0x30   :  { %653 = vmatprep.subr.bf16.mxu0 %v7284_v43 }
  0x32   :  { %625 = vmatpush2.bf16.msra.mxu1 %v7327_v56  ;;  %v926_v56 = vld [vmem:[%s10648_s5 + $0x540] sm:$0xff] }
  0x33   :  { %654 = vmatpush1.bf16.msra.mxu0 %v7282_v46  ;;  %626 = vmatprep.subr.bf16.mxu1 %v7328_v2 }
  0x34   :  { %655 = vmatprep.subr.bf16.mxu0 %v7290_v47 }
  0x36   :  { %627 = vmatpush2.bf16.msra.mxu1 %v7333_v5 }
  0x37   :  { %656 = vmatpush1.bf16.msra.mxu0 %v7288_v50  ;;  %628 = vmatprep.subr.bf16.mxu1 %v7334_v6  ;;  %v934_v50 = vld [vmem:[%s10648_s5 + $0x580] sm:$0xff] }
  0x38   :  { %657 = vmatprep.subr.bf16.mxu0 %v7296_v51  ;;  %v938_v51 = vld [vmem:[%s10648_s5 + $0x5a0] sm:$0xff] }
  0x3a   :  { %629 = vmatpush2.bf16.msra.mxu1 %v7339_v9 }
  0x3b   :  { %658 = vmatpush1.bf16.msra.mxu0 %v7294_v54  ;;  %630 = vmatprep.subr.bf16.mxu1 %v7340_v10  ;;  %v798_v54 = vld [vmem:[%s10648_s5 + $0x140] sm:$0xff] }
  0x3c   :  { %659 = vmatprep.subr.bf16.mxu0 %v7302_v55  ;;  %v802_v55 = vld [vmem:[%s10648_s5 + $0x160] sm:$0xff] }
  0x3e   :  { %631 = vmatpush2.bf16.msra.mxu1 %v7345_v13 }
  0x3f   :  { %660 = vmatpush1.bf16.msra.mxu0 %v7300_v57  ;;  %632 = vmatprep.subr.bf16.mxu1 %v7346_v14  ;;  %v930_v57 = vld [vmem:[%s10648_s5 + $0x560] sm:$0xff] }
  0x40   :  { %661 = vmatprep.subr.bf16.mxu0 %v7308_v58 }
  0x42   :  { %633 = vmatpush2.bf16.msra.mxu1 %v7351_v17 }
  0x43   :  { %662 = vmatpush2.bf16.msra.mxu0 %v7306_v59  ;;  %2294 = vmatprep.subr.bf16.mxu1 %v6492_v22  ;;  %v6484_v59 = vcombine.high %v806_v48, %v810_v49 }
  0x44   :  { %663 = vmatprep.subr.bf16.mxu0 %v7314_v60  ;;  %v6612_v60 = vcombine.high %v934_v50, %v938_v51 }
  0x47   :  { %664 = vmatpush2.bf16.msra.mxu0 %v7312_v61  ;;  %v6483_v61 = vcombine.low %v806_v48, %v810_v49 }
  0x48   :  { %665 = vmatprep.subr.bf16.mxu0 %v7320_v62  ;;  %v6611_v62 = vcombine.low %v934_v50, %v938_v51 }
  0x4b   :  { %666 = vmatpush2.bf16.msra.mxu0 %v7318_v63 }
  0x4c   :  { %667 = vmatprep.subr.bf16.mxu0 %v7326_v0 }
  0x4f   :  { %668 = vmatpush2.bf16.msra.mxu0 %v7324_v1 }
  0x50   :  { %669 = vmatprep.subr.bf16.mxu0 %v7332_v3 }
  0x53   :  { %670 = vmatpush2.bf16.msra.mxu0 %v7330_v4 }
  0x54   :  { %671 = vmatprep.subr.bf16.mxu0 %v7338_v7 }
  0x57   :  { %672 = vmatpush2.bf16.msra.mxu0 %v7336_v8 }
  0x58   :  { %673 = vmatprep.subr.bf16.mxu0 %v7344_v11 }
  0x5b   :  { %674 = vmatpush2.bf16.msra.mxu0 %v7342_v12 }
  0x5c   :  { %675 = vmatprep.subr.bf16.mxu0 %v7350_v16 }
  0x5f   :  { %676 = vmatpush2.bf16.msra.mxu0 %v7348_v15 }
  0x60   :  { %2337 = vmatprep.subr.bf16.mxu0 %v6620_v25 }
  0xe2   :  { %v173_v36 = vpop.f32.mrf.mxu0 }
  0xe4   :  { %v175_v38 = vpop.f32.mrf.mxu0 }
  0xe6   :  { %v177_v40 = vpop.f32.mrf.mxu0 }
  0xe7   :  { %v182_v41 = vpack.c.bf16 %v177_v40, %v173_v36 }
  0xe8   :  { %v179_v43 = vpop.f32.mrf.mxu0 }
  0xe9   :  { %v212_v44 = vadd.bf16 %v204_v39, %v182_v41  ;;  %v183_v45 = vpack.c.bf16 %v179_v43, %v175_v38 }
  0xeb   :  { %v214_v46 = vmul.bf16 1045249613, %v212_v44  ;;  %v213_v47 = vadd.bf16 %v211_v42, %v183_v45 }
  0xed   :  { %v215_v52 = vmul.bf16 1045249613, %v213_v47  ;;  %v216_v58 = vmax.bf16 %v214_v46, %v212_v44 }
  0xef   :  { %v217_v53 = vmax.bf16 %v215_v52, %v213_v47 }
  0xf1   :  { %634 = vmatprep.mubr.bf16.mxu1 %v217_v53  ;;  %677 = vmatprep.mubr.bf16.mxu0 %v217_v53 }
  0xf2   :  { %635 = vmatmul.mubr.bf16.vlgmr.msra.gmra.mxu1 %v216_v58  ;;  %678 = vmatmul.mubr.bf16.vlgmr.msra.gmra.mxu0 %v216_v58 }
  0xf3   :  { %2295 = vmatpush1.bf16.msra.mxu1 %v6491_v21  ;;  %2338 = vmatpush1.bf16.msra.mxu0 %v6619_v24 }
  0xf4   :  { %14 = vsyncpa [#allocation3], 0  ;;  %2296 = vmatprep.subr.bf16.mxu1 %v6484_v59  ;;  %2339 = vmatprep.subr.bf16.mxu0 %v6612_v60  ;;  %v6476_v63 = vcombine.high %v798_v54, %v802_v55  ;;  %v6604_v0 = vcombine.high %v926_v56, %v930_v57  ;;  %v790_v1 = vld [vmem:[%s10648_s5 + $0x100] sm:$0xff]  ;;  %v6475_v5 = vcombine.low %v798_v54, %v802_v55  ;;  %vm6329_vm0 = vcmask 130048  }
  0xf5   :  { %v794_v2 = vld [vmem:[%s10648_s5 + $0x120] sm:$0xff]  ;;  %v6603_v6 = vcombine.low %v926_v56, %v930_v57 }
  0xf6   :  { %v918_v3 = vld [vmem:[%s10648_s5 + $0x500] sm:$0xff]  ;;  %v6468_v7 = vcombine.high %v790_v1, %v794_v2  ;;  %v6467_v13 = vcombine.low %v790_v1, %v794_v2 }
  0xf7   :  { %v922_v4 = vld [vmem:[%s10648_s5 + $0x520] sm:$0xff]  ;;  %2297 = vmatpush1.bf16.msra.mxu1 %v6483_v61  ;;  %2340 = vmatpush1.bf16.msra.mxu0 %v6611_v62 }
  0xf8   :  { %2298 = vmatprep.subr.bf16.mxu1 %v6476_v63  ;;  %2341 = vmatprep.subr.bf16.mxu0 %v6604_v0  ;;  %v6596_v8 = vcombine.high %v918_v3, %v922_v4  ;;  %v782_v9 = vld [vmem:[%s10648_s5 + $0xc0] sm:$0xff]  ;;  %v6595_v14 = vcombine.low %v918_v3, %v922_v4 }
  0xf9   :  { %v786_v10 = vld [vmem:[%s10648_s5 + $0xe0] sm:$0xff] }
  0xfa   :  { %v910_v11 = vld [vmem:[%s10648_s5 + $0x4c0] sm:$0xff]  ;;  %v6460_v15 = vcombine.high %v782_v9, %v786_v10  ;;  %v6459_v21 = vcombine.low %v782_v9, %v786_v10 }
  0xfb   :  { %v914_v12 = vld [vmem:[%s10648_s5 + $0x4e0] sm:$0xff]  ;;  %2299 = vmatpush1.bf16.msra.mxu1 %v6475_v5  ;;  %2342 = vmatpush1.bf16.msra.mxu0 %v6603_v6 }
  0xfc   :  { %2300 = vmatprep.subr.bf16.mxu1 %v6468_v7  ;;  %2343 = vmatprep.subr.bf16.mxu0 %v6596_v8  ;;  %v6588_v16 = vcombine.high %v910_v11, %v914_v12  ;;  %v774_v17 = vld [vmem:[%s10648_s5 + $0x80] sm:$0xff]  ;;  %v6587_v22 = vcombine.low %v910_v11, %v914_v12 }
  0xfd   :  { %v778_v18 = vld [vmem:[%s10648_s5 + $0xa0] sm:$0xff] }
  0xfe   :  { %v902_v19 = vld [vmem:[%s10648_s5 + $0x480] sm:$0xff]  ;;  %v6452_v23 = vcombine.high %v774_v17, %v778_v18  ;;  %v6451_v32 = vcombine.low %v774_v17, %v778_v18 }
  0xff   :  { %v906_v20 = vld [vmem:[%s10648_s5 + $0x4a0] sm:$0xff]  ;;  %2301 = vmatpush1.bf16.msra.mxu1 %v6467_v13  ;;  %2344 = vmatpush1.bf16.msra.mxu0 %v6595_v14 }
 0x100   :  { %2302 = vmatprep.subr.bf16.mxu1 %v6460_v15  ;;  %2345 = vmatprep.subr.bf16.mxu0 %v6588_v16  ;;  %v6580_v24 = vcombine.high %v902_v19, %v906_v20  ;;  %v766_v25 = vld [vmem:[%s10648_s5 + $0x40] sm:$0xff]  ;;  %v6579_v33 = vcombine.low %v902_v19, %v906_v20 }
 0x101   :  { %v770_v26 = vld [vmem:[%s10648_s5 + $0x60] sm:$0xff] }
 0x102   :  { %v894_v28 = vld [vmem:[%s10648_s5 + $0x440] sm:$0xff]  ;;  %v6444_v34 = vcombine.high %v766_v25, %v770_v26  ;;  %v6443_v40 = vcombine.low %v766_v25, %v770_v26 }
 0x103   :  { %v898_v31 = vld [vmem:[%s10648_s5 + $0x460] sm:$0xff]  ;;  %2303 = vmatpush1.bf16.msra.mxu1 %v6459_v21  ;;  %2346 = vmatpush1.bf16.msra.mxu0 %v6587_v22 }
 0x104   :  { %2304 = vmatprep.subr.bf16.mxu1 %v6452_v23  ;;  %2347 = vmatprep.subr.bf16.mxu0 %v6580_v24  ;;  %v6572_v35 = vcombine.high %v894_v28, %v898_v31  ;;  %v758_v36 = vld [vmem:[%s10648_s5] sm:$0xff]  ;;  %v6571_v41 = vcombine.low %v894_v28, %v898_v31 }
 0x105   :  { %v762_v37 = vld [vmem:[%s10648_s5 + $0x20] sm:$0xff] }
 0x106   :  { %v886_v38 = vld [vmem:[%s10648_s5 + $0x400] sm:$0xff]  ;;  %v6436_v42 = vcombine.high %v758_v36, %v762_v37  ;;  %v6435_v48 = vcombine.low %v758_v36, %v762_v37 }
 0x107   :  { %v890_v39 = vld [vmem:[%s10648_s5 + $0x420] sm:$0xff]  ;;  %2305 = vmatpush1.bf16.msra.mxu1 %v6451_v32  ;;  %2348 = vmatpush1.bf16.msra.mxu0 %v6579_v33 }
 0x108   :  { %2306 = vmatprep.subr.bf16.mxu1 %v6444_v34  ;;  %2349 = vmatprep.subr.bf16.mxu0 %v6572_v35  ;;  %v6564_v43 = vcombine.high %v886_v38, %v890_v39  ;;  %v878_v44 = vld [vmem:[%s10648_s5 + $0x3c0] sm:$0xff]  ;;  %v6563_v49 = vcombine.low %v886_v38, %v890_v39 }
 0x109   :  { %v882_v45 = vld [vmem:[%s10648_s5 + $0x3e0] sm:$0xff] }
 0x10a   :  { %v1006_v46 = vld [vmem:[%s10648_s5 + $0x7c0] sm:$0xff]  ;;  %v6556_v50 = vcombine.high %v878_v44, %v882_v45  ;;  %v6555_v56 = vcombine.low %v878_v44, %v882_v45 }
 0x10b   :  { %v1010_v47 = vld [vmem:[%s10648_s5 + $0x7e0] sm:$0xff]  ;;  %2307 = vmatpush1.bf16.msra.mxu1 %v6443_v40  ;;  %2350 = vmatpush1.bf16.msra.mxu0 %v6571_v41 }
 0x10c   :  { %2308 = vmatprep.subr.bf16.mxu1 %v6436_v42  ;;  %2351 = vmatprep.subr.bf16.mxu0 %v6564_v43  ;;  %v6684_v51 = vcombine.high %v1006_v46, %v1010_v47  ;;  %v870_v52 = vld [vmem:[%s10648_s5 + $0x380] sm:$0xff]  ;;  %v6683_v57 = vcombine.low %v1006_v46, %v1010_v47 }
 0x10d   :  { %v874_v53 = vld [vmem:[%s10648_s5 + $0x3a0] sm:$0xff] }
 0x10e   :  { %v998_v54 = vld [vmem:[%s10648_s5 + $0x780] sm:$0xff]  ;;  %v6548_v58 = vcombine.high %v870_v52, %v874_v53  ;;  %v6547_v0 = vcombine.low %v870_v52, %v874_v53  ;;  %v8566_v53 = vld [vmem:[%s10648_s5 + $0x5e8] sm:$0xff] }
 0x10f   :  { %v1002_v55 = vld [vmem:[%s10648_s5 + $0x7a0] sm:$0xff]  ;;  %2309 = vmatpush1.bf16.msra.mxu1 %v6435_v48  ;;  %2352 = vmatpush1.bf16.msra.mxu0 %v6563_v49  ;;  %v8549_v49 = vld [vmem:[%s10648_s5 + $0x1c8] sm:$0xff] }
 0x110   :  { %2310 = vmatprep.subr.bf16.mxu1 %v6556_v50  ;;  %2353 = vmatprep.subr.bf16.mxu0 %v6684_v51  ;;  %v6676_v59 = vcombine.high %v998_v54, %v1002_v55  ;;  %v862_v60 = vld [vmem:[%s10648_s5 + $0x340] sm:$0xff]  ;;  %v6675_v1 = vcombine.low %v998_v54, %v1002_v55  ;;  %v8554_v50 = vld [vmem:[%s10648_s5 + $0x1e8] sm:$0xff] }
 0x111   :  { %v866_v61 = vld [vmem:[%s10648_s5 + $0x360] sm:$0xff]  ;;  %v8559_v51 = vld [vmem:[%s10648_s5 + $0x5c8] sm:$0xff]  ;;  %v6494_v52 = vcombine.high %v8549_v49, %v8554_v50  ;;  %v6493_v54 = vcombine.low %v8549_v49, %v8554_v50 }
 0x112   :  { %v990_v62 = vld [vmem:[%s10648_s5 + $0x740] sm:$0xff]  ;;  %v6540_v2 = vcombine.high %v862_v60, %v866_v61  ;;  %v6539_v8 = vcombine.low %v862_v60, %v866_v61  ;;  %v6621_v55 = vcombine.low %v8559_v51, %v8566_v53 }
 0x113   :  { %v994_v63 = vld [vmem:[%s10648_s5 + $0x760] sm:$0xff]  ;;  %2311 = vmatpush2.bf16.msra.mxu1 %v6555_v56  ;;  %2354 = vmatpush2.bf16.msra.mxu0 %v6683_v57  ;;  %v6622_v56 = vcombine.high %v8559_v51, %v8566_v53  ;;  %v8575_v57 = vsub.s32 2, %v8351_v27  ;;  %v791_v53 = vld [vmem:[%s10648_s5 + $0x108] sm:$0xff] }
 0x114   :  { %2312 = vmatprep.subr.bf16.mxu1 %v6548_v58  ;;  %2355 = vmatprep.subr.bf16.mxu0 %v6676_v59  ;;  %v6668_v3 = vcombine.high %v990_v62, %v994_v63  ;;  %v854_v4 = vld [vmem:[%s10648_s5 + $0x300] sm:$0xff]  ;;  %v6667_v9 = vcombine.low %v990_v62, %v994_v63  ;;  %v8581_v59 = vsub.s32 3, %v8351_v27 }
 0x115   :  { %v858_v5 = vld [vmem:[%s10648_s5 + $0x320] sm:$0xff] }
 0x116   :  { %v982_v6 = vld [vmem:[%s10648_s5 + $0x700] sm:$0xff]  ;;  %v6532_v10 = vcombine.high %v854_v4, %v858_v5  ;;  %v6531_v16 = vcombine.low %v854_v4, %v858_v5 }
 0x117   :  { %v986_v7 = vld [vmem:[%s10648_s5 + $0x720] sm:$0xff]  ;;  %2313 = vmatpush2.bf16.msra.mxu1 %v6547_v0  ;;  %2356 = vmatpush2.bf16.msra.mxu0 %v6675_v1 }
 0x118   :  { %2314 = vmatprep.subr.bf16.mxu1 %v6540_v2  ;;  %2357 = vmatprep.subr.bf16.mxu0 %v6668_v3  ;;  %v6660_v11 = vcombine.high %v982_v6, %v986_v7  ;;  %v846_v12 = vld [vmem:[%s10648_s5 + $0x2c0] sm:$0xff]  ;;  %v6659_v17 = vcombine.low %v982_v6, %v986_v7 }
 0x119   :  { %v850_v13 = vld [vmem:[%s10648_s5 + $0x2e0] sm:$0xff] }
 0x11a   :  { %v974_v14 = vld [vmem:[%s10648_s5 + $0x6c0] sm:$0xff]  ;;  %v6524_v18 = vcombine.high %v846_v12, %v850_v13  ;;  %v6523_v20 = vcombine.low %v846_v12, %v850_v13 }
 0x11b   :  { %v978_v15 = vld [vmem:[%s10648_s5 + $0x6e0] sm:$0xff]  ;;  %2315 = vmatpush2.bf16.msra.mxu1 %v6539_v8  ;;  %2358 = vmatpush2.bf16.msra.mxu0 %v6667_v9 }
 0x11c   :  { %2316 = vmatprep.subr.bf16.mxu1 %v6532_v10  ;;  %2359 = vmatprep.subr.bf16.mxu0 %v6660_v11  ;;  %v6652_v19 = vcombine.high %v974_v14, %v978_v15  ;;  %v6651_v21 = vcombine.low %v974_v14, %v978_v15  ;;  %v838_v22 = vld [vmem:[%s10648_s5 + $0x280] sm:$0xff] }
 0x11d   :  { %v842_v23 = vld [vmem:[%s10648_s5 + $0x2a0] sm:$0xff] }
 0x11e   :  { %v966_v24 = vld [vmem:[%s10648_s5 + $0x680] sm:$0xff]  ;;  %v6516_v25 = vcombine.high %v838_v22, %v842_v23  ;;  %v6515_v28 = vcombine.low %v838_v22, %v842_v23 }
 0x11f   :  { %2317 = vmatpush2.bf16.msra.mxu1 %v6531_v16  ;;  %2360 = vmatpush2.bf16.msra.mxu0 %v6659_v17  ;;  %v970_v26 = vld [vmem:[%s10648_s5 + $0x6a0] sm:$0xff] }
 0x120   :  { %2318 = vmatprep.subr.bf16.mxu1 %v6524_v18  ;;  %2361 = vmatprep.subr.bf16.mxu0 %v6652_v19  ;;  %v6643_v31 = vcombine.low %v966_v24, %v970_v26  ;;  %v6644_v32 = vcombine.high %v966_v24, %v970_v26  ;;  %v830_v33 = vld [vmem:[%s10648_s5 + $0x240] sm:$0xff] }
 0x121   :  { %v834_v34 = vld [vmem:[%s10648_s5 + $0x260] sm:$0xff] }
 0x122   :  { %v958_v35 = vld [vmem:[%s10648_s5 + $0x640] sm:$0xff]  ;;  %v6508_v36 = vcombine.high %v830_v33, %v834_v34  ;;  %v6507_v38 = vcombine.low %v830_v33, %v834_v34 }
 0x123   :  { %2319 = vmatpush2.bf16.msra.mxu1 %v6523_v20  ;;  %2362 = vmatpush2.bf16.msra.mxu0 %v6651_v21  ;;  %v962_v37 = vld [vmem:[%s10648_s5 + $0x660] sm:$0xff] }
 0x124   :  { %2320 = vmatprep.subr.bf16.mxu1 %v6516_v25  ;;  %2363 = vmatprep.subr.bf16.mxu0 %v6644_v32  ;;  %v6635_v39 = vcombine.low %v958_v35, %v962_v37  ;;  %v6636_v40 = vcombine.high %v958_v35, %v962_v37  ;;  %v822_v41 = vld [vmem:[%s10648_s5 + $0x200] sm:$0xff]  ;;  %v807_v35 = vld [vmem:[%s10648_s5 + $0x188] sm:$0xff] }
 0x125   :  { %v826_v42 = vld [vmem:[%s10648_s5 + $0x220] sm:$0xff]  ;;  %v935_v37 = vld [vmem:[%s10648_s5 + $0x588] sm:$0xff] }
 0x126   :  { %v950_v43 = vld [vmem:[%s10648_s5 + $0x600] sm:$0xff]  ;;  %v6500_v44 = vcombine.high %v822_v41, %v826_v42  ;;  %v6499_v46 = vcombine.low %v822_v41, %v826_v42 }
 0x127   :  { %2321 = vmatpush2.bf16.msra.mxu1 %v6515_v28  ;;  %2364 = vmatpush2.bf16.msra.mxu0 %v6643_v31  ;;  %v954_v45 = vld [vmem:[%s10648_s5 + $0x620] sm:$0xff] }
 0x128   :  { %2322 = vmatprep.subr.bf16.mxu1 %v6508_v36  ;;  %2365 = vmatprep.subr.bf16.mxu0 %v6636_v40  ;;  %v6627_v47 = vcombine.low %v950_v43, %v954_v45  ;;  %v6628_v48 = vcombine.high %v950_v43, %v954_v45  ;;  %v692_v58 = vld [vmem:[%s10647_s4] sm:$0xf]  ;;  %v811_v36 = vld [vmem:[%s10648_s5 + $0x1a8] sm:$0xff] }
 0x129   :  { %v697_v60 = vrot.slane %v692_v58, %v8357_v29  ;;  %v705_v61 = vrot.slane %v692_v58, %v8575_v57  ;;  %v701_v62 = vrot.slane %v692_v58, %v8360_v30  ;;  %v709_v63 = vrot.slane %v692_v58, %v8581_v59  ;;  %v799_v43 = vld [vmem:[%s10648_s5 + $0x148] sm:$0xff] }
 0x12a   :  { %v6485_v49 = vcombine.low %v807_v35, %v811_v36 }
 0x12b   :  { %2323 = vmatpush2.bf16.msra.mxu1 %v6507_v38  ;;  %2366 = vmatpush2.bf16.msra.mxu0 %v6635_v39  ;;  %v714_v0 = vpack.c.bf16 %v697_v60, %v697_v60  ;;  %v716_v1 = vpack.c.bf16 %v705_v61, %v705_v61  ;;  %v715_v2 = vpack.c.bf16 %v701_v62, %v701_v62  ;;  %v939_v38 = vld [vmem:[%s10648_s5 + $0x5a8] sm:$0xff] }
 0x12c   :  { %2324 = vmatprep.subr.bf16.mxu1 %v6500_v44  ;;  %2367 = vmatprep.subr.bf16.mxu0 %v6628_v48  ;;  %v717_v3 = vpack.c.bf16 %v709_v63, %v709_v63  ;;  %v6486_v44 = vcombine.high %v807_v35, %v811_v36  ;;  %v6614_v45 = vcombine.high %v935_v37, %v939_v38  ;;  %v931_v48 = vld [vmem:[%s10648_s5 + $0x568] sm:$0xff] }
 0x12d   :  { %v719_v4 = vpack.i.b16 %v714_v0, %v714_v0  ;;  %v733_v5 = vpack.i.b16 %v716_v1, %v716_v1  ;;  %v726_v8 = vpack.i.b16 %v715_v2, %v715_v2  ;;  %v6613_v50 = vcombine.low %v935_v37, %v939_v38  ;;  %v783_v63 = vld [vmem:[%s10648_s5 + $0xc8] sm:$0xff] }
 0x12e   :  { %v740_v9 = vpack.i.b16 %v717_v3, %v717_v3  ;;  %v787_v0 = vld [vmem:[%s10648_s5 + $0xe8] sm:$0xff] }
 0x12f   :  { %2325 = vmatpush2.bf16.msra.mxu1 %v6499_v46  ;;  %2368 = vmatpush2.bf16.msra.mxu0 %v6627_v47  ;;  %v724_v12 = vrot.slane %v719_v4, %v8357_v29  ;;  %v738_v13 = vrot.slane %v733_v5, %v8357_v29  ;;  %v731_v18 = vrot.slane %v726_v8, %v8357_v29  ;;  %v803_v46 = vld [vmem:[%s10648_s5 + $0x168] sm:$0xff] }
 0x130   :  { %2380 = vmatprep.subr.bf16.mxu1 %v6494_v52  ;;  %2423 = vmatprep.subr.bf16.mxu0 %v6622_v56  ;;  %v745_v19 = vrot.slane %v740_v9, %v8357_v29  ;;  %v927_v47 = vld [vmem:[%s10648_s5 + $0x548] sm:$0xff]  ;;  %v6478_v51 = vcombine.high %v799_v43, %v803_v46  ;;  %v6477_v58 = vcombine.low %v799_v43, %v803_v46 }
 0x131   :  { %v6606_v52 = vcombine.high %v927_v47, %v931_v48  ;;  %v795_v56 = vld [vmem:[%s10648_s5 + $0x128] sm:$0xff]  ;;  %v6605_v60 = vcombine.low %v927_v47, %v931_v48  ;;  %v6462_v5 = vcombine.high %v783_v63, %v787_v0 }
 0x132   :  { %v6470_v61 = vcombine.high %v791_v53, %v795_v56  ;;  %v911_v1 = vld [vmem:[%s10648_s5 + $0x4c8] sm:$0xff]  ;;  %v6469_v3 = vcombine.low %v791_v53, %v795_v56 }
 0x133   :  { %v915_v2 = vld [vmem:[%s10648_s5 + $0x4e8] sm:$0xff] }
 0x134   :  { %v779_v8 = vld [vmem:[%s10648_s5 + $0xa8] sm:$0xff] }
 0x135   :  { %v903_v9 = vld [vmem:[%s10648_s5 + $0x488] sm:$0xff] }
 0x136   :  { %v883_v35 = vld [vmem:[%s10648_s5 + $0x3e8] sm:$0xff] }
 0x137   :  { %v1007_v36 = vld [vmem:[%s10648_s5 + $0x7c8] sm:$0xff] }
 0x138   :  { %v1011_v37 = vld [vmem:[%s10648_s5 + $0x7e8] sm:$0xff] }
 0x139   :  { %v871_v46 = vld [vmem:[%s10648_s5 + $0x388] sm:$0xff] }
 0x13a   :  { %v875_v47 = vld [vmem:[%s10648_s5 + $0x3a8] sm:$0xff] }
 0x13b   :  { %v999_v48 = vld [vmem:[%s10648_s5 + $0x788] sm:$0xff] }
 0x13c   :  { %v863_v56 = vld [vmem:[%s10648_s5 + $0x348] sm:$0xff] }
 0x1b2   :  { %v636_v6 = vpop.f32.mrf.mxu1  ;;  %v679_v7 = vpop.f32.mrf.mxu0 }
 0x1b4   :  { %v638_v10 = vpop.f32.mrf.mxu1  ;;  %v681_v11 = vpop.f32.mrf.mxu0 }
 0x1b6   :  { %v640_v14 = vpop.f32.mrf.mxu1  ;;  %v683_v15 = vpop.f32.mrf.mxu0 }
 0x1b7   :  { %v688_v16 = vpack.c.bf16 %v640_v14, %v636_v6  ;;  %v690_v17 = vpack.c.bf16 %v683_v15, %v679_v7  ;;  %v6590_v6 = vcombine.high %v911_v1, %v915_v2  ;;  %v775_v7 = vld [vmem:[%s10648_s5 + $0x88] sm:$0xff] }
 0x1b8   :  { %v642_v20 = vpop.f32.mrf.mxu1  ;;  %v685_v21 = vpop.f32.mrf.mxu0  ;;  %v767_v15 = vld [vmem:[%s10648_s5 + $0x48] sm:$0xff] }
 0x1b9   :  { %v746_v22 = vadd.bf16 %v724_v12, %v688_v16  ;;  %v748_v23 = vadd.bf16 %v738_v13, %v690_v17  ;;  %v689_v24 = vpack.c.bf16 %v642_v20, %v638_v10  ;;  %v691_v25 = vpack.c.bf16 %v685_v21, %v681_v11  ;;  %v907_v10 = vld [vmem:[%s10648_s5 + $0x4a8] sm:$0xff] }
 0x1ba   :  { %v6461_v11 = vcombine.low %v783_v63, %v787_v0  ;;  %v6589_v12 = vcombine.low %v911_v1, %v915_v2  ;;  %v6454_v13 = vcombine.high %v775_v7, %v779_v8  ;;  %v6582_v14 = vcombine.high %v903_v9, %v907_v10  ;;  %v771_v16 = vld [vmem:[%s10648_s5 + $0x68] sm:$0xff] }
 0x1bb   :  { %v747_v26 = vadd.bf16 %v731_v18, %v689_v24  ;;  %v749_v28 = vadd.bf16 %v745_v19, %v691_v25  ;;  %v750_v31 = vmul.bf16 1045249613, %v746_v22  ;;  %v752_v32 = vmul.bf16 1045249613, %v748_v23  ;;  %v895_v17 = vld [vmem:[%s10648_s5 + $0x448] sm:$0xff] }
 0x1bc   :  { %v899_v18 = vld [vmem:[%s10648_s5 + $0x468] sm:$0xff]  ;;  %v6453_v19 = vcombine.low %v775_v7, %v779_v8  ;;  %v6581_v20 = vcombine.low %v903_v9, %v907_v10  ;;  %v6446_v21 = vcombine.high %v767_v15, %v771_v16 }
 0x1bd   :  { %v751_v33 = vmul.bf16 1045249613, %v747_v26  ;;  %v753_v34 = vmul.bf16 1045249613, %v749_v28  ;;  %v8607_v41 = vmax.bf16 %v750_v31, %v746_v22  ;;  %v8609_v42 = vmax.bf16 %v752_v32, %v748_v23  ;;  %v759_v23 = vld [vmem:[%s10648_s5 + $0x8] sm:$0xff] }
 0x1be   :  { %v6574_v22 = vcombine.high %v895_v17, %v899_v18  ;;  %v763_v24 = vld [vmem:[%s10648_s5 + $0x28] sm:$0xff]  ;;  %v6573_v31 = vcombine.low %v895_v17, %v899_v18 }
 0x1bf   :  { %v8603_v39 = vmax.bf16 %v751_v33, %v747_v26  ;;  %v8605_v40 = vmax.bf16 %v753_v34, %v749_v28  ;;  %v887_v25 = vld [vmem:[%s10648_s5 + $0x408] sm:$0xff]  ;;  %v6445_v28 = vcombine.low %v767_v15, %v771_v16  ;;  %v6438_v32 = vcombine.high %v759_v23, %v763_v24 }
 0x1c0   :  { %v891_v26 = vld [vmem:[%s10648_s5 + $0x428] sm:$0xff]  ;;  %v6437_v38 = vcombine.low %v759_v23, %v763_v24 }
 0x1c1   :  { %2326 = vmatprep.mubr.bf16.mxu1 %v8603_v39  ;;  %2369 = vmatprep.mubr.bf16.mxu0 %v8605_v40  ;;  %v6566_v33 = vcombine.high %v887_v25, %v891_v26  ;;  %v879_v34 = vld [vmem:[%s10648_s5 + $0x3c8] sm:$0xff]  ;;  %v6565_v43 = vcombine.low %v887_v25, %v891_v26 }
 0x1c2   :  { %2327 = vmatmul.mubr.bf16.vlgmr.msra.gmra.mxu1 %v8607_v41  ;;  %2370 = vmatmul.mubr.bf16.vlgmr.msra.gmra.mxu0 %v8609_v42  ;;  %v855_v0 = vld [vmem:[%s10648_s5 + $0x308] sm:$0xff] }
 0x1c3   :  { %2381 = vmatpush1.bf16.msra.mxu1 %v6493_v54  ;;  %2424 = vmatpush1.bf16.msra.mxu0 %v6621_v55  ;;  %v919_v54 = vld [vmem:[%s10648_s5 + $0x508] sm:$0xff] }
 0x1c4   :  { %2412 = vmatprep.mubr.bf16.mxu1 %v8603_v39  ;;  %2455 = vmatprep.mubr.bf16.mxu0 %v8605_v40  ;;  %v923_v55 = vld [vmem:[%s10648_s5 + $0x528] sm:$0xff] }
 0x1c5   :  { %2382 = vmatprep.subr.bf16.mxu1 %v6486_v44  ;;  %2425 = vmatprep.subr.bf16.mxu0 %v6614_v45  ;;  %v6598_v62 = vcombine.high %v919_v54, %v923_v55  ;;  %v6597_v4 = vcombine.low %v919_v54, %v923_v55  ;;  %v6558_v44 = vcombine.high %v879_v34, %v883_v35  ;;  %v867_v54 = vld [vmem:[%s10648_s5 + $0x368] sm:$0xff] }
 0x1c6   :  { %v6686_v45 = vcombine.high %v1007_v36, %v1011_v37  ;;  %v991_v55 = vld [vmem:[%s10648_s5 + $0x748] sm:$0xff] }
 0x1c7   :  { %2383 = vmatpush1.bf16.msra.mxu1 %v6485_v49  ;;  %2426 = vmatpush1.bf16.msra.mxu0 %v6613_v50  ;;  %v1003_v49 = vld [vmem:[%s10648_s5 + $0x7a8] sm:$0xff]  ;;  %v6557_v50 = vcombine.low %v879_v34, %v883_v35 }
 0x1c8   :  { %2384 = vmatprep.subr.bf16.mxu1 %v6478_v51  ;;  %2427 = vmatprep.subr.bf16.mxu0 %v6606_v52  ;;  %v6685_v51 = vcombine.low %v1007_v36, %v1011_v37  ;;  %v6550_v52 = vcombine.high %v871_v46, %v875_v47  ;;  %v6678_v53 = vcombine.high %v999_v48, %v1003_v49  ;;  %v859_v1 = vld [vmem:[%s10648_s5 + $0x328] sm:$0xff] }
 0x1c9   :  { %v983_v2 = vld [vmem:[%s10648_s5 + $0x708] sm:$0xff] }
 0x1ca   :  { %v847_v8 = vld [vmem:[%s10648_s5 + $0x2c8] sm:$0xff] }
 0x1cb   :  { %2385 = vmatpush1.bf16.msra.mxu1 %v6477_v58  ;;  %2428 = vmatpush1.bf16.msra.mxu0 %v6605_v60  ;;  %v995_v58 = vld [vmem:[%s10648_s5 + $0x768] sm:$0xff]  ;;  %v6549_v60 = vcombine.low %v871_v46, %v875_v47  ;;  %v816_v47 = vld [vmem:[%s10648_s5 + $0x1d0] sm:$0xff] }
 0x1cc   :  { %2386 = vmatprep.subr.bf16.mxu1 %v6470_v61  ;;  %2429 = vmatprep.subr.bf16.mxu0 %v6598_v62  ;;  %v6677_v61 = vcombine.low %v999_v48, %v1003_v49  ;;  %v6542_v62 = vcombine.high %v863_v56, %v867_v54  ;;  %v6670_v63 = vcombine.high %v991_v55, %v995_v58  ;;  %v851_v9 = vld [vmem:[%s10648_s5 + $0x2e8] sm:$0xff]  ;;  %v820_v48 = vld [vmem:[%s10648_s5 + $0x1f0] sm:$0xff] }
 0x1cd   :  { %v975_v10 = vld [vmem:[%s10648_s5 + $0x6c8] sm:$0xff]  ;;  %v944_v49 = vld [vmem:[%s10648_s5 + $0x5d0] sm:$0xff] }
 0x1ce   :  { %v839_v16 = vld [vmem:[%s10648_s5 + $0x288] sm:$0xff] }
 0x1cf   :  { %2387 = vmatpush1.bf16.msra.mxu1 %v6469_v3  ;;  %2430 = vmatpush1.bf16.msra.mxu0 %v6597_v4  ;;  %v987_v3 = vld [vmem:[%s10648_s5 + $0x728] sm:$0xff]  ;;  %v6541_v4 = vcombine.low %v863_v56, %v867_v54  ;;  %v808_v54 = vld [vmem:[%s10648_s5 + $0x190] sm:$0xff] }
 0x1d0   :  { %2388 = vmatprep.subr.bf16.mxu1 %v6462_v5  ;;  %2431 = vmatprep.subr.bf16.mxu0 %v6590_v6  ;;  %v6669_v5 = vcombine.low %v991_v55, %v995_v58  ;;  %v6534_v6 = vcombine.high %v855_v0, %v859_v1  ;;  %v6662_v7 = vcombine.high %v983_v2, %v987_v3  ;;  %v843_v17 = vld [vmem:[%s10648_s5 + $0x2a8] sm:$0xff]  ;;  %v812_v55 = vld [vmem:[%s10648_s5 + $0x1b0] sm:$0xff] }
 0x1d1   :  { %v967_v18 = vld [vmem:[%s10648_s5 + $0x688] sm:$0xff]  ;;  %v936_v58 = vld [vmem:[%s10648_s5 + $0x590] sm:$0xff] }
 0x1d2   :  { %v831_v24 = vld [vmem:[%s10648_s5 + $0x248] sm:$0xff] }
 0x1d3   :  { %2389 = vmatpush1.bf16.msra.mxu1 %v6461_v11  ;;  %2432 = vmatpush1.bf16.msra.mxu0 %v6589_v12  ;;  %v979_v11 = vld [vmem:[%s10648_s5 + $0x6e8] sm:$0xff]  ;;  %v6533_v12 = vcombine.low %v855_v0, %v859_v1  ;;  %v800_v1 = vld [vmem:[%s10648_s5 + $0x150] sm:$0xff] }
 0x1d4   :  { %2390 = vmatprep.subr.bf16.mxu1 %v6454_v13  ;;  %2433 = vmatprep.subr.bf16.mxu0 %v6582_v14  ;;  %v6661_v13 = vcombine.low %v983_v2, %v987_v3  ;;  %v6526_v14 = vcombine.high %v847_v8, %v851_v9  ;;  %v6654_v15 = vcombine.high %v975_v10, %v979_v11  ;;  %v835_v25 = vld [vmem:[%s10648_s5 + $0x268] sm:$0xff]  ;;  %v804_v2 = vld [vmem:[%s10648_s5 + $0x170] sm:$0xff] }
 0x1d5   :  { %v959_v26 = vld [vmem:[%s10648_s5 + $0x648] sm:$0xff]  ;;  %v928_v3 = vld [vmem:[%s10648_s5 + $0x550] sm:$0xff] }
 0x1d6   :  { %v823_v35 = vld [vmem:[%s10648_s5 + $0x208] sm:$0xff] }
 0x1d7   :  { %2391 = vmatpush1.bf16.msra.mxu1 %v6453_v19  ;;  %2434 = vmatpush1.bf16.msra.mxu0 %v6581_v20  ;;  %v971_v19 = vld [vmem:[%s10648_s5 + $0x6a8] sm:$0xff]  ;;  %v6525_v20 = vcombine.low %v847_v8, %v851_v9  ;;  %v792_v9 = vld [vmem:[%s10648_s5 + $0x110] sm:$0xff] }
 0x1d8   :  { %2392 = vmatprep.subr.bf16.mxu1 %v6446_v21  ;;  %2435 = vmatprep.subr.bf16.mxu0 %v6574_v22  ;;  %v6653_v21 = vcombine.low %v975_v10, %v979_v11  ;;  %v6518_v22 = vcombine.high %v839_v16, %v843_v17  ;;  %v6646_v23 = vcombine.high %v967_v18, %v971_v19  ;;  %v827_v36 = vld [vmem:[%s10648_s5 + $0x228] sm:$0xff]  ;;  %v796_v10 = vld [vmem:[%s10648_s5 + $0x130] sm:$0xff] }
 0x1d9   :  { %v951_v37 = vld [vmem:[%s10648_s5 + $0x608] sm:$0xff]  ;;  %v920_v11 = vld [vmem:[%s10648_s5 + $0x510] sm:$0xff] }
 0x1db   :  { %2393 = vmatpush1.bf16.msra.mxu1 %v6445_v28  ;;  %2436 = vmatpush1.bf16.msra.mxu0 %v6573_v31  ;;  %v963_v28 = vld [vmem:[%s10648_s5 + $0x668] sm:$0xff]  ;;  %v6517_v31 = vcombine.low %v839_v16, %v843_v17  ;;  %v784_v17 = vld [vmem:[%s10648_s5 + $0xd0] sm:$0xff] }
 0x1dc   :  { %2394 = vmatprep.subr.bf16.mxu1 %v6438_v32  ;;  %2437 = vmatprep.subr.bf16.mxu0 %v6566_v33  ;;  %v6645_v32 = vcombine.low %v967_v18, %v971_v19  ;;  %v6510_v33 = vcombine.high %v831_v24, %v835_v25  ;;  %v6638_v34 = vcombine.high %v959_v26, %v963_v28  ;;  %v788_v18 = vld [vmem:[%s10648_s5 + $0xf0] sm:$0xff] }
 0x1dd   :  { %v912_v19 = vld [vmem:[%s10648_s5 + $0x4d0] sm:$0xff] }
 0x1df   :  { %2395 = vmatpush1.bf16.msra.mxu1 %v6437_v38  ;;  %2438 = vmatpush1.bf16.msra.mxu0 %v6565_v43  ;;  %v955_v38 = vld [vmem:[%s10648_s5 + $0x628] sm:$0xff]  ;;  %v6509_v43 = vcombine.low %v831_v24, %v835_v25  ;;  %v776_v25 = vld [vmem:[%s10648_s5 + $0x90] sm:$0xff] }
 0x1e0   :  { %2396 = vmatprep.subr.bf16.mxu1 %v6558_v44  ;;  %2439 = vmatprep.subr.bf16.mxu0 %v6686_v45  ;;  %v6637_v44 = vcombine.low %v959_v26, %v963_v28  ;;  %v6502_v45 = vcombine.high %v823_v35, %v827_v36  ;;  %v6630_v46 = vcombine.high %v951_v37, %v955_v38  ;;  %v780_v26 = vld [vmem:[%s10648_s5 + $0xb0] sm:$0xff] }
 0x1e1   :  { %v904_v28 = vld [vmem:[%s10648_s5 + $0x490] sm:$0xff] }
 0x1e3   :  { %2397 = vmatpush2.bf16.msra.mxu1 %v6557_v50  ;;  %2440 = vmatpush2.bf16.msra.mxu0 %v6685_v51  ;;  %v948_v50 = vld [vmem:[%s10648_s5 + $0x5f0] sm:$0xff]  ;;  %v6501_v51 = vcombine.low %v823_v35, %v827_v36 }
 0x1e4   :  { %2398 = vmatprep.subr.bf16.mxu1 %v6550_v52  ;;  %2441 = vmatprep.subr.bf16.mxu0 %v6678_v53  ;;  %v6629_v52 = vcombine.low %v951_v37, %v955_v38  ;;  %v6496_v53 = vcombine.high %v816_v47, %v820_v48  ;;  %v6624_v56 = vcombine.high %v944_v49, %v948_v50  ;;  %v768_v36 = vld [vmem:[%s10648_s5 + $0x50] sm:$0xff] }
 0x1e5   :  { %v772_v37 = vld [vmem:[%s10648_s5 + $0x70] sm:$0xff] }
 0x1e6   :  { %v896_v38 = vld [vmem:[%s10648_s5 + $0x450] sm:$0xff] }
 0x1e7   :  { %2399 = vmatpush2.bf16.msra.mxu1 %v6549_v60  ;;  %2442 = vmatpush2.bf16.msra.mxu0 %v6677_v61  ;;  %v940_v60 = vld [vmem:[%s10648_s5 + $0x5b0] sm:$0xff]  ;;  %v6495_v61 = vcombine.low %v816_v47, %v820_v48 }
 0x1e8   :  { %2400 = vmatprep.subr.bf16.mxu1 %v6542_v62  ;;  %2443 = vmatprep.subr.bf16.mxu0 %v6670_v63  ;;  %v6623_v62 = vcombine.low %v944_v49, %v948_v50  ;;  %v6488_v63 = vcombine.high %v808_v54, %v812_v55  ;;  %v6616_v0 = vcombine.high %v936_v58, %v940_v60  ;;  %v760_v48 = vld [vmem:[%s10648_s5 + $0x10] sm:$0xff] }
 0x1e9   :  { %v764_v49 = vld [vmem:[%s10648_s5 + $0x30] sm:$0xff] }
 0x1ea   :  { %v888_v50 = vld [vmem:[%s10648_s5 + $0x410] sm:$0xff] }
 0x1eb   :  { %2401 = vmatpush2.bf16.msra.mxu1 %v6541_v4  ;;  %2444 = vmatpush2.bf16.msra.mxu0 %v6669_v5  ;;  %v932_v4 = vld [vmem:[%s10648_s5 + $0x570] sm:$0xff]  ;;  %v6487_v5 = vcombine.low %v808_v54, %v812_v55 }
 0x1ec   :  { %2402 = vmatprep.subr.bf16.mxu1 %v6534_v6  ;;  %2445 = vmatprep.subr.bf16.mxu0 %v6662_v7  ;;  %v6615_v6 = vcombine.low %v936_v58, %v940_v60  ;;  %v6480_v7 = vcombine.high %v800_v1, %v804_v2  ;;  %v6608_v8 = vcombine.high %v928_v3, %v932_v4  ;;  %v880_v55 = vld [vmem:[%s10648_s5 + $0x3d0] sm:$0xff] }
 0x1ed   :  { %v884_v58 = vld [vmem:[%s10648_s5 + $0x3f0] sm:$0xff] }
 0x1ee   :  { %v1008_v60 = vld [vmem:[%s10648_s5 + $0x7d0] sm:$0xff] }
 0x1ef   :  { %2403 = vmatpush2.bf16.msra.mxu1 %v6533_v12  ;;  %2446 = vmatpush2.bf16.msra.mxu0 %v6661_v13  ;;  %v924_v12 = vld [vmem:[%s10648_s5 + $0x530] sm:$0xff]  ;;  %v6479_v13 = vcombine.low %v800_v1, %v804_v2 }
 0x1f0   :  { %2404 = vmatprep.subr.bf16.mxu1 %v6526_v14  ;;  %2447 = vmatprep.subr.bf16.mxu0 %v6654_v15  ;;  %v6607_v14 = vcombine.low %v928_v3, %v932_v4  ;;  %v6472_v15 = vcombine.high %v792_v9, %v796_v10  ;;  %v6600_v16 = vcombine.high %v920_v11, %v924_v12  ;;  %v872_v2 = vld [vmem:[%s10648_s5 + $0x390] sm:$0xff] }
 0x1f1   :  { %v876_v3 = vld [vmem:[%s10648_s5 + $0x3b0] sm:$0xff] }
 0x1f2   :  { %v1000_v4 = vld [vmem:[%s10648_s5 + $0x790] sm:$0xff] }
 0x1f3   :  { %2405 = vmatpush2.bf16.msra.mxu1 %v6525_v20  ;;  %2448 = vmatpush2.bf16.msra.mxu0 %v6653_v21  ;;  %v916_v20 = vld [vmem:[%s10648_s5 + $0x4f0] sm:$0xff]  ;;  %v6471_v21 = vcombine.low %v792_v9, %v796_v10 }
 0x1f4   :  { %2406 = vmatprep.subr.bf16.mxu1 %v6518_v22  ;;  %2449 = vmatprep.subr.bf16.mxu0 %v6646_v23  ;;  %v6599_v22 = vcombine.low %v920_v11, %v924_v12  ;;  %v6464_v23 = vcombine.high %v784_v17, %v788_v18  ;;  %v6592_v24 = vcombine.high %v912_v19, %v916_v20  ;;  %v864_v10 = vld [vmem:[%s10648_s5 + $0x350] sm:$0xff] }
 0x1f5   :  { %v868_v11 = vld [vmem:[%s10648_s5 + $0x370] sm:$0xff] }
 0x1f6   :  { %v992_v12 = vld [vmem:[%s10648_s5 + $0x750] sm:$0xff] }
 0x1f7   :  { %2407 = vmatpush2.bf16.msra.mxu1 %v6517_v31  ;;  %2450 = vmatpush2.bf16.msra.mxu0 %v6645_v32  ;;  %v908_v31 = vld [vmem:[%s10648_s5 + $0x4b0] sm:$0xff]  ;;  %v6463_v32 = vcombine.low %v784_v17, %v788_v18 }
 0x1f8   :  { %2408 = vmatprep.subr.bf16.mxu1 %v6510_v33  ;;  %2451 = vmatprep.subr.bf16.mxu0 %v6638_v34  ;;  %v6591_v33 = vcombine.low %v912_v19, %v916_v20  ;;  %v6456_v34 = vcombine.high %v776_v25, %v780_v26  ;;  %v6584_v35 = vcombine.high %v904_v28, %v908_v31  ;;  %v856_v18 = vld [vmem:[%s10648_s5 + $0x310] sm:$0xff] }
 0x1f9   :  { %v860_v19 = vld [vmem:[%s10648_s5 + $0x330] sm:$0xff] }
 0x1fa   :  { %v984_v20 = vld [vmem:[%s10648_s5 + $0x710] sm:$0xff] }
 0x1fb   :  { %2409 = vmatpush2.bf16.msra.mxu1 %v6509_v43  ;;  %2452 = vmatpush2.bf16.msra.mxu0 %v6637_v44  ;;  %v900_v43 = vld [vmem:[%s10648_s5 + $0x470] sm:$0xff]  ;;  %v6455_v44 = vcombine.low %v776_v25, %v780_v26 }
 0x1fc   :  { %2410 = vmatprep.subr.bf16.mxu1 %v6502_v45  ;;  %2453 = vmatprep.subr.bf16.mxu0 %v6630_v46  ;;  %v6583_v45 = vcombine.low %v904_v28, %v908_v31  ;;  %v6448_v46 = vcombine.high %v768_v36, %v772_v37  ;;  %v6576_v47 = vcombine.high %v896_v38, %v900_v43  ;;  %v848_v26 = vld [vmem:[%s10648_s5 + $0x2d0] sm:$0xff] }
 0x1fd   :  { %v852_v28 = vld [vmem:[%s10648_s5 + $0x2f0] sm:$0xff] }
 0x1fe   :  { %v976_v31 = vld [vmem:[%s10648_s5 + $0x6d0] sm:$0xff] }
 0x1ff   :  { %2411 = vmatpush2.bf16.msra.mxu1 %v6501_v51  ;;  %2454 = vmatpush2.bf16.msra.mxu0 %v6629_v52  ;;  %v892_v51 = vld [vmem:[%s10648_s5 + $0x430] sm:$0xff]  ;;  %v6447_v52 = vcombine.low %v768_v36, %v772_v37 }
 0x200   :  { %2466 = vmatprep.subr.bf16.mxu1 %v6496_v53  ;;  %2509 = vmatprep.subr.bf16.mxu0 %v6624_v56  ;;  %v6575_v53 = vcombine.low %v896_v38, %v900_v43  ;;  %v6440_v56 = vcombine.high %v760_v48, %v764_v49  ;;  %v6568_v54 = vcombine.high %v888_v50, %v892_v51  ;;  %v840_v37 = vld [vmem:[%s10648_s5 + $0x290] sm:$0xff] }
 0x201   :  { %v844_v38 = vld [vmem:[%s10648_s5 + $0x2b0] sm:$0xff] }
 0x202   :  { %2413 = vmatmul.mubr.bf16.vlgmr.msra.gmra.mxu1 %v8607_v41  ;;  %2456 = vmatmul.mubr.bf16.vlgmr.msra.gmra.mxu0 %v8609_v42  ;;  %v968_v43 = vld [vmem:[%s10648_s5 + $0x690] sm:$0xff] }
 0x203   :  { %2467 = vmatpush1.bf16.msra.mxu1 %v6495_v61  ;;  %2498 = vmatprep.mubr.bf16.mxu1 %v8603_v39  ;;  %v1012_v61 = vld [vmem:[%s10648_s5 + $0x7f0] sm:$0xff] }
 0x204   :  { %2510 = vmatpush1.bf16.msra.mxu0 %v6623_v62  ;;  %2541 = vmatprep.mubr.bf16.mxu0 %v8605_v40  ;;  %v6439_v62 = vcombine.low %v760_v48, %v764_v49  ;;  %v6688_v1 = vcombine.high %v1008_v60, %v1012_v61  ;;  %v832_v49 = vld [vmem:[%s10648_s5 + $0x250] sm:$0xff] }
 0x205   :  { %2468 = vmatprep.subr.bf16.mxu1 %v6488_v63  ;;  %2511 = vmatprep.subr.bf16.mxu0 %v6616_v0  ;;  %v6567_v63 = vcombine.low %v888_v50, %v892_v51  ;;  %v6560_v0 = vcombine.high %v880_v55, %v884_v58  ;;  %v836_v50 = vld [vmem:[%s10648_s5 + $0x270] sm:$0xff] }
 0x206   :  { %v960_v51 = vld [vmem:[%s10648_s5 + $0x650] sm:$0xff] }
 0x207   :  { %2469 = vmatpush1.bf16.msra.mxu1 %v6487_v5  ;;  %v1004_v5 = vld [vmem:[%s10648_s5 + $0x7b0] sm:$0xff] }
 0x208   :  { %2512 = vmatpush1.bf16.msra.mxu0 %v6615_v6  ;;  %2470 = vmatprep.subr.bf16.mxu1 %v6480_v7  ;;  %v6559_v6 = vcombine.low %v880_v55, %v884_v58  ;;  %v6687_v7 = vcombine.low %v1008_v60, %v1012_v61  ;;  %v6680_v9 = vcombine.high %v1000_v4, %v1004_v5  ;;  %v824_v58 = vld [vmem:[%s10648_s5 + $0x210] sm:$0xff] }
 0x209   :  { %2513 = vmatprep.subr.bf16.mxu0 %v6608_v8  ;;  %v6552_v8 = vcombine.high %v872_v2, %v876_v3  ;;  %v828_v60 = vld [vmem:[%s10648_s5 + $0x230] sm:$0xff] }
 0x20a   :  { %v952_v61 = vld [vmem:[%s10648_s5 + $0x610] sm:$0xff] }
 0x20b   :  { %2471 = vmatpush1.bf16.msra.mxu1 %v6479_v13  ;;  %v996_v13 = vld [vmem:[%s10648_s5 + $0x770] sm:$0xff] }
 0x20c   :  { %2514 = vmatpush1.bf16.msra.mxu0 %v6607_v14  ;;  %2472 = vmatprep.subr.bf16.mxu1 %v6472_v15  ;;  %v6551_v14 = vcombine.low %v872_v2, %v876_v3  ;;  %v6679_v15 = vcombine.low %v1000_v4, %v1004_v5  ;;  %v6672_v17 = vcombine.high %v992_v12, %v996_v13  ;;  %v817_v3 = vld [vmem:[%s10648_s5 + $0x1d8] sm:$0xff] }
 0x20d   :  { %2515 = vmatprep.subr.bf16.mxu0 %v6600_v16  ;;  %v6544_v16 = vcombine.high %v864_v10, %v868_v11  ;;  %v821_v4 = vld [vmem:[%s10648_s5 + $0x1f8] sm:$0xff] }
 0x20e   :  { %v945_v5 = vld [vmem:[%s10648_s5 + $0x5d8] sm:$0xff] }
 0x20f   :  { %2473 = vmatpush1.bf16.msra.mxu1 %v6471_v21  ;;  %v988_v21 = vld [vmem:[%s10648_s5 + $0x730] sm:$0xff] }
 0x210   :  { %2516 = vmatpush1.bf16.msra.mxu0 %v6599_v22  ;;  %2474 = vmatprep.subr.bf16.mxu1 %v6464_v23  ;;  %v6543_v22 = vcombine.low %v864_v10, %v868_v11  ;;  %v6671_v23 = vcombine.low %v992_v12, %v996_v13  ;;  %v6664_v25 = vcombine.high %v984_v20, %v988_v21  ;;  %v809_v11 = vld [vmem:[%s10648_s5 + $0x198] sm:$0xff] }
 0x211   :  { %2517 = vmatprep.subr.bf16.mxu0 %v6592_v24  ;;  %v6536_v24 = vcombine.high %v856_v18, %v860_v19  ;;  %v813_v12 = vld [vmem:[%s10648_s5 + $0x1b8] sm:$0xff]  ;;  %v6497_v13 = vcombine.low %v817_v3, %v821_v4 }
 0x213   :  { %2475 = vmatpush1.bf16.msra.mxu1 %v6463_v32  ;;  %v980_v32 = vld [vmem:[%s10648_s5 + $0x6f0] sm:$0xff] }
 0x214   :  { %2518 = vmatpush1.bf16.msra.mxu0 %v6591_v33  ;;  %2476 = vmatprep.subr.bf16.mxu1 %v6456_v34  ;;  %v6535_v33 = vcombine.low %v856_v18, %v860_v19  ;;  %v6663_v34 = vcombine.low %v984_v20, %v988_v21  ;;  %v6656_v36 = vcombine.high %v976_v31, %v980_v32  ;;  %v801_v18 = vld [vmem:[%s10648_s5 + $0x158] sm:$0xff] }
 0x215   :  { %2519 = vmatprep.subr.bf16.mxu0 %v6584_v35  ;;  %v6528_v35 = vcombine.high %v848_v26, %v852_v28  ;;  %v805_v19 = vld [vmem:[%s10648_s5 + $0x178] sm:$0xff] }
 0x216   :  { %v929_v21 = vld [vmem:[%s10648_s5 + $0x558] sm:$0xff] }
 0x217   :  { %2477 = vmatpush1.bf16.msra.mxu1 %v6455_v44  ;;  %v972_v44 = vld [vmem:[%s10648_s5 + $0x6b0] sm:$0xff] }
 0x218   :  { %2520 = vmatpush1.bf16.msra.mxu0 %v6583_v45  ;;  %2478 = vmatprep.subr.bf16.mxu1 %v6448_v46  ;;  %v6527_v45 = vcombine.low %v848_v26, %v852_v28  ;;  %v6655_v46 = vcombine.low %v976_v31, %v980_v32  ;;  %v6648_v48 = vcombine.high %v968_v43, %v972_v44  ;;  %v793_v28 = vld [vmem:[%s10648_s5 + $0x118] sm:$0xff] }
 0x219   :  { %2521 = vmatprep.subr.bf16.mxu0 %v6576_v47  ;;  %v6520_v47 = vcombine.high %v840_v37, %v844_v38  ;;  %v797_v31 = vld [vmem:[%s10648_s5 + $0x138] sm:$0xff] }
 0x21a   :  { %v925_v32 = vld [vmem:[%s10648_s5 + $0x538] sm:$0xff] }
 0x21b   :  { %2479 = vmatpush1.bf16.msra.mxu1 %v6447_v52  ;;  %v964_v52 = vld [vmem:[%s10648_s5 + $0x670] sm:$0xff] }
 0x21c   :  { %2522 = vmatpush1.bf16.msra.mxu0 %v6575_v53  ;;  %2480 = vmatprep.subr.bf16.mxu1 %v6440_v56  ;;  %v6519_v53 = vcombine.low %v840_v37, %v844_v38  ;;  %v6647_v56 = vcombine.low %v968_v43, %v972_v44  ;;  %v6640_v55 = vcombine.high %v960_v51, %v964_v52  ;;  %v789_v37 = vld [vmem:[%s10648_s5 + $0xf8] sm:$0xff] }
 0x21d   :  { %2523 = vmatprep.subr.bf16.mxu0 %v6568_v54  ;;  %v6512_v54 = vcombine.high %v832_v49, %v836_v50  ;;  %v913_v38 = vld [vmem:[%s10648_s5 + $0x4d8] sm:$0xff]  ;;  %v6473_v44 = vcombine.low %v793_v28, %v797_v31 }
 0x21e   :  { %v917_v43 = vld [vmem:[%s10648_s5 + $0x4f8] sm:$0xff] }
 0x21f   :  { %2481 = vmatpush1.bf16.msra.mxu1 %v6439_v62  ;;  %v956_v62 = vld [vmem:[%s10648_s5 + $0x630] sm:$0xff] }
 0x220   :  { %2524 = vmatpush1.bf16.msra.mxu0 %v6567_v63  ;;  %2482 = vmatprep.subr.bf16.mxu1 %v6560_v0  ;;  %v6511_v63 = vcombine.low %v832_v49, %v836_v50  ;;  %v6639_v0 = vcombine.low %v960_v51, %v964_v52  ;;  %v6632_v2 = vcombine.high %v952_v61, %v956_v62  ;;  %v781_v49 = vld [vmem:[%s10648_s5 + $0xb8] sm:$0xff] }
 0x221   :  { %2525 = vmatprep.subr.bf16.mxu0 %v6688_v1  ;;  %v6504_v1 = vcombine.high %v824_v58, %v828_v60  ;;  %v905_v50 = vld [vmem:[%s10648_s5 + $0x498] sm:$0xff] }
 0x222   :  { %v909_v51 = vld [vmem:[%s10648_s5 + $0x4b8] sm:$0xff] }
 0x223   :  { %2483 = vmatpush2.bf16.msra.mxu1 %v6559_v6  ;;  %v949_v6 = vld [vmem:[%s10648_s5 + $0x5f8] sm:$0xff] }
 0x224   :  { %2526 = vmatpush2.bf16.msra.mxu0 %v6687_v7  ;;  %2484 = vmatprep.subr.bf16.mxu1 %v6552_v8  ;;  %v6503_v7 = vcombine.low %v824_v58, %v828_v60  ;;  %v6631_v8 = vcombine.low %v952_v61, %v956_v62  ;;  %v6626_v10 = vcombine.high %v945_v5, %v949_v6  ;;  %v773_v58 = vld [vmem:[%s10648_s5 + $0x78] sm:$0xff] }
 0x225   :  { %2527 = vmatprep.subr.bf16.mxu0 %v6680_v9  ;;  %v6498_v9 = vcombine.high %v817_v3, %v821_v4  ;;  %v897_v60 = vld [vmem:[%s10648_s5 + $0x458] sm:$0xff] }
 0x226   :  { %v901_v61 = vld [vmem:[%s10648_s5 + $0x478] sm:$0xff] }
 0x227   :  { %2485 = vmatpush2.bf16.msra.mxu1 %v6551_v14  ;;  %v937_v14 = vld [vmem:[%s10648_s5 + $0x598] sm:$0xff] }
 0x228   :  { %2528 = vmatpush2.bf16.msra.mxu0 %v6679_v15  ;;  %2486 = vmatprep.subr.bf16.mxu1 %v6544_v16  ;;  %v941_v15 = vld [vmem:[%s10648_s5 + $0x5b8] sm:$0xff]  ;;  %v6625_v16 = vcombine.low %v945_v5, %v949_v6 }
 0x229   :  { %2529 = vmatprep.subr.bf16.mxu0 %v6672_v17  ;;  %v6490_v17 = vcombine.high %v809_v11, %v813_v12  ;;  %v6618_v20 = vcombine.high %v937_v14, %v941_v15  ;;  %v765_v3 = vld [vmem:[%s10648_s5 + $0x38] sm:$0xff] }
 0x22a   :  { %v889_v4 = vld [vmem:[%s10648_s5 + $0x418] sm:$0xff] }
 0x22b   :  { %2487 = vmatpush2.bf16.msra.mxu1 %v6543_v22  ;;  %v933_v22 = vld [vmem:[%s10648_s5 + $0x578] sm:$0xff] }
 0x22c   :  { %2530 = vmatpush2.bf16.msra.mxu0 %v6671_v23  ;;  %2488 = vmatprep.subr.bf16.mxu1 %v6536_v24  ;;  %v6489_v23 = vcombine.low %v809_v11, %v813_v12  ;;  %v6617_v24 = vcombine.low %v937_v14, %v941_v15  ;;  %v6610_v26 = vcombine.high %v929_v21, %v933_v22  ;;  %v893_v5 = vld [vmem:[%s10648_s5 + $0x438] sm:$0xff] }
 0x22d   :  { %2531 = vmatprep.subr.bf16.mxu0 %v6664_v25  ;;  %v6482_v25 = vcombine.high %v801_v18, %v805_v19  ;;  %v885_v11 = vld [vmem:[%s10648_s5 + $0x3f8] sm:$0xff]  ;;  %v6569_v15 = vcombine.low %v889_v4, %v893_v5 }
 0x22e   :  { %v1009_v12 = vld [vmem:[%s10648_s5 + $0x7d8] sm:$0xff] }
 0x22f   :  { %2489 = vmatpush2.bf16.msra.mxu1 %v6535_v33  ;;  %v6609_v33 = vcombine.low %v929_v21, %v933_v22  ;;  %v1005_v21 = vld [vmem:[%s10648_s5 + $0x7b8] sm:$0xff] }
 0x230   :  { %2532 = vmatpush2.bf16.msra.mxu0 %v6663_v34  ;;  %2490 = vmatprep.subr.bf16.mxu1 %v6528_v35  ;;  %v6474_v34 = vcombine.high %v793_v28, %v797_v31  ;;  %v869_v28 = vld [vmem:[%s10648_s5 + $0x378] sm:$0xff] }
 0x231   :  { %2533 = vmatprep.subr.bf16.mxu0 %v6656_v36  ;;  %v785_v36 = vld [vmem:[%s10648_s5 + $0xd8] sm:$0xff] }
 0x232   :  { %v6465_v52 = vcombine.low %v785_v36, %v789_v37  ;;  %v993_v31 = vld [vmem:[%s10648_s5 + $0x758] sm:$0xff] }
 0x233   :  { %2491 = vmatpush2.bf16.msra.mxu1 %v6527_v45 }
 0x234   :  { %2534 = vmatpush2.bf16.msra.mxu0 %v6655_v46  ;;  %2492 = vmatprep.subr.bf16.mxu1 %v6520_v47  ;;  %v6466_v46 = vcombine.high %v785_v36, %v789_v37  ;;  %v6594_v47 = vcombine.high %v913_v38, %v917_v43  ;;  %v861_v36 = vld [vmem:[%s10648_s5 + $0x338] sm:$0xff] }
 0x235   :  { %2535 = vmatprep.subr.bf16.mxu0 %v6648_v48  ;;  %v777_v48 = vld [vmem:[%s10648_s5 + $0x98] sm:$0xff] }
 0x236   :  { %v6457_v62 = vcombine.low %v777_v48, %v781_v49  ;;  %v985_v37 = vld [vmem:[%s10648_s5 + $0x718] sm:$0xff] }
 0x237   :  { %2493 = vmatpush2.bf16.msra.mxu1 %v6519_v53  ;;  %v6593_v53 = vcombine.low %v913_v38, %v917_v43  ;;  %v989_v38 = vld [vmem:[%s10648_s5 + $0x738] sm:$0xff] }
 0x238   :  { %2536 = vmatpush2.bf16.msra.mxu0 %v6647_v56  ;;  %2494 = vmatprep.subr.bf16.mxu1 %v6512_v54  ;;  %v6458_v56 = vcombine.high %v777_v48, %v781_v49  ;;  %v6586_v54 = vcombine.high %v905_v50, %v909_v51  ;;  %v853_v48 = vld [vmem:[%s10648_s5 + $0x2f8] sm:$0xff] }
 0x239   :  { %2537 = vmatprep.subr.bf16.mxu0 %v6640_v55  ;;  %v769_v55 = vld [vmem:[%s10648_s5 + $0x58] sm:$0xff] }
 0x23a   :  { %v6449_v6 = vcombine.low %v769_v55, %v773_v58  ;;  %v977_v49 = vld [vmem:[%s10648_s5 + $0x6d8] sm:$0xff] }
 0x23b   :  { %2495 = vmatpush2.bf16.msra.mxu1 %v6511_v63  ;;  %v6585_v63 = vcombine.low %v905_v50, %v909_v51  ;;  %v981_v50 = vld [vmem:[%s10648_s5 + $0x6f8] sm:$0xff] }
 0x23c   :  { %2538 = vmatpush2.bf16.msra.mxu0 %v6639_v0  ;;  %2496 = vmatprep.subr.bf16.mxu1 %v6504_v1  ;;  %v6450_v0 = vcombine.high %v769_v55, %v773_v58  ;;  %v6578_v1 = vcombine.high %v897_v60, %v901_v61  ;;  %v845_v55 = vld [vmem:[%s10648_s5 + $0x2b8] sm:$0xff] }
 0x23d   :  { %2539 = vmatprep.subr.bf16.mxu0 %v6632_v2  ;;  %v761_v2 = vld [vmem:[%s10648_s5 + $0x18] sm:$0xff] }
 0x23e   :  { %v6441_v14 = vcombine.low %v761_v2, %v765_v3  ;;  %v969_v58 = vld [vmem:[%s10648_s5 + $0x698] sm:$0xff] }
 0x23f   :  { %2497 = vmatpush2.bf16.msra.mxu1 %v6503_v7  ;;  %v6577_v7 = vcombine.low %v897_v60, %v901_v61  ;;  %v973_v60 = vld [vmem:[%s10648_s5 + $0x6b8] sm:$0xff] }
 0x240   :  { %2540 = vmatpush2.bf16.msra.mxu0 %v6631_v8  ;;  %2552 = vmatprep.subr.bf16.mxu1 %v6498_v9  ;;  %v6442_v8 = vcombine.high %v761_v2, %v765_v3  ;;  %v6570_v9 = vcombine.high %v889_v4, %v893_v5  ;;  %v837_v2 = vld [vmem:[%s10648_s5 + $0x278] sm:$0xff] }
 0x241   :  { %2595 = vmatprep.subr.bf16.mxu0 %v6626_v10  ;;  %v881_v10 = vld [vmem:[%s10648_s5 + $0x3d8] sm:$0xff] }
 0x242   :  { %2499 = vmatmul.mubr.bf16.vlgmr.msra.gmra.mxu1 %v8607_v41  ;;  %v6561_v22 = vcombine.low %v881_v10, %v885_v11  ;;  %v961_v3 = vld [vmem:[%s10648_s5 + $0x658] sm:$0xff] }
 0x243   :  { %2542 = vmatmul.mubr.bf16.vlgmr.msra.gmra.mxu0 %v8609_v42  ;;  %2553 = vmatpush1.bf16.msra.mxu1 %v6497_v13  ;;  %v1013_v13 = vld [vmem:[%s10648_s5 + $0x7f8] sm:$0xff] }
 0x244   :  { %2584 = vmatprep.mubr.bf16.mxu1 %v8603_v39  ;;  %2596 = vmatpush1.bf16.msra.mxu0 %v6625_v16  ;;  %v921_v39 = vld [vmem:[%s10648_s5 + $0x518] sm:$0xff]  ;;  %v6562_v16 = vcombine.high %v881_v10, %v885_v11 }
 0x245   :  { %2627 = vmatprep.mubr.bf16.mxu0 %v8605_v40  ;;  %2554 = vmatprep.subr.bf16.mxu1 %v6490_v17  ;;  %v6481_v40 = vcombine.low %v801_v18, %v805_v19  ;;  %v6602_v35 = vcombine.high %v921_v39, %v925_v32  ;;  %v6601_v45 = vcombine.low %v921_v39, %v925_v32  ;;  %v873_v18 = vld [vmem:[%s10648_s5 + $0x398] sm:$0xff] }
 0x246   :  { %2597 = vmatprep.subr.bf16.mxu0 %v6618_v20  ;;  %v6690_v17 = vcombine.high %v1009_v12, %v1013_v13  ;;  %v877_v19 = vld [vmem:[%s10648_s5 + $0x3b8] sm:$0xff] }
 0x247   :  { %2555 = vmatpush1.bf16.msra.mxu1 %v6489_v23  ;;  %v1001_v20 = vld [vmem:[%s10648_s5 + $0x798] sm:$0xff]  ;;  %v6689_v23 = vcombine.low %v1009_v12, %v1013_v13  ;;  %v6553_v32 = vcombine.low %v873_v18, %v877_v19 }
 0x248   :  { %2598 = vmatpush1.bf16.msra.mxu0 %v6617_v24  ;;  %2556 = vmatprep.subr.bf16.mxu1 %v6482_v25  ;;  %v6554_v24 = vcombine.high %v873_v18, %v877_v19  ;;  %v6682_v25 = vcombine.high %v1001_v20, %v1005_v21  ;;  %v997_v39 = vld [vmem:[%s10648_s5 + $0x778] sm:$0xff]  ;;  %v7354_v19 = vld [vmem:[%s10650_s7 + $0x18c] ss:$28 sps:$4 sm:$0xff]  }
 0x249   :  { %2599 = vmatprep.subr.bf16.mxu0 %v6610_v26  ;;  %v865_v26 = vld [vmem:[%s10648_s5 + $0x358] sm:$0xff] }
 0x24a   :  { %v6545_v43 = vcombine.low %v865_v26, %v869_v28  ;;  %v965_v4 = vld [vmem:[%s10648_s5 + $0x678] sm:$0xff] }
 0x24b   :  { %2557 = vmatpush1.bf16.msra.mxu1 %v6481_v40  ;;  %v6681_v40 = vcombine.low %v1001_v20, %v1005_v21  ;;  %v829_v10 = vld [vmem:[%s10648_s5 + $0x238] sm:$0xff]  ;;  %v9183_v20 = vld [vmem:[%s10649_s6] sm:$0xff] }
 0x24c   :  { %2600 = vmatpush1.bf16.msra.mxu0 %v6609_v33  ;;  %2558 = vmatprep.subr.bf16.mxu1 %v6474_v34  ;;  %v6546_v33 = vcombine.high %v865_v26, %v869_v28  ;;  %v6674_v34 = vcombine.high %v993_v31, %v997_v39  ;;  %v953_v11 = vld [vmem:[%s10648_s5 + $0x618] sm:$0xff]  ;;  %v2655_v21 = vrot.slane %v9183_v20, %v8360_v30  ;;  %v7375_v28 = vld [vmem:[%s10650_s7 + $0x4d4] ss:$28 sps:$4 sm:$0xff]  }
 0x24d   :  { %2601 = vmatprep.subr.bf16.mxu0 %v6602_v35  ;;  %v857_v35 = vld [vmem:[%s10648_s5 + $0x318] sm:$0xff] }
 0x24e   :  { %v6537_v51 = vcombine.low %v857_v35, %v861_v36  ;;  %v957_v12 = vld [vmem:[%s10648_s5 + $0x638] sm:$0xff]  ;;  %v2689_v26 = vpack.c.bf16 %v2655_v21, %v2655_v21 }
 0x24f   :  { %2559 = vmatpush1.bf16.msra.mxu1 %v6473_v44  ;;  %v6673_v44 = vcombine.low %v993_v31, %v997_v39  ;;  %v6633_v18 = vcombine.low %v953_v11, %v957_v12  ;;  %v7429_v21 = vld [vmem:[%s10650_s7 + $0x65c] ss:$28 sps:$4 sm:$0xff]  }
 0x250   :  { %2602 = vmatpush1.bf16.msra.mxu0 %v6601_v45  ;;  %2560 = vmatprep.subr.bf16.mxu1 %v6466_v46  ;;  %v6538_v45 = vcombine.high %v857_v35, %v861_v36  ;;  %v6666_v46 = vcombine.high %v985_v37, %v989_v38  ;;  %v2704_v35 = vpack.i.b16 %v2689_v26, %v2689_v26  ;;  %v7435_v26 = vld [vmem:[%s10650_s7 + $0x624] ss:$28 sps:$4 sm:$0xff]  }
 0x251   :  { %2603 = vmatprep.subr.bf16.mxu0 %v6594_v47  ;;  %v849_v47 = vld [vmem:[%s10648_s5 + $0x2d8] sm:$0xff] }
 0x252   :  { %v6529_v61 = vcombine.low %v849_v47, %v853_v48 }
 0x253   :  { %2561 = vmatpush1.bf16.msra.mxu1 %v6465_v52  ;;  %v6665_v52 = vcombine.low %v985_v37, %v989_v38  ;;  %v7358_v38 = vld [vmem:[%s10650_s7 + $0x118] ss:$28 sps:$4 sm:$0xff]  }
 0x254   :  { %2604 = vmatpush1.bf16.msra.mxu0 %v6593_v53  ;;  %2562 = vmatprep.subr.bf16.mxu1 %v6458_v56  ;;  %v6530_v53 = vcombine.high %v849_v47, %v853_v48  ;;  %v6658_v56 = vcombine.high %v977_v49, %v981_v50 }
 0x255   :  { %2605 = vmatprep.subr.bf16.mxu0 %v6586_v54  ;;  %v841_v54 = vld [vmem:[%s10648_s5 + $0x298] sm:$0xff] }
 0x256   :  { %v6521_v5 = vcombine.low %v841_v54, %v845_v55 }
 0x257   :  { %2563 = vmatpush1.bf16.msra.mxu1 %v6457_v62  ;;  %v6657_v62 = vcombine.low %v977_v49, %v981_v50  ;;  %v2709_v49 = vrot.slane %v2704_v35, %v8357_v29  ;;  %v7387_v50 = vld [vmem:[%s10650_s7 + $0x464] ss:$28 sps:$4 sm:$0xff]  }
 0x258   :  { %2606 = vmatpush1.bf16.msra.mxu0 %v6585_v63  ;;  %2564 = vmatprep.subr.bf16.mxu1 %v6450_v0  ;;  %v6522_v63 = vcombine.high %v841_v54, %v845_v55  ;;  %v6650_v0 = vcombine.high %v969_v58, %v973_v60  ;;  %v7393_v55 = vld [vmem:[%s10650_s7 + $0x42c] ss:$28 sps:$4 sm:$0xff]  }
 0x259   :  { %2607 = vmatprep.subr.bf16.mxu0 %v6578_v1  ;;  %v833_v1 = vld [vmem:[%s10648_s5 + $0x258] sm:$0xff] }
 0x25a   :  { %v6513_v13 = vcombine.low %v833_v1, %v837_v2 }
 0x25b   :  { %2565 = vmatpush1.bf16.msra.mxu1 %v6449_v6  ;;  %v6649_v6 = vcombine.low %v969_v58, %v973_v60  ;;  %v7364_v60 = vld [vmem:[%s10650_s7 + $0xa8] ss:$28 sps:$4 sm:$0xff]  }
 0x25c   :  { %2608 = vmatpush1.bf16.msra.mxu0 %v6577_v7  ;;  %2566 = vmatprep.subr.bf16.mxu1 %v6442_v8  ;;  %v6514_v7 = vcombine.high %v833_v1, %v837_v2  ;;  %v6642_v8 = vcombine.high %v961_v3, %v965_v4  ;;  %v7370_v1 = vld [vmem:[%s10650_s7 + $0x70] ss:$28 sps:$4 sm:$0xff]   ;;  %v7378_v2 = vld [vmem:[%s10650_s7 + $0x3c] ss:$28 sps:$4 sm:$0xff]  }
 0x25d   :  { %2609 = vmatprep.subr.bf16.mxu0 %v6570_v9  ;;  %v825_v9 = vld [vmem:[%s10648_s5 + $0x218] sm:$0xff] }
 0x25f   :  { %2567 = vmatpush1.bf16.msra.mxu1 %v6441_v14  ;;  %v6641_v14 = vcombine.low %v961_v3, %v965_v4  ;;  %v7397_v3 = vld [vmem:[%s10650_s7 + $0x3f0] ss:$28 sps:$4 sm:$0xff]   ;;  %v7405_v4 = vld [vmem:[%s10650_s7 + $0x3bc] ss:$28 sps:$4 sm:$0xff]  }
 0x260   :  { %2610 = vmatpush1.bf16.msra.mxu0 %v6569_v15  ;;  %2568 = vmatprep.subr.bf16.mxu1 %v6562_v16  ;;  %v6506_v15 = vcombine.high %v825_v9, %v829_v10  ;;  %v6634_v16 = vcombine.high %v953_v11, %v957_v12  ;;  %v7409_v11 = vld [vmem:[%s10650_s7 + $0x380] ss:$28 sps:$4 sm:$0xff]   ;;  %v7417_v12 = vld [vmem:[%s10650_s7 + $0x6cc] ss:$28 sps:$4 sm:$0xff]  }
 0x261   :  { %2611 = vmatprep.subr.bf16.mxu0 %v6690_v17  ;;  %v6505_v17 = vcombine.low %v825_v9, %v829_v10  ;;  %v7382_v9 = vld [vmem:[%s10650_s7] ss:$28 sps:$4 sm:$0xff]   ;;  %v7390_v10 = vld [vmem:[%s10650_s7 + $0x34c] ss:$28 sps:$4 sm:$0xff]  }
 0x263   :  { %2569 = vmatpush2.bf16.msra.mxu1 %v6561_v22  ;;  %v7369_v22 = vld [vmem:[%s10650_s7 + $0x50c] ss:$28 sps:$4 sm:$0xff]  }
 0x264   :  { %2612 = vmatpush2.bf16.msra.mxu0 %v6689_v23  ;;  %2570 = vmatprep.subr.bf16.mxu1 %v6554_v24  ;;  %v7352_v23 = vld [vmem:[%s10650_s7 + $0x188] ss:$28 sps:$4 sm:$0xff]   ;;  %v7357_v24 = vld [vmem:[%s10650_s7 + $0x154] ss:$28 sps:$4 sm:$0xff]  }
 0x265   :  { %2613 = vmatprep.subr.bf16.mxu0 %v6682_v25  ;;  %v7367_v25 = vld [vmem:[%s10650_s7 + $0x508] ss:$28 sps:$4 sm:$0xff]  }
 0x267   :  { %2571 = vmatpush2.bf16.msra.mxu1 %v6553_v32  ;;  %v7355_v32 = vld [vmem:[%s10650_s7 + $0x150] ss:$28 sps:$4 sm:$0xff]  }
 0x268   :  { %2614 = vmatpush2.bf16.msra.mxu0 %v6681_v40  ;;  %2572 = vmatprep.subr.bf16.mxu1 %v6546_v33 }
 0x269   :  { %2615 = vmatprep.subr.bf16.mxu0 %v6674_v34  ;;  %v7360_v34 = vld [vmem:[%s10650_s7 + $0x11c] ss:$28 sps:$4 sm:$0xff]  }
 0x26b   :  { %2573 = vmatpush2.bf16.msra.mxu1 %v6545_v43 }
 0x26c   :  { %2616 = vmatpush2.bf16.msra.mxu0 %v6673_v44  ;;  %2574 = vmatprep.subr.bf16.mxu1 %v6538_v45  ;;  %v7363_v45 = vld [vmem:[%s10650_s7 + $0xe4] ss:$28 sps:$4 sm:$0xff]  }
 0x26d   :  { %2617 = vmatprep.subr.bf16.mxu0 %v6666_v46  ;;  %v7379_v46 = vld [vmem:[%s10650_s7 + $0x498] ss:$28 sps:$4 sm:$0xff]  }
 0x26f   :  { %2575 = vmatpush2.bf16.msra.mxu1 %v6537_v51 }
 0x270   :  { %2618 = vmatpush2.bf16.msra.mxu0 %v6665_v52  ;;  %2576 = vmatprep.subr.bf16.mxu1 %v6530_v53  ;;  %v7361_v52 = vld [vmem:[%s10650_s7 + $0xe0] ss:$28 sps:$4 sm:$0xff]   ;;  %v7366_v53 = vld [vmem:[%s10650_s7 + $0xac] ss:$28 sps:$4 sm:$0xff]  }
 0x271   :  { %2619 = vmatprep.subr.bf16.mxu0 %v6658_v56  ;;  %v7385_v56 = vld [vmem:[%s10650_s7 + $0x460] ss:$28 sps:$4 sm:$0xff]  }
 0x273   :  { %2577 = vmatpush2.bf16.msra.mxu1 %v6529_v61  ;;  %v7372_v61 = vld [vmem:[%s10650_s7 + $0x74] ss:$28 sps:$4 sm:$0xff]  }
 0x274   :  { %2620 = vmatpush2.bf16.msra.mxu0 %v6657_v62  ;;  %2578 = vmatprep.subr.bf16.mxu1 %v6522_v63  ;;  %v7391_v62 = vld [vmem:[%s10650_s7 + $0x428] ss:$28 sps:$4 sm:$0xff]  }
 0x275   :  { %2621 = vmatprep.subr.bf16.mxu0 %v6650_v0  ;;  %v7399_v0 = vld [vmem:[%s10650_s7 + $0x3f4] ss:$28 sps:$4 sm:$0xff]  }
 0x277   :  { %2579 = vmatpush2.bf16.msra.mxu1 %v6521_v5  ;;  %v7376_v5 = vld [vmem:[%s10650_s7 + $0x38] ss:$28 sps:$4 sm:$0xff]  }
 0x278   :  { %2622 = vmatpush2.bf16.msra.mxu0 %v6649_v6  ;;  %2580 = vmatprep.subr.bf16.mxu1 %v6514_v7  ;;  %v7384_v6 = vld [vmem:[%s10650_s7 + $0x4] ss:$28 sps:$4 sm:$0xff]   ;;  %v7403_v7 = vld [vmem:[%s10650_s7 + $0x3b8] ss:$28 sps:$4 sm:$0xff]  }
 0x279   :  { %2623 = vmatprep.subr.bf16.mxu0 %v6642_v8  ;;  %v7411_v8 = vld [vmem:[%s10650_s7 + $0x384] ss:$28 sps:$4 sm:$0xff]  }
 0x27b   :  { %2581 = vmatpush2.bf16.msra.mxu1 %v6513_v13  ;;  %v7388_v13 = vld [vmem:[%s10650_s7 + $0x348] ss:$28 sps:$4 sm:$0xff]  }
 0x27c   :  { %2624 = vmatpush2.bf16.msra.mxu0 %v6641_v14  ;;  %2582 = vmatprep.subr.bf16.mxu1 %v6506_v15  ;;  %v7396_v14 = vld [vmem:[%s10650_s7 + $0x314] ss:$28 sps:$4 sm:$0xff]   ;;  %v7415_v15 = vld [vmem:[%s10650_s7 + $0x6c8] ss:$28 sps:$4 sm:$0xff]  }
 0x27d   :  { %2625 = vmatprep.subr.bf16.mxu0 %v6634_v16  ;;  %v7423_v16 = vld [vmem:[%s10650_s7 + $0x694] ss:$28 sps:$4 sm:$0xff]  }
 0x27f   :  { %2583 = vmatpush2.bf16.msra.mxu1 %v6505_v17  ;;  %v7394_v17 = vld [vmem:[%s10650_s7 + $0x310] ss:$28 sps:$4 sm:$0xff]  }
 0x280   :  { %2626 = vmatpush2.bf16.msra.mxu0 %v6633_v18  ;;  %5629 = vmatprep.subr.bf16.mxu1 %v7354_v19  ;;  %v7402_v18 = vld [vmem:[%s10650_s7 + $0x2dc] ss:$28 sps:$4 sm:$0xff]   ;;  %v7421_v19 = vld [vmem:[%s10650_s7 + $0x690] ss:$28 sps:$4 sm:$0xff]  }
 0x281   :  { %5672 = vmatprep.subr.bf16.mxu0 %v7369_v22  ;;  %v7400_v22 = vld [vmem:[%s10650_s7 + $0x2d8] ss:$28 sps:$4 sm:$0xff]  }
 0x282   :  { %2585 = vmatmul.mubr.bf16.vlgmr.msra.gmra.mxu1 %v8607_v41  ;;  %v9203_v31 = vpop.f32.mrf.mxu1  ;;  %v9205_v39 = vpop.f32.mrf.mxu0  ;;  %v7373_v41 = vld [vmem:[%s10650_s7 + $0x4d0] ss:$28 sps:$4 sm:$0xff]  }
 0x283   :  { %2628 = vmatmul.mubr.bf16.vlgmr.msra.gmra.mxu0 %v8609_v42  ;;  %5630 = vmatpush1.bf16.msra.mxu1 %v7352_v23  ;;  %v7381_v42 = vld [vmem:[%s10650_s7 + $0x49c] ss:$28 sps:$4 sm:$0xff]   ;;  %v2651_v23 = vrot.slane %v9183_v20, %v8357_v29 }
 0x284   :  { %v2330_v40 = vpop.f32.mrf.mxu1  ;;  %v2373_v33 = vpop.f32.mrf.mxu0  ;;  %5631 = vmatprep.subr.bf16.mxu1 %v7357_v24  ;;  %5673 = vmatpush1.bf16.msra.mxu0 %v7367_v25  ;;  %v7408_v24 = vld [vmem:[%s10650_s7 + $0x2a4] ss:$28 sps:$4 sm:$0xff]   ;;  %v7427_v25 = vld [vmem:[%s10650_s7 + $0x658] ss:$28 sps:$4 sm:$0xff]  }
 0x285   :  { %5674 = vmatprep.subr.bf16.mxu0 %v7375_v28  ;;  %v2374_v47 = vadd.f32 %v2373_v33, %v2330_v40  ;;  %v7406_v28 = vld [vmem:[%s10650_s7 + $0x2a0] ss:$28 sps:$4 sm:$0xff]   ;;  %v7414_v40 = vld [vmem:[%s10650_s7 + $0x26c] ss:$28 sps:$4 sm:$0xff]  }
 0x286   :  { %v9220_v36 = vpop.f32.mrf.mxu1  ;;  %v9222_v37 = vpop.f32.mrf.mxu0  ;;  %v7433_v33 = vld [vmem:[%s10650_s7 + $0x620] ss:$28 sps:$4 sm:$0xff]  }
 0x287   :  { %5632 = vmatpush1.bf16.msra.mxu1 %v7355_v32  ;;  %v2688_v32 = vpack.c.bf16 %v2651_v23, %v2651_v23  ;;  %v2376_v35 = vadd.f32 %v9222_v37, %v9220_v36  ;;  %v7418_v36 = vld [vmem:[%s10650_s7 + $0x230] ss:$28 sps:$4 sm:$0xff]  }
 0x288   :  { %v2334_v43 = vpop.f32.mrf.mxu1  ;;  %v2377_v44 = vpop.f32.mrf.mxu0  ;;  %5633 = vmatprep.subr.bf16.mxu1 %v7360_v34  ;;  %5675 = vmatpush1.bf16.msra.mxu0 %v7373_v41  ;;  %v7438_v34 = vld [vmem:[%s10650_s7 + $0x5ec] ss:$28 sps:$4 sm:$0xff]  }
 0x289   :  { %v2378_v48 = vadd.f32 %v2377_v44, %v2334_v43  ;;  %5676 = vmatprep.subr.bf16.mxu0 %v7381_v42  ;;  %v7412_v41 = vld [vmem:[%s10650_s7 + $0x268] ss:$28 sps:$4 sm:$0xff]   ;;  %v2697_v42 = vpack.i.b16 %v2688_v32, %v2688_v32  ;;  %v7441_v44 = vld [vmem:[%s10650_s7 + $0x5b4] ss:$28 sps:$4 sm:$0xff]   ;;  %v7457_v32 = vld [vmem:[%s10650_s7 + $0x7e0] ss:$28 sps:$4 sm:$0xff]  }
 0x28a   :  { %v7436_v43 = vld [vmem:[%s10650_s7 + $0x5e8] ss:$28 sps:$4 sm:$0xff]  }
 0x28b   :  { %v2639_v51 = vpack.c.bf16 %v2378_v48, %v2374_v47  ;;  %5634 = vmatpush1.bf16.msra.mxu1 %v7358_v38  ;;  %v7420_v38 = vld [vmem:[%s10650_s7 + $0x234] ss:$28 sps:$4 sm:$0xff]   ;;  %v7426_v47 = vld [vmem:[%s10650_s7 + $0x1fc] ss:$28 sps:$4 sm:$0xff]  }
 0x28c   :  { %5635 = vmatprep.subr.bf16.mxu1 %v7363_v45  ;;  %5677 = vmatpush1.bf16.msra.mxu0 %v7379_v46  ;;  %v2372_v45 = vadd.f32 %v9205_v39, %v9203_v31  ;;  %v2702_v46 = vrot.slane %v2697_v42, %v8357_v29  ;;  %v7439_v48 = vld [vmem:[%s10650_s7 + $0x5b0] ss:$28 sps:$4 sm:$0xff]   ;;  %v7444_v31 = vld [vmem:[%s10650_s7 + $0x57c] ss:$28 sps:$4 sm:$0xff]  }
 0x28d   :  { %v2753_v54 = vadd.bf16 %v2709_v49, %v2639_v51  ;;  %5678 = vmatprep.subr.bf16.mxu0 %v7387_v50  ;;  %v7424_v39 = vld [vmem:[%s10650_s7 + $0x1f8] ss:$28 sps:$4 sm:$0xff]   ;;  %v7432_v50 = vld [vmem:[%s10650_s7 + $0x1c4] ss:$28 sps:$4 sm:$0xff]  }
 0x28e   :  { %v2638_v37 = vpack.c.bf16 %v2376_v35, %v2372_v45  ;;  %v7442_v51 = vld [vmem:[%s10650_s7 + $0x578] ss:$28 sps:$4 sm:$0xff]   ;;  %v7460_v35 = vld [vmem:[%s10650_s7 + $0x7a8] ss:$28 sps:$4 sm:$0xff]  }
 0x28f   :  { %v2761_v58 = vmul.bf16 1045249613, %v2753_v54  ;;  %5636 = vmatpush1.bf16.msra.mxu1 %v7361_v52  ;;  %v7447_v52 = vld [vmem:[%s10650_s7 + $0x544] ss:$28 sps:$4 sm:$0xff]   ;;  %v7465_v42 = vld [vmem:[%s10650_s7 + $0x774] ss:$28 sps:$4 sm:$0xff]  }
 0x290   :  { %5637 = vmatprep.subr.bf16.mxu1 %v7366_v53  ;;  %5679 = vmatpush1.bf16.msra.mxu0 %v7385_v56  ;;  %v2752_v49 = vadd.bf16 %v2702_v46, %v2638_v37  ;;  %v7430_v53 = vld [vmem:[%s10650_s7 + $0x1c0] ss:$28 sps:$4 sm:$0xff]   ;;  %v2659_v56 = vrot.slane %v9183_v20, %v8575_v57  ;;  %v7504_v45 = vld [vmem:[%s10650_s7 + $0xbd4] ss:$28 sps:$4 sm:$0xff]  }
 0x291   :  { %v9258_v63 = vmax.bf16 %v2761_v58, %v2753_v54  ;;  %5680 = vmatprep.subr.bf16.mxu0 %v7393_v55  ;;  %v7445_v55 = vld [vmem:[%s10650_s7 + $0x540] ss:$28 sps:$4 sm:$0xff]   ;;  %v7450_v58 = vld [vmem:[%s10650_s7 + $0x88c] ss:$28 sps:$4 sm:$0xff]  }
 0x292   :  { %v2760_v54 = vmul.bf16 1045249613, %v2752_v49  ;;  %v7468_v37 = vld [vmem:[%s10650_s7 + $0x73c] ss:$28 sps:$4 sm:$0xff]   ;;  %v7502_v46 = vld [vmem:[%s10650_s7 + $0xbd0] ss:$28 sps:$4 sm:$0xff]  }
 0x293   :  { %5638 = vmatpush1.bf16.msra.mxu1 %v7364_v60  ;;  %5661 = vmatprep.mubr.bf16.mxu1 %v9258_v63  ;;  %v2663_v60 = vrot.slane %v9183_v20, %v8581_v59 }
 0x294   :  { %5639 = vmatprep.subr.bf16.mxu1 %v7372_v61  ;;  %5681 = vmatpush1.bf16.msra.mxu0 %v7391_v62  ;;  %v7498_v61 = vld [vmem:[%s10650_s7 + $0xc0c] ss:$28 sps:$4 sm:$0xff]   ;;  %v2690_v62 = vpack.c.bf16 %v2659_v56, %v2659_v56 }
 0x295   :  { %5682 = vmatprep.subr.bf16.mxu0 %v7399_v0  ;;  %v7448_v0 = vld [vmem:[%s10650_s7 + $0x888] ss:$28 sps:$4 sm:$0xff]  }
 0x296   :  { %v7472_v56 = vld [vmem:[%s10650_s7 + $0xa48] ss:$28 sps:$4 sm:$0xff]  }
 0x297   :  { %5640 = vmatpush1.bf16.msra.mxu1 %v7370_v1  ;;  %v9410_v1 = vmax.bf16 %v2760_v54, %v2752_v49  ;;  %v7516_v49 = vld [vmem:[%s10650_s7 + $0xb64] ss:$28 sps:$4 sm:$0xff]   ;;  %v7477_v54 = vld [vmem:[%s10650_s7 + $0xa14] ss:$28 sps:$4 sm:$0xff]  }
 0x298   :  { %5641 = vmatprep.subr.bf16.mxu1 %v7378_v2  ;;  %5683 = vmatpush1.bf16.msra.mxu0 %v7397_v3  ;;  %v7453_v2 = vld [vmem:[%s10650_s7 + $0x854] ss:$28 sps:$4 sm:$0xff]   ;;  %v2691_v3 = vpack.c.bf16 %v2663_v60, %v2663_v60 }
 0x299   :  { %5684 = vmatprep.subr.bf16.mxu0 %v7405_v4  ;;  %v7475_v60 = vld [vmem:[%s10650_s7 + $0xa10] ss:$28 sps:$4 sm:$0xff]  }
 0x29b   :  { %5642 = vmatpush1.bf16.msra.mxu1 %v7376_v5 }
 0x29c   :  { %5643 = vmatprep.subr.bf16.mxu1 %v7384_v6  ;;  %5685 = vmatpush1.bf16.msra.mxu0 %v7403_v7  ;;  %v2711_v6 = vpack.i.b16 %v2690_v62, %v2690_v62  ;;  %v7451_v7 = vld [vmem:[%s10650_s7 + $0x850] ss:$28 sps:$4 sm:$0xff]  }
 0x29d   :  { %5686 = vmatprep.subr.bf16.mxu0 %v7411_v8  ;;  %v7526_v62 = vld [vmem:[%s10650_s7 + $0xaf0] ss:$28 sps:$4 sm:$0xff]  }
 0x29f   :  { %5644 = vmatpush1.bf16.msra.mxu1 %v7382_v9 }
 0x2a0   :  { %5645 = vmatprep.subr.bf16.mxu1 %v7390_v10  ;;  %5687 = vmatpush1.bf16.msra.mxu0 %v7409_v11  ;;  %v7456_v10 = vld [vmem:[%s10650_s7 + $0x81c] ss:$28 sps:$4 sm:$0xff]   ;;  %v2718_v11 = vpack.i.b16 %v2691_v3, %v2691_v3  ;;  %v7483_v3 = vld [vmem:[%s10650_s7 + $0x9a4] ss:$28 sps:$4 sm:$0xff]  }
 0x2a1   :  { %5688 = vmatprep.subr.bf16.mxu0 %v7417_v12 }
 0x2a3   :  { %5646 = vmatpush2.bf16.msra.mxu1 %v7388_v13 }
 0x2a4   :  { %5647 = vmatprep.subr.bf16.mxu1 %v7396_v14  ;;  %5689 = vmatpush2.bf16.msra.mxu0 %v7415_v15 }
 0x2a5   :  { %5690 = vmatprep.subr.bf16.mxu0 %v7423_v16  ;;  %v2716_v16 = vrot.slane %v2711_v6, %v8357_v29  ;;  %v7481_v6 = vld [vmem:[%s10650_s7 + $0x9a0] ss:$28 sps:$4 sm:$0xff]  }
 0x2a7   :  { %5648 = vmatpush2.bf16.msra.mxu1 %v7394_v17  ;;  %v7454_v17 = vld [vmem:[%s10650_s7 + $0x818] ss:$28 sps:$4 sm:$0xff]  }
 0x2a8   :  { %5649 = vmatprep.subr.bf16.mxu1 %v7402_v18  ;;  %5691 = vmatpush2.bf16.msra.mxu0 %v7421_v19 }
 0x2a9   :  { %5692 = vmatprep.subr.bf16.mxu0 %v7429_v21  ;;  %v7459_v21 = vld [vmem:[%s10650_s7 + $0x7e4] ss:$28 sps:$4 sm:$0xff]  }
 0x2ab   :  { %5650 = vmatpush2.bf16.msra.mxu1 %v7400_v22 }
 0x2ac   :  { %5651 = vmatprep.subr.bf16.mxu1 %v7408_v24  ;;  %5693 = vmatpush2.bf16.msra.mxu0 %v7427_v25  ;;  %v2723_v25 = vrot.slane %v2718_v11, %v8357_v29  ;;  %v7489_v11 = vld [vmem:[%s10650_s7 + $0x934] ss:$28 sps:$4 sm:$0xff]  }
 0x2ad   :  { %5694 = vmatprep.subr.bf16.mxu0 %v7435_v26 }
 0x2af   :  { %5652 = vmatpush2.bf16.msra.mxu1 %v7406_v28 }
 0x2b0   :  { %5653 = vmatprep.subr.bf16.mxu1 %v7414_v40  ;;  %5695 = vmatpush2.bf16.msra.mxu0 %v7433_v33  ;;  %v7462_v40 = vld [vmem:[%s10650_s7 + $0x7ac] ss:$28 sps:$4 sm:$0xff]  }
 0x2b1   :  { %5696 = vmatprep.subr.bf16.mxu0 %v7438_v34 }
 0x2b3   :  { %5654 = vmatpush2.bf16.msra.mxu1 %v7412_v41 }
 0x2b4   :  { %5655 = vmatprep.subr.bf16.mxu1 %v7420_v38  ;;  %5697 = vmatpush2.bf16.msra.mxu0 %v7436_v43  ;;  %v7496_v43 = vld [vmem:[%s10650_s7 + $0xc08] ss:$28 sps:$4 sm:$0xff]  }
 0x2b5   :  { %5698 = vmatprep.subr.bf16.mxu0 %v7441_v44 }
 0x2b7   :  { %5656 = vmatpush2.bf16.msra.mxu1 %v7418_v36  ;;  %v7463_v36 = vld [vmem:[%s10650_s7 + $0x770] ss:$28 sps:$4 sm:$0xff]  }
 0x2b8   :  { %5657 = vmatprep.subr.bf16.mxu1 %v7426_v47  ;;  %5699 = vmatpush2.bf16.msra.mxu0 %v7439_v48  ;;  %v7510_v47 = vld [vmem:[%s10650_s7 + $0xb9c] ss:$28 sps:$4 sm:$0xff]  }
 0x2b9   :  { %5700 = vmatprep.subr.bf16.mxu0 %v7444_v31  ;;  %v7466_v48 = vld [vmem:[%s10650_s7 + $0x738] ss:$28 sps:$4 sm:$0xff]   ;;  %v7471_v31 = vld [vmem:[%s10650_s7 + $0x704] ss:$28 sps:$4 sm:$0xff]  }
 0x2bb   :  { %5658 = vmatpush2.bf16.msra.mxu1 %v7424_v39  ;;  %v7508_v39 = vld [vmem:[%s10650_s7 + $0xb98] ss:$28 sps:$4 sm:$0xff]  }
 0x2bc   :  { %5659 = vmatprep.subr.bf16.mxu1 %v7432_v50  ;;  %5701 = vmatpush2.bf16.msra.mxu0 %v7442_v51  ;;  %v7469_v50 = vld [vmem:[%s10650_s7 + $0x700] ss:$28 sps:$4 sm:$0xff]   ;;  %v7474_v51 = vld [vmem:[%s10650_s7 + $0xa4c] ss:$28 sps:$4 sm:$0xff]  }
 0x2bd   :  { %5702 = vmatprep.subr.bf16.mxu0 %v7447_v52  ;;  %v7514_v52 = vld [vmem:[%s10650_s7 + $0xb60] ss:$28 sps:$4 sm:$0xff]  }
 0x2bf   :  { %5660 = vmatpush2.bf16.msra.mxu1 %v7430_v53  ;;  %v7522_v53 = vld [vmem:[%s10650_s7 + $0xb2c] ss:$28 sps:$4 sm:$0xff]  }
 0x2c0   :  { %5703 = vmatpush2.bf16.msra.mxu0 %v7445_v55  ;;  %5715 = vmatprep.subr.bf16.mxu1 %v7450_v58  ;;  %v7520_v55 = vld [vmem:[%s10650_s7 + $0xb28] ss:$28 sps:$4 sm:$0xff]   ;;  %v7528_v58 = vld [vmem:[%s10650_s7 + $0xaf4] ss:$28 sps:$4 sm:$0xff]  }
 0x2c1   :  { %5758 = vmatprep.subr.bf16.mxu0 %v7498_v61  ;;  %v7480_v61 = vld [vmem:[%s10650_s7 + $0x9dc] ss:$28 sps:$4 sm:$0xff]  }
 0x2c2   :  { %v2414_v4 = vpop.f32.mrf.mxu1  ;;  %v2457_v5 = vpop.f32.mrf.mxu0  ;;  %5662 = vmatmul.mubr.bf16.vlgmr.msra.gmra.mxu1 %v9410_v1 }
 0x2c3   :  { %5716 = vmatpush1.bf16.msra.mxu1 %v7448_v0  ;;  %v2458_v14 = vadd.f32 %v2457_v5, %v2414_v4  ;;  %v7534_v0 = vld [vmem:[%s10650_s7 + $0xabc] ss:$28 sps:$4 sm:$0xff]   ;;  %v7540_v5 = vld [vmem:[%s10650_s7 + $0xa84] ss:$28 sps:$4 sm:$0xff]  }
 0x2c4   :  { %v2416_v8 = vpop.f32.mrf.mxu1  ;;  %v2459_v9 = vpop.f32.mrf.mxu0  ;;  %5717 = vmatprep.subr.bf16.mxu1 %v7453_v2  ;;  %v7478_v2 = vld [vmem:[%s10650_s7 + $0x9d8] ss:$28 sps:$4 sm:$0xff]  }
 0x2c5   :  { %v2460_v22 = vadd.f32 %v2459_v9, %v2416_v8  ;;  %v7532_v4 = vld [vmem:[%s10650_s7 + $0xab8] ss:$28 sps:$4 sm:$0xff]   ;;  %v7538_v8 = vld [vmem:[%s10650_s7 + $0xa80] ss:$28 sps:$4 sm:$0xff]   ;;  %v7546_v9 = vld [vmem:[%s10650_s7 + $0xdcc] ss:$28 sps:$4 sm:$0xff]  }
 0x2c6   :  { %v2418_v12 = vpop.f32.mrf.mxu1  ;;  %v2461_v13 = vpop.f32.mrf.mxu0 }
 0x2c7   :  { %v2462_v15 = vadd.f32 %v2461_v13, %v2418_v12  ;;  %5718 = vmatpush1.bf16.msra.mxu1 %v7451_v7  ;;  %v7486_v7 = vld [vmem:[%s10650_s7 + $0x96c] ss:$28 sps:$4 sm:$0xff]   ;;  %v7552_v13 = vld [vmem:[%s10650_s7 + $0xd94] ss:$28 sps:$4 sm:$0xff]  }
 0x2c8   :  { %v2420_v18 = vpop.f32.mrf.mxu1  ;;  %v2463_v19 = vpop.f32.mrf.mxu0  ;;  %5719 = vmatprep.subr.bf16.mxu1 %v7456_v10  ;;  %v7484_v10 = vld [vmem:[%s10650_s7 + $0x968] ss:$28 sps:$4 sm:$0xff]  }
 0x2c9   :  { %v2640_v23 = vpack.c.bf16 %v2462_v15, %v2458_v14  ;;  %v2464_v24 = vadd.f32 %v2463_v19, %v2420_v18  ;;  %v7544_v12 = vld [vmem:[%s10650_s7 + $0xdc8] ss:$28 sps:$4 sm:$0xff]   ;;  %v7487_v14 = vld [vmem:[%s10650_s7 + $0x930] ss:$28 sps:$4 sm:$0xff]   ;;  %v7492_v15 = vld [vmem:[%s10650_s7 + $0x8fc] ss:$28 sps:$4 sm:$0xff]  }
 0x2ca   :  { %v7490_v18 = vld [vmem:[%s10650_s7 + $0x8f8] ss:$28 sps:$4 sm:$0xff]   ;;  %v2666_v19 = vsub.s32 4, %v8351_v27 }
 0x2cb   :  { %v2754_v26 = vadd.bf16 %v2716_v16, %v2640_v23  ;;  %v2641_v28 = vpack.c.bf16 %v2464_v24, %v2460_v22  ;;  %5720 = vmatpush1.bf16.msra.mxu1 %v7454_v17  ;;  %v7550_v16 = vld [vmem:[%s10650_s7 + $0xd90] ss:$28 sps:$4 sm:$0xff]   ;;  %v7558_v17 = vld [vmem:[%s10650_s7 + $0xd5c] ss:$28 sps:$4 sm:$0xff]   ;;  %v2670_v23 = vsub.s32 5, %v8351_v27 }
 0x2cc   :  { %5721 = vmatprep.subr.bf16.mxu1 %v7459_v21  ;;  %v7495_v21 = vld [vmem:[%s10650_s7 + $0x8c4] ss:$28 sps:$4 sm:$0xff]   ;;  %v7556_v22 = vld [vmem:[%s10650_s7 + $0xd58] ss:$28 sps:$4 sm:$0xff]  }
 0x2cd   :  { %v2755_v33 = vadd.bf16 %v2723_v25, %v2641_v28  ;;  %v2762_v34 = vmul.bf16 1045249613, %v2754_v26  ;;  %v7564_v24 = vld [vmem:[%s10650_s7 + $0xd24] ss:$28 sps:$4 sm:$0xff]   ;;  %v7501_v28 = vld [vmem:[%s10650_s7 + $0x194] ss:$28 sps:$4 sm:$0xff]  }
 0x2ce   :  { %v7493_v25 = vld [vmem:[%s10650_s7 + $0x8c0] ss:$28 sps:$4 sm:$0xff]  }
 0x2cf   :  { %v2763_v41 = vmul.bf16 1045249613, %v2755_v33  ;;  %5722 = vmatpush1.bf16.msra.mxu1 %v7457_v32  ;;  %v9447_v44 = vmax.bf16 %v2762_v34, %v2754_v26  ;;  %v2667_v26 = vrot.slane %v9183_v20, %v2666_v19  ;;  %v7562_v32 = vld [vmem:[%s10650_s7 + $0xd20] ss:$28 sps:$4 sm:$0xff]  }
 0x2d0   :  { %5723 = vmatprep.subr.bf16.mxu1 %v7462_v40  ;;  %v2671_v40 = vrot.slane %v9183_v20, %v2670_v23 }
 0x2d1   :  { %v9442_v38 = vmax.bf16 %v2763_v41, %v2755_v33  ;;  %v7570_v33 = vld [vmem:[%s10650_s7 + $0xcec] ss:$28 sps:$4 sm:$0xff]   ;;  %v2692_v34 = vpack.c.bf16 %v2667_v26, %v2667_v26 }
 0x2d2   :  { %v7568_v41 = vld [vmem:[%s10650_s7 + $0xce8] ss:$28 sps:$4 sm:$0xff]  }
 0x2d3   :  { %5704 = vmatprep.mubr.bf16.mxu0 %v9442_v38  ;;  %5724 = vmatpush1.bf16.msra.mxu1 %v7460_v35  ;;  %v7543_v26 = vld [vmem:[%s10650_s7 + $0xc] ss:$28 sps:$4 sm:$0xff]  }
 0x2d4   :  { %5705 = vmatmul.mubr.bf16.vlgmr.msra.gmra.mxu0 %v9447_v44  ;;  %5725 = vmatprep.subr.bf16.mxu1 %v7465_v42  ;;  %v2693_v42 = vpack.c.bf16 %v2671_v40, %v2671_v40  ;;  %v7547_v40 = vld [vmem:[%s10650_s7 + $0x350] ss:$28 sps:$4 sm:$0xff]  }
 0x2d5   :  { %5759 = vmatpush1.bf16.msra.mxu0 %v7496_v43  ;;  %v7576_v43 = vld [vmem:[%s10650_s7 + $0xcb4] ss:$28 sps:$4 sm:$0xff]  }
 0x2d6   :  { %5760 = vmatprep.subr.bf16.mxu0 %v7504_v45 }
 0x2d7   :  { %5726 = vmatpush1.bf16.msra.mxu1 %v7463_v36 }
 0x2d8   :  { %5727 = vmatprep.subr.bf16.mxu1 %v7468_v37  ;;  %v2725_v37 = vpack.i.b16 %v2692_v34, %v2692_v34  ;;  %v7553_v34 = vld [vmem:[%s10650_s7 + $0x318] ss:$28 sps:$4 sm:$0xff]  }
 0x2d9   :  { %5761 = vmatpush1.bf16.msra.mxu0 %v7502_v46 }
 0x2da   :  { %5762 = vmatprep.subr.bf16.mxu0 %v7510_v47  ;;  %v7574_v47 = vld [vmem:[%s10650_s7 + $0xcb0] ss:$28 sps:$4 sm:$0xff]  }
 0x2db   :  { %5728 = vmatpush1.bf16.msra.mxu1 %v7466_v48 }
 0x2dc   :  { %5729 = vmatprep.subr.bf16.mxu1 %v7471_v31  ;;  %v2732_v31 = vpack.i.b16 %v2693_v42, %v2693_v42  ;;  %v7559_v42 = vld [vmem:[%s10650_s7 + $0x2e0] ss:$28 sps:$4 sm:$0xff]  }
 0x2dd   :  { %5763 = vmatpush1.bf16.msra.mxu0 %v7508_v39  ;;  %v7582_v39 = vld [vmem:[%s10650_s7 + $0xc7c] ss:$28 sps:$4 sm:$0xff]  }
 0x2de   :  { %5764 = vmatprep.subr.bf16.mxu0 %v7516_v49 }
 0x2df   :  { %5730 = vmatpush1.bf16.msra.mxu1 %v7469_v50 }
 0x2e0   :  { %5731 = vmatprep.subr.bf16.mxu1 %v7474_v51 }
 0x2e1   :  { %5765 = vmatpush1.bf16.msra.mxu0 %v7514_v52  ;;  %v2730_v52 = vrot.slane %v2725_v37, %v8357_v29  ;;  %v7565_v37 = vld [vmem:[%s10650_s7 + $0x2a8] ss:$28 sps:$4 sm:$0xff]  }
 0x2e2   :  { %5766 = vmatprep.subr.bf16.mxu0 %v7522_v53 }
 0x2e3   :  { %5732 = vmatpush2.bf16.msra.mxu1 %v7472_v56 }
 0x2e4   :  { %5733 = vmatprep.subr.bf16.mxu1 %v7477_v54  ;;  %v7580_v54 = vld [vmem:[%s10650_s7 + $0xc78] ss:$28 sps:$4 sm:$0xff]  }
 0x2e5   :  { %5767 = vmatpush1.bf16.msra.mxu0 %v7520_v55 }
 0x2e6   :  { %5768 = vmatprep.subr.bf16.mxu0 %v7528_v58 }
 0x2e7   :  { %5734 = vmatpush2.bf16.msra.mxu1 %v7475_v60 }
 0x2e8   :  { %5735 = vmatprep.subr.bf16.mxu1 %v7480_v61  ;;  %v2737_v61 = vrot.slane %v2732_v31, %v8357_v29 }
 0x2e9   :  { %5769 = vmatpush1.bf16.msra.mxu0 %v7526_v62  ;;  %v7588_v62 = vld [vmem:[%s10650_s7 + $0xc44] ss:$28 sps:$4 sm:$0xff]  }
 0x2ea   :  { %5770 = vmatprep.subr.bf16.mxu0 %v7534_v0 }
 0x2eb   :  { %5736 = vmatpush2.bf16.msra.mxu1 %v7478_v2 }
 0x2ec   :  { %5737 = vmatprep.subr.bf16.mxu1 %v7483_v3  ;;  %v7586_v3 = vld [vmem:[%s10650_s7 + $0xc40] ss:$28 sps:$4 sm:$0xff]  }
 0x2ed   :  { %5771 = vmatpush1.bf16.msra.mxu0 %v7532_v4 }
 0x2ee   :  { %5772 = vmatprep.subr.bf16.mxu0 %v7540_v5  ;;  %v7594_v5 = vld [vmem:[%s10650_s7 + $0x514] ss:$28 sps:$4 sm:$0xff]  }
 0x2ef   :  { %5738 = vmatpush2.bf16.msra.mxu1 %v7481_v6 }
 0x2f0   :  { %5739 = vmatprep.subr.bf16.mxu1 %v7486_v7 }
 0x2f1   :  { %5773 = vmatpush1.bf16.msra.mxu0 %v7538_v8 }
 0x2f2   :  { %5774 = vmatprep.subr.bf16.mxu0 %v7546_v9  ;;  %v7499_v9 = vld [vmem:[%s10650_s7 + $0x190] ss:$28 sps:$4 sm:$0xff]  }
 0x2f3   :  { %5740 = vmatpush2.bf16.msra.mxu1 %v7484_v10 }
 0x2f4   :  { %5741 = vmatprep.subr.bf16.mxu1 %v7489_v11  ;;  %v7507_v11 = vld [vmem:[%s10650_s7 + $0x15c] ss:$28 sps:$4 sm:$0xff]  }
 0x2f5   :  { %5775 = vmatpush2.bf16.msra.mxu0 %v7544_v12  ;;  %v7505_v12 = vld [vmem:[%s10650_s7 + $0x158] ss:$28 sps:$4 sm:$0xff]  }
 0x2f6   :  { %5776 = vmatprep.subr.bf16.mxu0 %v7552_v13  ;;  %v7513_v13 = vld [vmem:[%s10650_s7 + $0x124] ss:$28 sps:$4 sm:$0xff]  }
 0x2f7   :  { %5742 = vmatpush2.bf16.msra.mxu1 %v7487_v14  ;;  %v7511_v14 = vld [vmem:[%s10650_s7 + $0x120] ss:$28 sps:$4 sm:$0xff]  }
 0x2f8   :  { %5743 = vmatprep.subr.bf16.mxu1 %v7492_v15  ;;  %v7519_v15 = vld [vmem:[%s10650_s7 + $0xec] ss:$28 sps:$4 sm:$0xff]  }
 0x2f9   :  { %5777 = vmatpush2.bf16.msra.mxu0 %v7550_v16  ;;  %v7517_v16 = vld [vmem:[%s10650_s7 + $0xe8] ss:$28 sps:$4 sm:$0xff]  }
 0x2fa   :  { %5778 = vmatprep.subr.bf16.mxu0 %v7558_v17  ;;  %v7525_v17 = vld [vmem:[%s10650_s7 + $0xb4] ss:$28 sps:$4 sm:$0xff]  }
 0x2fb   :  { %5744 = vmatpush2.bf16.msra.mxu1 %v7490_v18  ;;  %v7523_v18 = vld [vmem:[%s10650_s7 + $0xb0] ss:$28 sps:$4 sm:$0xff]  }
 0x2fc   :  { %5745 = vmatprep.subr.bf16.mxu1 %v7495_v21  ;;  %v7531_v21 = vld [vmem:[%s10650_s7 + $0x7c] ss:$28 sps:$4 sm:$0xff]  }
 0x2fd   :  { %5779 = vmatpush2.bf16.msra.mxu0 %v7556_v22  ;;  %v7529_v22 = vld [vmem:[%s10650_s7 + $0x78] ss:$28 sps:$4 sm:$0xff]  }
 0x2fe   :  { %5780 = vmatprep.subr.bf16.mxu0 %v7564_v24  ;;  %v7537_v24 = vld [vmem:[%s10650_s7 + $0x44] ss:$28 sps:$4 sm:$0xff]  }
 0x2ff   :  { %5746 = vmatpush2.bf16.msra.mxu1 %v7493_v25  ;;  %v7535_v25 = vld [vmem:[%s10650_s7 + $0x40] ss:$28 sps:$4 sm:$0xff]  }
 0x300   :  { %5801 = vmatprep.subr.bf16.mxu1 %v7501_v28  ;;  %v7541_v28 = vld [vmem:[%s10650_s7 + $0x8] ss:$28 sps:$4 sm:$0xff]  }
 0x301   :  { %5781 = vmatpush2.bf16.msra.mxu0 %v7562_v32  ;;  %v7549_v32 = vld [vmem:[%s10650_s7 + $0x354] ss:$28 sps:$4 sm:$0xff]  }
 0x302   :  { %v2500_v35 = vpop.f32.mrf.mxu1  ;;  %5782 = vmatprep.subr.bf16.mxu0 %v7570_v33  ;;  %v7555_v33 = vld [vmem:[%s10650_s7 + $0x31c] ss:$28 sps:$4 sm:$0xff]  }
 0x303   :  { %v2543_v45 = vpop.f32.mrf.mxu0 }
 0x304   :  { %v2502_v36 = vpop.f32.mrf.mxu1  ;;  %v2544_v50 = vadd.f32 %v2543_v45, %v2500_v35  ;;  %v2674_v35 = vsub.s32 6, %v8351_v27  ;;  %v7567_v45 = vld [vmem:[%s10650_s7 + $0x2ac] ss:$28 sps:$4 sm:$0xff]  }
 0x305   :  { %v2545_v46 = vpop.f32.mrf.mxu0  ;;  %5783 = vmatpush2.bf16.msra.mxu0 %v7568_v41  ;;  %v7561_v41 = vld [vmem:[%s10650_s7 + $0x2e4] ss:$28 sps:$4 sm:$0xff]  }
 0x306   :  { %v2504_v48 = vpop.f32.mrf.mxu1  ;;  %5784 = vmatprep.subr.bf16.mxu0 %v7576_v43  ;;  %v2546_v55 = vadd.f32 %v2545_v46, %v2502_v36  ;;  %v2678_v43 = vsub.s32 7, %v8351_v27  ;;  %v2675_v36 = vrot.slane %v9183_v20, %v2674_v35 }
 0x307   :  { %v2547_v49 = vpop.f32.mrf.mxu0 }
 0x308   :  { %v2548_v51 = vadd.f32 %v2547_v49, %v2504_v48  ;;  %v2506_v53 = vpop.f32.mrf.mxu1  ;;  %v2679_v46 = vrot.slane %v9183_v20, %v2678_v43  ;;  %v2694_v48 = vpack.c.bf16 %v2675_v36, %v2675_v36  ;;  %v7612_v43 = vld [vmem:[%s10650_s7 + $0x46c] ss:$28 sps:$4 sm:$0xff]  }
 0x309   :  { %v2549_v56 = vpop.f32.mrf.mxu0  ;;  %5785 = vmatpush2.bf16.msra.mxu0 %v7574_v47  ;;  %v7573_v47 = vld [vmem:[%s10650_s7 + $0x274] ss:$28 sps:$4 sm:$0xff]   ;;  %v7610_v36 = vld [vmem:[%s10650_s7 + $0x468] ss:$28 sps:$4 sm:$0xff]  }
 0x30a   :  { %v2642_v58 = vpack.c.bf16 %v2548_v51, %v2544_v50  ;;  %v2550_v60 = vadd.f32 %v2549_v56, %v2506_v53  ;;  %5786 = vmatprep.subr.bf16.mxu0 %v7582_v39  ;;  %v7571_v39 = vld [vmem:[%s10650_s7 + $0x270] ss:$28 sps:$4 sm:$0xff]   ;;  %v2695_v49 = vpack.c.bf16 %v2679_v46, %v2679_v46  ;;  %v7579_v51 = vld [vmem:[%s10650_s7 + $0x23c] ss:$28 sps:$4 sm:$0xff]  }
 0x30b   :  { %v7618_v46 = vld [vmem:[%s10650_s7 + $0x434] ss:$28 sps:$4 sm:$0xff]  }
 0x30c   :  { %v2756_v0 = vadd.bf16 %v2730_v52, %v2642_v58  ;;  %v2643_v2 = vpack.c.bf16 %v2550_v60, %v2546_v55  ;;  %v2739_v52 = vpack.i.b16 %v2694_v48, %v2694_v48  ;;  %v2746_v55 = vpack.i.b16 %v2695_v49, %v2695_v49  ;;  %v7585_v60 = vld [vmem:[%s10650_s7 + $0x204] ss:$28 sps:$4 sm:$0xff]   ;;  %v7616_v48 = vld [vmem:[%s10650_s7 + $0x430] ss:$28 sps:$4 sm:$0xff]   ;;  %v7627_v49 = vld [vmem:[%s10650_s7 + $0x77c] ss:$28 sps:$4 sm:$0xff]  }
 0x30d   :  { %5787 = vmatpush2.bf16.msra.mxu0 %v7580_v54  ;;  %v7577_v54 = vld [vmem:[%s10650_s7 + $0x238] ss:$28 sps:$4 sm:$0xff]  }
 0x30e   :  { %v2757_v4 = vadd.bf16 %v2737_v61, %v2643_v2  ;;  %5788 = vmatprep.subr.bf16.mxu0 %v7588_v62  ;;  %v2764_v6 = vmul.bf16 1045249613, %v2756_v0 }
 0x310   :  { %v2765_v7 = vmul.bf16 1045249613, %v2757_v4  ;;  %v9625_v10 = vmax.bf16 %v2764_v6, %v2756_v0  ;;  %v2744_v0 = vrot.slane %v2739_v52, %v8357_v29  ;;  %v7633_v52 = vld [vmem:[%s10650_s7 + $0x744] ss:$28 sps:$4 sm:$0xff]  }
 0x311   :  { %5789 = vmatpush2.bf16.msra.mxu0 %v7586_v3 }
 0x312   :  { %v9620_v8 = vmax.bf16 %v2765_v7, %v2757_v4  ;;  %5844 = vmatprep.subr.bf16.mxu0 %v7594_v5  ;;  %v2751_v7 = vrot.slane %v2746_v55, %v8357_v29  ;;  %v7639_v55 = vld [vmem:[%s10650_s7 + $0x70c] ss:$28 sps:$4 sm:$0xff]  }
 0x314   :  { %5747 = vmatprep.mubr.bf16.mxu1 %v9620_v8 }
 0x315   :  { %5748 = vmatmul.mubr.bf16.vlgmr.msra.gmra.mxu1 %v9625_v10 }
 0x316   :  { %5802 = vmatpush1.bf16.msra.mxu1 %v7499_v9  ;;  %5833 = vmatprep.mubr.bf16.mxu1 %v9258_v63  ;;  %v7583_v9 = vld [vmem:[%s10650_s7 + $0x200] ss:$28 sps:$4 sm:$0xff]  }
 0x317   :  { %5803 = vmatprep.subr.bf16.mxu1 %v7507_v11  ;;  %v7591_v11 = vld [vmem:[%s10650_s7 + $0x1cc] ss:$28 sps:$4 sm:$0xff]  }
 0x31a   :  { %5804 = vmatpush1.bf16.msra.mxu1 %v7505_v12 }
 0x31b   :  { %5805 = vmatprep.subr.bf16.mxu1 %v7513_v13 }
 0x31e   :  { %5806 = vmatpush1.bf16.msra.mxu1 %v7511_v14 }
 0x31f   :  { %5807 = vmatprep.subr.bf16.mxu1 %v7519_v15  ;;  %v7589_v15 = vld [vmem:[%s10650_s7 + $0x1c8] ss:$28 sps:$4 sm:$0xff]  }
 0x322   :  { %5808 = vmatpush1.bf16.msra.mxu1 %v7517_v16 }
 0x323   :  { %5809 = vmatprep.subr.bf16.mxu1 %v7525_v17  ;;  %v7597_v17 = vld [vmem:[%s10650_s7 + $0x894] ss:$28 sps:$4 sm:$0xff]  }
 0x326   :  { %5810 = vmatpush1.bf16.msra.mxu1 %v7523_v18 }
 0x327   :  { %5811 = vmatprep.subr.bf16.mxu1 %v7531_v21 }
 0x32a   :  { %5812 = vmatpush1.bf16.msra.mxu1 %v7529_v22  ;;  %v7592_v22 = vld [vmem:[%s10650_s7 + $0x510] ss:$28 sps:$4 sm:$0xff]  }
 0x32b   :  { %5813 = vmatprep.subr.bf16.mxu1 %v7537_v24  ;;  %v7595_v24 = vld [vmem:[%s10650_s7 + $0x890] ss:$28 sps:$4 sm:$0xff]  }
 0x32e   :  { %5814 = vmatpush1.bf16.msra.mxu1 %v7535_v25 }
 0x32f   :  { %5815 = vmatprep.subr.bf16.mxu1 %v7543_v26  ;;  %v7600_v26 = vld [vmem:[%s10650_s7 + $0x4dc] ss:$28 sps:$4 sm:$0xff]  }
 0x332   :  { %5816 = vmatpush1.bf16.msra.mxu1 %v7541_v28  ;;  %v7603_v28 = vld [vmem:[%s10650_s7 + $0x85c] ss:$28 sps:$4 sm:$0xff]  }
 0x333   :  { %5817 = vmatprep.subr.bf16.mxu1 %v7549_v32  ;;  %v7598_v32 = vld [vmem:[%s10650_s7 + $0x4d8] ss:$28 sps:$4 sm:$0xff]  }
 0x336   :  { %5818 = vmatpush2.bf16.msra.mxu1 %v7547_v40  ;;  %v7601_v40 = vld [vmem:[%s10650_s7 + $0x858] ss:$28 sps:$4 sm:$0xff]  }
 0x337   :  { %5819 = vmatprep.subr.bf16.mxu1 %v7555_v33  ;;  %v7606_v33 = vld [vmem:[%s10650_s7 + $0x4a4] ss:$28 sps:$4 sm:$0xff]  }
 0x33a   :  { %5820 = vmatpush2.bf16.msra.mxu1 %v7553_v34  ;;  %v7609_v34 = vld [vmem:[%s10650_s7 + $0x824] ss:$28 sps:$4 sm:$0xff]  }
 0x33b   :  { %5821 = vmatprep.subr.bf16.mxu1 %v7561_v41  ;;  %v7604_v41 = vld [vmem:[%s10650_s7 + $0x4a0] ss:$28 sps:$4 sm:$0xff]  }
 0x33e   :  { %5822 = vmatpush2.bf16.msra.mxu1 %v7559_v42  ;;  %v7607_v42 = vld [vmem:[%s10650_s7 + $0x820] ss:$28 sps:$4 sm:$0xff]  }
 0x33f   :  { %5823 = vmatprep.subr.bf16.mxu1 %v7567_v45  ;;  %v7615_v45 = vld [vmem:[%s10650_s7 + $0x7ec] ss:$28 sps:$4 sm:$0xff]  }
 0x342   :  { %5824 = vmatpush2.bf16.msra.mxu1 %v7565_v37  ;;  %v2586_v31 = vpop.f32.mrf.mxu1  ;;  %v7613_v37 = vld [vmem:[%s10650_s7 + $0x7e8] ss:$28 sps:$4 sm:$0xff]  }
 0x343   :  { %v2629_v50 = vpop.f32.mrf.mxu0  ;;  %5825 = vmatprep.subr.bf16.mxu1 %v7573_v47  ;;  %v7621_v47 = vld [vmem:[%s10650_s7 + $0x7b4] ss:$28 sps:$4 sm:$0xff]  }
 0x344   :  { %v2588_v20 = vpop.f32.mrf.mxu1  ;;  %v2630_v61 = vadd.f32 %v2629_v50, %v2586_v31  ;;  %v7619_v31 = vld [vmem:[%s10650_s7 + $0x7b0] ss:$28 sps:$4 sm:$0xff]   ;;  %v7622_v50 = vld [vmem:[%s10650_s7 + $0x3f8] ss:$28 sps:$4 sm:$0xff]  }
 0x345   :  { %v2631_v53 = vpop.f32.mrf.mxu0 }
 0x346   :  { %5826 = vmatpush2.bf16.msra.mxu1 %v7571_v39  ;;  %v2590_v56 = vpop.f32.mrf.mxu1  ;;  %v2632_v4 = vadd.f32 %v2631_v53, %v2588_v20  ;;  %v7624_v39 = vld [vmem:[%s10650_s7 + $0x3fc] ss:$28 sps:$4 sm:$0xff]   ;;  %v7630_v20 = vld [vmem:[%s10650_s7 + $0x3c4] ss:$28 sps:$4 sm:$0xff]  }
 0x347   :  { %v2633_v58 = vpop.f32.mrf.mxu0  ;;  %5827 = vmatprep.subr.bf16.mxu1 %v7579_v51  ;;  %v7625_v51 = vld [vmem:[%s10650_s7 + $0x778] ss:$28 sps:$4 sm:$0xff]   ;;  %v7628_v53 = vld [vmem:[%s10650_s7 + $0x3c0] ss:$28 sps:$4 sm:$0xff]  }
 0x348   :  { %v2634_v62 = vadd.f32 %v2633_v58, %v2590_v56  ;;  %v2592_v2 = vpop.f32.mrf.mxu1  ;;  %v7631_v56 = vld [vmem:[%s10650_s7 + $0x740] ss:$28 sps:$4 sm:$0xff]   ;;  %v7634_v58 = vld [vmem:[%s10650_s7 + $0x388] ss:$28 sps:$4 sm:$0xff]  }
 0x349   :  { %v2635_v3 = vpop.f32.mrf.mxu0 }
 0x34a   :  { %v2644_v5 = vpack.c.bf16 %v2634_v62, %v2630_v61  ;;  %v2636_v6 = vadd.f32 %v2635_v3, %v2592_v2  ;;  %5828 = vmatpush2.bf16.msra.mxu1 %v7577_v54  ;;  %v7636_v54 = vld [vmem:[%s10650_s7 + $0x38c] ss:$28 sps:$4 sm:$0xff]   ;;  %v7642_v61 = vld [vmem:[%s10650_s7 + $0x6d4] ss:$28 sps:$4 sm:$0xff]   ;;  %v7648_v3 = vld [vmem:[%s10650_s7 + $0x69c] ss:$28 sps:$4 sm:$0xff]  }
 0x34b   :  { %5829 = vmatprep.subr.bf16.mxu1 %v7585_v60  ;;  %v7637_v60 = vld [vmem:[%s10650_s7 + $0x708] ss:$28 sps:$4 sm:$0xff]   ;;  %v7645_v62 = vld [vmem:[%s10650_s7 + $0xa54] ss:$28 sps:$4 sm:$0xff]  }
 0x34c   :  { %v2758_v12 = vadd.bf16 %v2744_v0, %v2644_v5  ;;  %v2645_v13 = vpack.c.bf16 %v2636_v6, %v2632_v4  ;;  %v7640_v0 = vld [vmem:[%s10650_s7 + $0x6d0] ss:$28 sps:$4 sm:$0xff]   ;;  %v7651_v4 = vld [vmem:[%s10650_s7 + $0xa1c] ss:$28 sps:$4 sm:$0xff]  }
 0x34d   :  { %v7643_v2 = vld [vmem:[%s10650_s7 + $0xa50] ss:$28 sps:$4 sm:$0xff]   ;;  %v7646_v5 = vld [vmem:[%s10650_s7 + $0x698] ss:$28 sps:$4 sm:$0xff]  }
 0x34e   :  { %v2759_v14 = vadd.bf16 %v2751_v7, %v2645_v13  ;;  %5830 = vmatpush2.bf16.msra.mxu1 %v7583_v9  ;;  %v2766_v16 = vmul.bf16 1045249613, %v2758_v12  ;;  %v7649_v6 = vld [vmem:[%s10650_s7 + $0xa18] ss:$28 sps:$4 sm:$0xff]   ;;  %v7654_v7 = vld [vmem:[%s10650_s7 + $0x664] ss:$28 sps:$4 sm:$0xff]  }
 0x34f   :  { %5831 = vmatprep.subr.bf16.mxu1 %v7591_v11  ;;  %v7657_v9 = vld [vmem:[%s10650_s7 + $0x9e4] ss:$28 sps:$4 sm:$0xff]   ;;  %v7660_v13 = vld [vmem:[%s10650_s7 + $0x62c] ss:$28 sps:$4 sm:$0xff]  }
 0x350   :  { %v2767_v18 = vmul.bf16 1045249613, %v2759_v14  ;;  %v9739_v25 = vmax.bf16 %v2766_v16, %v2758_v12  ;;  %v7652_v11 = vld [vmem:[%s10650_s7 + $0x660] ss:$28 sps:$4 sm:$0xff]   ;;  %v7661_v16 = vld [vmem:[%s10650_s7 + $0x9a8] ss:$28 sps:$4 sm:$0xff]  }
 0x351   :  { %v7655_v12 = vld [vmem:[%s10650_s7 + $0x9e0] ss:$28 sps:$4 sm:$0xff]  }
 0x352   :  { %v9731_v21 = vmax.bf16 %v2767_v18, %v2759_v14  ;;  %5832 = vmatpush2.bf16.msra.mxu1 %v7589_v15  ;;  %v7663_v14 = vld [vmem:[%s10650_s7 + $0x9ac] ss:$28 sps:$4 sm:$0xff]   ;;  %v7669_v18 = vld [vmem:[%s10650_s7 + $0x974] ss:$28 sps:$4 sm:$0xff]  }
 0x353   :  { %5887 = vmatprep.subr.bf16.mxu1 %v7597_v17  ;;  %v7658_v15 = vld [vmem:[%s10650_s7 + $0x628] ss:$28 sps:$4 sm:$0xff]   ;;  %v7666_v17 = vld [vmem:[%s10650_s7 + $0x5f4] ss:$28 sps:$4 sm:$0xff]  }
 0x354   :  { %5790 = vmatprep.mubr.bf16.mxu0 %v9731_v21 }
 0x355   :  { %5834 = vmatmul.mubr.bf16.vlgmr.msra.gmra.mxu1 %v9410_v1  ;;  %5791 = vmatmul.mubr.bf16.vlgmr.msra.gmra.mxu0 %v9739_v25 }
 0x356   :  { %5845 = vmatpush1.bf16.msra.mxu0 %v7592_v22  ;;  %5888 = vmatpush1.bf16.msra.mxu1 %v7595_v24  ;;  %v7664_v22 = vld [vmem:[%s10650_s7 + $0x5f0] ss:$28 sps:$4 sm:$0xff]  }
 0x357   :  { %5919 = vmatprep.mubr.bf16.mxu1 %v9620_v8  ;;  %5876 = vmatprep.mubr.bf16.mxu0 %v9442_v38  ;;  %v7667_v24 = vld [vmem:[%s10650_s7 + $0x970] ss:$28 sps:$4 sm:$0xff]  }
 0x358   :  { %5846 = vmatprep.subr.bf16.mxu0 %v7600_v26  ;;  %5889 = vmatprep.subr.bf16.mxu1 %v7603_v28  ;;  %v7672_v26 = vld [vmem:[%s10650_s7 + $0x5bc] ss:$28 sps:$4 sm:$0xff]  }
 0x359   :  { %v7675_v28 = vld [vmem:[%s10650_s7 + $0x93c] ss:$28 sps:$4 sm:$0xff]  }
 0x35a   :  { %5847 = vmatpush1.bf16.msra.mxu0 %v7598_v32  ;;  %5890 = vmatpush1.bf16.msra.mxu1 %v7601_v40  ;;  %v7670_v32 = vld [vmem:[%s10650_s7 + $0x5b8] ss:$28 sps:$4 sm:$0xff]  }
 0x35b   :  { %5848 = vmatprep.subr.bf16.mxu0 %v7606_v33  ;;  %5891 = vmatprep.subr.bf16.mxu1 %v7609_v34  ;;  %v7673_v40 = vld [vmem:[%s10650_s7 + $0x938] ss:$28 sps:$4 sm:$0xff]   ;;  %v7678_v33 = vld [vmem:[%s10650_s7 + $0x584] ss:$28 sps:$4 sm:$0xff]  }
 0x35c   :  { %v7681_v34 = vld [vmem:[%s10650_s7 + $0x904] ss:$28 sps:$4 sm:$0xff]  }
 0x35e   :  { %5849 = vmatpush1.bf16.msra.mxu0 %v7604_v41  ;;  %5892 = vmatpush1.bf16.msra.mxu1 %v7607_v42  ;;  %v7676_v41 = vld [vmem:[%s10650_s7 + $0x580] ss:$28 sps:$4 sm:$0xff]  }
 0x35f   :  { %5850 = vmatprep.subr.bf16.mxu0 %v7612_v43  ;;  %5893 = vmatprep.subr.bf16.mxu1 %v7615_v45  ;;  %v7679_v42 = vld [vmem:[%s10650_s7 + $0x900] ss:$28 sps:$4 sm:$0xff]   ;;  %v7684_v43 = vld [vmem:[%s10650_s7 + $0x54c] ss:$28 sps:$4 sm:$0xff]  }
 0x360   :  { %v7687_v45 = vld [vmem:[%s10650_s7 + $0x8cc] ss:$28 sps:$4 sm:$0xff]  }
 0x362   :  { %5851 = vmatpush1.bf16.msra.mxu0 %v7610_v36  ;;  %5894 = vmatpush1.bf16.msra.mxu1 %v7613_v37  ;;  %v7682_v36 = vld [vmem:[%s10650_s7 + $0x548] ss:$28 sps:$4 sm:$0xff]  }
 0x363   :  { %5852 = vmatprep.subr.bf16.mxu0 %v7618_v46  ;;  %5895 = vmatprep.subr.bf16.mxu1 %v7621_v47  ;;  %v7685_v37 = vld [vmem:[%s10650_s7 + $0x8c8] ss:$28 sps:$4 sm:$0xff]   ;;  %v7690_v46 = vld [vmem:[%s10650_s7 + $0xc14] ss:$28 sps:$4 sm:$0xff]   ;;  %v7693_v47 = vld [vmem:[%s10650_s7 + $0x19c] ss:$28 sps:$4 sm:$0xff]  }
 0x366   :  { %5853 = vmatpush1.bf16.msra.mxu0 %v7616_v48  ;;  %5896 = vmatpush1.bf16.msra.mxu1 %v7619_v31  ;;  %v7688_v48 = vld [vmem:[%s10650_s7 + $0xc10] ss:$28 sps:$4 sm:$0xff]   ;;  %v7691_v31 = vld [vmem:[%s10650_s7 + $0x198] ss:$28 sps:$4 sm:$0xff]  }
 0x367   :  { %5854 = vmatprep.subr.bf16.mxu0 %v7624_v39  ;;  %5897 = vmatprep.subr.bf16.mxu1 %v7627_v49  ;;  %v7696_v39 = vld [vmem:[%s10650_s7 + $0xbdc] ss:$28 sps:$4 sm:$0xff]   ;;  %v7699_v49 = vld [vmem:[%s10650_s7 + $0x164] ss:$28 sps:$4 sm:$0xff]  }
 0x36a   :  { %5855 = vmatpush1.bf16.msra.mxu0 %v7622_v50  ;;  %5898 = vmatpush1.bf16.msra.mxu1 %v7625_v51  ;;  %v7694_v50 = vld [vmem:[%s10650_s7 + $0xbd8] ss:$28 sps:$4 sm:$0xff]   ;;  %v7697_v51 = vld [vmem:[%s10650_s7 + $0x160] ss:$28 sps:$4 sm:$0xff]  }
 0x36b   :  { %5856 = vmatprep.subr.bf16.mxu0 %v7630_v20  ;;  %5899 = vmatprep.subr.bf16.mxu1 %v7633_v52  ;;  %v7702_v20 = vld [vmem:[%s10650_s7 + $0xba4] ss:$28 sps:$4 sm:$0xff]   ;;  %v7705_v52 = vld [vmem:[%s10650_s7 + $0x12c] ss:$28 sps:$4 sm:$0xff]  }
 0x36e   :  { %5857 = vmatpush1.bf16.msra.mxu0 %v7628_v53  ;;  %5900 = vmatpush1.bf16.msra.mxu1 %v7631_v56  ;;  %v7700_v53 = vld [vmem:[%s10650_s7 + $0xba0] ss:$28 sps:$4 sm:$0xff]   ;;  %v7703_v56 = vld [vmem:[%s10650_s7 + $0x128] ss:$28 sps:$4 sm:$0xff]  }
 0x36f   :  { %5858 = vmatprep.subr.bf16.mxu0 %v7636_v54  ;;  %5901 = vmatprep.subr.bf16.mxu1 %v7639_v55  ;;  %v7708_v54 = vld [vmem:[%s10650_s7 + $0xb6c] ss:$28 sps:$4 sm:$0xff]   ;;  %v7711_v55 = vld [vmem:[%s10650_s7 + $0xf4] ss:$28 sps:$4 sm:$0xff]  }
 0x372   :  { %5859 = vmatpush1.bf16.msra.mxu0 %v7634_v58  ;;  %5902 = vmatpush1.bf16.msra.mxu1 %v7637_v60  ;;  %v7706_v58 = vld [vmem:[%s10650_s7 + $0xb68] ss:$28 sps:$4 sm:$0xff]   ;;  %v7709_v60 = vld [vmem:[%s10650_s7 + $0xf0] ss:$28 sps:$4 sm:$0xff]  }
 0x373   :  { %5860 = vmatprep.subr.bf16.mxu0 %v7642_v61  ;;  %5903 = vmatprep.subr.bf16.mxu1 %v7645_v62  ;;  %v7714_v61 = vld [vmem:[%s10650_s7 + $0xb34] ss:$28 sps:$4 sm:$0xff]   ;;  %v7717_v62 = vld [vmem:[%s10650_s7 + $0xbc] ss:$28 sps:$4 sm:$0xff]  }
 0x376   :  { %5861 = vmatpush2.bf16.msra.mxu0 %v7640_v0  ;;  %5904 = vmatpush2.bf16.msra.mxu1 %v7643_v2  ;;  %v7712_v0 = vld [vmem:[%s10650_s7 + $0xb30] ss:$28 sps:$4 sm:$0xff]   ;;  %v7715_v2 = vld [vmem:[%s10650_s7 + $0xb8] ss:$28 sps:$4 sm:$0xff]  }
 0x377   :  { %5862 = vmatprep.subr.bf16.mxu0 %v7648_v3  ;;  %5905 = vmatprep.subr.bf16.mxu1 %v7651_v4  ;;  %v7720_v3 = vld [vmem:[%s10650_s7 + $0xafc] ss:$28 sps:$4 sm:$0xff]   ;;  %v7723_v4 = vld [vmem:[%s10650_s7 + $0x84] ss:$28 sps:$4 sm:$0xff]  }
 0x37a   :  { %5863 = vmatpush2.bf16.msra.mxu0 %v7646_v5  ;;  %5906 = vmatpush2.bf16.msra.mxu1 %v7649_v6  ;;  %v7718_v5 = vld [vmem:[%s10650_s7 + $0xaf8] ss:$28 sps:$4 sm:$0xff]   ;;  %v7721_v6 = vld [vmem:[%s10650_s7 + $0x80] ss:$28 sps:$4 sm:$0xff]  }
 0x37b   :  { %5864 = vmatprep.subr.bf16.mxu0 %v7654_v7  ;;  %5907 = vmatprep.subr.bf16.mxu1 %v7657_v9  ;;  %v7726_v7 = vld [vmem:[%s10650_s7 + $0xac4] ss:$28 sps:$4 sm:$0xff]   ;;  %v7729_v9 = vld [vmem:[%s10650_s7 + $0x4c] ss:$28 sps:$4 sm:$0xff]  }
 0x37e   :  { %5865 = vmatpush2.bf16.msra.mxu0 %v7652_v11  ;;  %5908 = vmatpush2.bf16.msra.mxu1 %v7655_v12  ;;  %v7724_v11 = vld [vmem:[%s10650_s7 + $0xac0] ss:$28 sps:$4 sm:$0xff]   ;;  %v7727_v12 = vld [vmem:[%s10650_s7 + $0x48] ss:$28 sps:$4 sm:$0xff]  }
 0x37f   :  { %5866 = vmatprep.subr.bf16.mxu0 %v7660_v13  ;;  %5909 = vmatprep.subr.bf16.mxu1 %v7663_v14  ;;  %v7732_v13 = vld [vmem:[%s10650_s7 + $0xa8c] ss:$28 sps:$4 sm:$0xff]   ;;  %v7735_v14 = vld [vmem:[%s10650_s7 + $0x14] ss:$28 sps:$4 sm:$0xff]  }
 0x382   :  { %5867 = vmatpush2.bf16.msra.mxu0 %v7658_v15  ;;  %5910 = vmatpush2.bf16.msra.mxu1 %v7661_v16  ;;  %v7730_v15 = vld [vmem:[%s10650_s7 + $0xa88] ss:$28 sps:$4 sm:$0xff]   ;;  %v7733_v16 = vld [vmem:[%s10650_s7 + $0x10] ss:$28 sps:$4 sm:$0xff]  }
 0x383   :  { %5868 = vmatprep.subr.bf16.mxu0 %v7666_v17  ;;  %5911 = vmatprep.subr.bf16.mxu1 %v7669_v18  ;;  %v7738_v17 = vld [vmem:[%s10650_s7 + $0xdd4] ss:$28 sps:$4 sm:$0xff]   ;;  %v7741_v18 = vld [vmem:[%s10650_s7 + $0x35c] ss:$28 sps:$4 sm:$0xff]  }
 0x386   :  { %5869 = vmatpush2.bf16.msra.mxu0 %v7664_v22  ;;  %5912 = vmatpush2.bf16.msra.mxu1 %v7667_v24  ;;  %v7736_v22 = vld [vmem:[%s10650_s7 + $0xdd0] ss:$28 sps:$4 sm:$0xff]   ;;  %v7739_v24 = vld [vmem:[%s10650_s7 + $0x358] ss:$28 sps:$4 sm:$0xff]  }
 0x387   :  { %5870 = vmatprep.subr.bf16.mxu0 %v7672_v26  ;;  %5913 = vmatprep.subr.bf16.mxu1 %v7675_v28  ;;  %v7744_v26 = vld [vmem:[%s10650_s7 + $0xd9c] ss:$28 sps:$4 sm:$0xff]   ;;  %v7747_v28 = vld [vmem:[%s10650_s7 + $0x324] ss:$28 sps:$4 sm:$0xff]  }
 0x38a   :  { %5871 = vmatpush2.bf16.msra.mxu0 %v7670_v32  ;;  %5914 = vmatpush2.bf16.msra.mxu1 %v7673_v40  ;;  %v7742_v32 = vld [vmem:[%s10650_s7 + $0xd98] ss:$28 sps:$4 sm:$0xff]   ;;  %v7745_v40 = vld [vmem:[%s10650_s7 + $0x320] ss:$28 sps:$4 sm:$0xff]  }
 0x38b   :  { %5872 = vmatprep.subr.bf16.mxu0 %v7678_v33  ;;  %5915 = vmatprep.subr.bf16.mxu1 %v7681_v34  ;;  %v7750_v33 = vld [vmem:[%s10650_s7 + $0xd64] ss:$28 sps:$4 sm:$0xff]   ;;  %v7753_v34 = vld [vmem:[%s10650_s7 + $0x2ec] ss:$28 sps:$4 sm:$0xff]  }
 0x38e   :  { %5873 = vmatpush2.bf16.msra.mxu0 %v7676_v41  ;;  %5916 = vmatpush2.bf16.msra.mxu1 %v7679_v42  ;;  %v7748_v41 = vld [vmem:[%s10650_s7 + $0xd60] ss:$28 sps:$4 sm:$0xff]   ;;  %v7751_v42 = vld [vmem:[%s10650_s7 + $0x2e8] ss:$28 sps:$4 sm:$0xff]  }
 0x38f   :  { %5874 = vmatprep.subr.bf16.mxu0 %v7684_v43  ;;  %5917 = vmatprep.subr.bf16.mxu1 %v7687_v45  ;;  %v7756_v43 = vld [vmem:[%s10650_s7 + $0xd2c] ss:$28 sps:$4 sm:$0xff]   ;;  %v7759_v45 = vld [vmem:[%s10650_s7 + $0x2b4] ss:$28 sps:$4 sm:$0xff]  }
 0x392   :  { %5875 = vmatpush2.bf16.msra.mxu0 %v7682_v36  ;;  %5918 = vmatpush2.bf16.msra.mxu1 %v7685_v37  ;;  %v7754_v36 = vld [vmem:[%s10650_s7 + $0xd28] ss:$28 sps:$4 sm:$0xff]   ;;  %v7757_v37 = vld [vmem:[%s10650_s7 + $0x2b0] ss:$28 sps:$4 sm:$0xff]  }
 0x393   :  { %5930 = vmatprep.subr.bf16.mxu0 %v7690_v46  ;;  %5973 = vmatprep.subr.bf16.mxu1 %v7693_v47  ;;  %v7762_v46 = vld [vmem:[%s10650_s7 + $0xcf4] ss:$28 sps:$4 sm:$0xff]   ;;  %v7765_v47 = vld [vmem:[%s10650_s7 + $0x27c] ss:$28 sps:$4 sm:$0xff]  }
 0x395   :  { %5877 = vmatmul.mubr.bf16.vlgmr.msra.gmra.mxu0 %v9447_v44  ;;  %5920 = vmatmul.mubr.bf16.vlgmr.msra.gmra.mxu1 %v9625_v10 }
 0x396   :  { %5931 = vmatpush1.bf16.msra.mxu0 %v7688_v48  ;;  %5962 = vmatprep.mubr.bf16.mxu0 %v9731_v21  ;;  %v7760_v48 = vld [vmem:[%s10650_s7 + $0xcf0] ss:$28 sps:$4 sm:$0xff]  }
 0x397   :  { %5974 = vmatpush1.bf16.msra.mxu1 %v7691_v31  ;;  %6005 = vmatprep.mubr.bf16.mxu1 %v9258_v63  ;;  %v7763_v31 = vld [vmem:[%s10650_s7 + $0x278] ss:$28 sps:$4 sm:$0xff]  }
 0x398   :  { %5932 = vmatprep.subr.bf16.mxu0 %v7696_v39  ;;  %5975 = vmatprep.subr.bf16.mxu1 %v7699_v49  ;;  %v7768_v39 = vld [vmem:[%s10650_s7 + $0xcbc] ss:$28 sps:$4 sm:$0xff]   ;;  %v7771_v49 = vld [vmem:[%s10650_s7 + $0x244] ss:$28 sps:$4 sm:$0xff]  }
 0x39a   :  { %5933 = vmatpush1.bf16.msra.mxu0 %v7694_v50  ;;  %v7766_v50 = vld [vmem:[%s10650_s7 + $0xcb8] ss:$28 sps:$4 sm:$0xff]  }
 0x39b   :  { %5976 = vmatpush1.bf16.msra.mxu1 %v7697_v51  ;;  %5934 = vmatprep.subr.bf16.mxu0 %v7702_v20  ;;  %v7769_v51 = vld [vmem:[%s10650_s7 + $0x240] ss:$28 sps:$4 sm:$0xff]  }
 0x39c   :  { %5977 = vmatprep.subr.bf16.mxu1 %v7705_v52  ;;  %v7774_v20 = vld [vmem:[%s10650_s7 + $0xc84] ss:$28 sps:$4 sm:$0xff]   ;;  %v7777_v52 = vld [vmem:[%s10650_s7 + $0x20c] ss:$28 sps:$4 sm:$0xff]  }
 0x39e   :  { %5935 = vmatpush1.bf16.msra.mxu0 %v7700_v53  ;;  %v7772_v53 = vld [vmem:[%s10650_s7 + $0xc80] ss:$28 sps:$4 sm:$0xff]  }
 0x39f   :  { %5978 = vmatpush1.bf16.msra.mxu1 %v7703_v56  ;;  %5936 = vmatprep.subr.bf16.mxu0 %v7708_v54  ;;  %v7775_v56 = vld [vmem:[%s10650_s7 + $0x208] ss:$28 sps:$4 sm:$0xff]  }
 0x3a0   :  { %5979 = vmatprep.subr.bf16.mxu1 %v7711_v55  ;;  %v7780_v54 = vld [vmem:[%s10650_s7 + $0xc4c] ss:$28 sps:$4 sm:$0xff]   ;;  %v7783_v55 = vld [vmem:[%s10650_s7 + $0x1d4] ss:$28 sps:$4 sm:$0xff]  }
 0x3a2   :  { %5937 = vmatpush1.bf16.msra.mxu0 %v7706_v58  ;;  %v7778_v58 = vld [vmem:[%s10650_s7 + $0xc48] ss:$28 sps:$4 sm:$0xff]  }
 0x3a3   :  { %5980 = vmatpush1.bf16.msra.mxu1 %v7709_v60  ;;  %5938 = vmatprep.subr.bf16.mxu0 %v7714_v61  ;;  %v7781_v60 = vld [vmem:[%s10650_s7 + $0x1d0] ss:$28 sps:$4 sm:$0xff]   ;;  %v7786_v61 = vld [vmem:[%s10650_s7 + $0x51c] ss:$28 sps:$4 sm:$0xff]  }
 0x3a4   :  { %5981 = vmatprep.subr.bf16.mxu1 %v7717_v62  ;;  %v7789_v62 = vld [vmem:[%s10650_s7 + $0x89c] ss:$28 sps:$4 sm:$0xff]  }
 0x3a6   :  { %5939 = vmatpush1.bf16.msra.mxu0 %v7712_v0  ;;  %v7784_v0 = vld [vmem:[%s10650_s7 + $0x518] ss:$28 sps:$4 sm:$0xff]  }
 0x3a7   :  { %5982 = vmatpush1.bf16.msra.mxu1 %v7715_v2  ;;  %5940 = vmatprep.subr.bf16.mxu0 %v7720_v3  ;;  %v7787_v2 = vld [vmem:[%s10650_s7 + $0x898] ss:$28 sps:$4 sm:$0xff]   ;;  %v7792_v3 = vld [vmem:[%s10650_s7 + $0x4e4] ss:$28 sps:$4 sm:$0xff]  }
 0x3a8   :  { %5983 = vmatprep.subr.bf16.mxu1 %v7723_v4  ;;  %v7795_v4 = vld [vmem:[%s10650_s7 + $0x864] ss:$28 sps:$4 sm:$0xff]  }
 0x3aa   :  { %5941 = vmatpush1.bf16.msra.mxu0 %v7718_v5  ;;  %v7790_v5 = vld [vmem:[%s10650_s7 + $0x4e0] ss:$28 sps:$4 sm:$0xff]  }
 0x3ab   :  { %5984 = vmatpush1.bf16.msra.mxu1 %v7721_v6  ;;  %5942 = vmatprep.subr.bf16.mxu0 %v7726_v7  ;;  %v7793_v6 = vld [vmem:[%s10650_s7 + $0x860] ss:$28 sps:$4 sm:$0xff]   ;;  %v7798_v7 = vld [vmem:[%s10650_s7 + $0x4ac] ss:$28 sps:$4 sm:$0xff]  }
 0x3ac   :  { %5985 = vmatprep.subr.bf16.mxu1 %v7729_v9  ;;  %v7801_v9 = vld [vmem:[%s10650_s7 + $0x82c] ss:$28 sps:$4 sm:$0xff]  }
 0x3ae   :  { %5943 = vmatpush1.bf16.msra.mxu0 %v7724_v11  ;;  %v7796_v11 = vld [vmem:[%s10650_s7 + $0x4a8] ss:$28 sps:$4 sm:$0xff]  }
 0x3af   :  { %5986 = vmatpush1.bf16.msra.mxu1 %v7727_v12  ;;  %5944 = vmatprep.subr.bf16.mxu0 %v7732_v13  ;;  %v7799_v12 = vld [vmem:[%s10650_s7 + $0x828] ss:$28 sps:$4 sm:$0xff]   ;;  %v7804_v13 = vld [vmem:[%s10650_s7 + $0x474] ss:$28 sps:$4 sm:$0xff]  }
 0x3b0   :  { %5987 = vmatprep.subr.bf16.mxu1 %v7735_v14  ;;  %v7807_v14 = vld [vmem:[%s10650_s7 + $0x7f4] ss:$28 sps:$4 sm:$0xff]  }
 0x3b2   :  { %5945 = vmatpush1.bf16.msra.mxu0 %v7730_v15  ;;  %v7802_v15 = vld [vmem:[%s10650_s7 + $0x470] ss:$28 sps:$4 sm:$0xff]  }
 0x3b3   :  { %5988 = vmatpush1.bf16.msra.mxu1 %v7733_v16  ;;  %5946 = vmatprep.subr.bf16.mxu0 %v7738_v17  ;;  %v7805_v16 = vld [vmem:[%s10650_s7 + $0x7f0] ss:$28 sps:$4 sm:$0xff]   ;;  %v7810_v17 = vld [vmem:[%s10650_s7 + $0x43c] ss:$28 sps:$4 sm:$0xff]  }
 0x3b4   :  { %5989 = vmatprep.subr.bf16.mxu1 %v7741_v18  ;;  %v7813_v18 = vld [vmem:[%s10650_s7 + $0x7bc] ss:$28 sps:$4 sm:$0xff]  }
 0x3b6   :  { %5947 = vmatpush2.bf16.msra.mxu0 %v7736_v22  ;;  %v7808_v22 = vld [vmem:[%s10650_s7 + $0x438] ss:$28 sps:$4 sm:$0xff]  }
 0x3b7   :  { %5990 = vmatpush2.bf16.msra.mxu1 %v7739_v24  ;;  %5948 = vmatprep.subr.bf16.mxu0 %v7744_v26  ;;  %v7811_v24 = vld [vmem:[%s10650_s7 + $0x7b8] ss:$28 sps:$4 sm:$0xff]   ;;  %v7816_v26 = vld [vmem:[%s10650_s7 + $0x404] ss:$28 sps:$4 sm:$0xff]  }
 0x3b8   :  { %5991 = vmatprep.subr.bf16.mxu1 %v7747_v28  ;;  %v7819_v28 = vld [vmem:[%s10650_s7 + $0x784] ss:$28 sps:$4 sm:$0xff]  }
 0x3ba   :  { %5949 = vmatpush2.bf16.msra.mxu0 %v7742_v32  ;;  %v7814_v32 = vld [vmem:[%s10650_s7 + $0x400] ss:$28 sps:$4 sm:$0xff]  }
 0x3bb   :  { %5992 = vmatpush2.bf16.msra.mxu1 %v7745_v40  ;;  %5950 = vmatprep.subr.bf16.mxu0 %v7750_v33  ;;  %v7817_v40 = vld [vmem:[%s10650_s7 + $0x780] ss:$28 sps:$4 sm:$0xff]   ;;  %v7822_v33 = vld [vmem:[%s10650_s7 + $0x3cc] ss:$28 sps:$4 sm:$0xff]  }
 0x3bc   :  { %5993 = vmatprep.subr.bf16.mxu1 %v7753_v34  ;;  %v7825_v34 = vld [vmem:[%s10650_s7 + $0x74c] ss:$28 sps:$4 sm:$0xff]  }
 0x3be   :  { %5951 = vmatpush2.bf16.msra.mxu0 %v7748_v41  ;;  %v7820_v41 = vld [vmem:[%s10650_s7 + $0x3c8] ss:$28 sps:$4 sm:$0xff]  }
 0x3bf   :  { %5994 = vmatpush2.bf16.msra.mxu1 %v7751_v42  ;;  %5952 = vmatprep.subr.bf16.mxu0 %v7756_v43  ;;  %v7823_v42 = vld [vmem:[%s10650_s7 + $0x748] ss:$28 sps:$4 sm:$0xff]   ;;  %v7828_v43 = vld [vmem:[%s10650_s7 + $0x394] ss:$28 sps:$4 sm:$0xff]  }
 0x3c0   :  { %5995 = vmatprep.subr.bf16.mxu1 %v7759_v45  ;;  %v7831_v45 = vld [vmem:[%s10650_s7 + $0x714] ss:$28 sps:$4 sm:$0xff]  }
 0x3c2   :  { %5953 = vmatpush2.bf16.msra.mxu0 %v7754_v36  ;;  %v7826_v36 = vld [vmem:[%s10650_s7 + $0x390] ss:$28 sps:$4 sm:$0xff]  }
 0x3c3   :  { %5996 = vmatpush2.bf16.msra.mxu1 %v7757_v37  ;;  %5954 = vmatprep.subr.bf16.mxu0 %v7762_v46  ;;  %v7829_v37 = vld [vmem:[%s10650_s7 + $0x710] ss:$28 sps:$4 sm:$0xff]   ;;  %v7834_v46 = vld [vmem:[%s10650_s7 + $0x6dc] ss:$28 sps:$4 sm:$0xff]  }
 0x3c4   :  { %5997 = vmatprep.subr.bf16.mxu1 %v7765_v47  ;;  %v7837_v47 = vld [vmem:[%s10650_s7 + $0xa5c] ss:$28 sps:$4 sm:$0xff]  }
 0x3c6   :  { %5955 = vmatpush2.bf16.msra.mxu0 %v7760_v48  ;;  %v7832_v48 = vld [vmem:[%s10650_s7 + $0x6d8] ss:$28 sps:$4 sm:$0xff]  }
 0x3c7   :  { %5998 = vmatpush2.bf16.msra.mxu1 %v7763_v31  ;;  %5956 = vmatprep.subr.bf16.mxu0 %v7768_v39  ;;  %v7835_v31 = vld [vmem:[%s10650_s7 + $0xa58] ss:$28 sps:$4 sm:$0xff]   ;;  %v7840_v39 = vld [vmem:[%s10650_s7 + $0x6a4] ss:$28 sps:$4 sm:$0xff]  }
 0x3c8   :  { %5999 = vmatprep.subr.bf16.mxu1 %v7771_v49  ;;  %v7843_v49 = vld [vmem:[%s10650_s7 + $0xa24] ss:$28 sps:$4 sm:$0xff]  }
 0x3ca   :  { %5957 = vmatpush2.bf16.msra.mxu0 %v7766_v50  ;;  %v7838_v50 = vld [vmem:[%s10650_s7 + $0x6a0] ss:$28 sps:$4 sm:$0xff]  }
 0x3cb   :  { %6000 = vmatpush2.bf16.msra.mxu1 %v7769_v51  ;;  %5958 = vmatprep.subr.bf16.mxu0 %v7774_v20  ;;  %v7841_v51 = vld [vmem:[%s10650_s7 + $0xa20] ss:$28 sps:$4 sm:$0xff]   ;;  %v7846_v20 = vld [vmem:[%s10650_s7 + $0x66c] ss:$28 sps:$4 sm:$0xff]  }
 0x3cc   :  { %6001 = vmatprep.subr.bf16.mxu1 %v7777_v52  ;;  %v7849_v52 = vld [vmem:[%s10650_s7 + $0x9ec] ss:$28 sps:$4 sm:$0xff]  }
 0x3ce   :  { %5959 = vmatpush2.bf16.msra.mxu0 %v7772_v53  ;;  %v7844_v53 = vld [vmem:[%s10650_s7 + $0x668] ss:$28 sps:$4 sm:$0xff]  }
 0x3cf   :  { %6002 = vmatpush2.bf16.msra.mxu1 %v7775_v56  ;;  %5960 = vmatprep.subr.bf16.mxu0 %v7780_v54  ;;  %v7847_v56 = vld [vmem:[%s10650_s7 + $0x9e8] ss:$28 sps:$4 sm:$0xff]   ;;  %v7852_v54 = vld [vmem:[%s10650_s7 + $0x634] ss:$28 sps:$4 sm:$0xff]  }
 0x3d0   :  { %6003 = vmatprep.subr.bf16.mxu1 %v7783_v55  ;;  %v7855_v55 = vld [vmem:[%s10650_s7 + $0x9b4] ss:$28 sps:$4 sm:$0xff]  }
 0x3d2   :  { %5961 = vmatpush2.bf16.msra.mxu0 %v7778_v58  ;;  %v5663_v58 = vpop.f32.mrf.mxu1 }
 0x3d3   :  { %6004 = vmatpush2.bf16.msra.mxu1 %v7781_v60  ;;  %6016 = vmatprep.subr.bf16.mxu0 %v7786_v61  ;;  %v7850_v60 = vld [vmem:[%s10650_s7 + $0x630] ss:$28 sps:$4 sm:$0xff]  }
 0x3d4   :  { %6059 = vmatprep.subr.bf16.mxu1 %v7789_v62  ;;  %v7853_v61 = vld [vmem:[%s10650_s7 + $0x9b0] ss:$28 sps:$4 sm:$0xff]   ;;  %v7858_v62 = vld [vmem:[%s10650_s7 + $0x5fc] ss:$28 sps:$4 sm:$0xff]  }
 0x3d5   :  { %5963 = vmatmul.mubr.bf16.vlgmr.msra.gmra.mxu0 %v9739_v25 }
 0x3d6   :  { %6006 = vmatmul.mubr.bf16.vlgmr.msra.gmra.mxu1 %v9410_v1  ;;  %6017 = vmatpush1.bf16.msra.mxu0 %v7784_v0  ;;  %v7861_v0 = vld [vmem:[%s10650_s7 + $0x97c] ss:$28 sps:$4 sm:$0xff]  }
 0x3d7   :  { %6048 = vmatprep.mubr.bf16.mxu0 %v9442_v38  ;;  %6060 = vmatpush1.bf16.msra.mxu1 %v7787_v2  ;;  %v5665_v2 = vpop.f32.mrf.mxu1 }
 0x3d8   :  { %6091 = vmatprep.mubr.bf16.mxu1 %v9620_v8  ;;  %6018 = vmatprep.subr.bf16.mxu0 %v7792_v3  ;;  %v7856_v3 = vld [vmem:[%s10650_s7 + $0x5f8] ss:$28 sps:$4 sm:$0xff]  }
 0x3d9   :  { %6061 = vmatprep.subr.bf16.mxu1 %v7795_v4  ;;  %v7859_v4 = vld [vmem:[%s10650_s7 + $0x978] ss:$28 sps:$4 sm:$0xff]  }
 0x3da   :  { %6019 = vmatpush1.bf16.msra.mxu0 %v7790_v5  ;;  %v7864_v5 = vld [vmem:[%s10650_s7 + $0x5c4] ss:$28 sps:$4 sm:$0xff]  }
 0x3db   :  { %6062 = vmatpush1.bf16.msra.mxu1 %v7793_v6  ;;  %6020 = vmatprep.subr.bf16.mxu0 %v7798_v7  ;;  %v7867_v6 = vld [vmem:[%s10650_s7 + $0x944] ss:$28 sps:$4 sm:$0xff]   ;;  %v5667_v7 = vpop.f32.mrf.mxu1 }
 0x3dc   :  { %6063 = vmatprep.subr.bf16.mxu1 %v7801_v9  ;;  %v7862_v9 = vld [vmem:[%s10650_s7 + $0x5c0] ss:$28 sps:$4 sm:$0xff]  }
 0x3de   :  { %6021 = vmatpush1.bf16.msra.mxu0 %v7796_v11  ;;  %v5706_v11 = vpop.f32.mrf.mxu0 }
 0x3df   :  { %6064 = vmatpush1.bf16.msra.mxu1 %v7799_v12  ;;  %6022 = vmatprep.subr.bf16.mxu0 %v7804_v13  ;;  %v7865_v12 = vld [vmem:[%s10650_s7 + $0x940] ss:$28 sps:$4 sm:$0xff]   ;;  %v7870_v13 = vld [vmem:[%s10650_s7 + $0x58c] ss:$28 sps:$4 sm:$0xff]  }
 0x3e0   :  { %6065 = vmatprep.subr.bf16.mxu1 %v7807_v14  ;;  %v7873_v14 = vld [vmem:[%s10650_s7 + $0x90c] ss:$28 sps:$4 sm:$0xff]  }
 0x3e2   :  { %6023 = vmatpush1.bf16.msra.mxu0 %v7802_v15  ;;  %v10303_v15 = vld [vmem:[%s10651_s8] sm:$0x7f] }
 0x3e3   :  { %6066 = vmatpush1.bf16.msra.mxu1 %v7805_v16  ;;  %6024 = vmatprep.subr.bf16.mxu0 %v7810_v17  ;;  %v5669_v16 = vpop.f32.mrf.mxu1  ;;  %v7868_v17 = vld [vmem:[%s10650_s7 + $0x588] ss:$28 sps:$4 sm:$0xff]  }
 0x3e4   :  { %6067 = vmatprep.subr.bf16.mxu1 %v7813_v18  ;;  %v5708_v18 = vpop.f32.mrf.mxu0 }
 0x3e6   :  { %6025 = vmatpush1.bf16.msra.mxu0 %v7808_v22  ;;  %v5749_v22 = vpop.f32.mrf.mxu1 }
 0x3e7   :  { %6068 = vmatpush1.bf16.msra.mxu1 %v7811_v24  ;;  %6026 = vmatprep.subr.bf16.mxu0 %v7816_v26  ;;  %v7871_v24 = vld [vmem:[%s10650_s7 + $0x908] ss:$28 sps:$4 sm:$0xff]   ;;  %v7876_v26 = vld [vmem:[%s10650_s7 + $0x554] ss:$28 sps:$4 sm:$0xff]  }
 0x3e8   :  { %6069 = vmatprep.subr.bf16.mxu1 %v7819_v28  ;;  %v3293_v28 = vrot.slane %v10303_v15, %v8357_v29  ;;  %v7877_v29 = vld [vmem:[%s10650_s7 + $0x8d0] ss:$28 sps:$4 sm:$0xff]  }
 0x3ea   :  { %6027 = vmatpush1.bf16.msra.mxu0 %v7814_v32  ;;  %v7879_v32 = vld [vmem:[%s10650_s7 + $0x8d4] ss:$28 sps:$4 sm:$0xff]  }
 0x3eb   :  { %6070 = vmatpush1.bf16.msra.mxu1 %v7817_v40  ;;  %6028 = vmatprep.subr.bf16.mxu0 %v7822_v33  ;;  %v3297_v40 = vrot.slane %v10303_v15, %v8360_v30  ;;  %v7874_v33 = vld [vmem:[%s10650_s7 + $0x550] ss:$28 sps:$4 sm:$0xff]   ;;  %v7883_v30 = vld [vmem:[%s10650_s7 + $0x360] ss:$28 sps:$4 sm:$0xff]  }
 0x3ec   :  { %6071 = vmatprep.subr.bf16.mxu1 %v7825_v34  ;;  %v5710_v34 = vpop.f32.mrf.mxu0 }
 0x3ee   :  { %6029 = vmatpush1.bf16.msra.mxu0 %v7820_v41  ;;  %v5751_v41 = vpop.f32.mrf.mxu1 }
 0x3ef   :  { %6072 = vmatpush1.bf16.msra.mxu1 %v7823_v42  ;;  %6030 = vmatprep.subr.bf16.mxu0 %v7828_v43  ;;  %v7882_v42 = vld [vmem:[%s10650_s7 + $0xc1c] ss:$28 sps:$4 sm:$0xff]   ;;  %v5664_v43 = vadd.f32 %v5663_v58, %v3293_v28 }
 0x3f0   :  { %6073 = vmatprep.subr.bf16.mxu1 %v7831_v45  ;;  %v5666_v45 = vadd.f32 %v5665_v2, %v3297_v40 }
 0x3f2   :  { %6031 = vmatpush1.bf16.msra.mxu0 %v7826_v36  ;;  %v5707_v36 = vadd.f32 %v5706_v11, %v5664_v43 }
 0x3f3   :  { %6074 = vmatpush1.bf16.msra.mxu1 %v7829_v37  ;;  %6032 = vmatprep.subr.bf16.mxu0 %v7834_v46  ;;  %v7880_v37 = vld [vmem:[%s10650_s7 + $0xc18] ss:$28 sps:$4 sm:$0xff]   ;;  %v5712_v46 = vpop.f32.mrf.mxu0 }
 0x3f4   :  { %6075 = vmatprep.subr.bf16.mxu1 %v7837_v47  ;;  %v5753_v47 = vpop.f32.mrf.mxu1 }
 0x3f6   :  { %6033 = vmatpush2.bf16.msra.mxu0 %v7832_v48  ;;  %v7884_v48 = vld [vmem:[%s10650_s7 + $0x1a0] ss:$28 sps:$4 sm:$0xff]   ;;  %v5755_v58 = vpop.f32.mrf.mxu1 }
 0x3f7   :  { %6076 = vmatpush2.bf16.msra.mxu1 %v7835_v31  ;;  %6034 = vmatprep.subr.bf16.mxu0 %v7840_v39  ;;  %v5668_v31 = vadd.f32 %v5667_v7, %v3293_v28  ;;  %v5709_v39 = vadd.f32 %v5708_v18, %v5666_v45  ;;  %v7902_v18 = vld [vmem:[%s10650_s7 + $0xb3c] ss:$28 sps:$4 sm:$0xff]   ;;  %v7907_v28 = vld [vmem:[%s10650_s7 + $0xb04] ss:$28 sps:$4 sm:$0xff]  }
 0x3f8   :  { %6077 = vmatprep.subr.bf16.mxu1 %v7843_v49  ;;  %v5750_v49 = vadd.f32 %v5749_v22, %v5707_v36  ;;  %v7903_v22 = vld [vmem:[%s10650_s7 + $0x280] ss:$28 sps:$4 sm:$0xff]   ;;  %v7914_v36 = vld [vmem:[%s10650_s7 + $0x50] ss:$28 sps:$4 sm:$0xff]  }
 0x3fa   :  { %6035 = vmatpush2.bf16.msra.mxu0 %v7838_v50  ;;  %v7887_v50 = vld [vmem:[%s10650_s7 + $0xbe4] ss:$28 sps:$4 sm:$0xff]  }
 0x3fb   :  { %6078 = vmatpush2.bf16.msra.mxu1 %v7841_v51  ;;  %6036 = vmatprep.subr.bf16.mxu0 %v7846_v20  ;;  %v5670_v51 = vadd.f32 %v5669_v16, %v3297_v40  ;;  %v7895_v16 = vld [vmem:[%s10650_s7 + $0xb70] ss:$28 sps:$4 sm:$0xff]  }
 0x3fc   :  { %6079 = vmatprep.subr.bf16.mxu1 %v7849_v52  ;;  %v7888_v52 = vld [vmem:[%s10650_s7 + $0x328] ss:$28 sps:$4 sm:$0xff]  }
 0x3fe   :  { %6037 = vmatpush2.bf16.msra.mxu0 %v7844_v53  ;;  %v5711_v53 = vadd.f32 %v5710_v34, %v5668_v31  ;;  %v7922_v31 = vld [vmem:[%s10650_s7 + $0xddc] ss:$28 sps:$4 sm:$0xff]  }
 0x3ff   :  { %6080 = vmatpush2.bf16.msra.mxu1 %v7847_v56  ;;  %6038 = vmatprep.subr.bf16.mxu0 %v7852_v54  ;;  %v5752_v56 = vadd.f32 %v5751_v41, %v5709_v39  ;;  %v7909_v41 = vld [vmem:[%s10650_s7 + $0x88] ss:$28 sps:$4 sm:$0xff]   ;;  %v7923_v39 = vld [vmem:[%s10650_s7 + $0xa60] ss:$28 sps:$4 sm:$0xff]  }
 0x400   :  { %6081 = vmatprep.subr.bf16.mxu1 %v7855_v55  ;;  %v7885_v55 = vld [vmem:[%s10650_s7 + $0xbe0] ss:$28 sps:$4 sm:$0xff]   ;;  %v5754_v2 = vadd.f32 %v5753_v47, %v5711_v53  ;;  %v7915_v47 = vld [vmem:[%s10650_s7 + $0xa90] ss:$28 sps:$4 sm:$0xff]   ;;  %v7929_v53 = vld [vmem:[%s10650_s7 + $0x868] ss:$28 sps:$4 sm:$0xff]  }
 0x402   :  { %6039 = vmatpush2.bf16.msra.mxu0 %v7850_v60 }
 0x403   :  { %6082 = vmatpush2.bf16.msra.mxu1 %v7853_v61  ;;  %6040 = vmatprep.subr.bf16.mxu0 %v7858_v62  ;;  %v7889_v61 = vld [vmem:[%s10650_s7 + $0x168] ss:$28 sps:$4 sm:$0xff]  }
 0x404   :  { %6083 = vmatprep.subr.bf16.mxu1 %v7861_v0  ;;  %v7892_v62 = vld [vmem:[%s10650_s7 + $0xbac] ss:$28 sps:$4 sm:$0xff]   ;;  %v5713_v0 = vadd.f32 %v5712_v46, %v5670_v51  ;;  %v7918_v46 = vld [vmem:[%s10650_s7 + $0x1d8] ss:$28 sps:$4 sm:$0xff]   ;;  %v7927_v51 = vld [vmem:[%s10650_s7 + $0xda4] ss:$28 sps:$4 sm:$0xff]  }
 0x406   :  { %6041 = vmatpush2.bf16.msra.mxu0 %v7856_v3 }
 0x407   :  { %6084 = vmatpush2.bf16.msra.mxu1 %v7859_v4  ;;  %6042 = vmatprep.subr.bf16.mxu0 %v7864_v5  ;;  %v7893_v4 = vld [vmem:[%s10650_s7 + $0x2f0] ss:$28 sps:$4 sm:$0xff]  }
 0x408   :  { %6085 = vmatprep.subr.bf16.mxu1 %v7867_v6  ;;  %v5756_v6 = vadd.f32 %v5755_v58, %v5713_v0  ;;  %v7938_v58 = vld [vmem:[%s10650_s7 + $0x9b8] ss:$28 sps:$4 sm:$0xff]   ;;  %v7943_v0 = vld [vmem:[%s10650_s7 + $0x980] ss:$28 sps:$4 sm:$0xff]  }
 0x40a   :  { %6043 = vmatpush2.bf16.msra.mxu0 %v7862_v9  ;;  %v7890_v9 = vld [vmem:[%s10650_s7 + $0xba8] ss:$28 sps:$4 sm:$0xff]  }
 0x40b   :  { %6086 = vmatpush2.bf16.msra.mxu1 %v7865_v12  ;;  %6044 = vmatprep.subr.bf16.mxu0 %v7870_v13  ;;  %v7897_v12 = vld [vmem:[%s10650_s7 + $0xb74] ss:$28 sps:$4 sm:$0xff]  }
 0x40c   :  { %6087 = vmatprep.subr.bf16.mxu1 %v7873_v14  ;;  %v7898_v14 = vld [vmem:[%s10650_s7 + $0x2b8] ss:$28 sps:$4 sm:$0xff]  }
 0x40e   :  { %6045 = vmatpush2.bf16.msra.mxu0 %v7868_v17  ;;  %v7899_v17 = vld [vmem:[%s10650_s7 + $0xf8] ss:$28 sps:$4 sm:$0xff]  }
 0x40f   :  { %6088 = vmatpush2.bf16.msra.mxu1 %v7871_v24  ;;  %6046 = vmatprep.subr.bf16.mxu0 %v7876_v26  ;;  %v7900_v24 = vld [vmem:[%s10650_s7 + $0xb38] ss:$28 sps:$4 sm:$0xff]   ;;  %v7904_v26 = vld [vmem:[%s10650_s7 + $0xc0] ss:$28 sps:$4 sm:$0xff]  }
 0x410   :  { %6089 = vmatprep.subr.bf16.mxu1 %v7879_v32  ;;  %v7908_v32 = vld [vmem:[%s10650_s7 + $0x248] ss:$28 sps:$4 sm:$0xff]  }
 0x412   :  { %6047 = vmatpush2.bf16.msra.mxu0 %v7874_v33  ;;  %v7905_v33 = vld [vmem:[%s10650_s7 + $0xb00] ss:$28 sps:$4 sm:$0xff]  }
 0x413   :  { %6090 = vmatpush2.bf16.msra.mxu1 %v7877_v29  ;;  %6102 = vmatprep.subr.bf16.mxu0 %v7882_v42  ;;  %v7912_v29 = vld [vmem:[%s10650_s7 + $0xacc] ss:$28 sps:$4 sm:$0xff]  }
 0x414   :  { %7139 = vmatprep.subr.bf16.mxu1 %v7883_v30  ;;  %v7913_v42 = vld [vmem:[%s10650_s7 + $0x210] ss:$28 sps:$4 sm:$0xff]   ;;  %v7910_v30 = vld [vmem:[%s10650_s7 + $0xac8] ss:$28 sps:$4 sm:$0xff]  }
 0x415   :  { %6049 = vmatmul.mubr.bf16.vlgmr.msra.gmra.mxu0 %v9447_v44  ;;  %v5792_v20 = vpop.f32.mrf.mxu0 }
 0x416   :  { %6092 = vmatmul.mubr.bf16.vlgmr.msra.gmra.mxu1 %v9625_v10  ;;  %v5793_v54 = vadd.f32 %v5792_v20, %v5750_v49  ;;  %6103 = vmatpush1.bf16.msra.mxu0 %v7880_v37  ;;  %v7917_v37 = vld [vmem:[%s10650_s7 + $0xa94] ss:$28 sps:$4 sm:$0xff]   ;;  %v7928_v20 = vld [vmem:[%s10650_s7 + $0xa28] ss:$28 sps:$4 sm:$0xff]  }
 0x417   :  { %6134 = vmatprep.mubr.bf16.mxu0 %v9731_v21  ;;  %7140 = vmatpush3.bf16.msra.mxu1 %v7884_v48  ;;  %v5794_v60 = vpop.f32.mrf.mxu0  ;;  %v7919_v48 = vld [vmem:[%s10650_s7 + $0x18] ss:$28 sps:$4 sm:$0xff]  }
 0x418   :  { %7992 = vtanh.f32 %v5793_v54  ;;  %6177 = vmatprep.mubr.bf16.mxu1 %v9258_v63  ;;  %v5795_v3 = vadd.f32 %v5794_v60, %v5752_v56  ;;  %6104 = vmatprep.subr.bf16.mxu0 %v7887_v50  ;;  %v7894_v63 = vld [vmem:[%s10650_s7 + $0x130] ss:$28 sps:$4 sm:$0xff]   ;;  %v7920_v49 = vld [vmem:[%s10650_s7 + $0xdd8] ss:$28 sps:$4 sm:$0xff]   ;;  %v7924_v50 = vld [vmem:[%s10650_s7 + $0x8a0] ss:$28 sps:$4 sm:$0xff]  }
 0x419   :  { %7141 = vmatprep.subr.bf16.mxu1 %v7888_v52  ;;  %v5796_v5 = vpop.f32.mrf.mxu0  ;;  %v7925_v52 = vld [vmem:[%s10650_s7 + $0xda0] ss:$28 sps:$4 sm:$0xff]   ;;  %v7932_v56 = vld [vmem:[%s10650_s7 + $0xd6c] ss:$28 sps:$4 sm:$0xff]  }
 0x41a   :  { %7994 = vtanh.f32 %v5795_v3  ;;  %v5797_v7 = vadd.f32 %v5796_v5, %v5754_v2  ;;  %6105 = vmatpush1.bf16.msra.mxu0 %v7885_v55  ;;  %v7930_v54 = vld [vmem:[%s10650_s7 + $0xd68] ss:$28 sps:$4 sm:$0xff]   ;;  %v7937_v55 = vld [vmem:[%s10650_s7 + $0xd34] ss:$28 sps:$4 sm:$0xff]   ;;  %v7944_v3 = vld [vmem:[%s10650_s7 + $0x7c0] ss:$28 sps:$4 sm:$0xff]  }
 0x41b   :  { %7142 = vmatpush3.bf16.msra.mxu1 %v7889_v61  ;;  %v5798_v11 = vpop.f32.mrf.mxu0  ;;  %6106 = vmatprep.subr.bf16.mxu0 %v7892_v62  ;;  %v7935_v60 = vld [vmem:[%s10650_s7 + $0xd30] ss:$28 sps:$4 sm:$0xff]   ;;  %v7939_v61 = vld [vmem:[%s10650_s7 + $0x7f8] ss:$28 sps:$4 sm:$0xff]   ;;  %v7948_v5 = vld [vmem:[%s10650_s7 + $0x948] ss:$28 sps:$4 sm:$0xff]  }
 0x41c   :  { %7996 = vtanh.f32 %v5797_v7  ;;  %v5799_v13 = vadd.f32 %v5798_v11, %v5756_v6  ;;  %7143 = vmatprep.subr.bf16.mxu1 %v7893_v4  ;;  %v7942_v62 = vld [vmem:[%s10650_s7 + $0xcfc] ss:$28 sps:$4 sm:$0xff]   ;;  %v7947_v4 = vld [vmem:[%s10650_s7 + $0xcc4] ss:$28 sps:$4 sm:$0xff]   ;;  %v7953_v11 = vld [vmem:[%s10650_s7 + $0x910] ss:$28 sps:$4 sm:$0xff]  }
 0x41d   :  { %v7940_v2 = vld [vmem:[%s10650_s7 + $0xcf8] ss:$28 sps:$4 sm:$0xff]   ;;  %v7945_v6 = vld [vmem:[%s10650_s7 + $0xcc0] ss:$28 sps:$4 sm:$0xff]   ;;  %v7949_v7 = vld [vmem:[%s10650_s7 + $0x788] ss:$28 sps:$4 sm:$0xff]  }
 0x41e   :  { %7998 = vtanh.f32 %v5799_v13  ;;  %6107 = vmatpush1.bf16.msra.mxu0 %v7890_v9  ;;  %v7952_v9 = vld [vmem:[%s10650_s7 + $0xc8c] ss:$28 sps:$4 sm:$0xff]   ;;  %v7957_v13 = vld [vmem:[%s10650_s7 + $0xc54] ss:$28 sps:$4 sm:$0xff]  }
 0x41f   :  { %7144 = vmatpush3.bf16.msra.mxu1 %v7894_v63  ;;  %6108 = vmatprep.subr.bf16.mxu0 %v7897_v12  ;;  %v7950_v63 = vld [vmem:[%s10650_s7 + $0xc88] ss:$28 sps:$4 sm:$0xff]   ;;  %v7954_v12 = vld [vmem:[%s10650_s7 + $0x750] ss:$28 sps:$4 sm:$0xff]  }
 0x420   :  { %7145 = vmatprep.subr.bf16.mxu1 %v7898_v14  ;;  %v7958_v14 = vld [vmem:[%s10650_s7 + $0x8d8] ss:$28 sps:$4 sm:$0xff]  }
 0x422   :  { %6109 = vmatpush1.bf16.msra.mxu0 %v7895_v16  ;;  %v7955_v16 = vld [vmem:[%s10650_s7 + $0xc50] ss:$28 sps:$4 sm:$0xff]  }
 0x423   :  { %7146 = vmatpush3.bf16.msra.mxu1 %v7899_v17  ;;  %6110 = vmatprep.subr.bf16.mxu0 %v7902_v18  ;;  %v7959_v17 = vld [vmem:[%s10650_s7 + $0x718] ss:$28 sps:$4 sm:$0xff]   ;;  %v7960_v18 = vld [vmem:[%s10650_s7 + $0x6e0] ss:$28 sps:$4 sm:$0xff]  }
 0x424   :  { %7147 = vmatprep.subr.bf16.mxu1 %v7903_v22  ;;  %v7961_v22 = vld [vmem:[%s10650_s7 + $0x520] ss:$28 sps:$4 sm:$0xff]  }
 0x425   :  { %v7993_v40 = vpop.eup %7992 }
 0x426   :  { %6323 = vst [vmem:[#allocation2] sm:$0xff] %v7993_v40  ;;  %6111 = vmatpush1.bf16.msra.mxu0 %v7900_v24  ;;  %v7962_v24 = vld [vmem:[%s10650_s7 + $0x6a8] ss:$28 sps:$4 sm:$0xff]   ;;  %v7968_v40 = vld [vmem:[%s10650_s7 + $0x600] ss:$28 sps:$4 sm:$0xff]  }
 0x427   :  { %v7995_v34 = vpop.eup %7994  ;;  %7148 = vmatpush3.bf16.msra.mxu1 %v7904_v26  ;;  %6112 = vmatprep.subr.bf16.mxu0 %v7907_v28  ;;  %v7963_v26 = vld [vmem:[%s10650_s7 + $0x4e8] ss:$28 sps:$4 sm:$0xff]   ;;  %v7964_v28 = vld [vmem:[%s10650_s7 + $0x670] ss:$28 sps:$4 sm:$0xff]  }
 0x428   :  { %6324 = vst [vmem:[#allocation2 + $0x8] sm:$0xff] %v7995_v34  ;;  %7149 = vmatprep.subr.bf16.mxu1 %v7908_v32  ;;  %v7965_v32 = vld [vmem:[%s10650_s7 + $0x4b0] ss:$28 sps:$4 sm:$0xff]   ;;  %v7970_v34 = vld [vmem:[%s10650_s7 + $0x5c8] ss:$28 sps:$4 sm:$0xff]  }
 0x429   :  { %v7997_v43 = vpop.eup %7996 }
 0x42a   :  { %6331 = vst [vmem:[#allocation2 + $0x38] sm:$0xff] %v7997_v43  ;;  %6113 = vmatpush1.bf16.msra.mxu0 %v7905_v33  ;;  %v7969_v33 = vld [vmem:[%s10650_s7 + $0x440] ss:$28 sps:$4 sm:$0xff]   ;;  %v7974_v43 = vld [vmem:[%s10650_s7 + $0x558] ss:$28 sps:$4 sm:$0xff]  }
 0x42b   :  { %v7999_v45 = vpop.eup %7998  ;;  %7150 = vmatpush3.bf16.msra.mxu1 %v7909_v41  ;;  %6114 = vmatprep.subr.bf16.mxu0 %v7912_v29  ;;  %v7971_v41 = vld [vmem:[%s10650_s7 + $0x408] ss:$28 sps:$4 sm:$0xff]   ;;  %v7972_v29 = vld [vmem:[%s10650_s7 + $0x590] ss:$28 sps:$4 sm:$0xff]  }
 0x42c   :  { %6332 = vst [vmem:[#allocation2 + $0x40] sm:$0xff] %v7999_v45  ;;  %7151 = vmatprep.subr.bf16.mxu1 %v7913_v42  ;;  %v7973_v42 = vld [vmem:[%s10650_s7 + $0x3d0] ss:$28 sps:$4 sm:$0xff]   ;;  %v7976_v45 = vld [vmem:[%s10650_s7 + $0xde0] ss:$28 sps:$4 sm:$0xff]  }
 0x42e   :  { %6115 = vmatpush1.bf16.msra.mxu0 %v7910_v30  ;;  %v7975_v30 = vld [vmem:[%s10650_s7 + $0x398] ss:$28 sps:$4 sm:$0xff]  }
 0x42f   :  { %7152 = vmatpush3.bf16.msra.mxu1 %v7914_v36  ;;  %6116 = vmatprep.subr.bf16.mxu0 %v7917_v37  ;;  %v7977_v36 = vld [vmem:[%s10650_s7 + $0xc20] ss:$28 sps:$4 sm:$0xff]   ;;  %v7978_v37 = vld [vmem:[%s10650_s7 + $0xda8] ss:$28 sps:$4 sm:$0xff]  }
 0x430   :  { %7153 = vmatprep.subr.bf16.mxu1 %v7918_v46  ;;  %v7979_v46 = vld [vmem:[%s10650_s7 + $0xbe8] ss:$28 sps:$4 sm:$0xff]  }
 0x432   :  { %6117 = vmatpush1.bf16.msra.mxu0 %v7915_v47  ;;  %v7980_v47 = vld [vmem:[%s10650_s7 + $0xd70] ss:$28 sps:$4 sm:$0xff]  }
 0x433   :  { %7154 = vmatpush3.bf16.msra.mxu1 %v7919_v48  ;;  %6118 = vmatprep.subr.bf16.mxu0 %v7922_v31  ;;  %v7981_v48 = vld [vmem:[%s10650_s7 + $0xbb0] ss:$28 sps:$4 sm:$0xff]   ;;  %v5835_v31 = vpop.f32.mrf.mxu1 }
 0x434   :  { %7183 = vmatprep.subr.bf16.mxu1 %v7923_v39  ;;  %v7984_v39 = vld [vmem:[%s10650_s7 + $0xd00] ss:$28 sps:$4 sm:$0xff]  }
 0x436   :  { %6178 = vmatmul.mubr.bf16.vlgmr.msra.gmra.mxu1 %v9410_v1  ;;  %6119 = vmatpush2.bf16.msra.mxu0 %v7920_v49  ;;  %v7933_v1 = vld [vmem:[%s10650_s7 + $0x9f0] ss:$28 sps:$4 sm:$0xff]   ;;  %v7985_v49 = vld [vmem:[%s10650_s7 + $0xb40] ss:$28 sps:$4 sm:$0xff]  }
 0x437   :  { %7184 = vmatpush3.bf16.msra.mxu1 %v7924_v50  ;;  %6259 = vmatprep.mubr.bf16.mxu1 %v9620_v8  ;;  %v7934_v8 = vld [vmem:[%s10650_s7 + $0x830] ss:$28 sps:$4 sm:$0xff]   ;;  %v5837_v50 = vpop.f32.mrf.mxu1 }
 0x438   :  { %6120 = vmatprep.subr.bf16.mxu0 %v7927_v51  ;;  %7185 = vmatprep.subr.bf16.mxu1 %v7928_v20  ;;  %v7986_v51 = vld [vmem:[%s10650_s7 + $0xcc8] ss:$28 sps:$4 sm:$0xff]  }
 0x439   :  { %v7987_v20 = vld [vmem:[%s10650_s7 + $0xb08] ss:$28 sps:$4 sm:$0xff]  }
 0x43a   :  { %6121 = vmatpush2.bf16.msra.mxu0 %v7925_v52  ;;  %v5839_v52 = vpop.f32.mrf.mxu1 }
 0x43b   :  { %7186 = vmatpush3.bf16.msra.mxu1 %v7929_v53  ;;  %6122 = vmatprep.subr.bf16.mxu0 %v7932_v56  ;;  %v7988_v56 = vld [vmem:[%s10650_s7 + $0xc90] ss:$28 sps:$4 sm:$0xff]  }
 0x43c   :  { %7187 = vmatprep.subr.bf16.mxu1 %v7933_v1  ;;  %v3301_v1 = vrot.slane %v10303_v15, %v8575_v57  ;;  %v7991_v57 = vld [vmem:[%s10650_s7 + $0xa98] ss:$28 sps:$4 sm:$0xff]  }
 0x43e   :  { %6123 = vmatpush2.bf16.msra.mxu0 %v7930_v54  ;;  %v7989_v54 = vld [vmem:[%s10650_s7 + $0xad0] ss:$28 sps:$4 sm:$0xff]  }
 0x43f   :  { %7188 = vmatpush3.bf16.msra.mxu1 %v7934_v8  ;;  %6124 = vmatprep.subr.bf16.mxu0 %v7937_v55  ;;  %v5841_v8 = vpop.f32.mrf.mxu1 }
 0x440   :  { %7189 = vmatprep.subr.bf16.mxu1 %v7938_v58  ;;  %v7990_v58 = vld [vmem:[%s10650_s7 + $0xc58] ss:$28 sps:$4 sm:$0xff]  }
 0x442   :  { %6125 = vmatpush2.bf16.msra.mxu0 %v7935_v60  ;;  %v3305_v60 = vrot.slane %v10303_v15, %v8581_v59 }
 0x443   :  { %7190 = vmatpush3.bf16.msra.mxu1 %v7939_v61  ;;  %6126 = vmatprep.subr.bf16.mxu0 %v7942_v62  ;;  %v5836_v62 = vadd.f32 %v5835_v31, %v3301_v1 }
 0x444   :  { %7191 = vmatprep.subr.bf16.mxu1 %v7943_v0 }
 0x446   :  { %6127 = vmatpush2.bf16.msra.mxu0 %v7940_v2  ;;  %v5838_v2 = vadd.f32 %v5837_v50, %v3305_v60 }
 0x447   :  { %7192 = vmatpush3.bf16.msra.mxu1 %v7944_v3  ;;  %6128 = vmatprep.subr.bf16.mxu0 %v7947_v4 }
 0x448   :  { %7193 = vmatprep.subr.bf16.mxu1 %v7948_v5  ;;  %v5840_v5 = vadd.f32 %v5839_v52, %v3301_v1 }
 0x44a   :  { %6129 = vmatpush2.bf16.msra.mxu0 %v7945_v6 }
 0x44b   :  { %7194 = vmatpush3.bf16.msra.mxu1 %v7949_v7  ;;  %6130 = vmatprep.subr.bf16.mxu0 %v7952_v9  ;;  %v5842_v9 = vadd.f32 %v5841_v8, %v3305_v60 }
 0x44c   :  { %7195 = vmatprep.subr.bf16.mxu1 %v7953_v11 }
 0x44e   :  { %6131 = vmatpush2.bf16.msra.mxu0 %v7950_v63 }
 0x44f   :  { %7196 = vmatpush3.bf16.msra.mxu1 %v7954_v12  ;;  %6132 = vmatprep.subr.bf16.mxu0 %v7957_v13 }
 0x450   :  { %7197 = vmatprep.subr.bf16.mxu1 %v7958_v14 }
 0x452   :  { %6133 = vmatpush2.bf16.msra.mxu0 %v7955_v16 }
 0x453   :  { %7198 = vmatpush3.bf16.msra.mxu1 %v7959_v17  ;;  %7161 = vmatprep.subr.bf16.mxu0 %v7960_v18 }
 0x455   :  { %6135 = vmatmul.mubr.bf16.vlgmr.msra.gmra.mxu0 %v9739_v25  ;;  %v5878_v53 = vpop.f32.mrf.mxu0  ;;  %v5921_v61 = vpop.f32.mrf.mxu1 }
 0x456   :  { %6260 = vmatmul.mubr.bf16.vlgmr.msra.gmra.mxu1 %v9625_v10  ;;  %7162 = vmatpush3.bf16.msra.mxu0 %v7961_v22  ;;  %v7966_v10 = vld [vmem:[%s10650_s7 + $0x638] ss:$28 sps:$4 sm:$0xff]   ;;  %v5879_v3 = vadd.f32 %v5878_v53, %v5836_v62 }
 0x457   :  { %6218 = vmatprep.mubr.bf16.mxu0 %v9442_v38  ;;  %7163 = vmatprep.subr.bf16.mxu0 %v7962_v24  ;;  %v7967_v38 = vld [vmem:[%s10650_s7 + $0x478] ss:$28 sps:$4 sm:$0xff]   ;;  %v5880_v55 = vpop.f32.mrf.mxu0  ;;  %v5923_v4 = vpop.f32.mrf.mxu1 }
 0x458   :  { %v5881_v6 = vadd.f32 %v5880_v55, %v5838_v2  ;;  %v5922_v11 = vadd.f32 %v5921_v61, %v5879_v3 }
 0x459   :  { %v5882_v0 = vpop.f32.mrf.mxu0  ;;  %v5925_v59 = vpop.f32.mrf.mxu1 }
 0x45a   :  { %7164 = vmatpush3.bf16.msra.mxu0 %v7963_v26  ;;  %v5883_v63 = vadd.f32 %v5882_v0, %v5840_v5  ;;  %v5924_v13 = vadd.f32 %v5923_v4, %v5881_v6 }
 0x45b   :  { %7165 = vmatprep.subr.bf16.mxu0 %v7964_v28  ;;  %v5884_v7 = vpop.f32.mrf.mxu0  ;;  %v5927_v24 = vpop.f32.mrf.mxu1 }
 0x45c   :  { %v5885_v14 = vadd.f32 %v5884_v7, %v5842_v9  ;;  %v5926_v18 = vadd.f32 %v5925_v59, %v5883_v63 }
 0x45e   :  { %7166 = vmatpush3.bf16.msra.mxu0 %v7965_v32  ;;  %v5928_v28 = vadd.f32 %v5927_v24, %v5885_v14  ;;  %v3317_v14 = vrot.slane %v10303_v15, %v2674_v35 }
 0x45f   :  { %7167 = vmatprep.subr.bf16.mxu0 %v7966_v10 }
 0x462   :  { %7168 = vmatpush3.bf16.msra.mxu0 %v7967_v38 }
 0x463   :  { %7169 = vmatprep.subr.bf16.mxu0 %v7968_v40 }
 0x466   :  { %7170 = vmatpush3.bf16.msra.mxu0 %v7969_v33 }
 0x467   :  { %7171 = vmatprep.subr.bf16.mxu0 %v7970_v34 }
 0x46a   :  { %7172 = vmatpush3.bf16.msra.mxu0 %v7971_v41 }
 0x46b   :  { %7173 = vmatprep.subr.bf16.mxu0 %v7972_v29 }
 0x46e   :  { %7174 = vmatpush3.bf16.msra.mxu0 %v7973_v42 }
 0x46f   :  { %7175 = vmatprep.subr.bf16.mxu0 %v7974_v43 }
 0x472   :  { %7176 = vmatpush3.bf16.msra.mxu0 %v7975_v30  ;;  %v3309_v30 = vrot.slane %v10303_v15, %v2666_v19 }
 0x473   :  { %7205 = vmatprep.subr.bf16.mxu0 %v7976_v45 }
 0x475   :  { %6219 = vmatmul.mubr.bf16.vlgmr.msra.gmra.mxu0 %v9447_v44  ;;  %v7982_v44 = vld [vmem:[%s10650_s7 + $0xd38] ss:$28 sps:$4 sm:$0xff]  }
 0x476   :  { %7206 = vmatpush3.bf16.msra.mxu0 %v7977_v36  ;;  %6300 = vmatprep.mubr.bf16.mxu0 %v9731_v21  ;;  %v7983_v21 = vld [vmem:[%s10650_s7 + $0xb78] ss:$28 sps:$4 sm:$0xff]   ;;  %s8043_s7 = smov [#allocation2]  }
 0x477   :  { %7207 = vmatprep.subr.bf16.mxu0 %v7978_v37  ;;  %v3313_v37 = vrot.slane %v10303_v15, %v2670_v23  ;;  %s6343_s12 = sshll.u32 %s8043_s7, 4  ;;  %s6344_s12 = int_to_ptr.vmem [resolvable:$true] %s6343_s12 }
 0x478   :  { %s8020_s13 = scalar_lea.vmem %s6344_s12, 1792  ;;  %p8025_p1 = scmp.lt.s32.totalorder %s6344_s12, %s6344_s12 }
 0x479   :  { %p8021_p0 = scmp.ne.s32.totalorder %s6344_s12, %s8020_s13  ;;  %p8026_p2 = scmp.lt.s32.totalorder %s8020_s13, %s8020_s13 }
 0x47a   :  { %7208 = vmatpush3.bf16.msra.mxu0 %v7979_v46 }
 0x47b   :  { %7209 = vmatprep.subr.bf16.mxu0 %v7980_v47  ;;  %p8027_p3 = por %p8026_p2, %p8025_p1 }
 0x47d   :  { %p8028_p4 = pnand %p8027_p3, %p8021_p0 }
 0x47e   :  { %7210 = vmatpush3.bf16.msra.mxu0 %v7981_v48 }
 0x47f   :  { %7211 = vmatprep.subr.bf16.mxu0 %v7982_v44 }
 0x482   :  { %7212 = vmatpush3.bf16.msra.mxu0 %v7983_v21 }
 0x483   :  { %7213 = vmatprep.subr.bf16.mxu0 %v7984_v39 }
 0x486   :  { %7214 = vmatpush3.bf16.msra.mxu0 %v7985_v49 }
 0x487   :  { %7215 = vmatprep.subr.bf16.mxu0 %v7986_v51 }
 0x48a   :  { %7216 = vmatpush3.bf16.msra.mxu0 %v7987_v20 }
 0x48b   :  { %7217 = vmatprep.subr.bf16.mxu0 %v7988_v56 }
 0x48e   :  { %7218 = vmatpush3.bf16.msra.mxu0 %v7989_v54 }
 0x48f   :  { %7219 = vmatprep.subr.bf16.mxu0 %v7990_v58 }
 0x492   :  { %7220 = vmatpush3.bf16.msra.mxu0 %v7991_v57 }
 0x495   :  { %v5964_v12 = vpop.f32.mrf.mxu0  ;;  %6301 = vmatmul.mubr.bf16.vlgmr.msra.gmra.mxu0 %v9739_v25 }
 0x496   :  { %v5965_v16 = vadd.f32 %v5964_v12, %v5922_v11  ;;  %v6007_v41 = vpop.f32.mrf.mxu1 }
 0x497   :  { %v5966_v17 = vpop.f32.mrf.mxu0  ;;  %v6008_v47 = vadd.f32 %v6007_v41, %v3309_v30 }
 0x498   :  { %8000 = vtanh.f32 %v5965_v16  ;;  %v5967_v22 = vadd.f32 %v5966_v17, %v5924_v13  ;;  %v6009_v29 = vpop.f32.mrf.mxu1 }
 0x499   :  { %v5968_v26 = vpop.f32.mrf.mxu0  ;;  %v6010_v44 = vadd.f32 %v6009_v29, %v3313_v37 }
 0x49a   :  { %8002 = vtanh.f32 %v5967_v22  ;;  %v5969_v32 = vadd.f32 %v5968_v26, %v5926_v18  ;;  %v6011_v42 = vpop.f32.mrf.mxu1 }
 0x49b   :  { %v5970_v10 = vpop.f32.mrf.mxu0  ;;  %v6012_v39 = vadd.f32 %v6011_v42, %v3309_v30 }
 0x49c   :  { %8004 = vtanh.f32 %v5969_v32  ;;  %v5971_v38 = vadd.f32 %v5970_v10, %v5928_v28  ;;  %v6013_v45 = vpop.f32.mrf.mxu1 }
 0x49d   :  { %v6014_v51 = vadd.f32 %v6013_v45, %v3313_v37 }
 0x49e   :  { %8006 = vtanh.f32 %v5971_v38 }
 0x4a5   :  { %v8001_v40 = vpop.eup %8000 }
 0x4a6   :  { %6325 = vst [vmem:[#allocation2 + $0x10] sm:$0xff] %v8001_v40 }
 0x4a7   :  { %v8003_v33 = vpop.eup %8002 }
 0x4a8   :  { %6326 = vst [vmem:[#allocation2 + $0x18] sm:$0xff] %v8003_v33 }
 0x4a9   :  { %v8005_v25 = vpop.eup %8004 }
 0x4aa   :  { %6333 = vst [vmem:[#allocation2 + $0x48] sm:$0xff] %v8005_v25 }
 0x4ab   :  { %v8007_v34 = vpop.eup %8006 }
 0x4ac   :  { %6334 = vst [vmem:[#allocation2 + $0x50] sm:$0xff] %v8007_v34 }
 0x4d5   :  { %v6050_v43 = vpop.f32.mrf.mxu0 }
 0x4d6   :  { %v6093_v46 = vpop.f32.mrf.mxu1  ;;  %v6051_v21 = vadd.f32 %v6050_v43, %v6008_v47 }
 0x4d7   :  { %v6052_v36 = vpop.f32.mrf.mxu0 }
 0x4d8   :  { %v6095_v31 = vpop.f32.mrf.mxu1  ;;  %v6053_v49 = vadd.f32 %v6052_v36, %v6010_v44  ;;  %v6094_v20 = vadd.f32 %v6093_v46, %v6051_v21 }
 0x4d9   :  { %v6054_v48 = vpop.f32.mrf.mxu0 }
 0x4da   :  { %v6055_v52 = vadd.f32 %v6054_v48, %v6012_v39  ;;  %v6097_v53 = vpop.f32.mrf.mxu1  ;;  %v6096_v56 = vadd.f32 %v6095_v31, %v6053_v49 }
 0x4db   :  { %v6056_v50 = vpop.f32.mrf.mxu0 }
 0x4dc   :  { %v6057_v1 = vadd.f32 %v6056_v50, %v6014_v51  ;;  %v6098_v55 = vadd.f32 %v6097_v53, %v6055_v52  ;;  %v6099_v58 = vpop.f32.mrf.mxu1 }
 0x4de   :  { %v6100_v61 = vadd.f32 %v6099_v58, %v6057_v1 }
 0x4f6   :  { %v7155_v6 = vpop.f32.mrf.mxu1 }
 0x4f8   :  { %v7156_v7 = vpop.f32.mrf.mxu1 }
 0x4f9   :  { %v7157_v16 = vadd.f32 %v7156_v7, %v7155_v6 }
 0x4fa   :  { %v7158_v9 = vpop.f32.mrf.mxu1 }
 0x4fb   :  { %v6180_v24 = vadd.f32 %v7157_v16, %v3317_v14 }
 0x4fc   :  { %v7159_v63 = vpop.f32.mrf.mxu1 }
 0x4fd   :  { %v7160_v26 = vadd.f32 %v7159_v63, %v7158_v9 }
 0x4ff   :  { %v6183_v40 = vadd.f32 %v7160_v26, %v3317_v14 }
 0x515   :  { %v6136_v19 = vpop.f32.mrf.mxu0 }
 0x516   :  { %v6137_v54 = vadd.f32 %v6136_v19, %v6094_v20  ;;  %v7199_v12 = vpop.f32.mrf.mxu1 }
 0x517   :  { %v6138_v8 = vpop.f32.mrf.mxu0 }
 0x518   :  { %8008 = vtanh.f32 %v6137_v54  ;;  %v6139_v23 = vadd.f32 %v6138_v8, %v6096_v56  ;;  %v7200_v17 = vpop.f32.mrf.mxu1 }
 0x519   :  { %v6140_v60 = vpop.f32.mrf.mxu0  ;;  %v7201_v33 = vadd.f32 %v7200_v17, %v7199_v12 }
 0x51a   :  { %8010 = vtanh.f32 %v6139_v23  ;;  %v6141_v62 = vadd.f32 %v6140_v60, %v6098_v55  ;;  %v7202_v28 = vpop.f32.mrf.mxu1 }
 0x51b   :  { %v6142_v57 = vpop.f32.mrf.mxu0 }
 0x51c   :  { %8012 = vtanh.f32 %v6141_v62  ;;  %v6143_v0 = vadd.f32 %v6142_v57, %v6100_v61  ;;  %v7203_v25 = vpop.f32.mrf.mxu1 }
 0x51d   :  { %v7204_v43 = vadd.f32 %v7203_v25, %v7202_v28 }
 0x51e   :  { %8014 = vtanh.f32 %v6143_v0 }
 0x525   :  { %v8009_v2 = vpop.eup %8008 }
 0x526   :  { %6327 = vst [vmem:[#allocation2 + $0x20] sm:$0xff] %v8009_v2 }
 0x527   :  { %v8011_v3 = vpop.eup %8010 }
 0x528   :  { %6328 = vst [vmem:[#allocation2 + $0x28] sm:$0xff] %v8011_v3 }
 0x529   :  { %v8013_v4 = vpop.eup %8012 }
 0x52a   :  { %6335 = vst [vmem:[#allocation2 + $0x58] sm:$0xff] %v8013_v4 }
 0x52b   :  { %v8015_v5 = vpop.eup %8014 }
 0x52c   :  { %6336 = vst [vmem:[#allocation2 + $0x60] sm:$0xff] %v8015_v5 }
 0x535   :  { %v7177_v11 = vpop.f32.mrf.mxu0 }
 0x537   :  { %v7178_v59 = vpop.f32.mrf.mxu0 }
 0x538   :  { %v7179_v18 = vadd.f32 %v7178_v59, %v7177_v11 }
 0x539   :  { %v7180_v13 = vpop.f32.mrf.mxu0 }
 0x53a   :  { %v6221_v32 = vadd.f32 %v7179_v18, %v6180_v24 }
 0x53b   :  { %v7181_v22 = vpop.f32.mrf.mxu0 }
 0x53c   :  { %v7182_v10 = vadd.f32 %v7181_v22, %v7180_v13  ;;  %v6262_v29 = vadd.f32 %v7201_v33, %v6221_v32 }
 0x53e   :  { %v6224_v41 = vadd.f32 %v7182_v10, %v6183_v40 }
 0x540   :  { %v6265_v30 = vadd.f32 %v7204_v43, %v6224_v41 }
 0x555   :  { %v7221_v38 = vpop.f32.mrf.mxu0 }
 0x557   :  { %v7222_v34 = vpop.f32.mrf.mxu0 }
 0x558   :  { %v7223_v42 = vadd.f32 %v7222_v34, %v7221_v38 }
 0x559   :  { %v7224_v27 = vpop.f32.mrf.mxu0 }
 0x55a   :  { %v6303_v35 = vadd.f32 %v7223_v42, %v6262_v29 }
 0x55b   :  { %v7225_v15 = vpop.f32.mrf.mxu0 }
 0x55c   :  { %8016 = vtanh.f32 %v6303_v35  ;;  %v7226_v45 = vadd.f32 %v7225_v15, %v7224_v27 }
 0x55e   :  { %v6306_v36 = vadd.f32 %v7226_v45, %v6265_v30 }
 0x560   :  { %8018 = vtanh.f32 %v6306_v36 }
 0x569   :  { %v8017_v37 = vpop.eup %8016 }
 0x56a   :  { %6330 = vst.msk [vmem:[#allocation2 + $0x30] sm:$0xff] %vm6329_vm0, %v8017_v37 }
 0x56d   :  { %v8019_v46 = vpop.eup %8018 }
 0x56e   :  { %6337 = vst.msk [vmem:[#allocation2 + $0x68] sm:$0xff] %vm6329_vm0, %v8019_v46 }
 0x56f   :  { %8031 = shalt.err (!%p8028_p4)
}
 0x570   :  { %s8044_s14 = smov 896   ;;  %s8045_s15 = smov 56  }
 0x571   :  { %6349 = dma.vmem_to_hbm [thread:$0]  %s6344_s12, 1792, %s10652_s9, [#allocation3], %s8044_s14, %s8044_s14, %s8045_s15  }
 0x572   :  { %8040 = dma.done.wait [#allocation3], 1792  }
 0x573   :  { %8041 = vsyncadd [#allocation3], 4294965504 }
 0x574   :  { %6353 = vsyncpa [#allocation3], 1 }

</bundles_post_ra>
